<compile_context>
chip_gen: v5e
topology: v5e:2x2
jax: 0.10.0
libtpu: 0.0.40
codegen_flags: <defaults>
</compile_context>

<pallas_src>
import numpy as np
import jax
import jax.numpy as jnp
from jax.experimental import pallas as pl
from jax.experimental.pallas import tpu as pltpu

BN_EPS = 0.8           # PyTorch BatchNorm*(C, 0.8) -> eps = 0.8
N_ROWS = 30            # image is (N, 1, 30, 3)
N_TAPS = 3
N_TAPS_PAD = 8         # conv taps zero-padded 3 -> 8 so the conv is a K=8 matmul

CELL_ROW0, CELL_H = 0, 2      # image rows 0:2   -> model_cell
MG_ROW0, MG_H = 2, 8          # image rows 2:10  -> model_mg
O_ROW0, O_H = 18, 12          # image rows 18:30 -> model_o

OUT_W = 128                          # lane-dense packed output slab width
MG_SM_OFF = 0                        # 16 cols, layout col = 2*h + c
O_SM_OFF = MG_SM_OFF + 2 * MG_H      # 24 cols
MG_CAT_OFF = O_SM_OFF + 2 * O_H      # 8 cols
O_CAT_OFF = MG_CAT_OFF + 8           # 12 cols
CELL_OFF = O_CAT_OFF + 12            # 1 col
USED_W = CELL_OFF + 1                # = 61


# ----------------------------------------------------------------------------
# in-kernel math
# ----------------------------------------------------------------------------
def _lrelu(x, alpha):
    return jnp.where(x > 0, x, alpha * x)


def _dot(x, w_ref, b_ref):
    """bf16 MXU matmul with f32 accumulation + f32 bias (elementwise in f32)."""
    return jnp.dot(x.astype(jnp.bfloat16), w_ref[...],
                   preferred_element_type=jnp.float32) + b_ref[...]


def _mlp3(x, wr, a1, a2, final):
    w1, b1, w2, b2, w3, b3 = wr
    h = _lrelu(_dot(x, w1, b1), a1)
    h = _lrelu(_dot(h, w2, b2), a2)
    y = _dot(h, w3, b3)
    if final == "softmax":
        m = jnp.max(y, axis=-1, keepdims=True)
        e = jnp.exp(y - m)
        return e * pl.reciprocal(jnp.sum(e, axis=-1, keepdims=True), approx=True)
    return pl.reciprocal(1.0 + jnp.exp(-y), approx=True)    # sigmoid


# ----------------------------------------------------------------------------
# the single fused kernel
# ----------------------------------------------------------------------------
def qhead_kernel(x_mg_ref, x_o_ref, x_cell_ref, *refs):
    out_ref = refs[-1]
    w = refs[:-1]
    w_mg, w_o = w[0:8], w[8:16]
    w_cell = w[16:20]
    w_lmg, w_lo, w_lc = w[20:26], w[26:32], w[32:38]

    bt = out_ref.shape[0]                       # batch rows in this block

    def branch4(x_ref, wr, rows):
        """Merged-row Conv(1,3)+LReLU -> 2x[1x1+LReLU] -> 1x1 (2 ch). BN folded."""
        w1, b1, w2, b2, w3, b3, w4, b4 = wr
        x = x_ref[...].reshape(rows * bt, N_TAPS_PAD)   # free leading-dim merge
        h = _lrelu(_dot(x, w1, b1), 0.2)                # (rows*bt, 512)
        h = _lrelu(_dot(h, w2, b2), 0.2)                # (rows*bt, 256)
        h = _lrelu(_dot(h, w3, b3), 0.2)                # (rows*bt, 256)
        y = _dot(h, w4, b4)                             # (rows*bt, 2)
        # Softmax2d over 2 channels == sigmoid(y0 - y1): VPU/EUP only.
        p0 = pl.reciprocal(1.0 + jnp.exp(y[:, 1:2] - y[:, 0:1]), approx=True)
        sm = jnp.concatenate([p0, 1.0 - p0], axis=-1)   # (rows*bt, 2)
        return y, sm

    y_mg, sm_mg = branch4(x_mg_ref, w_mg, MG_H)
    y_o, sm_o = branch4(x_o_ref, w_o, O_H)

    # cell branch: Conv(1,3)+LReLU -> 1x1+LReLU (BN folded), merged rows.
    cw1, cb1, cw2, cb2 = w_cell
    xc = x_cell_ref[...].reshape(CELL_H * bt, N_TAPS_PAD)
    hc = _lrelu(_dot(xc, cw1, cb1), 0.2)                # (2*bt, 64)
    hc = _lrelu(_dot(hc, cw2, cb2), 0.2)                # (2*bt, 64)

    # Per-sample feature repack (rows: sublanes -> lanes); these are needed as
    # lane-contiguous matmul LHS for the label heads.  Kernel col = n_ch*h + c;
    # the label-head W1 rows were permuted host-side to match torch.flatten.
    feat_mg = jnp.concatenate(
        [y_mg[h * bt:(h + 1) * bt, :] for h in range(MG_H)], axis=-1)     # (bt, 16)
    feat_o = jnp.concatenate(
        [y_o[h * bt:(h + 1) * bt, :] for h in range(O_H)], axis=-1)       # (bt, 24)
    feat_c = jnp.concatenate(
        [hc[h * bt:(h + 1) * bt, :] for h in range(CELL_H)], axis=-1)     # (bt, 128)

    mg_cat = _mlp3(feat_mg, w_lmg, 0.2, 0.2, "softmax")        # (bt, 8)
    o_cat = _mlp3(feat_o, w_lo, 0.2, 0.2, "softmax")           # (bt, 12)
    cell_label = _mlp3(feat_c, w_lc, 0.2, 0.01, "sigmoid")     # (bt, 1)

    # Lane-sliced stores into the lane-dense (bt, 128) output block (the HBM
    # writeback is the full 128-wide block DMA regardless).
    for h in range(MG_H):
        out_ref[:, MG_SM_OFF + 2 * h:MG_SM_OFF + 2 * h + 2] = \
            sm_mg[h * bt:(h + 1) * bt, :]
    for h in range(O_H):
        out_ref[:, O_SM_OFF + 2 * h:O_SM_OFF + 2 * h + 2] = \
            sm_o[h * bt:(h + 1) * bt, :]
    out_ref[:, MG_CAT_OFF:MG_CAT_OFF + 8] = mg_cat
    out_ref[:, O_CAT_OFF:O_CAT_OFF + 12] = o_cat
    out_ref[:, CELL_OFF:CELL_OFF + 1] = cell_label
    out_ref[:, USED_W:OUT_W] = jnp.zeros((bt, OUT_W - USED_W), jnp.float32)


# ----------------------------------------------------------------------------
# deterministic parameter init (PyTorch-default-style) + eval-mode BN folding
# ----------------------------------------------------------------------------
def _init_linear(key, fan_in, fan_out):
    kw, kb = jax.random.split(key)
    bound = 1.0 / float(np.sqrt(fan_in))
    w = jax.random.uniform(kw, (fan_in, fan_out), jnp.float32, -bound, bound)
    b = jax.random.uniform(kb, (1, fan_out), jnp.float32, -bound, bound)
    return w, b


def _init_bn(key, c):
    kg, kb, km, kv = jax.random.split(key, 4)
    return dict(
        gamma=1.0 + 0.1 * jax.random.normal(kg, (1, c), jnp.float32),
        beta=0.1 * jax.random.normal(kb, (1, c), jnp.float32),
        mean=0.1 * jax.random.normal(km, (1, c), jnp.float32),
        var=jnp.abs(jax.random.normal(kv, (1, c), jnp.float32)) + 0.5)


def _init_branch4(key, c1, c2):
    ks = jax.random.split(key, 7)
    w1, b1 = _init_linear(ks[0], 3, c1)
    w2, b2 = _init_linear(ks[2], c1, c2)
    w3, b3 = _init_linear(ks[4], c2, c2)
    w4, b4 = _init_linear(ks[6], c2, 2)
    return dict(w1=w1, b1=b1, bn1=_init_bn(ks[1], c1),
                w2=w2, b2=b2, bn2=_init_bn(ks[3], c2),
                w3=w3, b3=b3, bn3=_init_bn(ks[5], c2),
                w4=w4, b4=b4)


def _init_branch2(key, c):
    ks = jax.random.split(key, 4)
    w1, b1 = _init_linear(ks[0], 3, c)
    w2, b2 = _init_linear(ks[2], c, c)
    return dict(w1=w1, b1=b1, bn1=_init_bn(ks[1], c),
                w2=w2, b2=b2, bn2=_init_bn(ks[3], c))


def _init_mlp3(key, d_in, d_h1, d_h2, d_out):
    ks = jax.random.split(key, 5)
    w1, b1 = _init_linear(ks[0], d_in, d_h1)
    w2, b2 = _init_linear(ks[2], d_h1, d_h2)
    w3, b3 = _init_linear(ks[4], d_h2, d_out)
    return dict(w1=w1, b1=b1, bn1=_init_bn(ks[1], d_h1),
                w2=w2, b2=b2, bn2=_init_bn(ks[3], d_h2),
                w3=w3, b3=b3)


def init_params(key):
    k = jax.random.split(key, 6)
    return {
        "mg": _init_branch4(k[0], 512, 256),
        "o": _init_branch4(k[1], 512, 256),
        "cell": _init_branch2(k[2], 64),
        "label_mg": _init_mlp3(k[3], 16, 300, 100, 8),
        "label_o": _init_mlp3(k[4], 24, 300, 100, 12),
        "label_c": _init_mlp3(k[5], 128, 100, 50, 1),
    }


# TODO(synk): BatchNorm is implemented in eval mode (running stats folded into
# the preceding conv/linear); training-mode batch statistics are not modeled.
def fold_params(raw):
    def fold(w, b, bn):
        s = bn["gamma"] / jnp.sqrt(bn["var"] + BN_EPS)
        t = bn["beta"] - bn["mean"] * s
        return w * s, b * s + t

    out = {}
    for name in ("mg", "o"):
        r = raw[name]
        w1, b1 = fold(r["w1"], r["b1"], r["bn1"])
        w2, b2 = fold(r["w2"], r["b2"], r["bn2"])
        w3, b3 = fold(r["w3"], r["b3"], r["bn3"])
        out[name] = dict(w1=w1, b1=b1, w2=w2, b2=b2, w3=w3, b3=b3,
                         w4=r["w4"], b4=r["b4"])
    r = raw["cell"]
    w1, b1 = fold(r["w1"], r["b1"], r["bn1"])
    w2, b2 = fold(r["w2"], r["b2"], r["bn2"])
    out["cell"] = dict(w1=w1, b1=b1, w2=w2, b2=b2)
    for name in ("label_mg", "label_o", "label_c"):
        r = raw[name]
        w1, b1 = fold(r["w1"], r["b1"], r["bn1"])
        w2, b2 = fold(r["w2"], r["b2"], r["bn2"])
        out[name] = dict(w1=w1, b1=b1, w2=w2, b2=b2, w3=r["w3"], b3=r["b3"])
    return out


def _label_perm(h_count, c_count):
    # kernel feature col j = h*c_count + c ; torch flatten index = c*h_count + h
    return np.array([(j % c_count) * h_count + (j // c_count)
                     for j in range(h_count * c_count)], dtype=np.int32)


def pack_for_kernel(folded):
    """Flat kernel-ordered weight list.  Matmul operands are cast to bf16,
    conv taps padded 3->8, label-head W1 rows permuted to the kernel's
    h-major feature layout (exact re-indexing of torch.flatten).  Biases f32."""
    def mx(w):
        return w.astype(jnp.bfloat16)

    def conv_w(w):   # (3, C) -> (8, C) bf16 with zero tap rows
        return jnp.pad(w, ((0, N_TAPS_PAD - N_TAPS), (0, 0))).astype(jnp.bfloat16)

    packed = []
    for name in ("mg", "o"):
        b = folded[name]
        packed += [conv_w(b["w1"]), b["b1"], mx(b["w2"]), b["b2"],
                   mx(b["w3"]), b["b3"], mx(b["w4"]), b["b4"]]
    c = folded["cell"]
    packed += [conv_w(c["w1"]), c["b1"], mx(c["w2"]), c["b2"]]
    for name, hc, cc in (("label_mg", MG_H, 2), ("label_o", O_H, 2),
                         ("label_c", CELL_H, 64)):
        m = folded[name]
        perm = _label_perm(hc, cc)
        packed += [mx(m["w1"][perm, :]), m["b1"], mx(m["w2"]), m["b2"],
                   mx(m["w3"]), m["b3"]]
    return packed


# ----------------------------------------------------------------------------
# fused Pallas forward + wrapper-side layout plumbing
# ----------------------------------------------------------------------------
def _round_up(x, m):
    return (x + m - 1) // m * m


def qhead_forward(image, packed, block_rows=256,
                  vmem_limit_bytes=48 * 1024 * 1024):
    """`packed` comes from pack_for_kernel(fold_params(init_params(...))).

    Defaults are tuned for v7x (64 MiB VMEM, 2 TCs): block_rows <= 256 and at
    least 2 grid steps whenever the batch allows it.  On v5e/v6e (128 MiB VMEM)
    raising block_rows (e.g. 1024) and vmem_limit_bytes is profitable.
    """
    n = image.shape[0]
    assert image.shape[1:] == (1, N_ROWS, N_TAPS), image.shape

    # Rows per grid step: multiple of 8, <= block_rows, and small enough that
    # the grid has >= 2 steps when n > 8 (lets v7x shard across both TCs).
    half = _round_up(-(-n // 2), 8)
    bt = max(8, min(_round_up(block_rows, 8), half))
    npad = _round_up(n, bt)
    grid_steps = npad // bt

    # Per-group input slabs: (rows, npad, 8) with taps zero-padded 3->8 so the
    # kernel's row merge is a free leading-dim reshape and the (1,3) conv is
    # one K=8 MXU matmul per branch.
    def group_input(r0, rows):
        g = jnp.transpose(image[:, 0, r0:r0 + rows, :], (1, 0, 2))   # (rows,n,3)
        return jnp.pad(g, ((0, 0), (0, npad - n), (0, N_TAPS_PAD - N_TAPS)))

    x_mg = group_input(MG_ROW0, MG_H)
    x_o = group_input(O_ROW0, O_H)
    x_cell = group_input(CELL_ROW0, CELL_H)

    in_specs = [
        pl.BlockSpec((MG_H, bt, N_TAPS_PAD), lambda i: (0, i, 0)),
        pl.BlockSpec((O_H, bt, N_TAPS_PAD), lambda i: (0, i, 0)),
        pl.BlockSpec((CELL_H, bt, N_TAPS_PAD), lambda i: (0, i, 0)),
    ]
    in_specs += [pl.BlockSpec(wa.shape, lambda i: (0, 0)) for wa in packed]

    per_sample_flops = 2 * (
        (MG_H + O_H) * (N_TAPS_PAD * 512 + 512 * 256 + 256 * 256 + 256 * 2)
        + CELL_H * (N_TAPS_PAD * 64 + 64 * 64)
        + (16 * 300 + 300 * 100 + 100 * 8)
        + (24 * 300 + 300 * 100 + 100 * 12)
        + (128 * 100 + 100 * 50 + 50 * 1))
    weight_bytes = sum(int(wa.size) * int(wa.dtype.itemsize) for wa in packed)
    cost = pl.CostEstimate(
        flops=per_sample_flops * npad,
        transcendentals=(MG_H + O_H + 8 + 12 + 4) * npad,
        bytes_accessed=4 * int(x_mg.size + x_o.size + x_cell.size)
        + 4 * npad * OUT_W + weight_bytes * grid_steps)

    slab = pl.pallas_call(
        qhead_kernel,
        out_shape=jax.ShapeDtypeStruct((npad, OUT_W), jnp.float32),
        grid=(grid_steps,),
        in_specs=in_specs,
        out_specs=pl.BlockSpec((bt, OUT_W), lambda i: (i, 0)),
        compiler_params=pltpu.CompilerParams(
            dimension_semantics=("parallel",),        # megacore-friendly
            vmem_limit_bytes=vmem_limit_bytes),
        cost_estimate=cost,
    )(x_mg, x_o, x_cell, *packed)

    slab = slab[:n]
    mg_sm = slab[:, MG_SM_OFF:MG_SM_OFF + 2 * MG_H]
    o_sm = slab[:, O_SM_OFF:O_SM_OFF + 2 * O_H]
    mg_output_sm = jnp.transpose(mg_sm.reshape(n, MG_H, 2), (0, 2, 1))[..., None]
    o_output_sm = jnp.transpose(o_sm.reshape(n, O_H, 2), (0, 2, 1))[..., None]
    mg_cat = slab[:, MG_CAT_OFF:MG_CAT_OFF + 8]
    o_cat = slab[:, O_CAT_OFF:O_CAT_OFF + 12]
    cell_label = slab[:, CELL_OFF:CELL_OFF + 1]
    return mg_output_sm, o_output_sm, mg_cat, o_cat, cell_label


# ----------------------------------------------------------------------------
# pure-JAX f32 reference (unfused, torch-style NCHW flatten, standard softmax)
# ----------------------------------------------------------------------------
def qhead_forward_ref(image, folded):
    n = image.shape[0]
    x = image[:, 0]                                        # (N, 30, 3)
    cell = x[:, CELL_ROW0:CELL_ROW0 + CELL_H].reshape(-1, 3)
    mg = x[:, MG_ROW0:MG_ROW0 + MG_H].reshape(-1, 3)
    o = x[:, O_ROW0:O_ROW0 + O_H].reshape(-1, 3)

    def lrelu(v, a):
        return jnp.where(v > 0, v, a * v)

    def conv13(r, w, b):
        return r[:, 0:1] * w[0:1] + r[:, 1:2] * w[1:2] + r[:, 2:3] * w[2:3] + b

    def branch4(r, p):
        h = lrelu(conv13(r, p["w1"], p["b1"]), 0.2)
        h = lrelu(jnp.dot(h, p["w2"], preferred_element_type=jnp.float32) + p["b2"], 0.2)
        h = lrelu(jnp.dot(h, p["w3"], preferred_element_type=jnp.float32) + p["b3"], 0.2)
        return jnp.dot(h, p["w4"], preferred_element_type=jnp.float32) + p["b4"]

    def branch2(r, p):
        h = lrelu(conv13(r, p["w1"], p["b1"]), 0.2)
        return lrelu(jnp.dot(h, p["w2"], preferred_element_type=jnp.float32) + p["b2"], 0.2)

    def softmax(y):
        m = jnp.max(y, axis=-1, keepdims=True)
        e = jnp.exp(y - m)
        return e / jnp.sum(e, axis=-1, keepdims=True)

    def mlp(xf, p, a1, a2, final):
        h = lrelu(jnp.dot(xf, p["w1"], preferred_element_type=jnp.float32) + p["b1"], a1)
        h = lrelu(jnp.dot(h, p["w2"], preferred_element_type=jnp.float32) + p["b2"], a2)
        y = jnp.dot(h, p["w3"], preferred_element_type=jnp.float32) + p["b3"]
        return softmax(y) if final == "softmax" else 1.0 / (1.0 + jnp.exp(-y))

    cell_out = branch2(cell, folded["cell"])       # (N*2, 64)
    mg_out = branch4(mg, folded["mg"])             # (N*8, 2)
    o_out = branch4(o, folded["o"])                # (N*12, 2)

    def to_nchw(y, hh):   # (N*hh, C) -> (N, C, hh, 1)
        return jnp.transpose(y.reshape(n, hh, -1), (0, 2, 1))[..., None]

    def flat(y, hh):      # torch.flatten(NCHW, start_dim=1) -> (N, C*hh)
        return jnp.transpose(y.reshape(n, hh, -1), (0, 2, 1)).reshape(n, -1)

    return (to_nchw(softmax(mg_out), MG_H),
            to_nchw(softmax(o_out), O_H),
            mlp(flat(mg_out, MG_H), folded["label_mg"], 0.2, 0.2, "softmax"),
            mlp(flat(o_out, O_H), folded["label_o"], 0.2, 0.2, "softmax"),
            mlp(flat(cell_out, CELL_H), folded["label_c"], 0.2, 0.01, "sigmoid"))


if __name__ == "__main__":
    key = jax.random.PRNGKey(0)
    k_img, k_img2, k_par = jax.random.split(key, 3)

    raw = init_params(k_par)
    folded = fold_params(raw)          # exact eval-mode BN algebra (f32)
    packed = pack_for_kernel(folded)   # bf16 MXU operands, padded conv taps

    fwd = jax.jit(qhead_forward)

    def check(image):
        nb = image.shape[0]
        outs = jax.block_until_ready(fwd(image, packed))
        refs = jax.block_until_ready(qhead_forward_ref(image, folded))
        expected = [(nb, 2, MG_H, 1), (nb, 2, O_H, 1), (nb, 8), (nb, 12), (nb, 1)]
        for got, ref, shp in zip(outs, refs, expected):
            assert got.shape == shp, (got.shape, shp)
            # bf16 MXU operands (f32 accumulation) -> relaxed tolerance.
            np.testing.assert_allclose(np.asarray(got), np.asarray(ref),
                                       rtol=2e-2, atol=2e-2)

    # Input shape implied by the module: Linear(16) <- 2ch*8rows,
    # Linear(24) <- 2ch*12rows, Linear(128) <- 64ch*2rows  =>  (N, 1, 30, 3).
    # batch=2  : single grid step.
    check(jax.random.normal(k_img, (2, 1, N_ROWS, N_TAPS), jnp.float32))
    # batch=19 : two parallel grid steps + padded tail rows.
    check(jax.random.normal(k_img2, (19, 1, N_ROWS, N_TAPS), jnp.float32))

    print("KERNEL_OK")
</pallas_src>

<mosaic_0001>
module attributes {stable_mosaic.version = 11 : i64} {
  func.func @qhead_kernel(%arg0: i32, %arg1: memref<8x8x8xf32, #tpu.memory_space<vmem>>, %arg2: memref<12x8x8xf32, #tpu.memory_space<vmem>>, %arg3: memref<2x8x8xf32, #tpu.memory_space<vmem>>, %arg4: memref<8x512xbf16, #tpu.memory_space<vmem>>, %arg5: memref<1x512xf32, #tpu.memory_space<vmem>>, %arg6: memref<512x256xbf16, #tpu.memory_space<vmem>>, %arg7: memref<1x256xf32, #tpu.memory_space<vmem>>, %arg8: memref<256x256xbf16, #tpu.memory_space<vmem>>, %arg9: memref<1x256xf32, #tpu.memory_space<vmem>>, %arg10: memref<256x2xbf16, #tpu.memory_space<vmem>>, %arg11: memref<1x2xf32, #tpu.memory_space<vmem>>, %arg12: memref<8x512xbf16, #tpu.memory_space<vmem>>, %arg13: memref<1x512xf32, #tpu.memory_space<vmem>>, %arg14: memref<512x256xbf16, #tpu.memory_space<vmem>>, %arg15: memref<1x256xf32, #tpu.memory_space<vmem>>, %arg16: memref<256x256xbf16, #tpu.memory_space<vmem>>, %arg17: memref<1x256xf32, #tpu.memory_space<vmem>>, %arg18: memref<256x2xbf16, #tpu.memory_space<vmem>>, %arg19: memref<1x2xf32, #tpu.memory_space<vmem>>, %arg20: memref<8x64xbf16, #tpu.memory_space<vmem>>, %arg21: memref<1x64xf32, #tpu.memory_space<vmem>>, %arg22: memref<64x64xbf16, #tpu.memory_space<vmem>>, %arg23: memref<1x64xf32, #tpu.memory_space<vmem>>, %arg24: memref<16x300xbf16, #tpu.memory_space<vmem>>, %arg25: memref<1x300xf32, #tpu.memory_space<vmem>>, %arg26: memref<300x100xbf16, #tpu.memory_space<vmem>>, %arg27: memref<1x100xf32, #tpu.memory_space<vmem>>, %arg28: memref<100x8xbf16, #tpu.memory_space<vmem>>, %arg29: memref<1x8xf32, #tpu.memory_space<vmem>>, %arg30: memref<24x300xbf16, #tpu.memory_space<vmem>>, %arg31: memref<1x300xf32, #tpu.memory_space<vmem>>, %arg32: memref<300x100xbf16, #tpu.memory_space<vmem>>, %arg33: memref<1x100xf32, #tpu.memory_space<vmem>>, %arg34: memref<100x12xbf16, #tpu.memory_space<vmem>>, %arg35: memref<1x12xf32, #tpu.memory_space<vmem>>, %arg36: memref<128x100xbf16, #tpu.memory_space<vmem>>, %arg37: memref<1x100xf32, #tpu.memory_space<vmem>>, %arg38: memref<100x50xbf16, #tpu.memory_space<vmem>>, %arg39: memref<1x50xf32, #tpu.memory_space<vmem>>, %arg40: memref<50x1xbf16, #tpu.memory_space<vmem>>, %arg41: memref<1x1xf32, #tpu.memory_space<vmem>>, %arg42: memref<8x128xf32, #tpu.memory_space<vmem>>) attributes {dimension_semantics = [#tpu.dimension_semantics<parallel>], iteration_bounds = array<i64: 1>, scalar_prefetch = 0 : i64, scratch_operands = 0 : i64, tpu.core_type = #tpu.core_type<tc>, window_params = [{transform_indices = @transform_0, window_bounds = array<i64: 8, 8, 8>}, {transform_indices = @transform_1, window_bounds = array<i64: 12, 8, 8>}, {transform_indices = @transform_2, window_bounds = array<i64: 2, 8, 8>}, {pipeline_mode = #tpu.pipeline_mode<synchronous>, transform_indices = @transform_3, window_bounds = array<i64: 8, 512>}, {pipeline_mode = #tpu.pipeline_mode<synchronous>, transform_indices = @transform_4, window_bounds = array<i64: 1, 512>}, {pipeline_mode = #tpu.pipeline_mode<synchronous>, transform_indices = @transform_5, window_bounds = array<i64: 512, 256>}, {pipeline_mode = #tpu.pipeline_mode<synchronous>, transform_indices = @transform_6, window_bounds = array<i64: 1, 256>}, {pipeline_mode = #tpu.pipeline_mode<synchronous>, transform_indices = @transform_7, window_bounds = array<i64: 256, 256>}, {pipeline_mode = #tpu.pipeline_mode<synchronous>, transform_indices = @transform_8, window_bounds = array<i64: 1, 256>}, {pipeline_mode = #tpu.pipeline_mode<synchronous>, transform_indices = @transform_9, window_bounds = array<i64: 256, 2>}, {pipeline_mode = #tpu.pipeline_mode<synchronous>, transform_indices = @transform_10, window_bounds = array<i64: 1, 2>}, {pipeline_mode = #tpu.pipeline_mode<synchronous>, transform_indices = @transform_11, window_bounds = array<i64: 8, 512>}, {pipeline_mode = #tpu.pipeline_mode<synchronous>, transform_indices = @transform_12, window_bounds = array<i64: 1, 512>}, {pipeline_mode = #tpu.pipeline_mode<synchronous>, transform_indices = @transform_13, window_bounds = array<i64: 512, 256>}, {pipeline_mode = #tpu.pipeline_mode<synchronous>, transform_indices = @transform_14, window_bounds = array<i64: 1, 256>}, {pipeline_mode = #tpu.pipeline_mode<synchronous>, transform_indices = @transform_15, window_bounds = array<i64: 256, 256>}, {pipeline_mode = #tpu.pipeline_mode<synchronous>, transform_indices = @transform_16, window_bounds = array<i64: 1, 256>}, {pipeline_mode = #tpu.pipeline_mode<synchronous>, transform_indices = @transform_17, window_bounds = array<i64: 256, 2>}, {pipeline_mode = #tpu.pipeline_mode<synchronous>, transform_indices = @transform_18, window_bounds = array<i64: 1, 2>}, {pipeline_mode = #tpu.pipeline_mode<synchronous>, transform_indices = @transform_19, window_bounds = array<i64: 8, 64>}, {pipeline_mode = #tpu.pipeline_mode<synchronous>, transform_indices = @transform_20, window_bounds = array<i64: 1, 64>}, {pipeline_mode = #tpu.pipeline_mode<synchronous>, transform_indices = @transform_21, window_bounds = array<i64: 64, 64>}, {pipeline_mode = #tpu.pipeline_mode<synchronous>, transform_indices = @transform_22, window_bounds = array<i64: 1, 64>}, {pipeline_mode = #tpu.pipeline_mode<synchronous>, transform_indices = @transform_23, window_bounds = array<i64: 16, 300>}, {pipeline_mode = #tpu.pipeline_mode<synchronous>, transform_indices = @transform_24, window_bounds = array<i64: 1, 300>}, {pipeline_mode = #tpu.pipeline_mode<synchronous>, transform_indices = @transform_25, window_bounds = array<i64: 300, 100>}, {pipeline_mode = #tpu.pipeline_mode<synchronous>, transform_indices = @transform_26, window_bounds = array<i64: 1, 100>}, {pipeline_mode = #tpu.pipeline_mode<synchronous>, transform_indices = @transform_27, window_bounds = array<i64: 100, 8>}, {pipeline_mode = #tpu.pipeline_mode<synchronous>, transform_indices = @transform_28, window_bounds = array<i64: 1, 8>}, {pipeline_mode = #tpu.pipeline_mode<synchronous>, transform_indices = @transform_29, window_bounds = array<i64: 24, 300>}, {pipeline_mode = #tpu.pipeline_mode<synchronous>, transform_indices = @transform_30, window_bounds = array<i64: 1, 300>}, {pipeline_mode = #tpu.pipeline_mode<synchronous>, transform_indices = @transform_31, window_bounds = array<i64: 300, 100>}, {pipeline_mode = #tpu.pipeline_mode<synchronous>, transform_indices = @transform_32, window_bounds = array<i64: 1, 100>}, {pipeline_mode = #tpu.pipeline_mode<synchronous>, transform_indices = @transform_33, window_bounds = array<i64: 100, 12>}, {pipeline_mode = #tpu.pipeline_mode<synchronous>, transform_indices = @transform_34, window_bounds = array<i64: 1, 12>}, {pipeline_mode = #tpu.pipeline_mode<synchronous>, transform_indices = @transform_35, window_bounds = array<i64: 128, 100>}, {pipeline_mode = #tpu.pipeline_mode<synchronous>, transform_indices = @transform_36, window_bounds = array<i64: 1, 100>}, {pipeline_mode = #tpu.pipeline_mode<synchronous>, transform_indices = @transform_37, window_bounds = array<i64: 100, 50>}, {pipeline_mode = #tpu.pipeline_mode<synchronous>, transform_indices = @transform_38, window_bounds = array<i64: 1, 50>}, {pipeline_mode = #tpu.pipeline_mode<synchronous>, transform_indices = @transform_39, window_bounds = array<i64: 50, 1>}, {pipeline_mode = #tpu.pipeline_mode<synchronous>, transform_indices = @transform_40, window_bounds = array<i64: 1, 1>}, {transform_indices = @transform_41, window_bounds = array<i64: 8, 128>}]} {
    %c0 = arith.constant 0 : index
    %c0_0 = arith.constant 0 : index
    %c0_1 = arith.constant 0 : index
    %0 = vector.load %arg1[%c0, %c0_0, %c0_1] : memref<8x8x8xf32, #tpu.memory_space<vmem>>, vector<8x8x8xf32>
    %1 = vector.shape_cast %0 : vector<8x8x8xf32> to vector<64x8xf32>
    %2 = arith.truncf %1 : vector<64x8xf32> to vector<64x8xbf16>
    %c0_2 = arith.constant 0 : index
    %c0_3 = arith.constant 0 : index
    %3 = vector.load %arg4[%c0_2, %c0_3] : memref<8x512xbf16, #tpu.memory_space<vmem>>, vector<8x512xbf16>
    %cst = arith.constant dense<0.000000e+00> : vector<64x512xf32>
    %4 = tpu.matmul %2, %3, %cst {dimension_numbers = #tpu.dot_dimension_numbers<[1], [0], [0], [1], [0, 0, 1, 1], [], []>} : vector<64x8xbf16>, vector<8x512xbf16>, vector<64x512xf32> -> vector<64x512xf32>
    %c0_4 = arith.constant 0 : index
    %c0_5 = arith.constant 0 : index
    %5 = vector.load %arg5[%c0_4, %c0_5] : memref<1x512xf32, #tpu.memory_space<vmem>>, vector<1x512xf32>
    %6 = vector.broadcast %5 : vector<1x512xf32> to vector<64x512xf32>
    %7 = arith.addf %4, %6 : vector<64x512xf32>
    %cst_6 = arith.constant 0.000000e+00 : f32
    %8 = vector.broadcast %cst_6 : f32 to vector<64x512xf32>
    %9 = arith.cmpf ogt, %7, %8 : vector<64x512xf32>
    %cst_7 = arith.constant 2.000000e-01 : f32
    %10 = vector.broadcast %cst_7 : f32 to vector<64x512xf32>
    %11 = arith.mulf %10, %7 : vector<64x512xf32>
    %12 = arith.select %9, %7, %11 : vector<64x512xi1>, vector<64x512xf32>
    %13 = arith.truncf %12 : vector<64x512xf32> to vector<64x512xbf16>
    %c0_8 = arith.constant 0 : index
    %c0_9 = arith.constant 0 : index
    %14 = vector.load %arg6[%c0_8, %c0_9] : memref<512x256xbf16, #tpu.memory_space<vmem>>, vector<512x256xbf16>
    %cst_10 = arith.constant dense<0.000000e+00> : vector<64x256xf32>
    %15 = tpu.matmul %13, %14, %cst_10 {dimension_numbers = #tpu.dot_dimension_numbers<[1], [0], [0], [1], [0, 0, 1, 1], [], []>} : vector<64x512xbf16>, vector<512x256xbf16>, vector<64x256xf32> -> vector<64x256xf32>
    %c0_11 = arith.constant 0 : index
    %c0_12 = arith.constant 0 : index
    %16 = vector.load %arg7[%c0_11, %c0_12] : memref<1x256xf32, #tpu.memory_space<vmem>>, vector<1x256xf32>
    %17 = vector.broadcast %16 : vector<1x256xf32> to vector<64x256xf32>
    %18 = arith.addf %15, %17 : vector<64x256xf32>
    %cst_13 = arith.constant 0.000000e+00 : f32
    %19 = vector.broadcast %cst_13 : f32 to vector<64x256xf32>
    %20 = arith.cmpf ogt, %18, %19 : vector<64x256xf32>
    %cst_14 = arith.constant 2.000000e-01 : f32
    %21 = vector.broadcast %cst_14 : f32 to vector<64x256xf32>
    %22 = arith.mulf %21, %18 : vector<64x256xf32>
    %23 = arith.select %20, %18, %22 : vector<64x256xi1>, vector<64x256xf32>
    %24 = arith.truncf %23 : vector<64x256xf32> to vector<64x256xbf16>
    %c0_15 = arith.constant 0 : index
    %c0_16 = arith.constant 0 : index
    %25 = vector.load %arg8[%c0_15, %c0_16] : memref<256x256xbf16, #tpu.memory_space<vmem>>, vector<256x256xbf16>
    %cst_17 = arith.constant dense<0.000000e+00> : vector<64x256xf32>
    %26 = tpu.matmul %24, %25, %cst_17 {dimension_numbers = #tpu.dot_dimension_numbers<[1], [0], [0], [1], [0, 0, 1, 1], [], []>} : vector<64x256xbf16>, vector<256x256xbf16>, vector<64x256xf32> -> vector<64x256xf32>
    %c0_18 = arith.constant 0 : index
    %c0_19 = arith.constant 0 : index
    %27 = vector.load %arg9[%c0_18, %c0_19] : memref<1x256xf32, #tpu.memory_space<vmem>>, vector<1x256xf32>
    %28 = vector.broadcast %27 : vector<1x256xf32> to vector<64x256xf32>
    %29 = arith.addf %26, %28 : vector<64x256xf32>
    %cst_20 = arith.constant 0.000000e+00 : f32
    %30 = vector.broadcast %cst_20 : f32 to vector<64x256xf32>
    %31 = arith.cmpf ogt, %29, %30 : vector<64x256xf32>
    %cst_21 = arith.constant 2.000000e-01 : f32
    %32 = vector.broadcast %cst_21 : f32 to vector<64x256xf32>
    %33 = arith.mulf %32, %29 : vector<64x256xf32>
    %34 = arith.select %31, %29, %33 : vector<64x256xi1>, vector<64x256xf32>
    %35 = arith.truncf %34 : vector<64x256xf32> to vector<64x256xbf16>
    %c0_22 = arith.constant 0 : index
    %c0_23 = arith.constant 0 : index
    %36 = vector.load %arg10[%c0_22, %c0_23] : memref<256x2xbf16, #tpu.memory_space<vmem>>, vector<256x2xbf16>
    %cst_24 = arith.constant dense<0.000000e+00> : vector<64x2xf32>
    %37 = tpu.matmul %35, %36, %cst_24 {dimension_numbers = #tpu.dot_dimension_numbers<[1], [0], [0], [1], [0, 0, 1, 1], [], []>} : vector<64x256xbf16>, vector<256x2xbf16>, vector<64x2xf32> -> vector<64x2xf32>
    %c0_25 = arith.constant 0 : index
    %c0_26 = arith.constant 0 : index
    %38 = vector.load %arg11[%c0_25, %c0_26] : memref<1x2xf32, #tpu.memory_space<vmem>>, vector<1x2xf32>
    %39 = vector.broadcast %38 : vector<1x2xf32> to vector<64x2xf32>
    %40 = arith.addf %37, %39 : vector<64x2xf32>
    %41 = vector.extract_strided_slice %40 {offsets = [0, 1], sizes = [64, 1], strides = [1, 1]} : vector<64x2xf32> to vector<64x1xf32>
    %42 = vector.extract_strided_slice %40 {offsets = [0, 0], sizes = [64, 1], strides = [1, 1]} : vector<64x2xf32> to vector<64x1xf32>
    %43 = arith.subf %41, %42 : vector<64x1xf32>
    %44 = math.exp %43 : vector<64x1xf32>
    %cst_27 = arith.constant 1.000000e+00 : f32
    %45 = vector.broadcast %cst_27 : f32 to vector<64x1xf32>
    %46 = arith.addf %45, %44 : vector<64x1xf32>
    %47 = tpu.reciprocal %46 {approx = true} : vector<64x1xf32> -> vector<64x1xf32>
    %cst_28 = arith.constant 1.000000e+00 : f32
    %48 = vector.broadcast %cst_28 : f32 to vector<64x1xf32>
    %49 = arith.subf %48, %47 : vector<64x1xf32>
    %50 = tpu.concatenate %47, %49 in 1 : vector<64x1xf32>, vector<64x1xf32> -> vector<64x2xf32>
    %c0_29 = arith.constant 0 : index
    %c0_30 = arith.constant 0 : index
    %c0_31 = arith.constant 0 : index
    %51 = vector.load %arg2[%c0_29, %c0_30, %c0_31] : memref<12x8x8xf32, #tpu.memory_space<vmem>>, vector<12x8x8xf32>
    %52 = vector.shape_cast %51 : vector<12x8x8xf32> to vector<96x8xf32>
    %53 = arith.truncf %52 : vector<96x8xf32> to vector<96x8xbf16>
    %c0_32 = arith.constant 0 : index
    %c0_33 = arith.constant 0 : index
    %54 = vector.load %arg12[%c0_32, %c0_33] : memref<8x512xbf16, #tpu.memory_space<vmem>>, vector<8x512xbf16>
    %cst_34 = arith.constant dense<0.000000e+00> : vector<96x512xf32>
    %55 = tpu.matmul %53, %54, %cst_34 {dimension_numbers = #tpu.dot_dimension_numbers<[1], [0], [0], [1], [0, 0, 1, 1], [], []>} : vector<96x8xbf16>, vector<8x512xbf16>, vector<96x512xf32> -> vector<96x512xf32>
    %c0_35 = arith.constant 0 : index
    %c0_36 = arith.constant 0 : index
    %56 = vector.load %arg13[%c0_35, %c0_36] : memref<1x512xf32, #tpu.memory_space<vmem>>, vector<1x512xf32>
    %57 = vector.broadcast %56 : vector<1x512xf32> to vector<96x512xf32>
    %58 = arith.addf %55, %57 : vector<96x512xf32>
    %cst_37 = arith.constant 0.000000e+00 : f32
    %59 = vector.broadcast %cst_37 : f32 to vector<96x512xf32>
    %60 = arith.cmpf ogt, %58, %59 : vector<96x512xf32>
    %cst_38 = arith.constant 2.000000e-01 : f32
    %61 = vector.broadcast %cst_38 : f32 to vector<96x512xf32>
    %62 = arith.mulf %61, %58 : vector<96x512xf32>
    %63 = arith.select %60, %58, %62 : vector<96x512xi1>, vector<96x512xf32>
    %64 = arith.truncf %63 : vector<96x512xf32> to vector<96x512xbf16>
    %c0_39 = arith.constant 0 : index
    %c0_40 = arith.constant 0 : index
    %65 = vector.load %arg14[%c0_39, %c0_40] : memref<512x256xbf16, #tpu.memory_space<vmem>>, vector<512x256xbf16>
    %cst_41 = arith.constant dense<0.000000e+00> : vector<96x256xf32>
    %66 = tpu.matmul %64, %65, %cst_41 {dimension_numbers = #tpu.dot_dimension_numbers<[1], [0], [0], [1], [0, 0, 1, 1], [], []>} : vector<96x512xbf16>, vector<512x256xbf16>, vector<96x256xf32> -> vector<96x256xf32>
    %c0_42 = arith.constant 0 : index
    %c0_43 = arith.constant 0 : index
    %67 = vector.load %arg15[%c0_42, %c0_43] : memref<1x256xf32, #tpu.memory_space<vmem>>, vector<1x256xf32>
    %68 = vector.broadcast %67 : vector<1x256xf32> to vector<96x256xf32>
    %69 = arith.addf %66, %68 : vector<96x256xf32>
    %cst_44 = arith.constant 0.000000e+00 : f32
    %70 = vector.broadcast %cst_44 : f32 to vector<96x256xf32>
    %71 = arith.cmpf ogt, %69, %70 : vector<96x256xf32>
    %cst_45 = arith.constant 2.000000e-01 : f32
    %72 = vector.broadcast %cst_45 : f32 to vector<96x256xf32>
    %73 = arith.mulf %72, %69 : vector<96x256xf32>
    %74 = arith.select %71, %69, %73 : vector<96x256xi1>, vector<96x256xf32>
    %75 = arith.truncf %74 : vector<96x256xf32> to vector<96x256xbf16>
    %c0_46 = arith.constant 0 : index
    %c0_47 = arith.constant 0 : index
    %76 = vector.load %arg16[%c0_46, %c0_47] : memref<256x256xbf16, #tpu.memory_space<vmem>>, vector<256x256xbf16>
    %cst_48 = arith.constant dense<0.000000e+00> : vector<96x256xf32>
    %77 = tpu.matmul %75, %76, %cst_48 {dimension_numbers = #tpu.dot_dimension_numbers<[1], [0], [0], [1], [0, 0, 1, 1], [], []>} : vector<96x256xbf16>, vector<256x256xbf16>, vector<96x256xf32> -> vector<96x256xf32>
    %c0_49 = arith.constant 0 : index
    %c0_50 = arith.constant 0 : index
    %78 = vector.load %arg17[%c0_49, %c0_50] : memref<1x256xf32, #tpu.memory_space<vmem>>, vector<1x256xf32>
    %79 = vector.broadcast %78 : vector<1x256xf32> to vector<96x256xf32>
    %80 = arith.addf %77, %79 : vector<96x256xf32>
    %cst_51 = arith.constant 0.000000e+00 : f32
    %81 = vector.broadcast %cst_51 : f32 to vector<96x256xf32>
    %82 = arith.cmpf ogt, %80, %81 : vector<96x256xf32>
    %cst_52 = arith.constant 2.000000e-01 : f32
    %83 = vector.broadcast %cst_52 : f32 to vector<96x256xf32>
    %84 = arith.mulf %83, %80 : vector<96x256xf32>
    %85 = arith.select %82, %80, %84 : vector<96x256xi1>, vector<96x256xf32>
    %86 = arith.truncf %85 : vector<96x256xf32> to vector<96x256xbf16>
    %c0_53 = arith.constant 0 : index
    %c0_54 = arith.constant 0 : index
    %87 = vector.load %arg18[%c0_53, %c0_54] : memref<256x2xbf16, #tpu.memory_space<vmem>>, vector<256x2xbf16>
    %cst_55 = arith.constant dense<0.000000e+00> : vector<96x2xf32>
    %88 = tpu.matmul %86, %87, %cst_55 {dimension_numbers = #tpu.dot_dimension_numbers<[1], [0], [0], [1], [0, 0, 1, 1], [], []>} : vector<96x256xbf16>, vector<256x2xbf16>, vector<96x2xf32> -> vector<96x2xf32>
    %c0_56 = arith.constant 0 : index
    %c0_57 = arith.constant 0 : index
    %89 = vector.load %arg19[%c0_56, %c0_57] : memref<1x2xf32, #tpu.memory_space<vmem>>, vector<1x2xf32>
    %90 = vector.broadcast %89 : vector<1x2xf32> to vector<96x2xf32>
    %91 = arith.addf %88, %90 : vector<96x2xf32>
    %92 = vector.extract_strided_slice %91 {offsets = [0, 1], sizes = [96, 1], strides = [1, 1]} : vector<96x2xf32> to vector<96x1xf32>
    %93 = vector.extract_strided_slice %91 {offsets = [0, 0], sizes = [96, 1], strides = [1, 1]} : vector<96x2xf32> to vector<96x1xf32>
    %94 = arith.subf %92, %93 : vector<96x1xf32>
    %95 = math.exp %94 : vector<96x1xf32>
    %cst_58 = arith.constant 1.000000e+00 : f32
    %96 = vector.broadcast %cst_58 : f32 to vector<96x1xf32>
    %97 = arith.addf %96, %95 : vector<96x1xf32>
    %98 = tpu.reciprocal %97 {approx = true} : vector<96x1xf32> -> vector<96x1xf32>
    %cst_59 = arith.constant 1.000000e+00 : f32
    %99 = vector.broadcast %cst_59 : f32 to vector<96x1xf32>
    %100 = arith.subf %99, %98 : vector<96x1xf32>
    %101 = tpu.concatenate %98, %100 in 1 : vector<96x1xf32>, vector<96x1xf32> -> vector<96x2xf32>
    %c0_60 = arith.constant 0 : index
    %c0_61 = arith.constant 0 : index
    %c0_62 = arith.constant 0 : index
    %102 = vector.load %arg3[%c0_60, %c0_61, %c0_62] : memref<2x8x8xf32, #tpu.memory_space<vmem>>, vector<2x8x8xf32>
    %103 = vector.shape_cast %102 : vector<2x8x8xf32> to vector<16x8xf32>
    %104 = arith.truncf %103 : vector<16x8xf32> to vector<16x8xbf16>
    %c0_63 = arith.constant 0 : index
    %c0_64 = arith.constant 0 : index
    %105 = vector.load %arg20[%c0_63, %c0_64] : memref<8x64xbf16, #tpu.memory_space<vmem>>, vector<8x64xbf16>
    %cst_65 = arith.constant dense<0.000000e+00> : vector<16x64xf32>
    %106 = tpu.matmul %104, %105, %cst_65 {dimension_numbers = #tpu.dot_dimension_numbers<[1], [0], [0], [1], [0, 0, 1, 1], [], []>} : vector<16x8xbf16>, vector<8x64xbf16>, vector<16x64xf32> -> vector<16x64xf32>
    %c0_66 = arith.constant 0 : index
    %c0_67 = arith.constant 0 : index
    %107 = vector.load %arg21[%c0_66, %c0_67] : memref<1x64xf32, #tpu.memory_space<vmem>>, vector<1x64xf32>
    %108 = vector.broadcast %107 : vector<1x64xf32> to vector<16x64xf32>
    %109 = arith.addf %106, %108 : vector<16x64xf32>
    %cst_68 = arith.constant 0.000000e+00 : f32
    %110 = vector.broadcast %cst_68 : f32 to vector<16x64xf32>
    %111 = arith.cmpf ogt, %109, %110 : vector<16x64xf32>
    %cst_69 = arith.constant 2.000000e-01 : f32
    %112 = vector.broadcast %cst_69 : f32 to vector<16x64xf32>
    %113 = arith.mulf %112, %109 : vector<16x64xf32>
    %114 = arith.select %111, %109, %113 : vector<16x64xi1>, vector<16x64xf32>
    %115 = arith.truncf %114 : vector<16x64xf32> to vector<16x64xbf16>
    %c0_70 = arith.constant 0 : index
    %c0_71 = arith.constant 0 : index
    %116 = vector.load %arg22[%c0_70, %c0_71] : memref<64x64xbf16, #tpu.memory_space<vmem>>, vector<64x64xbf16>
    %cst_72 = arith.constant dense<0.000000e+00> : vector<16x64xf32>
    %117 = tpu.matmul %115, %116, %cst_72 {dimension_numbers = #tpu.dot_dimension_numbers<[1], [0], [0], [1], [0, 0, 1, 1], [], []>} : vector<16x64xbf16>, vector<64x64xbf16>, vector<16x64xf32> -> vector<16x64xf32>
    %c0_73 = arith.constant 0 : index
    %c0_74 = arith.constant 0 : index
    %118 = vector.load %arg23[%c0_73, %c0_74] : memref<1x64xf32, #tpu.memory_space<vmem>>, vector<1x64xf32>
    %119 = vector.broadcast %118 : vector<1x64xf32> to vector<16x64xf32>
    %120 = arith.addf %117, %119 : vector<16x64xf32>
    %cst_75 = arith.constant 0.000000e+00 : f32
    %121 = vector.broadcast %cst_75 : f32 to vector<16x64xf32>
    %122 = arith.cmpf ogt, %120, %121 : vector<16x64xf32>
    %cst_76 = arith.constant 2.000000e-01 : f32
    %123 = vector.broadcast %cst_76 : f32 to vector<16x64xf32>
    %124 = arith.mulf %123, %120 : vector<16x64xf32>
    %125 = arith.select %122, %120, %124 : vector<16x64xi1>, vector<16x64xf32>
    %126 = vector.extract_strided_slice %40 {offsets = [0, 0], sizes = [8, 2], strides = [1, 1]} : vector<64x2xf32> to vector<8x2xf32>
    %127 = vector.extract_strided_slice %40 {offsets = [8, 0], sizes = [8, 2], strides = [1, 1]} : vector<64x2xf32> to vector<8x2xf32>
    %128 = vector.extract_strided_slice %40 {offsets = [16, 0], sizes = [8, 2], strides = [1, 1]} : vector<64x2xf32> to vector<8x2xf32>
    %129 = vector.extract_strided_slice %40 {offsets = [24, 0], sizes = [8, 2], strides = [1, 1]} : vector<64x2xf32> to vector<8x2xf32>
    %130 = vector.extract_strided_slice %40 {offsets = [32, 0], sizes = [8, 2], strides = [1, 1]} : vector<64x2xf32> to vector<8x2xf32>
    %131 = vector.extract_strided_slice %40 {offsets = [40, 0], sizes = [8, 2], strides = [1, 1]} : vector<64x2xf32> to vector<8x2xf32>
    %132 = vector.extract_strided_slice %40 {offsets = [48, 0], sizes = [8, 2], strides = [1, 1]} : vector<64x2xf32> to vector<8x2xf32>
    %133 = vector.extract_strided_slice %40 {offsets = [56, 0], sizes = [8, 2], strides = [1, 1]} : vector<64x2xf32> to vector<8x2xf32>
    %134 = tpu.concatenate %126, %127, %128, %129, %130, %131, %132, %133 in 1 : vector<8x2xf32>, vector<8x2xf32>, vector<8x2xf32>, vector<8x2xf32>, vector<8x2xf32>, vector<8x2xf32>, vector<8x2xf32>, vector<8x2xf32> -> vector<8x16xf32>
    %135 = vector.extract_strided_slice %91 {offsets = [0, 0], sizes = [8, 2], strides = [1, 1]} : vector<96x2xf32> to vector<8x2xf32>
    %136 = vector.extract_strided_slice %91 {offsets = [8, 0], sizes = [8, 2], strides = [1, 1]} : vector<96x2xf32> to vector<8x2xf32>
    %137 = vector.extract_strided_slice %91 {offsets = [16, 0], sizes = [8, 2], strides = [1, 1]} : vector<96x2xf32> to vector<8x2xf32>
    %138 = vector.extract_strided_slice %91 {offsets = [24, 0], sizes = [8, 2], strides = [1, 1]} : vector<96x2xf32> to vector<8x2xf32>
    %139 = vector.extract_strided_slice %91 {offsets = [32, 0], sizes = [8, 2], strides = [1, 1]} : vector<96x2xf32> to vector<8x2xf32>
    %140 = vector.extract_strided_slice %91 {offsets = [40, 0], sizes = [8, 2], strides = [1, 1]} : vector<96x2xf32> to vector<8x2xf32>
    %141 = vector.extract_strided_slice %91 {offsets = [48, 0], sizes = [8, 2], strides = [1, 1]} : vector<96x2xf32> to vector<8x2xf32>
    %142 = vector.extract_strided_slice %91 {offsets = [56, 0], sizes = [8, 2], strides = [1, 1]} : vector<96x2xf32> to vector<8x2xf32>
    %143 = vector.extract_strided_slice %91 {offsets = [64, 0], sizes = [8, 2], strides = [1, 1]} : vector<96x2xf32> to vector<8x2xf32>
    %144 = vector.extract_strided_slice %91 {offsets = [72, 0], sizes = [8, 2], strides = [1, 1]} : vector<96x2xf32> to vector<8x2xf32>
    %145 = vector.extract_strided_slice %91 {offsets = [80, 0], sizes = [8, 2], strides = [1, 1]} : vector<96x2xf32> to vector<8x2xf32>
    %146 = vector.extract_strided_slice %91 {offsets = [88, 0], sizes = [8, 2], strides = [1, 1]} : vector<96x2xf32> to vector<8x2xf32>
    %147 = tpu.concatenate %135, %136, %137, %138, %139, %140, %141, %142, %143, %144, %145, %146 in 1 : vector<8x2xf32>, vector<8x2xf32>, vector<8x2xf32>, vector<8x2xf32>, vector<8x2xf32>, vector<8x2xf32>, vector<8x2xf32>, vector<8x2xf32>, vector<8x2xf32>, vector<8x2xf32>, vector<8x2xf32>, vector<8x2xf32> -> vector<8x24xf32>
    %148 = vector.extract_strided_slice %125 {offsets = [0, 0], sizes = [8, 64], strides = [1, 1]} : vector<16x64xf32> to vector<8x64xf32>
    %149 = vector.extract_strided_slice %125 {offsets = [8, 0], sizes = [8, 64], strides = [1, 1]} : vector<16x64xf32> to vector<8x64xf32>
    %150 = tpu.concatenate %148, %149 in 1 : vector<8x64xf32>, vector<8x64xf32> -> vector<8x128xf32>
    %151 = arith.truncf %134 : vector<8x16xf32> to vector<8x16xbf16>
    %c0_77 = arith.constant 0 : index
    %c0_78 = arith.constant 0 : index
    %152 = vector.load %arg24[%c0_77, %c0_78] : memref<16x300xbf16, #tpu.memory_space<vmem>>, vector<16x300xbf16>
    %cst_79 = arith.constant dense<0.000000e+00> : vector<8x300xf32>
    %153 = tpu.matmul %151, %152, %cst_79 {dimension_numbers = #tpu.dot_dimension_numbers<[1], [0], [0], [1], [0, 0, 1, 1], [], []>} : vector<8x16xbf16>, vector<16x300xbf16>, vector<8x300xf32> -> vector<8x300xf32>
    %c0_80 = arith.constant 0 : index
    %c0_81 = arith.constant 0 : index
    %154 = vector.load %arg25[%c0_80, %c0_81] : memref<1x300xf32, #tpu.memory_space<vmem>>, vector<1x300xf32>
    %155 = vector.broadcast %154 : vector<1x300xf32> to vector<8x300xf32>
    %156 = arith.addf %153, %155 : vector<8x300xf32>
    %cst_82 = arith.constant 0.000000e+00 : f32
    %157 = vector.broadcast %cst_82 : f32 to vector<8x300xf32>
    %158 = arith.cmpf ogt, %156, %157 : vector<8x300xf32>
    %cst_83 = arith.constant 2.000000e-01 : f32
    %159 = vector.broadcast %cst_83 : f32 to vector<8x300xf32>
    %160 = arith.mulf %159, %156 : vector<8x300xf32>
    %161 = arith.select %158, %156, %160 : vector<8x300xi1>, vector<8x300xf32>
    %162 = arith.truncf %161 : vector<8x300xf32> to vector<8x300xbf16>
    %c0_84 = arith.constant 0 : index
    %c0_85 = arith.constant 0 : index
    %163 = vector.load %arg26[%c0_84, %c0_85] : memref<300x100xbf16, #tpu.memory_space<vmem>>, vector<300x100xbf16>
    %cst_86 = arith.constant dense<0.000000e+00> : vector<8x100xf32>
    %164 = tpu.matmul %162, %163, %cst_86 {dimension_numbers = #tpu.dot_dimension_numbers<[1], [0], [0], [1], [0, 0, 1, 1], [], []>} : vector<8x300xbf16>, vector<300x100xbf16>, vector<8x100xf32> -> vector<8x100xf32>
    %c0_87 = arith.constant 0 : index
    %c0_88 = arith.constant 0 : index
    %165 = vector.load %arg27[%c0_87, %c0_88] : memref<1x100xf32, #tpu.memory_space<vmem>>, vector<1x100xf32>
    %166 = vector.broadcast %165 : vector<1x100xf32> to vector<8x100xf32>
    %167 = arith.addf %164, %166 : vector<8x100xf32>
    %cst_89 = arith.constant 0.000000e+00 : f32
    %168 = vector.broadcast %cst_89 : f32 to vector<8x100xf32>
    %169 = arith.cmpf ogt, %167, %168 : vector<8x100xf32>
    %cst_90 = arith.constant 2.000000e-01 : f32
    %170 = vector.broadcast %cst_90 : f32 to vector<8x100xf32>
    %171 = arith.mulf %170, %167 : vector<8x100xf32>
    %172 = arith.select %169, %167, %171 : vector<8x100xi1>, vector<8x100xf32>
    %173 = arith.truncf %172 : vector<8x100xf32> to vector<8x100xbf16>
    %c0_91 = arith.constant 0 : index
    %c0_92 = arith.constant 0 : index
    %174 = vector.load %arg28[%c0_91, %c0_92] : memref<100x8xbf16, #tpu.memory_space<vmem>>, vector<100x8xbf16>
    %cst_93 = arith.constant dense<0.000000e+00> : vector<8x8xf32>
    %175 = tpu.matmul %173, %174, %cst_93 {dimension_numbers = #tpu.dot_dimension_numbers<[1], [0], [0], [1], [0, 0, 1, 1], [], []>} : vector<8x100xbf16>, vector<100x8xbf16>, vector<8x8xf32> -> vector<8x8xf32>
    %c0_94 = arith.constant 0 : index
    %c0_95 = arith.constant 0 : index
    %176 = vector.load %arg29[%c0_94, %c0_95] : memref<1x8xf32, #tpu.memory_space<vmem>>, vector<1x8xf32>
    %177 = vector.broadcast %176 : vector<1x8xf32> to vector<8x8xf32>
    %178 = arith.addf %175, %177 : vector<8x8xf32>
    %cst_96 = arith.constant dense<0xFF800000> : vector<8xf32>
    %179 = vector.multi_reduction <maximumf>, %178, %cst_96 [1] : vector<8x8xf32> to vector<8xf32>
    %180 = vector.shape_cast %179 : vector<8xf32> to vector<8x1xf32>
    %181 = vector.broadcast %180 : vector<8x1xf32> to vector<8x8xf32>
    %182 = arith.subf %178, %181 : vector<8x8xf32>
    %183 = math.exp %182 : vector<8x8xf32>
    %cst_97 = arith.constant dense<0.000000e+00> : vector<8xf32>
    %184 = vector.multi_reduction <add>, %183, %cst_97 [1] : vector<8x8xf32> to vector<8xf32>
    %185 = vector.shape_cast %184 : vector<8xf32> to vector<8x1xf32>
    %186 = tpu.reciprocal %185 {approx = true} : vector<8x1xf32> -> vector<8x1xf32>
    %187 = vector.broadcast %186 : vector<8x1xf32> to vector<8x8xf32>
    %188 = arith.mulf %183, %187 : vector<8x8xf32>
    %189 = arith.truncf %147 : vector<8x24xf32> to vector<8x24xbf16>
    %c0_98 = arith.constant 0 : index
    %c0_99 = arith.constant 0 : index
    %190 = vector.load %arg30[%c0_98, %c0_99] : memref<24x300xbf16, #tpu.memory_space<vmem>>, vector<24x300xbf16>
    %cst_100 = arith.constant dense<0.000000e+00> : vector<8x300xf32>
    %191 = tpu.matmul %189, %190, %cst_100 {dimension_numbers = #tpu.dot_dimension_numbers<[1], [0], [0], [1], [0, 0, 1, 1], [], []>} : vector<8x24xbf16>, vector<24x300xbf16>, vector<8x300xf32> -> vector<8x300xf32>
    %c0_101 = arith.constant 0 : index
    %c0_102 = arith.constant 0 : index
    %192 = vector.load %arg31[%c0_101, %c0_102] : memref<1x300xf32, #tpu.memory_space<vmem>>, vector<1x300xf32>
    %193 = vector.broadcast %192 : vector<1x300xf32> to vector<8x300xf32>
    %194 = arith.addf %191, %193 : vector<8x300xf32>
    %cst_103 = arith.constant 0.000000e+00 : f32
    %195 = vector.broadcast %cst_103 : f32 to vector<8x300xf32>
    %196 = arith.cmpf ogt, %194, %195 : vector<8x300xf32>
    %cst_104 = arith.constant 2.000000e-01 : f32
    %197 = vector.broadcast %cst_104 : f32 to vector<8x300xf32>
    %198 = arith.mulf %197, %194 : vector<8x300xf32>
    %199 = arith.select %196, %194, %198 : vector<8x300xi1>, vector<8x300xf32>
    %200 = arith.truncf %199 : vector<8x300xf32> to vector<8x300xbf16>
    %c0_105 = arith.constant 0 : index
    %c0_106 = arith.constant 0 : index
    %201 = vector.load %arg32[%c0_105, %c0_106] : memref<300x100xbf16, #tpu.memory_space<vmem>>, vector<300x100xbf16>
    %cst_107 = arith.constant dense<0.000000e+00> : vector<8x100xf32>
    %202 = tpu.matmul %200, %201, %cst_107 {dimension_numbers = #tpu.dot_dimension_numbers<[1], [0], [0], [1], [0, 0, 1, 1], [], []>} : vector<8x300xbf16>, vector<300x100xbf16>, vector<8x100xf32> -> vector<8x100xf32>
    %c0_108 = arith.constant 0 : index
    %c0_109 = arith.constant 0 : index
    %203 = vector.load %arg33[%c0_108, %c0_109] : memref<1x100xf32, #tpu.memory_space<vmem>>, vector<1x100xf32>
    %204 = vector.broadcast %203 : vector<1x100xf32> to vector<8x100xf32>
    %205 = arith.addf %202, %204 : vector<8x100xf32>
    %cst_110 = arith.constant 0.000000e+00 : f32
    %206 = vector.broadcast %cst_110 : f32 to vector<8x100xf32>
    %207 = arith.cmpf ogt, %205, %206 : vector<8x100xf32>
    %cst_111 = arith.constant 2.000000e-01 : f32
    %208 = vector.broadcast %cst_111 : f32 to vector<8x100xf32>
    %209 = arith.mulf %208, %205 : vector<8x100xf32>
    %210 = arith.select %207, %205, %209 : vector<8x100xi1>, vector<8x100xf32>
    %211 = arith.truncf %210 : vector<8x100xf32> to vector<8x100xbf16>
    %c0_112 = arith.constant 0 : index
    %c0_113 = arith.constant 0 : index
    %212 = vector.load %arg34[%c0_112, %c0_113] : memref<100x12xbf16, #tpu.memory_space<vmem>>, vector<100x12xbf16>
    %cst_114 = arith.constant dense<0.000000e+00> : vector<8x12xf32>
    %213 = tpu.matmul %211, %212, %cst_114 {dimension_numbers = #tpu.dot_dimension_numbers<[1], [0], [0], [1], [0, 0, 1, 1], [], []>} : vector<8x100xbf16>, vector<100x12xbf16>, vector<8x12xf32> -> vector<8x12xf32>
    %c0_115 = arith.constant 0 : index
    %c0_116 = arith.constant 0 : index
    %214 = vector.load %arg35[%c0_115, %c0_116] : memref<1x12xf32, #tpu.memory_space<vmem>>, vector<1x12xf32>
    %215 = vector.broadcast %214 : vector<1x12xf32> to vector<8x12xf32>
    %216 = arith.addf %213, %215 : vector<8x12xf32>
    %cst_117 = arith.constant dense<0xFF800000> : vector<8xf32>
    %217 = vector.multi_reduction <maximumf>, %216, %cst_117 [1] : vector<8x12xf32> to vector<8xf32>
    %218 = vector.shape_cast %217 : vector<8xf32> to vector<8x1xf32>
    %219 = vector.broadcast %218 : vector<8x1xf32> to vector<8x12xf32>
    %220 = arith.subf %216, %219 : vector<8x12xf32>
    %221 = math.exp %220 : vector<8x12xf32>
    %cst_118 = arith.constant dense<0.000000e+00> : vector<8xf32>
    %222 = vector.multi_reduction <add>, %221, %cst_118 [1] : vector<8x12xf32> to vector<8xf32>
    %223 = vector.shape_cast %222 : vector<8xf32> to vector<8x1xf32>
    %224 = tpu.reciprocal %223 {approx = true} : vector<8x1xf32> -> vector<8x1xf32>
    %225 = vector.broadcast %224 : vector<8x1xf32> to vector<8x12xf32>
    %226 = arith.mulf %221, %225 : vector<8x12xf32>
    %227 = arith.truncf %150 : vector<8x128xf32> to vector<8x128xbf16>
    %c0_119 = arith.constant 0 : index
    %c0_120 = arith.constant 0 : index
    %228 = vector.load %arg36[%c0_119, %c0_120] : memref<128x100xbf16, #tpu.memory_space<vmem>>, vector<128x100xbf16>
    %cst_121 = arith.constant dense<0.000000e+00> : vector<8x100xf32>
    %229 = tpu.matmul %227, %228, %cst_121 {dimension_numbers = #tpu.dot_dimension_numbers<[1], [0], [0], [1], [0, 0, 1, 1], [], []>} : vector<8x128xbf16>, vector<128x100xbf16>, vector<8x100xf32> -> vector<8x100xf32>
    %c0_122 = arith.constant 0 : index
    %c0_123 = arith.constant 0 : index
    %230 = vector.load %arg37[%c0_122, %c0_123] : memref<1x100xf32, #tpu.memory_space<vmem>>, vector<1x100xf32>
    %231 = vector.broadcast %230 : vector<1x100xf32> to vector<8x100xf32>
    %232 = arith.addf %229, %231 : vector<8x100xf32>
    %cst_124 = arith.constant 0.000000e+00 : f32
    %233 = vector.broadcast %cst_124 : f32 to vector<8x100xf32>
    %234 = arith.cmpf ogt, %232, %233 : vector<8x100xf32>
    %cst_125 = arith.constant 2.000000e-01 : f32
    %235 = vector.broadcast %cst_125 : f32 to vector<8x100xf32>
    %236 = arith.mulf %235, %232 : vector<8x100xf32>
    %237 = arith.select %234, %232, %236 : vector<8x100xi1>, vector<8x100xf32>
    %238 = arith.truncf %237 : vector<8x100xf32> to vector<8x100xbf16>
    %c0_126 = arith.constant 0 : index
    %c0_127 = arith.constant 0 : index
    %239 = vector.load %arg38[%c0_126, %c0_127] : memref<100x50xbf16, #tpu.memory_space<vmem>>, vector<100x50xbf16>
    %cst_128 = arith.constant dense<0.000000e+00> : vector<8x50xf32>
    %240 = tpu.matmul %238, %239, %cst_128 {dimension_numbers = #tpu.dot_dimension_numbers<[1], [0], [0], [1], [0, 0, 1, 1], [], []>} : vector<8x100xbf16>, vector<100x50xbf16>, vector<8x50xf32> -> vector<8x50xf32>
    %c0_129 = arith.constant 0 : index
    %c0_130 = arith.constant 0 : index
    %241 = vector.load %arg39[%c0_129, %c0_130] : memref<1x50xf32, #tpu.memory_space<vmem>>, vector<1x50xf32>
    %242 = vector.broadcast %241 : vector<1x50xf32> to vector<8x50xf32>
    %243 = arith.addf %240, %242 : vector<8x50xf32>
    %cst_131 = arith.constant 0.000000e+00 : f32
    %244 = vector.broadcast %cst_131 : f32 to vector<8x50xf32>
    %245 = arith.cmpf ogt, %243, %244 : vector<8x50xf32>
    %cst_132 = arith.constant 0.00999999977 : f32
    %246 = vector.broadcast %cst_132 : f32 to vector<8x50xf32>
    %247 = arith.mulf %246, %243 : vector<8x50xf32>
    %248 = arith.select %245, %243, %247 : vector<8x50xi1>, vector<8x50xf32>
    %249 = arith.truncf %248 : vector<8x50xf32> to vector<8x50xbf16>
    %c0_133 = arith.constant 0 : index
    %c0_134 = arith.constant 0 : index
    %250 = vector.load %arg40[%c0_133, %c0_134] : memref<50x1xbf16, #tpu.memory_space<vmem>>, vector<50x1xbf16>
    %cst_135 = arith.constant dense<0.000000e+00> : vector<8x1xf32>
    %251 = tpu.matmul %249, %250, %cst_135 {dimension_numbers = #tpu.dot_dimension_numbers<[1], [0], [0], [1], [0, 0, 1, 1], [], []>} : vector<8x50xbf16>, vector<50x1xbf16>, vector<8x1xf32> -> vector<8x1xf32>
    %c0_136 = arith.constant 0 : index
    %c0_137 = arith.constant 0 : index
    %252 = vector.load %arg41[%c0_136, %c0_137] : memref<1x1xf32, #tpu.memory_space<vmem>>, vector<1x1xf32>
    %253 = vector.broadcast %252 : vector<1x1xf32> to vector<8x1xf32>
    %254 = arith.addf %251, %253 : vector<8x1xf32>
    %cst_138 = arith.constant 0.000000e+00 : f32
    %255 = vector.broadcast %cst_138 : f32 to vector<8x1xf32>
    %256 = arith.subf %255, %254 : vector<8x1xf32>
    %257 = math.exp %256 : vector<8x1xf32>
    %cst_139 = arith.constant 1.000000e+00 : f32
    %258 = vector.broadcast %cst_139 : f32 to vector<8x1xf32>
    %259 = arith.addf %258, %257 : vector<8x1xf32>
    %260 = tpu.reciprocal %259 {approx = true} : vector<8x1xf32> -> vector<8x1xf32>
    %261 = vector.extract_strided_slice %50 {offsets = [0, 0], sizes = [8, 2], strides = [1, 1]} : vector<64x2xf32> to vector<8x2xf32>
    %c0_140 = arith.constant 0 : index
    %c0_141 = arith.constant 0 : index
    %262 = vector.load %arg42[%c0_140, %c0_141] : memref<8x128xf32, #tpu.memory_space<vmem>>, vector<8x2xf32>
    tpu.vector_store %arg42[%c0_140, %c0_141], %261 {strides = array<i32>} : memref<8x128xf32, #tpu.memory_space<vmem>>, vector<8x2xf32>,
    %263 = vector.extract_strided_slice %50 {offsets = [8, 0], sizes = [8, 2], strides = [1, 1]} : vector<64x2xf32> to vector<8x2xf32>
    %c0_142 = arith.constant 0 : index
    %c2 = arith.constant 2 : index
    %264 = vector.load %arg42[%c0_142, %c2] : memref<8x128xf32, #tpu.memory_space<vmem>>, vector<8x2xf32>
    tpu.vector_store %arg42[%c0_142, %c2], %263 {strides = array<i32>} : memref<8x128xf32, #tpu.memory_space<vmem>>, vector<8x2xf32>,
    %265 = vector.extract_strided_slice %50 {offsets = [16, 0], sizes = [8, 2], strides = [1, 1]} : vector<64x2xf32> to vector<8x2xf32>
    %c0_143 = arith.constant 0 : index
    %c4 = arith.constant 4 : index
    %266 = vector.load %arg42[%c0_143, %c4] : memref<8x128xf32, #tpu.memory_space<vmem>>, vector<8x2xf32>
    tpu.vector_store %arg42[%c0_143, %c4], %265 {strides = array<i32>} : memref<8x128xf32, #tpu.memory_space<vmem>>, vector<8x2xf32>,
    %267 = vector.extract_strided_slice %50 {offsets = [24, 0], sizes = [8, 2], strides = [1, 1]} : vector<64x2xf32> to vector<8x2xf32>
    %c0_144 = arith.constant 0 : index
    %c6 = arith.constant 6 : index
    %268 = vector.load %arg42[%c0_144, %c6] : memref<8x128xf32, #tpu.memory_space<vmem>>, vector<8x2xf32>
    tpu.vector_store %arg42[%c0_144, %c6], %267 {strides = array<i32>} : memref<8x128xf32, #tpu.memory_space<vmem>>, vector<8x2xf32>,
    %269 = vector.extract_strided_slice %50 {offsets = [32, 0], sizes = [8, 2], strides = [1, 1]} : vector<64x2xf32> to vector<8x2xf32>
    %c0_145 = arith.constant 0 : index
    %c8 = arith.constant 8 : index
    %270 = vector.load %arg42[%c0_145, %c8] : memref<8x128xf32, #tpu.memory_space<vmem>>, vector<8x2xf32>
    tpu.vector_store %arg42[%c0_145, %c8], %269 {strides = array<i32>} : memref<8x128xf32, #tpu.memory_space<vmem>>, vector<8x2xf32>,
    %271 = vector.extract_strided_slice %50 {offsets = [40, 0], sizes = [8, 2], strides = [1, 1]} : vector<64x2xf32> to vector<8x2xf32>
    %c0_146 = arith.constant 0 : index
    %c10 = arith.constant 10 : index
    %272 = vector.load %arg42[%c0_146, %c10] : memref<8x128xf32, #tpu.memory_space<vmem>>, vector<8x2xf32>
    tpu.vector_store %arg42[%c0_146, %c10], %271 {strides = array<i32>} : memref<8x128xf32, #tpu.memory_space<vmem>>, vector<8x2xf32>,
    %273 = vector.extract_strided_slice %50 {offsets = [48, 0], sizes = [8, 2], strides = [1, 1]} : vector<64x2xf32> to vector<8x2xf32>
    %c0_147 = arith.constant 0 : index
    %c12 = arith.constant 12 : index
    %274 = vector.load %arg42[%c0_147, %c12] : memref<8x128xf32, #tpu.memory_space<vmem>>, vector<8x2xf32>
    tpu.vector_store %arg42[%c0_147, %c12], %273 {strides = array<i32>} : memref<8x128xf32, #tpu.memory_space<vmem>>, vector<8x2xf32>,
    %275 = vector.extract_strided_slice %50 {offsets = [56, 0], sizes = [8, 2], strides = [1, 1]} : vector<64x2xf32> to vector<8x2xf32>
    %c0_148 = arith.constant 0 : index
    %c14 = arith.constant 14 : index
    %276 = vector.load %arg42[%c0_148, %c14] : memref<8x128xf32, #tpu.memory_space<vmem>>, vector<8x2xf32>
    tpu.vector_store %arg42[%c0_148, %c14], %275 {strides = array<i32>} : memref<8x128xf32, #tpu.memory_space<vmem>>, vector<8x2xf32>,
    %277 = vector.extract_strided_slice %101 {offsets = [0, 0], sizes = [8, 2], strides = [1, 1]} : vector<96x2xf32> to vector<8x2xf32>
    %c0_149 = arith.constant 0 : index
    %c16 = arith.constant 16 : index
    %278 = vector.load %arg42[%c0_149, %c16] : memref<8x128xf32, #tpu.memory_space<vmem>>, vector<8x2xf32>
    tpu.vector_store %arg42[%c0_149, %c16], %277 {strides = array<i32>} : memref<8x128xf32, #tpu.memory_space<vmem>>, vector<8x2xf32>,
    %279 = vector.extract_strided_slice %101 {offsets = [8, 0], sizes = [8, 2], strides = [1, 1]} : vector<96x2xf32> to vector<8x2xf32>
    %c0_150 = arith.constant 0 : index
    %c18 = arith.constant 18 : index
    %280 = vector.load %arg42[%c0_150, %c18] : memref<8x128xf32, #tpu.memory_space<vmem>>, vector<8x2xf32>
    tpu.vector_store %arg42[%c0_150, %c18], %279 {strides = array<i32>} : memref<8x128xf32, #tpu.memory_space<vmem>>, vector<8x2xf32>,
    %281 = vector.extract_strided_slice %101 {offsets = [16, 0], sizes = [8, 2], strides = [1, 1]} : vector<96x2xf32> to vector<8x2xf32>
    %c0_151 = arith.constant 0 : index
    %c20 = arith.constant 20 : index
    %282 = vector.load %arg42[%c0_151, %c20] : memref<8x128xf32, #tpu.memory_space<vmem>>, vector<8x2xf32>
    tpu.vector_store %arg42[%c0_151, %c20], %281 {strides = array<i32>} : memref<8x128xf32, #tpu.memory_space<vmem>>, vector<8x2xf32>,
    %283 = vector.extract_strided_slice %101 {offsets = [24, 0], sizes = [8, 2], strides = [1, 1]} : vector<96x2xf32> to vector<8x2xf32>
    %c0_152 = arith.constant 0 : index
    %c22 = arith.constant 22 : index
    %284 = vector.load %arg42[%c0_152, %c22] : memref<8x128xf32, #tpu.memory_space<vmem>>, vector<8x2xf32>
    tpu.vector_store %arg42[%c0_152, %c22], %283 {strides = array<i32>} : memref<8x128xf32, #tpu.memory_space<vmem>>, vector<8x2xf32>,
    %285 = vector.extract_strided_slice %101 {offsets = [32, 0], sizes = [8, 2], strides = [1, 1]} : vector<96x2xf32> to vector<8x2xf32>
    %c0_153 = arith.constant 0 : index
    %c24 = arith.constant 24 : index
    %286 = vector.load %arg42[%c0_153, %c24] : memref<8x128xf32, #tpu.memory_space<vmem>>, vector<8x2xf32>
    tpu.vector_store %arg42[%c0_153, %c24], %285 {strides = array<i32>} : memref<8x128xf32, #tpu.memory_space<vmem>>, vector<8x2xf32>,
    %287 = vector.extract_strided_slice %101 {offsets = [40, 0], sizes = [8, 2], strides = [1, 1]} : vector<96x2xf32> to vector<8x2xf32>
    %c0_154 = arith.constant 0 : index
    %c26 = arith.constant 26 : index
    %288 = vector.load %arg42[%c0_154, %c26] : memref<8x128xf32, #tpu.memory_space<vmem>>, vector<8x2xf32>
    tpu.vector_store %arg42[%c0_154, %c26], %287 {strides = array<i32>} : memref<8x128xf32, #tpu.memory_space<vmem>>, vector<8x2xf32>,
    %289 = vector.extract_strided_slice %101 {offsets = [48, 0], sizes = [8, 2], strides = [1, 1]} : vector<96x2xf32> to vector<8x2xf32>
    %c0_155 = arith.constant 0 : index
    %c28 = arith.constant 28 : index
    %290 = vector.load %arg42[%c0_155, %c28] : memref<8x128xf32, #tpu.memory_space<vmem>>, vector<8x2xf32>
    tpu.vector_store %arg42[%c0_155, %c28], %289 {strides = array<i32>} : memref<8x128xf32, #tpu.memory_space<vmem>>, vector<8x2xf32>,
    %291 = vector.extract_strided_slice %101 {offsets = [56, 0], sizes = [8, 2], strides = [1, 1]} : vector<96x2xf32> to vector<8x2xf32>
    %c0_156 = arith.constant 0 : index
    %c30 = arith.constant 30 : index
    %292 = vector.load %arg42[%c0_156, %c30] : memref<8x128xf32, #tpu.memory_space<vmem>>, vector<8x2xf32>
    tpu.vector_store %arg42[%c0_156, %c30], %291 {strides = array<i32>} : memref<8x128xf32, #tpu.memory_space<vmem>>, vector<8x2xf32>,
    %293 = vector.extract_strided_slice %101 {offsets = [64, 0], sizes = [8, 2], strides = [1, 1]} : vector<96x2xf32> to vector<8x2xf32>
    %c0_157 = arith.constant 0 : index
    %c32 = arith.constant 32 : index
    %294 = vector.load %arg42[%c0_157, %c32] : memref<8x128xf32, #tpu.memory_space<vmem>>, vector<8x2xf32>
    tpu.vector_store %arg42[%c0_157, %c32], %293 {strides = array<i32>} : memref<8x128xf32, #tpu.memory_space<vmem>>, vector<8x2xf32>,
    %295 = vector.extract_strided_slice %101 {offsets = [72, 0], sizes = [8, 2], strides = [1, 1]} : vector<96x2xf32> to vector<8x2xf32>
    %c0_158 = arith.constant 0 : index
    %c34 = arith.constant 34 : index
    %296 = vector.load %arg42[%c0_158, %c34] : memref<8x128xf32, #tpu.memory_space<vmem>>, vector<8x2xf32>
    tpu.vector_store %arg42[%c0_158, %c34], %295 {strides = array<i32>} : memref<8x128xf32, #tpu.memory_space<vmem>>, vector<8x2xf32>,
    %297 = vector.extract_strided_slice %101 {offsets = [80, 0], sizes = [8, 2], strides = [1, 1]} : vector<96x2xf32> to vector<8x2xf32>
    %c0_159 = arith.constant 0 : index
    %c36 = arith.constant 36 : index
    %298 = vector.load %arg42[%c0_159, %c36] : memref<8x128xf32, #tpu.memory_space<vmem>>, vector<8x2xf32>
    tpu.vector_store %arg42[%c0_159, %c36], %297 {strides = array<i32>} : memref<8x128xf32, #tpu.memory_space<vmem>>, vector<8x2xf32>,
    %299 = vector.extract_strided_slice %101 {offsets = [88, 0], sizes = [8, 2], strides = [1, 1]} : vector<96x2xf32> to vector<8x2xf32>
    %c0_160 = arith.constant 0 : index
    %c38 = arith.constant 38 : index
    %300 = vector.load %arg42[%c0_160, %c38] : memref<8x128xf32, #tpu.memory_space<vmem>>, vector<8x2xf32>
    tpu.vector_store %arg42[%c0_160, %c38], %299 {strides = array<i32>} : memref<8x128xf32, #tpu.memory_space<vmem>>, vector<8x2xf32>,
    %c0_161 = arith.constant 0 : index
    %c40 = arith.constant 40 : index
    %301 = vector.load %arg42[%c0_161, %c40] : memref<8x128xf32, #tpu.memory_space<vmem>>, vector<8x8xf32>
    tpu.vector_store %arg42[%c0_161, %c40], %188 {strides = array<i32>} : memref<8x128xf32, #tpu.memory_space<vmem>>, vector<8x8xf32>,
    %c0_162 = arith.constant 0 : index
    %c48 = arith.constant 48 : index
    %302 = vector.load %arg42[%c0_162, %c48] : memref<8x128xf32, #tpu.memory_space<vmem>>, vector<8x12xf32>
    tpu.vector_store %arg42[%c0_162, %c48], %226 {strides = array<i32>} : memref<8x128xf32, #tpu.memory_space<vmem>>, vector<8x12xf32>,
    %c0_163 = arith.constant 0 : index
    %c60 = arith.constant 60 : index
    %303 = vector.load %arg42[%c0_163, %c60] : memref<8x128xf32, #tpu.memory_space<vmem>>, vector<8x1xf32>
    tpu.vector_store %arg42[%c0_163, %c60], %260 {strides = array<i32>} : memref<8x128xf32, #tpu.memory_space<vmem>>, vector<8x1xf32>,
    %cst_164 = arith.constant 0.000000e+00 : f32
    %304 = vector.broadcast %cst_164 : f32 to vector<8x67xf32>
    %c0_165 = arith.constant 0 : index
    %c61 = arith.constant 61 : index
    %305 = vector.load %arg42[%c0_165, %c61] : memref<8x128xf32, #tpu.memory_space<vmem>>, vector<8x67xf32>
    tpu.vector_store %arg42[%c0_165, %c61], %304 {strides = array<i32>} : memref<8x128xf32, #tpu.memory_space<vmem>>, vector<8x67xf32>,
    return
  }
  func.func @transform_0(%arg0: i32) -> (i32, i32, i32) {
    %c0_i32 = arith.constant 0 : i32
    %c0_i32_0 = arith.constant 0 : i32
    %c0_i32_1 = arith.constant 0 : i32
    return %c0_i32, %arg0, %c0_i32_0 : i32, i32, i32
  }
  func.func @transform_1(%arg0: i32) -> (i32, i32, i32) {
    %c0_i32 = arith.constant 0 : i32
    %c0_i32_0 = arith.constant 0 : i32
    %c0_i32_1 = arith.constant 0 : i32
    return %c0_i32, %arg0, %c0_i32_0 : i32, i32, i32
  }
  func.func @transform_2(%arg0: i32) -> (i32, i32, i32) {
    %c0_i32 = arith.constant 0 : i32
    %c0_i32_0 = arith.constant 0 : i32
    %c0_i32_1 = arith.constant 0 : i32
    return %c0_i32, %arg0, %c0_i32_0 : i32, i32, i32
  }
  func.func @transform_3(%arg0: i32) -> (i32, i32) {
    %c0_i32 = arith.constant 0 : i32
    %c0_i32_0 = arith.constant 0 : i32
    %c0_i32_1 = arith.constant 0 : i32
    return %c0_i32, %c0_i32_0 : i32, i32
  }
  func.func @transform_4(%arg0: i32) -> (i32, i32) {
    %c0_i32 = arith.constant 0 : i32
    %c0_i32_0 = arith.constant 0 : i32
    %c0_i32_1 = arith.constant 0 : i32
    return %c0_i32, %c0_i32_0 : i32, i32
  }
  func.func @transform_5(%arg0: i32) -> (i32, i32) {
    %c0_i32 = arith.constant 0 : i32
    %c0_i32_0 = arith.constant 0 : i32
    %c0_i32_1 = arith.constant 0 : i32
    return %c0_i32, %c0_i32_0 : i32, i32
  }
  func.func @transform_6(%arg0: i32) -> (i32, i32) {
    %c0_i32 = arith.constant 0 : i32
    %c0_i32_0 = arith.constant 0 : i32
    %c0_i32_1 = arith.constant 0 : i32
    return %c0_i32, %c0_i32_0 : i32, i32
  }
  func.func @transform_7(%arg0: i32) -> (i32, i32) {
    %c0_i32 = arith.constant 0 : i32
    %c0_i32_0 = arith.constant 0 : i32
    %c0_i32_1 = arith.constant 0 : i32
    return %c0_i32, %c0_i32_0 : i32, i32
  }
  func.func @transform_8(%arg0: i32) -> (i32, i32) {
    %c0_i32 = arith.constant 0 : i32
    %c0_i32_0 = arith.constant 0 : i32
    %c0_i32_1 = arith.constant 0 : i32
    return %c0_i32, %c0_i32_0 : i32, i32
  }
  func.func @transform_9(%arg0: i32) -> (i32, i32) {
    %c0_i32 = arith.constant 0 : i32
    %c0_i32_0 = arith.constant 0 : i32
    %c0_i32_1 = arith.constant 0 : i32
    return %c0_i32, %c0_i32_0 : i32, i32
  }
  func.func @transform_10(%arg0: i32) -> (i32, i32) {
    %c0_i32 = arith.constant 0 : i32
    %c0_i32_0 = arith.constant 0 : i32
    %c0_i32_1 = arith.constant 0 : i32
    return %c0_i32, %c0_i32_0 : i32, i32
  }
  func.func @transform_11(%arg0: i32) -> (i32, i32) {
    %c0_i32 = arith.constant 0 : i32
    %c0_i32_0 = arith.constant 0 : i32
    %c0_i32_1 = arith.constant 0 : i32
    return %c0_i32, %c0_i32_0 : i32, i32
  }
  func.func @transform_12(%arg0: i32) -> (i32, i32) {
    %c0_i32 = arith.constant 0 : i32
    %c0_i32_0 = arith.constant 0 : i32
    %c0_i32_1 = arith.constant 0 : i32
    return %c0_i32, %c0_i32_0 : i32, i32
  }
  func.func @transform_13(%arg0: i32) -> (i32, i32) {
    %c0_i32 = arith.constant 0 : i32
    %c0_i32_0 = arith.constant 0 : i32
    %c0_i32_1 = arith.constant 0 : i32
    return %c0_i32, %c0_i32_0 : i32, i32
  }
  func.func @transform_14(%arg0: i32) -> (i32, i32) {
    %c0_i32 = arith.constant 0 : i32
    %c0_i32_0 = arith.constant 0 : i32
    %c0_i32_1 = arith.constant 0 : i32
    return %c0_i32, %c0_i32_0 : i32, i32
  }
  func.func @transform_15(%arg0: i32) -> (i32, i32) {
    %c0_i32 = arith.constant 0 : i32
    %c0_i32_0 = arith.constant 0 : i32
    %c0_i32_1 = arith.constant 0 : i32
    return %c0_i32, %c0_i32_0 : i32, i32
  }
  func.func @transform_16(%arg0: i32) -> (i32, i32) {
    %c0_i32 = arith.constant 0 : i32
    %c0_i32_0 = arith.constant 0 : i32
    %c0_i32_1 = arith.constant 0 : i32
    return %c0_i32, %c0_i32_0 : i32, i32
  }
  func.func @transform_17(%arg0: i32) -> (i32, i32) {
    %c0_i32 = arith.constant 0 : i32
    %c0_i32_0 = arith.constant 0 : i32
    %c0_i32_1 = arith.constant 0 : i32
    return %c0_i32, %c0_i32_0 : i32, i32
  }
  func.func @transform_18(%arg0: i32) -> (i32, i32) {
    %c0_i32 = arith.constant 0 : i32
    %c0_i32_0 = arith.constant 0 : i32
    %c0_i32_1 = arith.constant 0 : i32
    return %c0_i32, %c0_i32_0 : i32, i32
  }
  func.func @transform_19(%arg0: i32) -> (i32, i32) {
    %c0_i32 = arith.constant 0 : i32
    %c0_i32_0 = arith.constant 0 : i32
    %c0_i32_1 = arith.constant 0 : i32
    return %c0_i32, %c0_i32_0 : i32, i32
  }
  func.func @transform_20(%arg0: i32) -> (i32, i32) {
    %c0_i32 = arith.constant 0 : i32
    %c0_i32_0 = arith.constant 0 : i32
    %c0_i32_1 = arith.constant 0 : i32
    return %c0_i32, %c0_i32_0 : i32, i32
  }
  func.func @transform_21(%arg0: i32) -> (i32, i32) {
    %c0_i32 = arith.constant 0 : i32
    %c0_i32_0 = arith.constant 0 : i32
    %c0_i32_1 = arith.constant 0 : i32
    return %c0_i32, %c0_i32_0 : i32, i32
  }
  func.func @transform_22(%arg0: i32) -> (i32, i32) {
    %c0_i32 = arith.constant 0 : i32
    %c0_i32_0 = arith.constant 0 : i32
    %c0_i32_1 = arith.constant 0 : i32
    return %c0_i32, %c0_i32_0 : i32, i32
  }
  func.func @transform_23(%arg0: i32) -> (i32, i32) {
    %c0_i32 = arith.constant 0 : i32
    %c0_i32_0 = arith.constant 0 : i32
    %c0_i32_1 = arith.constant 0 : i32
    return %c0_i32, %c0_i32_0 : i32, i32
  }
  func.func @transform_24(%arg0: i32) -> (i32, i32) {
    %c0_i32 = arith.constant 0 : i32
    %c0_i32_0 = arith.constant 0 : i32
    %c0_i32_1 = arith.constant 0 : i32
    return %c0_i32, %c0_i32_0 : i32, i32
  }
  func.func @transform_25(%arg0: i32) -> (i32, i32) {
    %c0_i32 = arith.constant 0 : i32
    %c0_i32_0 = arith.constant 0 : i32
    %c0_i32_1 = arith.constant 0 : i32
    return %c0_i32, %c0_i32_0 : i32, i32
  }
  func.func @transform_26(%arg0: i32) -> (i32, i32) {
    %c0_i32 = arith.constant 0 : i32
    %c0_i32_0 = arith.constant 0 : i32
    %c0_i32_1 = arith.constant 0 : i32
    return %c0_i32, %c0_i32_0 : i32, i32
  }
  func.func @transform_27(%arg0: i32) -> (i32, i32) {
    %c0_i32 = arith.constant 0 : i32
    %c0_i32_0 = arith.constant 0 : i32
    %c0_i32_1 = arith.constant 0 : i32
    return %c0_i32, %c0_i32_0 : i32, i32
  }
  func.func @transform_28(%arg0: i32) -> (i32, i32) {
    %c0_i32 = arith.constant 0 : i32
    %c0_i32_0 = arith.constant 0 : i32
    %c0_i32_1 = arith.constant 0 : i32
    return %c0_i32, %c0_i32_0 : i32, i32
  }
  func.func @transform_29(%arg0: i32) -> (i32, i32) {
    %c0_i32 = arith.constant 0 : i32
    %c0_i32_0 = arith.constant 0 : i32
    %c0_i32_1 = arith.constant 0 : i32
    return %c0_i32, %c0_i32_0 : i32, i32
  }
  func.func @transform_30(%arg0: i32) -> (i32, i32) {
    %c0_i32 = arith.constant 0 : i32
    %c0_i32_0 = arith.constant 0 : i32
    %c0_i32_1 = arith.constant 0 : i32
    return %c0_i32, %c0_i32_0 : i32, i32
  }
  func.func @transform_31(%arg0: i32) -> (i32, i32) {
    %c0_i32 = arith.constant 0 : i32
    %c0_i32_0 = arith.constant 0 : i32
    %c0_i32_1 = arith.constant 0 : i32
    return %c0_i32, %c0_i32_0 : i32, i32
  }
  func.func @transform_32(%arg0: i32) -> (i32, i32) {
    %c0_i32 = arith.constant 0 : i32
    %c0_i32_0 = arith.constant 0 : i32
    %c0_i32_1 = arith.constant 0 : i32
    return %c0_i32, %c0_i32_0 : i32, i32
  }
  func.func @transform_33(%arg0: i32) -> (i32, i32) {
    %c0_i32 = arith.constant 0 : i32
    %c0_i32_0 = arith.constant 0 : i32
    %c0_i32_1 = arith.constant 0 : i32
    return %c0_i32, %c0_i32_0 : i32, i32
  }
  func.func @transform_34(%arg0: i32) -> (i32, i32) {
    %c0_i32 = arith.constant 0 : i32
    %c0_i32_0 = arith.constant 0 : i32
    %c0_i32_1 = arith.constant 0 : i32
    return %c0_i32, %c0_i32_0 : i32, i32
  }
  func.func @transform_35(%arg0: i32) -> (i32, i32) {
    %c0_i32 = arith.constant 0 : i32
    %c0_i32_0 = arith.constant 0 : i32
    %c0_i32_1 = arith.constant 0 : i32
    return %c0_i32, %c0_i32_0 : i32, i32
  }
  func.func @transform_36(%arg0: i32) -> (i32, i32) {
    %c0_i32 = arith.constant 0 : i32
    %c0_i32_0 = arith.constant 0 : i32
    %c0_i32_1 = arith.constant 0 : i32
    return %c0_i32, %c0_i32_0 : i32, i32
  }
  func.func @transform_37(%arg0: i32) -> (i32, i32) {
    %c0_i32 = arith.constant 0 : i32
    %c0_i32_0 = arith.constant 0 : i32
    %c0_i32_1 = arith.constant 0 : i32
    return %c0_i32, %c0_i32_0 : i32, i32
  }
  func.func @transform_38(%arg0: i32) -> (i32, i32) {
    %c0_i32 = arith.constant 0 : i32
    %c0_i32_0 = arith.constant 0 : i32
    %c0_i32_1 = arith.constant 0 : i32
    return %c0_i32, %c0_i32_0 : i32, i32
  }
  func.func @transform_39(%arg0: i32) -> (i32, i32) {
    %c0_i32 = arith.constant 0 : i32
    %c0_i32_0 = arith.constant 0 : i32
    %c0_i32_1 = arith.constant 0 : i32
    return %c0_i32, %c0_i32_0 : i32, i32
  }
  func.func @transform_40(%arg0: i32) -> (i32, i32) {
    %c0_i32 = arith.constant 0 : i32
    %c0_i32_0 = arith.constant 0 : i32
    %c0_i32_1 = arith.constant 0 : i32
    return %c0_i32, %c0_i32_0 : i32, i32
  }
  func.func @transform_41(%arg0: i32) -> (i32, i32) {
    %c0_i32 = arith.constant 0 : i32
    %c0_i32_0 = arith.constant 0 : i32
    return %arg0, %c0_i32 : i32, i32
  }
}

</mosaic_0001>

<bundles_post_ra>
// kernel: qhead_forward.1
= control target key start
LH: loop header
LB: loop body
LE: loop exit
PB: predicated region body
PF: predicated region fallthrough
CT: control target
= control target key end

     0   :  { %s7970_s6 = smov 1   ;;  %s7971_s10 = smov 2   ;;  %s9690_s0 = inlined_call_operand.smem [shape: u32[42], index: -1, kind: input, shape index: {}] }
   0x1   :  { %s8073_s5 = sld [smem:[%s9690_s0]]   ;;  %s7972_s14 = smov 3  }
   0x2   :  { %s8078_s9 = sld [smem:[%s9690_s0 + %s7970_s6]]   ;;  %s7973_s18 = smov 4  }
   0x3   :  { %s8083_s13 = sld [smem:[%s9690_s0 + %s7971_s10]]   ;;  %s7974_s22 = smov 5  }
   0x4   :  { %s8088_s17 = sld [smem:[%s9690_s0 + %s7972_s14]]   ;;  %s7975_s26 = smov 6  }
   0x5   :  { %s8093_s21 = sld [smem:[%s9690_s0 + %s7973_s18]]   ;;  %s7976_s30 = smov 7  }
   0x6   :  { %s8098_s25 = sld [smem:[%s9690_s0 + %s7974_s22]]   ;;  %s7977_s4 = smov 8  }
   0x7   :  { %9714 = sst [smem:[#allocation57_spill]] %s8073_s5  ;;  %s7978_s10 = smov 9  }
   0x8   :  { %9715 = sst [smem:[#allocation58_spill]] %s8078_s9  ;;  %s7979_s15 = smov 10  }
   0x9   :  { %9716 = sst [smem:[#allocation59_spill]] %s8083_s13  ;;  %s7980_s20 = smov 11  }
   0xa   :  { %s8103_s29 = sld [smem:[%s9690_s0 + %s7975_s26]]   ;;  %s7981_s26 = smov 12  }
   0xb   :  { %s8108_s3 = sld [smem:[%s9690_s0 + %s7976_s30]]   ;;  %s7982_s1 = smov 13  }
   0xc   :  { %9717 = sst [smem:[#allocation60_spill]] %s8098_s25  ;;  %s7983_s7 = smov 14  }
   0xd   :  { %s8113_s8 = sld [smem:[%s9690_s0 + %s7977_s4]]   ;;  %s7985_s22 = smov 16  }
   0xe   :  { %s8118_s14 = sld [smem:[%s9690_s0 + %s7978_s10]]   ;;  %s7986_s28 = smov 17  }
   0xf   :  { %s8123_s19 = sld [smem:[%s9690_s0 + %s7979_s15]]   ;;  %s7984_s15 = smov 15  }
  0x10   :  { %s8128_s24 = sld [smem:[%s9690_s0 + %s7980_s20]]  }
  0x11   :  { %9718 = sst [smem:[#allocation61_spill]] %s8108_s3 }
  0x12   :  { %s8133_s30 = sld [smem:[%s9690_s0 + %s7981_s26]]  }
  0x13   :  { %s8138_s6 = sld [smem:[%s9690_s0 + %s7982_s1]]   ;;  %s8010_s1 = smov 41  }
  0x14   :  { %9719 = sst [smem:[#allocation62_spill]] %s8118_s14 }
  0x15   :  { %9720 = sst [smem:[#allocation63_spill]] %s8123_s19 }
  0x16   :  { %s8143_s12 = sld [smem:[%s9690_s0 + %s7983_s7]]   ;;  %s7987_s7 = smov 18  }
  0x17   :  { %s8148_s20 = sld [smem:[%s9690_s0 + %s7984_s15]]   ;;  %s7988_s15 = smov 19  }
  0x18   :  { %9721 = sst [smem:[#allocation64_spill]] %s8133_s30 }
  0x19   :  { %s8153_s27 = sld [smem:[%s9690_s0 + %s7985_s22]]   ;;  %s7989_s22 = smov 20  }
  0x1a   :  { %s8158_s4 = sld [smem:[%s9690_s0 + %s7986_s28]]   ;;  %s7990_s28 = smov 21  }
  0x1b   :  { %s8163_s13 = sld [smem:[%s9690_s0 + %s7987_s7]]   ;;  %s7991_s7 = smov 22  }
  0x1c   :  { %9722 = sst [smem:[#allocation65_spill]] %s8143_s12 }
  0x1d   :  { %s8168_s14 = sld [smem:[%s9690_s0 + %s7988_s15]]   ;;  %s7992_s15 = smov 23  }
  0x1e   :  { %s8173_s9 = sld [smem:[%s9690_s0 + %s7989_s22]]   ;;  %s7993_s22 = smov 24  }
  0x1f   :  { %9723 = sst [smem:[#allocation66_spill]] %s8153_s27 }
  0x20   :  { %9724 = sst [smem:[#allocation67_spill]] %s8158_s4 }
  0x21   :  { %s8178_s4 = sld [smem:[%s9690_s0 + %s7990_s28]]   ;;  %s7994_s28 = smov 25  }
  0x22   :  { %s8183_s3 = sld [smem:[%s9690_s0 + %s7991_s7]]   ;;  %s7995_s7 = smov 26  }
  0x23   :  { %9725 = sst [smem:[#allocation68_spill]] %s8168_s14 }
  0x24   :  { %s8188_s25 = sld [smem:[%s9690_s0 + %s7992_s15]]   ;;  %s7996_s15 = smov 27  }
  0x25   :  { %s8193_s5 = sld [smem:[%s9690_s0 + %s7993_s22]]   ;;  %s7997_s22 = smov 28  }
  0x26   :  { %s8203_s14 = sld [smem:[%s9690_s0 + %s7995_s7]]   ;;  %s7999_s7 = smov 30  }
  0x27   :  { %9726 = sst [smem:[#allocation69_spill]] %s8178_s4 }
  0x28   :  { %s8198_s4 = sld [smem:[%s9690_s0 + %s7994_s28]]   ;;  %s7998_s28 = smov 29  }
  0x29   :  { %s8213_s27 = sld [smem:[%s9690_s0 + %s7997_s22]]   ;;  %s8001_s22 = smov 32  }
  0x2a   :  { %9727 = sst [smem:[#allocation70_spill]] %s8188_s25 }
  0x2b   :  { %s8208_s25 = sld [smem:[%s9690_s0 + %s7996_s15]]   ;;  %s8000_s15 = smov 31  }
  0x2c   :  { %9729 = sst [smem:[#allocation72_spill]] %s8203_s14 }
  0x2d   :  { %s8223_s14 = sld [smem:[%s9690_s0 + %s7999_s7]]   ;;  %s8003_s7 = smov 34  }
  0x2e   :  { %9728 = sst [smem:[#allocation71_spill]] %s8198_s4 }
  0x2f   :  { %s8218_s4 = sld [smem:[%s9690_s0 + %s7998_s28]]   ;;  %s8002_s28 = smov 33  }
  0x30   :  { %s8233_s12 = sld [smem:[%s9690_s0 + %s8001_s22]]   ;;  %s8005_s22 = smov 36  }
  0x31   :  { %9730 = sst [smem:[#allocation73_spill]] %s8208_s25 }
  0x32   :  { %s8228_s25 = sld [smem:[%s9690_s0 + %s8000_s15]]   ;;  %s8004_s15 = smov 35  }
  0x33   :  { %9732 = sst [smem:[#allocation75_spill]] %s8223_s14 }
  0x34   :  { %s8243_s14 = sld [smem:[%s9690_s0 + %s8003_s7]]   ;;  %s8007_s7 = smov 38  }
  0x35   :  { %9731 = sst [smem:[#allocation74_spill]] %s8218_s4 }
  0x36   :  { %9733 = sst [smem:[#allocation76_spill]] %s8233_s12 }
  0x37   :  { %s8238_s4 = sld [smem:[%s9690_s0 + %s8002_s28]]   ;;  %s8006_s28 = smov 37  }
  0x38   :  { %s8248_s30 = sld [smem:[%s9690_s0 + %s8004_s15]]   ;;  %s8008_s15 = smov 39  }
  0x39   :  { %s8253_s12 = sld [smem:[%s9690_s0 + %s8005_s22]]   ;;  %s8009_s22 = smov 40  }
  0x3a   :  { %s8263_s19 = sld [smem:[%s9690_s0 + %s8007_s7]]  }
  0x3d   :  { %9734 = sst [smem:[#allocation77_spill]] %s8238_s4 }
  0x3e   :  { %9735 = sst [smem:[#allocation78_spill]] %s8248_s30 }
  0x3f   :  { %9736 = sst [smem:[#allocation79_spill]] %s8253_s12 }
  0x40   :  { %s8258_s4 = sld [smem:[%s9690_s0 + %s8006_s28]]  }
  0x41   :  { %s8268_s30 = sld [smem:[%s9690_s0 + %s8008_s15]]  }
  0x42   :  { %s5559_s12 = sld [smem:[%s9690_s0 + %s8009_s22]]  }
  0x46   :  { %9737 = sst [smem:[#allocation80_spill]] %s8258_s4 }
  0x47   :  { %s8276_s4 = sld [smem:[%s9690_s0 + %s8010_s1]]  }
  0x48   :  { %v88_v0 = vstv %s5559_s12 }
  0x49   :  { %89 = vst [vmem:[#allocation2] sm:$0x1] %v88_v0 }
  0x4a   :  { %90 = vsyncpa [#allocation4], 0 }
  0x4b   :  { %91 = vsyncpa [#allocation6], 0 }
  0x4c   :  { %92 = vsyncpa [#allocation9], 0 }
  0x4d   :  { %93 = vsyncpa [#allocation12], 0 }
  0x4e   :  { %94 = vsyncpa [#allocation15], 0 }
  0x4f   :  { %95 = vsyncpa [#allocation18], 0 }
  0x50   :  { %96 = vsyncpa [#allocation21], 0 }
  0x51   :  { %97 = vsyncpa [#allocation24], 0 }
  0x52   :  { %98 = vsyncpa [#allocation27], 0 }
  0x53   :  { %99 = vsyncpa [#allocation30], 0 }
  0x54   :  { %100 = vsyncpa [#allocation33], 0 }
  0x55   :  { %101 = vsyncpa [#allocation36], 0 }
  0x56   :  { %102 = vsyncpa [#allocation39], 0  ;;  %s126_s7 = sshll.u32 %s8093_s21, 4  ;;  %s127_s7 = int_to_ptr.hbm [resolvable:$true] %s126_s7 }
  0x57   :  { %103 = vsyncpa [#allocation42], 0  ;;  %s8011_s0 = smov [#allocation5]   ;;  %s152_s10 = sshll.u32 %s8113_s8, 4  ;;  %s153_s10 = int_to_ptr.hbm [resolvable:$true] %s152_s10 }
  0x58   :  { %s128_s12 = sshll.u32 %s8011_s0, 4  ;;  %s7318_s11 = sshra.s32 %s127_s7, 4  ;;  %s129_s12 = int_to_ptr.vmem [resolvable:$true] %s128_s12  ;;  %s7319_s11 = int_to_ptr.hbm [resolvable:$true] %s7318_s11 }
  0x59   :  { %s7320_s15 = scalar_lea.hbm %s7319_s11, 4  ;;  %s7322_s16 = scalar_lea.hbm %s8093_s21, 4 }
  0x5a   :  { %p7321_p0 = scmp.ne.s32.totalorder %s7319_s11, %s7320_s15  ;;  %p7323_p1 = scmp.lt.s32.totalorder %s7319_s11, %s8093_s21 }
  0x5b   :  { %p7324_p2 = scmp.lt.s32.totalorder %s7322_s16, %s7320_s15 }
  0x5d   :  { %p7325_p3 = por %p7324_p2, %p7323_p1 }
  0x5f   :  { %p7326_p4 = pnand %p7325_p3, %p7321_p0 }
  0x61   :  { %7329 = shalt.err (!%p7326_p4)
}
  0x62   :  { %131 = dma.hbm_to_vmem [thread:$0]  %s127_s7, 64, %s129_s12, [#allocation6]  }
  0x63   :  { %s8012_s18 = smov [#allocation8]   ;;  %s176_s23 = sshll.u32 %s8128_s24, 4  ;;  %s177_s23 = int_to_ptr.hbm [resolvable:$true] %s176_s23 }
  0x64   :  { %s154_s22 = sshll.u32 %s8012_s18, 4  ;;  %s7342_s26 = sshra.s32 %s153_s10, 4  ;;  %s155_s22 = int_to_ptr.vmem [resolvable:$true] %s154_s22  ;;  %s7343_s26 = int_to_ptr.hbm [resolvable:$true] %s7342_s26 }
  0x65   :  { %s7344_s1 = scalar_lea.hbm %s7343_s26, 2  ;;  %s7346_s28 = scalar_lea.hbm %s8113_s8, 2 }
  0x66   :  { %p7345_p5 = scmp.ne.s32.totalorder %s7343_s26, %s7344_s1  ;;  %p7347_p6 = scmp.lt.s32.totalorder %s7343_s26, %s8113_s8 }
  0x67   :  { %p7348_p7 = scmp.lt.s32.totalorder %s7346_s28, %s7344_s1 }
  0x69   :  { %p7349_p8 = por %p7348_p7, %p7347_p6 }
  0x6b   :  { %p7350_p9 = pnand %p7349_p8, %p7345_p5 }
  0x6d   :  { %7353 = shalt.err (!%p7350_p9)
}
  0x6e   :  { %157 = dma.hbm_to_vmem [thread:$0]  %s153_s10, 32, %s155_s22, [#allocation9]  }
  0x6f   :  { %s197_s21 = sshll.u32 %s8138_s6, 4  ;;  %s8013_s2 = smov [#allocation11]   ;;  %s8286_s21 = int_to_ptr.hbm [resolvable:$true] %s197_s21 }
  0x70   :  { %s178_s7 = sshll.u32 %s8013_s2, 4  ;;  %s7366_s0 = sshra.s32 %s177_s23, 4  ;;  %s179_s7 = int_to_ptr.vmem [resolvable:$true] %s178_s7  ;;  %s7367_s0 = int_to_ptr.hbm [resolvable:$true] %s7366_s0 }
  0x71   :  { %s7368_s12 = scalar_lea.hbm %s7367_s0, 16  ;;  %s7370_s11 = scalar_lea.hbm %s8128_s24, 16 }
  0x72   :  { %p7369_p10 = scmp.ne.s32.totalorder %s7367_s0, %s7368_s12  ;;  %p7371_p11 = scmp.lt.s32.totalorder %s7367_s0, %s8128_s24 }
  0x73   :  { %p7372_p12 = scmp.lt.s32.totalorder %s7370_s11, %s7368_s12 }
  0x75   :  { %p7373_p13 = por %p7372_p12, %p7371_p11 }
  0x77   :  { %p7374_p0 = pnand %p7373_p13, %p7369_p10 }
  0x79   :  { %7377 = shalt.err (!%p7374_p0)
}
  0x7a   :  { %181 = dma.hbm_to_vmem [thread:$0]  %s177_s23, 256, %s179_s7, [#allocation12]  }
  0x7b   :  { %s8014_s8 = smov [#allocation14]   ;;  %s7390_s15 = sshra.s32 %s8286_s21, 4  ;;  %s7391_s15 = int_to_ptr.hbm [resolvable:$true] %s7390_s15 }
  0x7c   :  { %s199_s10 = sshll.u32 %s8014_s8, 4  ;;  %s7392_s16 = scalar_lea.hbm %s7391_s15, 512  ;;  %s200_s10 = int_to_ptr.vmem [resolvable:$true] %s199_s10 }
  0x7d   :  { %p7393_p1 = scmp.ne.s32.totalorder %s7391_s15, %s7392_s16  ;;  %s7394_s18 = scalar_lea.hbm %s8138_s6, 512 }
  0x7e   :  { %p7395_p2 = scmp.lt.s32.totalorder %s7391_s15, %s8138_s6  ;;  %p7396_p3 = scmp.lt.s32.totalorder %s7394_s18, %s7392_s16 }
  0x80   :  { %p7397_p4 = por %p7396_p3, %p7395_p2 }
  0x82   :  { %p7398_p5 = pnand %p7397_p4, %p7393_p1 }
  0x84   :  { %7401 = shalt.err (!%p7398_p5)
}
  0x85   :  { %s8015_s24 = smov 128   ;;  %s8016_s22 = smov 8  }
  0x86   :  { %205 = dma.hbm_to_vmem [thread:$0]  %s8286_s21, 8192, %s200_s10, [#allocation15], %s8015_s24, %s8015_s24, %s8016_s22  }
  0x87   :  { %s221_s23 = sshll.u32 %s8148_s20, 4  ;;  %s8017_s26 = smov [#allocation17]   ;;  %s222_s23 = int_to_ptr.hbm [resolvable:$true] %s221_s23 }
  0x88   :  { %s223_s1 = sshll.u32 %s8017_s26, 4  ;;  %s248_s28 = sshll.u32 %s8163_s13, 4  ;;  %s224_s1 = int_to_ptr.vmem [resolvable:$true] %s223_s1  ;;  %s249_s28 = int_to_ptr.hbm [resolvable:$true] %s248_s28 }
  0x89   :  { %s7414_s6 = sshra.s32 %s222_s23, 4  ;;  %s7418_s7 = scalar_lea.hbm %s8148_s20, 256  ;;  %s7415_s6 = int_to_ptr.hbm [resolvable:$true] %s7414_s6 }
  0x8a   :  { %s7416_s2 = scalar_lea.hbm %s7415_s6, 256  ;;  %p7419_p7 = scmp.lt.s32.totalorder %s7415_s6, %s8148_s20 }
  0x8b   :  { %p7417_p6 = scmp.ne.s32.totalorder %s7415_s6, %s7416_s2  ;;  %p7420_p8 = scmp.lt.s32.totalorder %s7418_s7, %s7416_s2 }
  0x8d   :  { %p7421_p9 = por %p7420_p8, %p7419_p7 }
  0x8f   :  { %p7422_p10 = pnand %p7421_p9, %p7417_p6 }
  0x91   :  { %7425 = shalt.err (!%p7422_p10)
}
  0x92   :  { %229 = dma.hbm_to_vmem [thread:$0]  %s222_s23, 4096, %s224_s1, [#allocation18], %s8015_s24, %s8015_s24, %s8016_s22  }
  0x93   :  { %s8018_s21 = smov [#allocation20]   ;;  %s270_s12 = sshll.u32 %s8173_s9, 4  ;;  %s271_s12 = int_to_ptr.hbm [resolvable:$true] %s270_s12 }
  0x94   :  { %s250_s0 = sshll.u32 %s8018_s21, 4  ;;  %s7438_s11 = sshra.s32 %s249_s28, 4  ;;  %s251_s0 = int_to_ptr.vmem [resolvable:$true] %s250_s0  ;;  %s7439_s11 = int_to_ptr.hbm [resolvable:$true] %s7438_s11 }
  0x95   :  { %s7440_s8 = scalar_lea.hbm %s7439_s11, 1  ;;  %s7442_s20 = scalar_lea.hbm %s8163_s13, 1 }
  0x96   :  { %p7441_p11 = scmp.ne.s32.totalorder %s7439_s11, %s7440_s8  ;;  %p7443_p12 = scmp.lt.s32.totalorder %s7439_s11, %s8163_s13 }
  0x97   :  { %p7444_p13 = scmp.lt.s32.totalorder %s7442_s20, %s7440_s8 }
  0x99   :  { %p7445_p0 = por %p7444_p13, %p7443_p12 }
  0x9b   :  { %p7446_p1 = pnand %p7445_p0, %p7441_p11 }
  0x9d   :  { %7449 = shalt.err (!%p7446_p1)
}
  0x9e   :  { %253 = dma.hbm_to_vmem [thread:$0]  %s249_s28, 16, %s251_s0, [#allocation21]  }
  0x9f   :  { %s294_s10 = sshll.u32 %s8183_s3, 4  ;;  %s8019_s15 = smov [#allocation23]   ;;  %s295_s10 = int_to_ptr.hbm [resolvable:$true] %s294_s10 }
  0xa0   :  { %s272_s16 = sshll.u32 %s8019_s15, 4  ;;  %s7462_s18 = sshra.s32 %s271_s12, 4  ;;  %s273_s16 = int_to_ptr.vmem [resolvable:$true] %s272_s16  ;;  %s7463_s18 = int_to_ptr.hbm [resolvable:$true] %s7462_s18 }
  0xa1   :  { %s7464_s24 = scalar_lea.hbm %s7463_s18, 1  ;;  %s7466_s23 = scalar_lea.hbm %s8173_s9, 1 }
  0xa2   :  { %p7465_p2 = scmp.ne.s32.totalorder %s7463_s18, %s7464_s24  ;;  %p7467_p3 = scmp.lt.s32.totalorder %s7463_s18, %s8173_s9 }
  0xa3   :  { %p7468_p4 = scmp.lt.s32.totalorder %s7466_s23, %s7464_s24 }
  0xa5   :  { %p7469_p5 = por %p7468_p4, %p7467_p3 }
  0xa7   :  { %p7470_p6 = pnand %p7469_p5, %p7465_p2 }
  0xa9   :  { %7473 = shalt.err (!%p7470_p6)
}
  0xaa   :  { %275 = dma.hbm_to_vmem [thread:$0]  %s271_s12, 16, %s273_s16, [#allocation24]  }
  0xab   :  { %s8020_s13 = smov [#allocation26]   ;;  %s318_s1 = sshll.u32 %s8193_s5, 4  ;;  %s319_s1 = int_to_ptr.hbm [resolvable:$true] %s318_s1 }
  0xac   :  { %s296_s26 = sshll.u32 %s8020_s13, 4  ;;  %s7486_s28 = sshra.s32 %s295_s10, 4  ;;  %s297_s26 = int_to_ptr.vmem [resolvable:$true] %s296_s26  ;;  %s7487_s28 = int_to_ptr.hbm [resolvable:$true] %s7486_s28 }
  0xad   :  { %s7488_s6 = scalar_lea.hbm %s7487_s28, 1  ;;  %s7490_s2 = scalar_lea.hbm %s8183_s3, 1 }
  0xae   :  { %p7489_p7 = scmp.ne.s32.totalorder %s7487_s28, %s7488_s6  ;;  %p7491_p8 = scmp.lt.s32.totalorder %s7487_s28, %s8183_s3 }
  0xaf   :  { %p7492_p9 = scmp.lt.s32.totalorder %s7490_s2, %s7488_s6 }
  0xb1   :  { %p7493_p10 = por %p7492_p9, %p7491_p8 }
  0xb3   :  { %p7494_p11 = pnand %p7493_p10, %p7489_p7 }
  0xb5   :  { %7497 = shalt.err (!%p7494_p11)
}
  0xb6   :  { %299 = dma.hbm_to_vmem [thread:$0]  %s295_s10, 16, %s297_s26, [#allocation27]  }
  0xb7   :  { %s344_s9 = sshll.u32 %s8213_s27, 4  ;;  %s8021_s7 = smov [#allocation29]   ;;  %s345_s9 = int_to_ptr.hbm [resolvable:$true] %s344_s9 }
  0xb8   :  { %s320_s21 = sshll.u32 %s8021_s7, 4  ;;  %s7510_s0 = sshra.s32 %s319_s1, 4  ;;  %s321_s21 = int_to_ptr.vmem [resolvable:$true] %s320_s21  ;;  %s7511_s0 = int_to_ptr.hbm [resolvable:$true] %s7510_s0 }
  0xb9   :  { %s7512_s12 = scalar_lea.hbm %s7511_s0, 3  ;;  %s7514_s11 = scalar_lea.hbm %s8193_s5, 3 }
  0xba   :  { %p7513_p12 = scmp.ne.s32.totalorder %s7511_s0, %s7512_s12  ;;  %p7515_p13 = scmp.lt.s32.totalorder %s7511_s0, %s8193_s5 }
  0xbb   :  { %p7516_p0 = scmp.lt.s32.totalorder %s7514_s11, %s7512_s12 }
  0xbd   :  { %p7517_p1 = por %p7516_p0, %p7515_p13 }
  0xbf   :  { %p7518_p2 = pnand %p7517_p1, %p7513_p12 }
  0xc1   :  { %7521 = shalt.err (!%p7518_p2)
}
  0xc2   :  { %323 = dma.hbm_to_vmem [thread:$0]  %s319_s1, 48, %s321_s21, [#allocation30]  }
  0xc3   :  { %s8022_s3 = smov [#allocation32]   ;;  %s7534_s20 = sshra.s32 %s345_s9, 4  ;;  %s7535_s20 = int_to_ptr.hbm [resolvable:$true] %s7534_s20 }
  0xc4   :  { %s346_s8 = sshll.u32 %s8022_s3, 4  ;;  %s7536_s10 = scalar_lea.hbm %s7535_s20, 1  ;;  %s347_s8 = int_to_ptr.vmem [resolvable:$true] %s346_s8 }
  0xc5   :  { %p7537_p3 = scmp.ne.s32.totalorder %s7535_s20, %s7536_s10  ;;  %s7538_s15 = scalar_lea.hbm %s8213_s27, 1 }
  0xc6   :  { %p7539_p4 = scmp.lt.s32.totalorder %s7535_s20, %s8213_s27  ;;  %p7540_p5 = scmp.lt.s32.totalorder %s7538_s15, %s7536_s10 }
  0xc8   :  { %p7541_p6 = por %p7540_p5, %p7539_p4 }
  0xca   :  { %p7542_p7 = pnand %p7541_p6, %p7537_p3 }
  0xcc   :  { %7545 = shalt.err (!%p7542_p7)
}
  0xcd   :  { %349 = dma.hbm_to_vmem [thread:$0]  %s345_s9, 16, %s347_s8, [#allocation33]  }
  0xce   :  { %s369_s5 = sshll.u32 %s8228_s25, 4  ;;  %s8023_s16 = smov [#allocation35]   ;;  %s370_s5 = int_to_ptr.hbm [resolvable:$true] %s369_s5 }
  0xcf   :  { %s371_s18 = sshll.u32 %s8023_s16, 4  ;;  %s396_s24 = sshll.u32 %s8243_s14, 4  ;;  %s372_s18 = int_to_ptr.vmem [resolvable:$true] %s371_s18  ;;  %s397_s24 = int_to_ptr.hbm [resolvable:$true] %s396_s24 }
  0xd0   :  { %s7558_s23 = sshra.s32 %s370_s5, 4  ;;  %s7562_s27 = scalar_lea.hbm %s8228_s25, 152  ;;  %s7559_s23 = int_to_ptr.hbm [resolvable:$true] %s7558_s23 }
  0xd1   :  { %s7560_s13 = scalar_lea.hbm %s7559_s23, 152  ;;  %p7563_p9 = scmp.lt.s32.totalorder %s7559_s23, %s8228_s25 }
  0xd2   :  { %p7561_p8 = scmp.ne.s32.totalorder %s7559_s23, %s7560_s13  ;;  %p7564_p10 = scmp.lt.s32.totalorder %s7562_s27, %s7560_s13 }
  0xd4   :  { %p7565_p11 = por %p7564_p10, %p7563_p9 }
  0xd6   :  { %p7566_p12 = pnand %p7565_p11, %p7561_p8 }
  0xd8   :  { %7569 = shalt.err (!%p7566_p12)
}
  0xd9   :  { %s8024_s26 = smov 64   ;;  %s8025_s1 = smov 4  }
  0xda   :  { %377 = dma.hbm_to_vmem [thread:$0]  %s370_s5, 2432, %s372_s18, [#allocation36], %s8024_s26, %s8024_s26, %s8025_s1  }
  0xdb   :  { %s8026_s28 = smov [#allocation38]   ;;  %s115_s2 = sshll.u32 %s8088_s17, 4  ;;  %s116_s2 = int_to_ptr.hbm [resolvable:$true] %s115_s2 }
  0xdc   :  { %s398_s6 = sshll.u32 %s8026_s28, 4  ;;  %s7582_s25 = sshra.s32 %s397_s24, 4  ;;  %s399_s6 = int_to_ptr.vmem [resolvable:$true] %s398_s6  ;;  %s7583_s25 = int_to_ptr.hbm [resolvable:$true] %s7582_s25 }
  0xdd   :  { %s7584_s9 = scalar_lea.hbm %s7583_s25, 1  ;;  %s7586_s7 = scalar_lea.hbm %s8243_s14, 1 }
  0xde   :  { %p7585_p13 = scmp.ne.s32.totalorder %s7583_s25, %s7584_s9  ;;  %p7587_p0 = scmp.lt.s32.totalorder %s7583_s25, %s8243_s14 }
  0xdf   :  { %p7588_p1 = scmp.lt.s32.totalorder %s7586_s7, %s7584_s9 }
  0xe1   :  { %p7589_p2 = por %p7588_p1, %p7587_p0 }
  0xe3   :  { %p7590_p3 = pnand %p7589_p2, %p7585_p13 }
  0xe5   :  { %7593 = shalt.err (!%p7590_p3)
}
  0xe6   :  { %401 = dma.hbm_to_vmem [thread:$0]  %s397_s24, 16, %s399_s6, [#allocation39]  }
  0xe7   :  { %s139_s21 = sshll.u32 %s8103_s29, 4  ;;  %s8027_s0 = smov [#allocation3]   ;;  %s140_s21 = int_to_ptr.hbm [resolvable:$true] %s139_s21 }
  0xe8   :  { %s117_s12 = sshll.u32 %s8027_s0, 4  ;;  %s7606_s11 = sshra.s32 %s116_s2, 4  ;;  %s118_s12 = int_to_ptr.vmem [resolvable:$true] %s117_s12  ;;  %s7607_s11 = int_to_ptr.hbm [resolvable:$true] %s7606_s11 }
  0xe9   :  { %s7608_s3 = scalar_lea.hbm %s7607_s11, 16  ;;  %s7610_s8 = scalar_lea.hbm %s8088_s17, 16 }
  0xea   :  { %p7609_p4 = scmp.ne.s32.totalorder %s7607_s11, %s7608_s3  ;;  %p7611_p5 = scmp.lt.s32.totalorder %s7607_s11, %s8088_s17 }
  0xeb   :  { %p7612_p6 = scmp.lt.s32.totalorder %s7610_s8, %s7608_s3 }
  0xed   :  { %p7613_p7 = por %p7612_p6, %p7611_p5 }
  0xef   :  { %p7614_p8 = pnand %p7613_p7, %p7609_p4 }
  0xf1   :  { %7617 = shalt.err (!%p7614_p8)
}
  0xf2   :  { %120 = dma.hbm_to_vmem [thread:$0]  %s116_s2, 256, %s118_s12, [#allocation4]  }
  0xf3   :  { %s9738_s14 = sld [smem:[#allocation63_spill]]  ;;  %s8028_s20 = smov [#allocation7]  }
  0xf4   :  { %s141_s10 = sshll.u32 %s8028_s20, 4  ;;  %s7630_s5 = sshra.s32 %s140_s21, 4  ;;  %s142_s10 = int_to_ptr.vmem [resolvable:$true] %s141_s10  ;;  %s7631_s5 = int_to_ptr.hbm [resolvable:$true] %s7630_s5 }
  0xf5   :  { %s7632_s16 = scalar_lea.hbm %s7631_s5, 2  ;;  %s7634_s18 = scalar_lea.hbm %s8103_s29, 2 }
  0xf6   :  { %p7633_p9 = scmp.ne.s32.totalorder %s7631_s5, %s7632_s16  ;;  %p7635_p10 = scmp.lt.s32.totalorder %s7631_s5, %s8103_s29 }
  0xf7   :  { %p7636_p11 = scmp.lt.s32.totalorder %s7634_s18, %s7632_s16 }
  0xf9   :  { %s165_s15 = sshll.u32 %s9738_s14, 4  ;;  %p7637_p12 = por %p7636_p11, %p7635_p10  ;;  %s166_s15 = int_to_ptr.hbm [resolvable:$true] %s165_s15 }
  0xfb   :  { %p7638_p13 = pnand %p7637_p12, %p7633_p9 }
  0xfd   :  { %7641 = shalt.err (!%p7638_p13)
}
  0xfe   :  { %144 = dma.hbm_to_vmem [thread:$0]  %s140_s21, 32, %s142_s10, [#allocation6]  }
  0xff   :  { %s9739_s17 = sld [smem:[#allocation64_spill]]  ;;  %s8029_s23 = smov [#allocation10]  }
 0x100   :  { %s167_s13 = sshll.u32 %s8029_s23, 4  ;;  %s7654_s27 = sshra.s32 %s166_s15, 4  ;;  %s168_s13 = int_to_ptr.vmem [resolvable:$true] %s167_s13  ;;  %s7655_s27 = int_to_ptr.hbm [resolvable:$true] %s7654_s27 }
 0x101   :  { %s7656_s28 = scalar_lea.hbm %s7655_s27, 1  ;;  %s7658_s6 = scalar_lea.hbm %s9738_s14, 1 }
 0x102   :  { %p7657_p0 = scmp.ne.s32.totalorder %s7655_s27, %s7656_s28  ;;  %p7659_p1 = scmp.lt.s32.totalorder %s7655_s27, %s9738_s14 }
 0x103   :  { %p7660_p2 = scmp.lt.s32.totalorder %s7658_s6, %s7656_s28 }
 0x105   :  { %s187_s24 = sshll.u32 %s9739_s17, 4  ;;  %p7661_p3 = por %p7660_p2, %p7659_p1  ;;  %s188_s24 = int_to_ptr.hbm [resolvable:$true] %s187_s24 }
 0x107   :  { %p7662_p4 = pnand %p7661_p3, %p7657_p0 }
 0x109   :  { %7665 = shalt.err (!%p7662_p4)
}
 0x10a   :  { %170 = dma.hbm_to_vmem [thread:$0]  %s166_s15, 16, %s168_s13, [#allocation9]  }
 0x10b   :  { %s9740_s29 = sld [smem:[#allocation65_spill]]  ;;  %s8030_s2 = smov [#allocation13]  }
 0x10c   :  { %s189_s25 = sshll.u32 %s8030_s2, 4  ;;  %s7678_s7 = sshra.s32 %s188_s24, 4  ;;  %s190_s25 = int_to_ptr.vmem [resolvable:$true] %s189_s25  ;;  %s7679_s7 = int_to_ptr.hbm [resolvable:$true] %s7678_s7 }
 0x10d   :  { %s7680_s21 = scalar_lea.hbm %s7679_s7, 4  ;;  %s7682_s0 = scalar_lea.hbm %s9739_s17, 4 }
 0x10e   :  { %p7681_p5 = scmp.ne.s32.totalorder %s7679_s7, %s7680_s21  ;;  %p7683_p6 = scmp.lt.s32.totalorder %s7679_s7, %s9739_s17 }
 0x10f   :  { %p7684_p7 = scmp.lt.s32.totalorder %s7682_s0, %s7680_s21 }
 0x111   :  { %s211_s9 = sshll.u32 %s9740_s29, 4  ;;  %p7685_p8 = por %p7684_p7, %p7683_p6  ;;  %s212_s9 = int_to_ptr.hbm [resolvable:$true] %s211_s9 }
 0x113   :  { %p7686_p9 = pnand %p7685_p8, %p7681_p5 }
 0x115   :  { %7689 = shalt.err (!%p7686_p9)
}
 0x116   :  { %192 = dma.hbm_to_vmem [thread:$0]  %s188_s24, 64, %s190_s25, [#allocation12]  }
 0x117   :  { %s9741_s12 = sld [smem:[#allocation66_spill]]  ;;  %s8031_s3 = smov [#allocation16]  }
 0x118   :  { %s213_s8 = sshll.u32 %s8031_s3, 4  ;;  %s7702_s14 = sshra.s32 %s212_s9, 4  ;;  %s214_s8 = int_to_ptr.vmem [resolvable:$true] %s213_s8  ;;  %s7703_s14 = int_to_ptr.hbm [resolvable:$true] %s7702_s14 }
 0x119   :  { %s7704_s20 = scalar_lea.hbm %s7703_s14, 2  ;;  %s7706_s10 = scalar_lea.hbm %s9740_s29, 2 }
 0x11a   :  { %p7705_p10 = scmp.ne.s32.totalorder %s7703_s14, %s7704_s20  ;;  %p7707_p11 = scmp.lt.s32.totalorder %s7703_s14, %s9740_s29 }
 0x11b   :  { %p7708_p12 = scmp.lt.s32.totalorder %s7706_s10, %s7704_s20 }
 0x11d   :  { %s235_s11 = sshll.u32 %s9741_s12, 4  ;;  %p7709_p13 = por %p7708_p12, %p7707_p11  ;;  %s236_s11 = int_to_ptr.hbm [resolvable:$true] %s235_s11 }
 0x11f   :  { %p7710_p0 = pnand %p7709_p13, %p7705_p10 }
 0x121   :  { %7713 = shalt.err (!%p7710_p0)
}
 0x122   :  { %216 = dma.hbm_to_vmem [thread:$0]  %s212_s9, 32, %s214_s8, [#allocation15]  }
 0x123   :  { %s9742_s15 = sld [smem:[#allocation68_spill]]  ;;  %s8032_s5 = smov [#allocation19]  }
 0x124   :  { %s237_s16 = sshll.u32 %s8032_s5, 4  ;;  %s7726_s17 = sshra.s32 %s236_s11, 4  ;;  %s238_s16 = int_to_ptr.vmem [resolvable:$true] %s237_s16  ;;  %s7727_s17 = int_to_ptr.hbm [resolvable:$true] %s7726_s17 }
 0x125   :  { %s7728_s24 = scalar_lea.hbm %s7727_s17, 2  ;;  %s7730_s23 = scalar_lea.hbm %s9741_s12, 2 }
 0x126   :  { %p7729_p1 = scmp.ne.s32.totalorder %s7727_s17, %s7728_s24  ;;  %p7731_p2 = scmp.lt.s32.totalorder %s7727_s17, %s9741_s12 }
 0x127   :  { %p7732_p3 = scmp.lt.s32.totalorder %s7730_s23, %s7728_s24 }
 0x129   :  { %s259_s18 = sshll.u32 %s9742_s15, 4  ;;  %p7733_p4 = por %p7732_p3, %p7731_p2  ;;  %s260_s18 = int_to_ptr.hbm [resolvable:$true] %s259_s18 }
 0x12b   :  { %p7734_p5 = pnand %p7733_p4, %p7729_p1 }
 0x12d   :  { %7737 = shalt.err (!%p7734_p5)
}
 0x12e   :  { %240 = dma.hbm_to_vmem [thread:$0]  %s236_s11, 32, %s238_s16, [#allocation18]  }
 0x12f   :  { %s9743_s13 = sld [smem:[#allocation69_spill]]  ;;  %s8033_s28 = smov [#allocation22]  }
 0x130   :  { %s261_s6 = sshll.u32 %s8033_s28, 4  ;;  %s7750_s29 = sshra.s32 %s260_s18, 4  ;;  %s262_s6 = int_to_ptr.vmem [resolvable:$true] %s261_s6  ;;  %s7751_s29 = int_to_ptr.hbm [resolvable:$true] %s7750_s29 }
 0x131   :  { %s7752_s2 = scalar_lea.hbm %s7751_s29, 4  ;;  %s7754_s25 = scalar_lea.hbm %s9742_s15, 4 }
 0x132   :  { %p7753_p6 = scmp.ne.s32.totalorder %s7751_s29, %s7752_s2  ;;  %p7755_p7 = scmp.lt.s32.totalorder %s7751_s29, %s9742_s15 }
 0x133   :  { %p7756_p8 = scmp.lt.s32.totalorder %s7754_s25, %s7752_s2 }
 0x135   :  { %s280_s27 = sshll.u32 %s9743_s13, 4  ;;  %p7757_p9 = por %p7756_p8, %p7755_p7  ;;  %s8343_s27 = int_to_ptr.hbm [resolvable:$true] %s280_s27 }
 0x137   :  { %p7758_p10 = pnand %p7757_p9, %p7753_p6 }
 0x139   :  { %7761 = shalt.err (!%p7758_p10)
}
 0x13a   :  { %264 = dma.hbm_to_vmem [thread:$0]  %s260_s18, 64, %s262_s6, [#allocation21]  }
 0x13b   :  { %s9744_s9 = sld [smem:[#allocation70_spill]]  ;;  %s8034_s7 = smov [#allocation25]  }
 0x13c   :  { %s282_s21 = sshll.u32 %s8034_s7, 4  ;;  %s7774_s12 = sshra.s32 %s8343_s27, 4  ;;  %s283_s21 = int_to_ptr.vmem [resolvable:$true] %s282_s21  ;;  %s7775_s12 = int_to_ptr.hbm [resolvable:$true] %s7774_s12 }
 0x13d   :  { %s7776_s11 = scalar_lea.hbm %s7775_s12, 32  ;;  %s7778_s3 = scalar_lea.hbm %s9743_s13, 32 }
 0x13e   :  { %p7777_p11 = scmp.ne.s32.totalorder %s7775_s12, %s7776_s11  ;;  %p7779_p12 = scmp.lt.s32.totalorder %s7775_s12, %s9743_s13 }
 0x13f   :  { %p7780_p13 = scmp.lt.s32.totalorder %s7778_s3, %s7776_s11 }
 0x141   :  { %s304_s0 = sshll.u32 %s9744_s9, 4  ;;  %p7781_p0 = por %p7780_p13, %p7779_p12  ;;  %s8348_s0 = int_to_ptr.hbm [resolvable:$true] %s304_s0 }
 0x143   :  { %p7782_p1 = pnand %p7781_p0, %p7777_p11 }
 0x145   :  { %7785 = shalt.err (!%p7782_p1)
}
 0x146   :  { %s9745_s8 = sld [smem:[#allocation72_spill]]  ;;  %s8035_s14 = smov [#allocation28]  }
 0x147   :  { %288 = dma.hbm_to_vmem [thread:$0]  %s8343_s27, 512, %s283_s21, [#allocation24], %s8024_s26, %s8024_s26, %s8025_s1  }
 0x148   :  { %s306_s20 = sshll.u32 %s8035_s14, 4  ;;  %s7798_s15 = sshra.s32 %s8348_s0, 4  ;;  %s307_s20 = int_to_ptr.vmem [resolvable:$true] %s306_s20  ;;  %s7799_s15 = int_to_ptr.hbm [resolvable:$true] %s7798_s15 }
 0x149   :  { %s7800_s5 = scalar_lea.hbm %s7799_s15, 24  ;;  %s7802_s16 = scalar_lea.hbm %s9744_s9, 24 }
 0x14a   :  { %p7801_p2 = scmp.ne.s32.totalorder %s7799_s15, %s7800_s5  ;;  %p7803_p3 = scmp.lt.s32.totalorder %s7799_s15, %s9744_s9 }
 0x14b   :  { %p7804_p4 = scmp.lt.s32.totalorder %s7802_s16, %s7800_s5 }
 0x14c   :  { %s331_s10 = sshll.u32 %s9745_s8, 4  ;;  %s332_s10 = int_to_ptr.hbm [resolvable:$true] %s331_s10 }
 0x14d   :  { %p7805_p5 = por %p7804_p4, %p7803_p3 }
 0x14f   :  { %p7806_p6 = pnand %p7805_p5, %p7801_p2 }
 0x151   :  { %7809 = shalt.err (!%p7806_p6)
}
 0x152   :  { %s8036_s18 = smov 192   ;;  %s9746_s17 = sld [smem:[#allocation74_spill]] }
 0x153   :  { %s8037_s24 = smov 12   ;;  %s8038_s23 = smov [#allocation31]  }
 0x154   :  { %312 = dma.hbm_to_vmem [thread:$0]  %s8348_s0, 384, %s307_s20, [#allocation27], %s8036_s18, %s8036_s18, %s8037_s24  }
 0x155   :  { %s333_s13 = sshll.u32 %s8038_s23, 4  ;;  %s7822_s28 = sshra.s32 %s332_s10, 4  ;;  %s334_s13 = int_to_ptr.vmem [resolvable:$true] %s333_s13  ;;  %s7823_s28 = int_to_ptr.hbm [resolvable:$true] %s7822_s28 }
 0x156   :  { %s7824_s6 = scalar_lea.hbm %s7823_s28, 1  ;;  %s7826_s29 = scalar_lea.hbm %s9745_s8, 1 }
 0x157   :  { %p7825_p7 = scmp.ne.s32.totalorder %s7823_s28, %s7824_s6  ;;  %p7827_p8 = scmp.lt.s32.totalorder %s7823_s28, %s9745_s8 }
 0x158   :  { %s354_s27 = sshll.u32 %s9746_s17, 4  ;;  %p7828_p9 = scmp.lt.s32.totalorder %s7826_s29, %s7824_s6  ;;  %s8366_s27 = int_to_ptr.hbm [resolvable:$true] %s354_s27 }
 0x15a   :  { %p7829_p10 = por %p7828_p9, %p7827_p8 }
 0x15c   :  { %p7830_p11 = pnand %p7829_p10, %p7825_p7 }
 0x15e   :  { %7833 = shalt.err (!%p7830_p11)
}
 0x15f   :  { %336 = dma.hbm_to_vmem [thread:$0]  %s332_s10, 16, %s334_s13, [#allocation30]  }
 0x160   :  { %s9747_s2 = sld [smem:[#allocation76_spill]]  ;;  %s8039_s9 = smov [#allocation34]  }
 0x161   :  { %s356_s7 = sshll.u32 %s8039_s9, 4  ;;  %s7846_s21 = sshra.s32 %s8366_s27, 4  ;;  %s357_s7 = int_to_ptr.vmem [resolvable:$true] %s356_s7  ;;  %s7847_s21 = int_to_ptr.hbm [resolvable:$true] %s7846_s21 }
 0x162   :  { %s7848_s0 = scalar_lea.hbm %s7847_s21, 36  ;;  %s7850_s12 = scalar_lea.hbm %s9746_s17, 36 }
 0x163   :  { %p7849_p12 = scmp.ne.s32.totalorder %s7847_s21, %s7848_s0  ;;  %p7851_p13 = scmp.lt.s32.totalorder %s7847_s21, %s9746_s17 }
 0x164   :  { %p7852_p0 = scmp.lt.s32.totalorder %s7850_s12, %s7848_s0 }
 0x166   :  { %s383_s25 = sshll.u32 %s9747_s2, 4  ;;  %p7853_p1 = por %p7852_p0, %p7851_p13  ;;  %s384_s25 = int_to_ptr.hbm [resolvable:$true] %s383_s25 }
 0x168   :  { %p7854_p2 = pnand %p7853_p1, %p7849_p12 }
 0x16a   :  { %7857 = shalt.err (!%p7854_p2)
}
 0x16b   :  { %s9748_s11 = sld [smem:[#allocation79_spill]]  ;;  %s8040_s3 = smov [#allocation37]  }
 0x16c   :  { %362 = dma.hbm_to_vmem [thread:$0]  %s8366_s27, 576, %s357_s7, [#allocation33], %s8036_s18, %s8036_s18, %s8037_s24  }
 0x16d   :  { %s385_s8 = sshll.u32 %s8040_s3, 4  ;;  %s7870_s20 = sshra.s32 %s384_s25, 4  ;;  %s386_s8 = int_to_ptr.vmem [resolvable:$true] %s385_s8  ;;  %s7871_s20 = int_to_ptr.hbm [resolvable:$true] %s7870_s20 }
 0x16e   :  { %s7872_s10 = scalar_lea.hbm %s7871_s20, 1  ;;  %s7874_s15 = scalar_lea.hbm %s9747_s2, 1 }
 0x16f   :  { %p7873_p3 = scmp.ne.s32.totalorder %s7871_s20, %s7872_s10  ;;  %p7875_p4 = scmp.lt.s32.totalorder %s7871_s20, %s9747_s2 }
 0x170   :  { %p7876_p5 = scmp.lt.s32.totalorder %s7874_s15, %s7872_s10 }
 0x171   :  { %s409_s14 = sshll.u32 %s9748_s11, 4  ;;  %s410_s14 = int_to_ptr.hbm [resolvable:$true] %s409_s14 }
 0x172   :  { %p7877_p6 = por %p7876_p5, %p7875_p4 }
 0x174   :  { %p7878_p7 = pnand %p7877_p6, %p7873_p3 }
 0x176   :  { %7881 = shalt.err (!%p7878_p7)
}
 0x177   :  { %388 = dma.hbm_to_vmem [thread:$0]  %s384_s25, 16, %s386_s8, [#allocation36]  }
 0x178   :  { %s422_s5 = sshll.u32 %s8263_s19, 4  ;;  %s8041_s16 = smov [#allocation40]   ;;  %s423_s5 = int_to_ptr.hbm [resolvable:$true] %s422_s5 }
 0x179   :  { %s411_s18 = sshll.u32 %s8041_s16, 4  ;;  %s7894_s17 = sshra.s32 %s410_s14, 4  ;;  %s412_s18 = int_to_ptr.vmem [resolvable:$true] %s411_s18  ;;  %s7895_s17 = int_to_ptr.hbm [resolvable:$true] %s7894_s17 }
 0x17a   :  { %s7896_s23 = scalar_lea.hbm %s7895_s17, 1  ;;  %s7898_s13 = scalar_lea.hbm %s9748_s11, 1 }
 0x17b   :  { %p7897_p8 = scmp.ne.s32.totalorder %s7895_s17, %s7896_s23  ;;  %p7899_p9 = scmp.lt.s32.totalorder %s7895_s17, %s9748_s11 }
 0x17c   :  { %p7900_p10 = scmp.lt.s32.totalorder %s7898_s13, %s7896_s23 }
 0x17e   :  { %p7901_p11 = por %p7900_p10, %p7899_p9 }
 0x180   :  { %p7902_p12 = pnand %p7901_p11, %p7897_p8 }
 0x182   :  { %7905 = shalt.err (!%p7902_p12)
}
 0x183   :  { %414 = dma.hbm_to_vmem [thread:$0]  %s410_s14, 16, %s412_s18, [#allocation39]  }
 0x184   :  { %s8042_s27 = smov [#allocation41]   ;;  %s7918_s6 = sshra.s32 %s423_s5, 4  ;;  %s7919_s6 = int_to_ptr.hbm [resolvable:$true] %s7918_s6 }
 0x185   :  { %s424_s28 = sshll.u32 %s8042_s27, 4  ;;  %s7920_s29 = scalar_lea.hbm %s7919_s6, 1  ;;  %s425_s28 = int_to_ptr.vmem [resolvable:$true] %s424_s28 }
 0x186   :  { %p7921_p13 = scmp.ne.s32.totalorder %s7919_s6, %s7920_s29  ;;  %s7922_s2 = scalar_lea.hbm %s8263_s19, 1 }
 0x187   :  { %p7923_p0 = scmp.lt.s32.totalorder %s7919_s6, %s8263_s19  ;;  %p7924_p1 = scmp.lt.s32.totalorder %s7922_s2, %s7920_s29 }
 0x189   :  { %p7925_p2 = por %p7924_p1, %p7923_p0 }
 0x18b   :  { %p7926_p3 = pnand %p7925_p2, %p7921_p13 }
 0x18d   :  { %7929 = shalt.err (!%p7926_p3)
}
 0x18e   :  { %427 = dma.hbm_to_vmem [thread:$0]  %s423_s5, 16, %s425_s28, [#allocation42]  }
 0x18f   :  { %7942 = dma.done.wait [#allocation4], 256  }
 0x190   :  { %7943 = vsyncadd [#allocation4], 4294967040 }
 0x191   :  { %7944 = dma.done.wait [#allocation6], 96  }
 0x192   :  { %7945 = vsyncadd [#allocation6], 4294967200 }
 0x193   :  { %7946 = dma.done.wait [#allocation9], 48  }
 0x194   :  { %7947 = vsyncadd [#allocation9], 4294967248 }
 0x195   :  { %7948 = dma.done.wait [#allocation12], 320  }
 0x196   :  { %7949 = vsyncadd [#allocation12], 4294966976 }
 0x197   :  { %7950 = dma.done.wait [#allocation15], 8224  }
 0x198   :  { %7951 = vsyncadd [#allocation15], 4294959072 }
 0x199   :  { %7952 = dma.done.wait [#allocation18], 4128  }
 0x19a   :  { %7953 = vsyncadd [#allocation18], 4294963168 }
 0x19b   :  { %7954 = dma.done.wait [#allocation21], 80  }
 0x19c   :  { %7955 = vsyncadd [#allocation21], 4294967216 }
 0x19d   :  { %7956 = dma.done.wait [#allocation24], 528  }
 0x19e   :  { %7957 = vsyncadd [#allocation24], 4294966768 }
 0x19f   :  { %7958 = dma.done.wait [#allocation27], 400  }
 0x1a0   :  { %7959 = vsyncadd [#allocation27], 4294966896 }
 0x1a1   :  { %7960 = dma.done.wait [#allocation30], 64  }
 0x1a2   :  { %7961 = vsyncadd [#allocation30], 4294967232 }
 0x1a3   :  { %7962 = dma.done.wait [#allocation33], 592  }
 0x1a4   :  { %7963 = vsyncadd [#allocation33], 4294966704 }
 0x1a5   :  { %7964 = dma.done.wait [#allocation36], 2448  }
 0x1a6   :  { %7965 = vsyncadd [#allocation36], 4294964848 }
 0x1a7   :  { %7966 = dma.done.wait [#allocation39], 32  }
 0x1a8   :  { %7967 = vsyncadd [#allocation39], 4294967264 }
 0x1a9   :  { %7968 = dma.done.wait [#allocation42], 16  }
 0x1aa   :  { %7969 = vsyncadd [#allocation42], 4294967280  ;;  %s9749_s19 = sld [smem:[#allocation57_spill]]  ;;  %v549_v1 = vld [vmem:[#allocation3] sm:$0xff]  ;;  %v550_v2 = vld [vmem:[#allocation3 + $0x8] sm:$0xff]  ;;  %vm584_vm0 = vcmask 1043456  }
 0x1ab   :  { %v563_v3 = vunpack.c.l.b16 %v549_v1  ;;  %v564_v4 = vunpack.c.h.b16 %v549_v1  ;;  %v565_v5 = vunpack.c.l.b16 %v550_v2  ;;  %v566_v6 = vunpack.c.h.b16 %v550_v2  ;;  %s9750_s25 = sld [smem:[#allocation60_spill]]  ;;  %s8043_s0 = smov 2  }
 0x1ac   :  { %vm571_vm1 = vcmask 64512   ;;  %s9751_s9 = sld [smem:[#allocation61_spill]]  ;;  %s8044_s12 = smov 6  }
 0x1ad   :  { %v567_v9 = vpack.c.b16 %v563_v3, %v563_v3  ;;  %v568_v10 = vpack.c.b16 %v564_v4, %v564_v4  ;;  %v569_v11 = vpack.c.b16 %v565_v5, %v565_v5  ;;  %v570_v12 = vpack.c.b16 %v566_v6, %v566_v6  ;;  %s9752_s7 = sld [smem:[#allocation58_spill]]  ;;  %s8045_s11 = smov 10  }
 0x1ae   :  { %s9753_s21 = sld [smem:[#allocation62_spill]]  ;;  %s8046_s3 = smov 14  }
 0x1af   :  { %v586_v14 = vsel %vm584_vm0, %v567_v9, 0  ;;  %v589_v15 = vsel %vm584_vm0, %v568_v10, 0  ;;  %v592_v16 = vsel %vm584_vm0, %v569_v11, 0  ;;  %v595_v17 = vsel %vm584_vm0, %v570_v12, 0  ;;  %s9754_s8 = sld [smem:[#allocation67_spill]]  ;;  %s8047_s10 = smov 16  }
 0x1b0   :  { %v537_v7 = vld [vmem:[%s9749_s19] sm:$0xff]  ;;  %v538_v8 = vld [vmem:[%s9749_s19 + $0x8] sm:$0xff]  ;;  %604 = vmatpush.bf16.msra.mxu0 %v586_v14  ;;  %633 = vmatpush.bf16.msra.mxu1 %v589_v15  ;;  %v539_v18 = vld [vmem:[%s9749_s19 + $0x10] sm:$0xff]  ;;  %s9755_s14 = sld [smem:[#allocation59_spill]]  ;;  %s8048_s15 = smov 18  }
 0x1b1   :  { %v545_v13 = vpack.c.bf16 %v538_v8, %v537_v7  ;;  %662 = vmatpush.bf16.msra.mxu2 %v592_v16  ;;  %691 = vmatpush.bf16.msra.mxu3 %v595_v17  ;;  %v540_v19 = vld [vmem:[%s9749_s19 + $0x18] sm:$0xff]  ;;  %v5763_v21 = vld [vmem:[%s9750_s25 + $0x170] sm:$0xf]  ;;  %v5755_v32 = vld [vmem:[%s9750_s25 + $0x160] sm:$0xf]  ;;  %s9756_s20 = sld [smem:[#allocation71_spill]] }
 0x1b2   :  { %v546_v20 = vpack.c.bf16 %v540_v19, %v539_v18  ;;  %v6866_v22 = vld [vmem:[%s9750_s25 + $0x174] sm:$0xf0]  ;;  %v5635_v23 = vld [vmem:[%s9750_s25 + $0x70] sm:$0xf]  ;;  %v6864_v34 = vld [vmem:[%s9750_s25 + $0x164] sm:$0xf0] }
 0x1b3   :  { %5561 = vmatmul.msk.bf16.vlgmr.msra.gmra.mxu0 %vm571_vm1, %v545_v13  ;;  %5565 = vmatmul.msk.bf16.vlgmr.msra.gmra.mxu1 %vm571_vm1, %v545_v13  ;;  %v5764_v24 = vor.u32 %v6866_v22, %v5763_v21  ;;  %v6834_v25 = vld [vmem:[%s9750_s25 + $0x74] sm:$0xf0]  ;;  %v5827_v26 = vld [vmem:[%s9750_s25 + $0x1f0] sm:$0xf]  ;;  %v5627_v35 = vld [vmem:[%s9750_s25 + $0x60] sm:$0xf]  ;;  %v5756_v37 = vor.u32 %v6864_v34, %v5755_v32 }
 0x1b4   :  { %5569 = vmatmul.msk.bf16.vlgmr.msra.gmra.mxu2 %vm571_vm1, %v545_v13  ;;  %5573 = vmatmul.msk.bf16.vlgmr.msra.gmra.mxu3 %vm571_vm1, %v545_v13  ;;  %v6882_v27 = vld [vmem:[%s9750_s25 + $0x1f4] sm:$0xf0]  ;;  %v5636_v28 = vor.u32 %v6834_v25, %v5635_v23  ;;  %v5699_v30 = vld [vmem:[%s9750_s25 + $0xf0] sm:$0xf]  ;;  %v6832_v36 = vld [vmem:[%s9750_s25 + $0x64] sm:$0xf0] }
 0x1b5   :  { %v5828_v29 = vor.u32 %v6882_v27, %v5827_v26  ;;  %v6850_v31 = vld [vmem:[%s9750_s25 + $0xf4] sm:$0xf0]  ;;  %1273 = vmatpush.bf16.msrb.mxu2 %v5764_v24  ;;  %v5628_v38 = vor.u32 %v6832_v36, %v5627_v35  ;;  %v5819_v39 = vld [vmem:[%s9750_s25 + $0x1e0] sm:$0xf]  ;;  %v6880_v40 = vld [vmem:[%s9750_s25 + $0x1e4] sm:$0xf0] }
 0x1b6   :  { %v5700_v33 = vor.u32 %v6850_v31, %v5699_v30  ;;  %1215 = vmatpush.bf16.msrb.mxu0 %v5636_v28  ;;  %v5691_v41 = vld [vmem:[%s9750_s25 + $0xe0] sm:$0xf]  ;;  %v5820_v42 = vor.u32 %v6880_v40, %v5819_v39  ;;  %v6848_v43 = vld [vmem:[%s9750_s25 + $0xe4] sm:$0xf0]  ;;  %v5747_v44 = vld [vmem:[%s9750_s25 + $0x150] sm:$0xf] }
 0x1b7   :  { %1302 = vmatpush.bf16.msrb.mxu3 %v5828_v29  ;;  %v6862_v45 = vld [vmem:[%s9750_s25 + $0x154] sm:$0xf0]  ;;  %v5692_v46 = vor.u32 %v6848_v43, %v5691_v41  ;;  %v5619_v47 = vld [vmem:[%s9750_s25 + $0x50] sm:$0xf]  ;;  %v541_v54 = vld [vmem:[%s9749_s19 + $0x20] sm:$0xff]  ;;  %s8049_s5 = smov 20  }
 0x1b8   :  { %1244 = vmatpush.bf16.msrb.mxu1 %v5700_v33  ;;  %v6830_v48 = vld [vmem:[%s9750_s25 + $0x54] sm:$0xf0]  ;;  %v5811_v49 = vld [vmem:[%s9750_s25 + $0x1d0] sm:$0xf]  ;;  %v5748_v50 = vor.u32 %v6862_v45, %v5747_v44  ;;  %v542_v55 = vld [vmem:[%s9749_s19 + $0x28] sm:$0xff]  ;;  %s9757_s16 = sld [smem:[#allocation73_spill]] }
 0x1b9   :  { %1274 = vmatpush.bf16.msrb.mxu2 %v5756_v37  ;;  %v6878_v51 = vld [vmem:[%s9750_s25 + $0x1d4] sm:$0xf0]  ;;  %v5683_v52 = vld [vmem:[%s9750_s25 + $0xd0] sm:$0xf]  ;;  %v5620_v56 = vor.u32 %v6830_v48, %v5619_v47  ;;  %v5739_v59 = vld [vmem:[%s9750_s25 + $0x140] sm:$0xf]  ;;  %v547_v0 = vpack.c.bf16 %v542_v55, %v541_v54 }
 0x1ba   :  { %v6846_v53 = vld [vmem:[%s9750_s25 + $0xd4] sm:$0xf0]  ;;  %1216 = vmatpush.bf16.msrb.mxu0 %v5628_v38  ;;  %v5812_v57 = vor.u32 %v6878_v51, %v5811_v49  ;;  %v6860_v60 = vld [vmem:[%s9750_s25 + $0x144] sm:$0xf0]  ;;  %v5611_v61 = vld [vmem:[%s9750_s25 + $0x40] sm:$0xf] }
 0x1bb   :  { %1303 = vmatpush.bf16.msrb.mxu3 %v5820_v42  ;;  %v5684_v58 = vor.u32 %v6846_v53, %v5683_v52  ;;  %v6828_v62 = vld [vmem:[%s9750_s25 + $0x44] sm:$0xf0]  ;;  %v5803_v63 = vld [vmem:[%s9750_s25 + $0x1c0] sm:$0xf]  ;;  %v5740_v4 = vor.u32 %v6860_v60, %v5739_v59  ;;  %v5731_v6 = vld [vmem:[%s9750_s25 + $0x130] sm:$0xf] }
 0x1bc   :  { %1245 = vmatpush.bf16.msrb.mxu1 %v5692_v46  ;;  %v6876_v1 = vld [vmem:[%s9750_s25 + $0x1c4] sm:$0xf0]  ;;  %v5675_v2 = vld [vmem:[%s9750_s25 + $0xc0] sm:$0xf]  ;;  %v5612_v5 = vor.u32 %v6828_v62, %v5611_v61  ;;  %v6858_v7 = vld [vmem:[%s9750_s25 + $0x134] sm:$0xf0] }
 0x1bd   :  { %1275 = vmatpush.bf16.msrb.mxu2 %v5748_v50  ;;  %v6844_v3 = vld [vmem:[%s9750_s25 + $0xc4] sm:$0xf0]  ;;  %v5804_v8 = vor.u32 %v6876_v1, %v5803_v63  ;;  %v5603_v10 = vld [vmem:[%s9750_s25 + $0x30] sm:$0xf]  ;;  %v6826_v11 = vld [vmem:[%s9750_s25 + $0x34] sm:$0xf0]  ;;  %v5732_v16 = vor.u32 %v6858_v7, %v5731_v6 }
 0x1be   :  { %1217 = vmatpush.bf16.msrb.mxu0 %v5620_v56  ;;  %v5676_v9 = vor.u32 %v6844_v3, %v5675_v2  ;;  %v5795_v12 = vld [vmem:[%s9750_s25 + $0x1b0] sm:$0xf]  ;;  %v6874_v13 = vld [vmem:[%s9750_s25 + $0x1b4] sm:$0xf0]  ;;  %v5604_v17 = vor.u32 %v6826_v11, %v5603_v10  ;;  %v6856_v21 = vld [vmem:[%s9750_s25 + $0x124] sm:$0xf0] }
 0x1bf   :  { %1304 = vmatpush.bf16.msrb.mxu3 %v5812_v57  ;;  %v5667_v14 = vld [vmem:[%s9750_s25 + $0xb0] sm:$0xf]  ;;  %v6842_v15 = vld [vmem:[%s9750_s25 + $0xb4] sm:$0xf0]  ;;  %v5796_v18 = vor.u32 %v6874_v13, %v5795_v12  ;;  %v5595_v26 = vld [vmem:[%s9750_s25 + $0x20] sm:$0xf] }
 0x1c0   :  { %1246 = vmatpush.bf16.msrb.mxu1 %v5684_v58  ;;  %v5668_v19 = vor.u32 %v6842_v15, %v5667_v14  ;;  %v543_v23 = vld [vmem:[%s9749_s19 + $0x30] sm:$0xff]  ;;  %v544_v24 = vld [vmem:[%s9749_s19 + $0x38] sm:$0xff]  ;;  %v6824_v27 = vld [vmem:[%s9750_s25 + $0x24] sm:$0xf0]  ;;  %s8050_s18 = smov 22   ;;  %s8051_s17 = smov 1  }
 0x1c1   :  { %1276 = vmatpush.bf16.msrb.mxu2 %v5740_v4  ;;  %v548_v25 = vpack.c.bf16 %v544_v24, %v543_v23  ;;  %v5596_v28 = vor.u32 %v6824_v27, %v5595_v26  ;;  %v5787_v29 = vld [vmem:[%s9750_s25 + $0x1a0] sm:$0xf]  ;;  %v6872_v30 = vld [vmem:[%s9750_s25 + $0x1a4] sm:$0xf0]  ;;  %v5587_v35 = vld [vmem:[%s9750_s25 + $0x10] sm:$0xf] }
 0x1c2   :  { %1218 = vmatpush.bf16.msrb.mxu0 %v5612_v5  ;;  %v5659_v31 = vld [vmem:[%s9750_s25 + $0xa0] sm:$0xf]  ;;  %v5788_v32 = vor.u32 %v6872_v30, %v5787_v29  ;;  %v6840_v33 = vld [vmem:[%s9750_s25 + $0xa4] sm:$0xf0]  ;;  %v6822_v36 = vld [vmem:[%s9750_s25 + $0x14] sm:$0xf0] }
 0x1c3   :  { %5562 = vmatmul.msk.bf16.gmra.mxu0 %vm571_vm1, %v546_v20  ;;  %5566 = vmatmul.msk.bf16.gmra.mxu1 %vm571_vm1, %v546_v20  ;;  %v5660_v34 = vor.u32 %v6840_v33, %v5659_v31  ;;  %v5651_v37 = vld [vmem:[%s9750_s25 + $0x90] sm:$0xf]  ;;  %v5588_v38 = vor.u32 %v6822_v36, %v5587_v35  ;;  %v6838_v39 = vld [vmem:[%s9750_s25 + $0x94] sm:$0xf0]  ;;  %v5579_v46 = vld [vmem:[%s9750_s25] sm:$0xf] }
 0x1c4   :  { %5570 = vmatmul.msk.bf16.gmra.mxu2 %vm571_vm1, %v546_v20  ;;  %5574 = vmatmul.msk.bf16.gmra.mxu3 %vm571_vm1, %v546_v20  ;;  %v5723_v20 = vld [vmem:[%s9750_s25 + $0x120] sm:$0xf]  ;;  %v5652_v40 = vor.u32 %v6838_v39, %v5651_v37  ;;  %v5715_v41 = vld [vmem:[%s9750_s25 + $0x110] sm:$0xf]  ;;  %v6854_v42 = vld [vmem:[%s9750_s25 + $0x114] sm:$0xf0] }
 0x1c5   :  { %1305 = vmatpush.bf16.msrb.mxu3 %v5804_v8  ;;  %1247 = vmatpush.bf16.msrb.mxu1 %v5676_v9  ;;  %v5724_v22 = vor.u32 %v6856_v21, %v5723_v20  ;;  %v5716_v43 = vor.u32 %v6854_v42, %v5715_v41  ;;  %v5779_v44 = vld [vmem:[%s9750_s25 + $0x190] sm:$0xf]  ;;  %v6870_v45 = vld [vmem:[%s9750_s25 + $0x194] sm:$0xf0]  ;;  %v6820_v48 = vld [vmem:[%s9750_s25 + $0x4] sm:$0xf0] }
 0x1c6   :  { %1277 = vmatpush.bf16.msrb.mxu2 %v5732_v16  ;;  %1219 = vmatpush.bf16.msrb.mxu0 %v5604_v17  ;;  %v5780_v47 = vor.u32 %v6870_v45, %v5779_v44  ;;  %v5643_v49 = vld [vmem:[%s9750_s25 + $0x80] sm:$0xf]  ;;  %v6836_v50 = vld [vmem:[%s9750_s25 + $0x84] sm:$0xf0]  ;;  %v5580_v51 = vor.u32 %v6820_v48, %v5579_v46  ;;  %v6865_v59 = vld [vmem:[%s9750_s25 + $0x174] sm:$0xf] }
 0x1c7   :  { %v5644_v52 = vor.u32 %v6836_v50, %v5643_v49  ;;  %v5707_v53 = vld [vmem:[%s9750_s25 + $0x100] sm:$0xf]  ;;  %v6852_v54 = vld [vmem:[%s9750_s25 + $0x104] sm:$0xf0]  ;;  %v5765_v60 = vld [vmem:[%s9750_s25 + $0x178] sm:$0xf0] }
 0x1c8   :  { %v5771_v55 = vld [vmem:[%s9750_s25 + $0x180] sm:$0xf]  ;;  %v5708_v56 = vor.u32 %v6852_v54, %v5707_v53  ;;  %v6868_v57 = vld [vmem:[%s9750_s25 + $0x184] sm:$0xf0]  ;;  %v5768_v61 = vor.u32 %v6865_v59, %v5765_v60  ;;  %v6833_v62 = vld [vmem:[%s9750_s25 + $0x74] sm:$0xf] }
 0x1c9   :  { %1306 = vmatpush.bf16.msrb.mxu3 %v5796_v18  ;;  %1248 = vmatpush.bf16.msrb.mxu1 %v5668_v19  ;;  %v5772_v58 = vor.u32 %v6868_v57, %v5771_v55  ;;  %v5637_v63 = vld [vmem:[%s9750_s25 + $0x78] sm:$0xf0]  ;;  %v6849_v3 = vld [vmem:[%s9750_s25 + $0xf4] sm:$0xf]  ;;  %v6863_v13 = vld [vmem:[%s9750_s25 + $0x164] sm:$0xf] }
 0x1ca   :  { %1278 = vmatpush.bf16.msrb.mxu2 %v5724_v22  ;;  %1220 = vmatpush.bf16.msrb.mxu0 %v5596_v28  ;;  %v5640_v1 = vor.u32 %v6833_v62, %v5637_v63  ;;  %v5829_v2 = vld [vmem:[%s9750_s25 + $0x1f8] sm:$0xf0]  ;;  %v551_v5 = vld [vmem:[#allocation5] sm:$0xf]  ;;  %v5757_v14 = vld [vmem:[%s9750_s25 + $0x168] sm:$0xf0] }
 0x1cb   :  { %v5701_v4 = vld [vmem:[%s9750_s25 + $0xf8] sm:$0xf0]  ;;  %v8486_v8 = vperm.slane %v551_v5, 1  ;;  %v8488_v11 = vperm.slane %v551_v5, 0  ;;  %v5760_v15 = vor.u32 %v6863_v13, %v5757_v14  ;;  %v6831_v16 = vld [vmem:[%s9750_s25 + $0x64] sm:$0xf] }
 0x1cc   :  { %v5704_v7 = vor.u32 %v6849_v3, %v5701_v4  ;;  %v5629_v17 = vld [vmem:[%s9750_s25 + $0x68] sm:$0xf0]  ;;  %v6879_v18 = vld [vmem:[%s9750_s25 + $0x1e4] sm:$0xf]  ;;  %v8500_v29 = vperm.slane %v551_v5, 2  ;;  %v8502_v30 = vperm.slane %v551_v5, 3 }
 0x1cd   :  { %1307 = vmatpush.bf16.msrb.mxu3 %v5788_v32  ;;  %1249 = vmatpush.bf16.msrb.mxu1 %v5660_v34  ;;  %v5632_v20 = vor.u32 %v6831_v16, %v5629_v17  ;;  %v5821_v21 = vld [vmem:[%s9750_s25 + $0x1e8] sm:$0xf0]  ;;  %v6847_v22 = vld [vmem:[%s9750_s25 + $0xe4] sm:$0xf]  ;;  %v6861_v41 = vld [vmem:[%s9750_s25 + $0x154] sm:$0xf] }
 0x1ce   :  { %1221 = vmatpush.bf16.msrb.mxu0 %v5588_v38  ;;  %1279 = vmatpush.bf16.msrb.mxu2 %v5716_v43  ;;  %v5693_v23 = vld [vmem:[%s9750_s25 + $0xe8] sm:$0xf0]  ;;  %v5749_v42 = vld [vmem:[%s9750_s25 + $0x158] sm:$0xf0]  ;;  %v6829_v43 = vld [vmem:[%s9750_s25 + $0x54] sm:$0xf] }
 0x1cf   :  { %v5696_v26 = vor.u32 %v6847_v22, %v5693_v23  ;;  %v5621_v48 = vld [vmem:[%s9750_s25 + $0x58] sm:$0xf0]  ;;  %v6877_v49 = vld [vmem:[%s9750_s25 + $0x1d4] sm:$0xf]  ;;  %v6827_v13 = vld [vmem:[%s9750_s25 + $0x44] sm:$0xf] }
 0x1d0   :  { %v5813_v50 = vld [vmem:[%s9750_s25 + $0x1d8] sm:$0xf0]  ;;  %v5624_v53 = vor.u32 %v6829_v43, %v5621_v48  ;;  %v6845_v55 = vld [vmem:[%s9750_s25 + $0xd4] sm:$0xf]  ;;  %v5613_v17 = vld [vmem:[%s9750_s25 + $0x48] sm:$0xf0] }
 0x1d1   :  { %1250 = vmatpush.bf16.msrb.mxu1 %v5652_v40  ;;  %1308 = vmatpush.bf16.msrb.mxu3 %v5780_v47  ;;  %v5752_v47 = vor.u32 %v6861_v41, %v5749_v42  ;;  %v5816_v54 = vor.u32 %v6877_v49, %v5813_v50  ;;  %v5616_v22 = vor.u32 %v6827_v13, %v5613_v17  ;;  %v6857_v41 = vld [vmem:[%s9750_s25 + $0x134] sm:$0xf]  ;;  %v5733_v42 = vld [vmem:[%s9750_s25 + $0x138] sm:$0xf0]  ;;  %v6855_v17 = vld [vmem:[%s9750_s25 + $0x124] sm:$0xf] }
 0x1d2   :  { %1222 = vmatpush.bf16.msrb.mxu0 %v5580_v51  ;;  %1280 = vmatpush.bf16.msrb.mxu2 %v5708_v56  ;;  %v5685_v56 = vld [vmem:[%s9750_s25 + $0xd8] sm:$0xf0]  ;;  %v6825_v43 = vld [vmem:[%s9750_s25 + $0x34] sm:$0xf]  ;;  %s9758_s23 = sld [smem:[#allocation78_spill]]  ;;  %s8055_s28 = smov 28  }
 0x1d3   :  { %5563 = vmatmul.msk.bf16.gmra.mxu0 %vm571_vm1, %v547_v0  ;;  %5567 = vmatmul.msk.bf16.gmra.mxu1 %vm571_vm1, %v547_v0  ;;  %v5688_v59 = vor.u32 %v6845_v55, %v5685_v56  ;;  %v5605_v48 = vld [vmem:[%s9750_s25 + $0x38] sm:$0xf0]  ;;  %v6873_v49 = vld [vmem:[%s9750_s25 + $0x1b4] sm:$0xf]  ;;  %s9759_s13 = sld [smem:[#allocation75_spill]]  ;;  %s8056_s6 = smov 30  }
 0x1d4   :  { %5571 = vmatmul.msk.bf16.gmra.mxu2 %vm571_vm1, %v547_v0  ;;  %5575 = vmatmul.msk.bf16.gmra.mxu3 %vm571_vm1, %v547_v0  ;;  %v6881_v0 = vld [vmem:[%s9750_s25 + $0x1f4] sm:$0xf]  ;;  %v5797_v50 = vld [vmem:[%s9750_s25 + $0x1b8] sm:$0xf0]  ;;  %v5608_v55 = vor.u32 %v6825_v43, %v5605_v48  ;;  %s9760_s27 = sld [smem:[#allocation77_spill]]  ;;  %s8057_s29 = smov 36  }
 0x1d5   :  { %1251 = vmatpush.bf16.msrb.mxu1 %v5644_v52  ;;  %1309 = vmatpush.bf16.msrb.mxu3 %v5772_v58  ;;  %v5832_v6 = vor.u32 %v6881_v0, %v5829_v2  ;;  %v5800_v56 = vor.u32 %v6873_v49, %v5797_v50  ;;  %v6837_v50 = vld [vmem:[%s9750_s25 + $0x94] sm:$0xf]  ;;  %s8058_s2 = smov 34   ;;  %s8060_s19 = smov 40  }
 0x1d6   :  { %1389 = vmatpush.bf16.msra.mxu2 %v5768_v61  ;;  %1331 = vmatpush.bf16.msra.mxu0 %v5640_v1 }
 0x1d9   :  { %1418 = vmatpush.bf16.msra.mxu3 %v5832_v6  ;;  %1360 = vmatpush.bf16.msra.mxu1 %v5704_v7 }
 0x1da   :  { %1390 = vmatpush.bf16.msra.mxu2 %v5760_v15  ;;  %1332 = vmatpush.bf16.msra.mxu0 %v5632_v20 }
 0x1dd   :  { %1361 = vmatpush.bf16.msra.mxu1 %v5696_v26 }
 0x1de   :  { %1391 = vmatpush.bf16.msra.mxu2 %v5752_v47  ;;  %1333 = vmatpush.bf16.msra.mxu0 %v5624_v53  ;;  %v5736_v47 = vor.u32 %v6857_v41, %v5733_v42  ;;  %v5589_v42 = vld [vmem:[%s9750_s25 + $0x18] sm:$0xf0] }
 0x1e1   :  { %1362 = vmatpush.bf16.msra.mxu1 %v5688_v59 }
 0x1e2   :  { %1334 = vmatpush.bf16.msra.mxu0 %v5616_v22  ;;  %v5597_v22 = vld [vmem:[%s9750_s25 + $0x28] sm:$0xf0] }
 0x1e3   :  { %5564 = vmatmul.msk.bf16.gmra.mxu0 %vm571_vm1, %v548_v25  ;;  %5568 = vmatmul.msk.bf16.gmra.mxu1 %vm571_vm1, %v548_v25 }
 0x1e4   :  { %5572 = vmatmul.msk.bf16.gmra.mxu2 %vm571_vm1, %v548_v25  ;;  %5576 = vmatmul.msk.bf16.gmra.mxu3 %vm571_vm1, %v548_v25  ;;  %v5824_v25 = vor.u32 %v6879_v18, %v5821_v21  ;;  %v6875_v18 = vld [vmem:[%s9750_s25 + $0x1c4] sm:$0xf] }
 0x1e6   :  { %1419 = vmatpush.bf16.msra.mxu3 %v5824_v25  ;;  %v5677_v25 = vld [vmem:[%s9750_s25 + $0xc8] sm:$0xf0]  ;;  %1335 = vmatpush.bf16.msra.mxu0 %v5608_v55  ;;  %v5653_v55 = vld [vmem:[%s9750_s25 + $0x98] sm:$0xf0] }
 0x1ea   :  { %1420 = vmatpush.bf16.msra.mxu3 %v5816_v54 }
 0x230   :  { %v606_v9 = vpop.f32.mrf.mxu0  ;;  %v635_v10 = vpop.f32.mrf.mxu1 }
 0x231   :  { %v636_v12 = vadd.f32 %v635_v10, %v8486_v8  ;;  %v607_v19 = vadd.f32 %v606_v9, %v8488_v11  ;;  %v6859_v10 = vld [vmem:[%s9750_s25 + $0x144] sm:$0xf] }
 0x233   :  { %v746_v24 = vmul.f32 0.2, %v636_v12  ;;  %vm714_vm2 = vcmp.gt.f32.partialorder %v636_v12, 0.0  ;;  %v745_v33 = vmul.f32 0.2, %v607_v19  ;;  %vm713_vm3 = vcmp.gt.f32.partialorder %v607_v19, 0.0 }
 0x235   :  { %v778_v36 = vsel %vm714_vm2, %v636_v12, %v746_v24  ;;  %v777_v44 = vsel %vm713_vm3, %v607_v19, %v745_v33  ;;  %v5741_v12 = vld [vmem:[%s9750_s25 + $0x148] sm:$0xf0]  ;;  %v6843_v24 = vld [vmem:[%s9750_s25 + $0xc4] sm:$0xf] }
 0x236   :  { %v5805_v19 = vld [vmem:[%s9750_s25 + $0x1c8] sm:$0xf0]  ;;  %v5744_v21 = vor.u32 %v6859_v10, %v5741_v12 }
 0x237   :  { %v664_v27 = vpop.f32.mrf.mxu2  ;;  %v693_v28 = vpop.f32.mrf.mxu3  ;;  %v5808_v23 = vor.u32 %v6875_v18, %v5805_v19  ;;  %v5725_v18 = vld [vmem:[%s9750_s25 + $0x128] sm:$0xf0]  ;;  %v6823_v19 = vld [vmem:[%s9750_s25 + $0x24] sm:$0xf] }
 0x238   :  { %v608_v31 = vpop.f32.mrf.mxu0  ;;  %v637_v32 = vpop.f32.mrf.mxu1  ;;  %v665_v39 = vadd.f32 %v664_v27, %v8500_v29  ;;  %v694_v40 = vadd.f32 %v693_v28, %v8502_v30  ;;  %v5680_v28 = vor.u32 %v6843_v24, %v5677_v25  ;;  %1392 = vmatpush.bf16.msra.mxu2 %v5744_v21  ;;  %v5789_v24 = vld [vmem:[%s9750_s25 + $0x1a8] sm:$0xf0]  ;;  %v5728_v25 = vor.u32 %v6855_v17, %v5725_v18 }
 0x239   :  { %v609_v34 = vadd.f32 %v608_v31, %v8488_v11  ;;  %v638_v35 = vadd.f32 %v637_v32, %v8486_v8  ;;  %1421 = vmatpush.bf16.msra.mxu3 %v5808_v23  ;;  %v6871_v23 = vld [vmem:[%s9750_s25 + $0x1a4] sm:$0xf] }
 0x23a   :  { %v747_v60 = vmul.f32 0.2, %v665_v39  ;;  %v748_v61 = vmul.f32 0.2, %v694_v40  ;;  %vm715_vm6 = vcmp.gt.f32.partialorder %v665_v39, 0.0  ;;  %vm716_vm7 = vcmp.gt.f32.partialorder %v694_v40, 0.0  ;;  %1363 = vmatpush.bf16.msra.mxu1 %v5680_v28 }
 0x23b   :  { %vm717_vm4 = vcmp.gt.f32.partialorder %v609_v34, 0.0  ;;  %v749_v37 = vmul.f32 0.2, %v609_v34  ;;  %vm718_vm5 = vcmp.gt.f32.partialorder %v638_v35, 0.0  ;;  %v750_v38 = vmul.f32 0.2, %v638_v35 }
 0x23c   :  { %v779_v5 = vsel %vm715_vm6, %v665_v39, %v747_v60  ;;  %v780_v7 = vsel %vm716_vm7, %v694_v40, %v748_v61  ;;  %1393 = vmatpush.bf16.msra.mxu2 %v5736_v47  ;;  %v6839_v28 = vld [vmem:[%s9750_s25 + $0xa4] sm:$0xf]  ;;  %v5781_v47 = vld [vmem:[%s9750_s25 + $0x198] sm:$0xf0] }
 0x23d   :  { %v781_v45 = vsel %vm717_vm4, %v609_v34, %v749_v37  ;;  %v782_v46 = vsel %vm718_vm5, %v638_v35, %v750_v38  ;;  %1422 = vmatpush.bf16.msra.mxu3 %v5800_v56  ;;  %v6819_v56 = vld [vmem:[%s9750_s25 + $0x4] sm:$0xf] }
 0x23e   :  { %v8514_v51 = vpack.c.bf16 %v781_v45, %v777_v44  ;;  %v8516_v52 = vpack.c.bf16 %v782_v46, %v778_v36 }
 0x23f   :  { %v666_v57 = vpop.f32.mrf.mxu2  ;;  %v695_v58 = vpop.f32.mrf.mxu3 }
 0x240   :  { %v667_v62 = vadd.f32 %v666_v57, %v8500_v29  ;;  %v696_v63 = vadd.f32 %v695_v58, %v8502_v30  ;;  %v611_v0 = vpop.f32.mrf.mxu0  ;;  %v640_v1 = vpop.f32.mrf.mxu1  ;;  %1223 = vmatmul.bf16.vlgmr.msrb.gmra.mxu0 %v8514_v51  ;;  %1252 = vmatmul.bf16.vlgmr.msrb.gmra.mxu1 %v8516_v52  ;;  %v6841_v57 = vld [vmem:[%s9750_s25 + $0xb4] sm:$0xf]  ;;  %v5669_v58 = vld [vmem:[%s9750_s25 + $0xb8] sm:$0xf0] }
 0x241   :  { %v641_v2 = vadd.f32 %v640_v1, %v8486_v8  ;;  %v612_v14 = vadd.f32 %v611_v0, %v8488_v11  ;;  %1394 = vmatpush.bf16.msra.mxu2 %v5728_v25  ;;  %v6867_v25 = vld [vmem:[%s9750_s25 + $0x184] sm:$0xf] }
 0x242   :  { %vm719_vm8 = vcmp.gt.f32.partialorder %v667_v62, 0.0  ;;  %v751_v3 = vmul.f32 0.2, %v667_v62  ;;  %vm720_vm9 = vcmp.gt.f32.partialorder %v696_v63, 0.0  ;;  %v752_v4 = vmul.f32 0.2, %v696_v63 }
 0x243   :  { %v754_v20 = vmul.f32 0.2, %v641_v2  ;;  %vm722_vm10 = vcmp.gt.f32.partialorder %v641_v2, 0.0  ;;  %v753_v33 = vmul.f32 0.2, %v612_v14  ;;  %vm721_vm11 = vcmp.gt.f32.partialorder %v612_v14, 0.0 }
 0x244   :  { %v783_v6 = vsel %vm719_vm8, %v667_v62, %v751_v3  ;;  %v784_v9 = vsel %vm720_vm9, %v696_v63, %v752_v4  ;;  %v5672_v62 = vor.u32 %v6841_v57, %v5669_v58 }
 0x245   :  { %v8529_v15 = vpack.c.bf16 %v783_v6, %v779_v5  ;;  %v8531_v16 = vpack.c.bf16 %v784_v9, %v780_v7  ;;  %v786_v37 = vsel %vm722_vm10, %v641_v2, %v754_v20  ;;  %v785_v44 = vsel %vm721_vm11, %v612_v14, %v753_v33 }
 0x246   :  { %1364 = vmatpush.bf16.msra.mxu1 %v5672_v62  ;;  %v5581_v62 = vld [vmem:[%s9750_s25 + $0x8] sm:$0xf0] }
 0x247   :  { %v669_v26 = vpop.f32.mrf.mxu2  ;;  %v698_v27 = vpop.f32.mrf.mxu3  ;;  %1281 = vmatmul.bf16.vlgmr.msrb.gmra.mxu2 %v8529_v15  ;;  %1310 = vmatmul.bf16.vlgmr.msrb.gmra.mxu3 %v8531_v16 }
 0x248   :  { %v613_v31 = vpop.f32.mrf.mxu0  ;;  %v642_v32 = vpop.f32.mrf.mxu1  ;;  %v670_v36 = vadd.f32 %v669_v26, %v8500_v29  ;;  %v699_v40 = vadd.f32 %v698_v27, %v8502_v30  ;;  %v5600_v26 = vor.u32 %v6823_v19, %v5597_v22  ;;  %v5792_v27 = vor.u32 %v6871_v23, %v5789_v24 }
 0x249   :  { %v614_v34 = vadd.f32 %v613_v31, %v8488_v11  ;;  %v643_v35 = vadd.f32 %v642_v32, %v8486_v8  ;;  %v5661_v31 = vld [vmem:[%s9750_s25 + $0xa8] sm:$0xf0] }
 0x24a   :  { %v755_v59 = vmul.f32 0.2, %v670_v36  ;;  %v756_v63 = vmul.f32 0.2, %v699_v40  ;;  %vm723_vm14 = vcmp.gt.f32.partialorder %v670_v36, 0.0  ;;  %vm724_vm15 = vcmp.gt.f32.partialorder %v699_v40, 0.0  ;;  %1336 = vmatpush.bf16.msra.mxu0 %v5600_v26  ;;  %1423 = vmatpush.bf16.msra.mxu3 %v5792_v27 }
 0x24b   :  { %v757_v38 = vmul.f32 0.2, %v614_v34  ;;  %v758_v39 = vmul.f32 0.2, %v643_v35  ;;  %vm725_vm12 = vcmp.gt.f32.partialorder %v614_v34, 0.0  ;;  %vm726_vm13 = vcmp.gt.f32.partialorder %v643_v35, 0.0 }
 0x24c   :  { %v787_v9 = vsel %vm723_vm14, %v670_v36, %v755_v59  ;;  %v788_v13 = vsel %vm724_vm15, %v699_v40, %v756_v63  ;;  %v5717_v36 = vld [vmem:[%s9750_s25 + $0x118] sm:$0xf0]  ;;  %v6835_v63 = vld [vmem:[%s9750_s25 + $0x84] sm:$0xf]  ;;  %v5773_v26 = vld [vmem:[%s9750_s25 + $0x188] sm:$0xf0] }
 0x24d   :  { %v789_v45 = vsel %vm725_vm12, %v614_v34, %v757_v38  ;;  %v790_v46 = vsel %vm726_vm13, %v643_v35, %v758_v39  ;;  %v5664_v34 = vor.u32 %v6839_v28, %v5661_v31  ;;  %v6853_v35 = vld [vmem:[%s9750_s25 + $0x114] sm:$0xf]  ;;  %v5776_v28 = vor.u32 %v6867_v25, %v5773_v26  ;;  %v5867_v26 = vld [vmem:[%s9751_s9 + $0x40] sm:$0xf] }
 0x24e   :  { %v8550_v53 = vpack.c.bf16 %v789_v45, %v785_v44  ;;  %v8552_v54 = vpack.c.bf16 %v790_v46, %v786_v37  ;;  %v6821_v37 = vld [vmem:[%s9750_s25 + $0x14] sm:$0xf]  ;;  %v5720_v41 = vor.u32 %v6853_v35, %v5717_v36 }
 0x24f   :  { %v671_v60 = vpop.f32.mrf.mxu2  ;;  %v700_v61 = vpop.f32.mrf.mxu3  ;;  %1365 = vmatpush.bf16.msra.mxu1 %v5664_v34  ;;  %v5592_v45 = vor.u32 %v6821_v37, %v5589_v42  ;;  %v6869_v46 = vld [vmem:[%s9750_s25 + $0x194] sm:$0xf] }
 0x250   :  { %v672_v0 = vadd.f32 %v671_v60, %v8500_v29  ;;  %v701_v1 = vadd.f32 %v700_v61, %v8502_v30  ;;  %v616_v2 = vpop.f32.mrf.mxu0  ;;  %v645_v3 = vpop.f32.mrf.mxu1  ;;  %1228 = vmatmul.bf16.gmra.mxu0 %v8550_v53  ;;  %1257 = vmatmul.bf16.gmra.mxu1 %v8552_v54  ;;  %v5784_v61 = vor.u32 %v6869_v46, %v5781_v47 }
 0x251   :  { %v646_v4 = vadd.f32 %v645_v3, %v8486_v8  ;;  %v617_v10 = vadd.f32 %v616_v2, %v8488_v11  ;;  %1395 = vmatpush.bf16.msra.mxu2 %v5720_v41  ;;  %1337 = vmatpush.bf16.msra.mxu0 %v5592_v45  ;;  %v5656_v3 = vor.u32 %v6837_v50, %v5653_v55 }
 0x252   :  { %v759_v5 = vmul.f32 0.2, %v672_v0  ;;  %v760_v6 = vmul.f32 0.2, %v701_v1  ;;  %vm727_vm2 = vcmp.gt.f32.partialorder %v672_v0, 0.0  ;;  %vm728_vm3 = vcmp.gt.f32.partialorder %v701_v1, 0.0  ;;  %1424 = vmatpush.bf16.msra.mxu3 %v5784_v61 }
 0x253   :  { %v762_v7 = vmul.f32 0.2, %v646_v4  ;;  %vm730_vm4 = vcmp.gt.f32.partialorder %v646_v4, 0.0  ;;  %v761_v38 = vmul.f32 0.2, %v617_v10  ;;  %vm729_vm5 = vcmp.gt.f32.partialorder %v617_v10, 0.0  ;;  %1366 = vmatpush.bf16.msra.mxu1 %v5656_v3 }
 0x254   :  { %v791_v12 = vsel %vm727_vm2, %v672_v0, %v759_v5  ;;  %v792_v14 = vsel %vm728_vm3, %v701_v1, %v760_v6  ;;  %v5645_v0 = vld [vmem:[%s9750_s25 + $0x88] sm:$0xf0]  ;;  %v6851_v5 = vld [vmem:[%s9750_s25 + $0x104] sm:$0xf] }
 0x255   :  { %v8565_v20 = vpack.c.bf16 %v791_v12, %v787_v9  ;;  %v8567_v21 = vpack.c.bf16 %v792_v14, %v788_v13  ;;  %v794_v49 = vsel %vm730_vm4, %v646_v4, %v762_v7  ;;  %v793_v60 = vsel %vm729_vm5, %v617_v10, %v761_v38  ;;  %v5709_v6 = vld [vmem:[%s9750_s25 + $0x108] sm:$0xf0]  ;;  %s8061_s25 = smov 38  }
 0x256   :  { %v5584_v4 = vor.u32 %v6819_v56, %v5581_v62  ;;  %v5712_v10 = vor.u32 %v6851_v5, %v5709_v6  ;;  %v5648_v17 = vor.u32 %v6835_v63, %v5645_v0  ;;  %1425 = vmatpush.bf16.msra.mxu3 %v5776_v28  ;;  %v5869_v28 = vld [vmem:[%s9751_s9 + $0x48] sm:$0xf0] }
 0x257   :  { %v674_v32 = vpop.f32.mrf.mxu2  ;;  %v703_v33 = vpop.f32.mrf.mxu3  ;;  %1286 = vmatmul.bf16.gmra.mxu2 %v8565_v20  ;;  %1315 = vmatmul.bf16.gmra.mxu3 %v8567_v21 }
 0x258   :  { %v618_v39 = vpop.f32.mrf.mxu0  ;;  %v647_v40 = vpop.f32.mrf.mxu1  ;;  %v675_v48 = vadd.f32 %v674_v32, %v8500_v29  ;;  %v704_v59 = vadd.f32 %v703_v33, %v8502_v30  ;;  %1338 = vmatpush.bf16.msra.mxu0 %v5584_v4  ;;  %1396 = vmatpush.bf16.msra.mxu2 %v5712_v10 }
 0x259   :  { %v619_v43 = vadd.f32 %v618_v39, %v8488_v11  ;;  %v648_v44 = vadd.f32 %v647_v40, %v8486_v8  ;;  %1367 = vmatpush.bf16.msra.mxu1 %v5648_v17  ;;  %v6895_v17 = vld [vmem:[%s9751_s9 + $0x64] sm:$0xf] }
 0x25a   :  { %v763_v12 = vmul.f32 0.2, %v675_v48  ;;  %v764_v18 = vmul.f32 0.2, %v704_v59  ;;  %vm731_vm8 = vcmp.gt.f32.partialorder %v675_v48, 0.0  ;;  %vm732_vm9 = vcmp.gt.f32.partialorder %v704_v59, 0.0 }
 0x25b   :  { %v765_v57 = vmul.f32 0.2, %v619_v43  ;;  %v766_v58 = vmul.f32 0.2, %v648_v44  ;;  %vm733_vm6 = vcmp.gt.f32.partialorder %v619_v43, 0.0  ;;  %vm734_vm7 = vcmp.gt.f32.partialorder %v648_v44, 0.0 }
 0x25c   :  { %v795_v33 = vsel %vm731_vm8, %v675_v48, %v763_v12  ;;  %v796_v35 = vsel %vm732_vm9, %v704_v59, %v764_v18  ;;  %v5891_v12 = vld [vmem:[%s9751_s9 + $0x70] sm:$0xf] }
 0x25d   :  { %v797_v1 = vsel %vm733_vm6, %v619_v43, %v765_v57  ;;  %v798_v2 = vsel %vm734_vm7, %v648_v44, %v766_v58  ;;  %v5875_v18 = vld [vmem:[%s9751_s9 + $0x50] sm:$0xf] }
 0x25e   :  { %v8596_v7 = vpack.c.bf16 %v797_v1, %v793_v60  ;;  %v8598_v9 = vpack.c.bf16 %v798_v2, %v794_v49 }
 0x25f   :  { %v676_v13 = vpop.f32.mrf.mxu2  ;;  %v705_v14 = vpop.f32.mrf.mxu3 }
 0x260   :  { %v677_v19 = vadd.f32 %v676_v13, %v8500_v29  ;;  %v706_v22 = vadd.f32 %v705_v14, %v8502_v30  ;;  %v621_v23 = vpop.f32.mrf.mxu0  ;;  %v650_v24 = vpop.f32.mrf.mxu1  ;;  %1233 = vmatmul.bf16.gmra.mxu0 %v8596_v7  ;;  %1262 = vmatmul.bf16.gmra.mxu1 %v8598_v9 }
 0x261   :  { %v651_v27 = vadd.f32 %v650_v24, %v8486_v8  ;;  %v622_v37 = vadd.f32 %v621_v23, %v8488_v11  ;;  %v5877_v24 = vld [vmem:[%s9751_s9 + $0x58] sm:$0xf0] }
 0x262   :  { %v767_v31 = vmul.f32 0.2, %v677_v19  ;;  %v768_v32 = vmul.f32 0.2, %v706_v22  ;;  %vm735_vm10 = vcmp.gt.f32.partialorder %v677_v19, 0.0  ;;  %vm736_vm11 = vcmp.gt.f32.partialorder %v706_v22, 0.0 }
 0x263   :  { %v770_v40 = vmul.f32 0.2, %v651_v27  ;;  %vm738_vm12 = vcmp.gt.f32.partialorder %v651_v27, 0.0  ;;  %v769_v45 = vmul.f32 0.2, %v622_v37  ;;  %vm737_vm13 = vcmp.gt.f32.partialorder %v622_v37, 0.0 }
 0x264   :  { %v799_v34 = vsel %vm735_vm10, %v677_v19, %v767_v31  ;;  %v800_v36 = vsel %vm736_vm11, %v706_v22, %v768_v32  ;;  %v6894_v19 = vld [vmem:[%s9751_s9 + $0x54] sm:$0xf0]  ;;  %v6893_v22 = vld [vmem:[%s9751_s9 + $0x54] sm:$0xf]  ;;  %v5859_v32 = vld [vmem:[%s9751_s9 + $0x30] sm:$0xf] }
 0x265   :  { %v8608_v38 = vpack.c.bf16 %v799_v34, %v795_v33  ;;  %v8610_v39 = vpack.c.bf16 %v800_v36, %v796_v35  ;;  %v802_v48 = vsel %vm738_vm12, %v651_v27, %v770_v40  ;;  %v801_v57 = vsel %vm737_vm13, %v622_v37, %v769_v45  ;;  %v6891_v27 = vld [vmem:[%s9751_s9 + $0x44] sm:$0xf]  ;;  %v6890_v33 = vld [vmem:[%s9751_s9 + $0x34] sm:$0xf0]  ;;  %v6889_v34 = vld [vmem:[%s9751_s9 + $0x34] sm:$0xf] }
 0x266   :  { %v5876_v23 = vor.u32 %v6894_v19, %v5875_v18  ;;  %v5880_v25 = vor.u32 %v6893_v22, %v5877_v24  ;;  %v5872_v31 = vor.u32 %v6891_v27, %v5869_v28  ;;  %v5860_v35 = vor.u32 %v6890_v33, %v5859_v32  ;;  %v5861_v36 = vld [vmem:[%s9751_s9 + $0x38] sm:$0xf0]  ;;  %v6887_v40 = vld [vmem:[%s9751_s9 + $0x24] sm:$0xf]  ;;  %v6886_v45 = vld [vmem:[%s9751_s9 + $0x14] sm:$0xf0] }
 0x267   :  { %v679_v41 = vpop.f32.mrf.mxu2  ;;  %v708_v42 = vpop.f32.mrf.mxu3  ;;  %1291 = vmatmul.bf16.gmra.mxu2 %v8608_v38  ;;  %1320 = vmatmul.bf16.gmra.mxu3 %v8610_v39  ;;  %v5864_v37 = vor.u32 %v6889_v34, %v5861_v36  ;;  %v5939_v18 = vld [vmem:[%s9751_s9 + $0xd0] sm:$0xf]  ;;  %v6910_v19 = vld [vmem:[%s9751_s9 + $0xd4] sm:$0xf0]  ;;  %v5933_v36 = vld [vmem:[%s9751_s9 + $0xc8] sm:$0xf0] }
 0x268   :  { %v623_v43 = vpop.f32.mrf.mxu0  ;;  %v652_v44 = vpop.f32.mrf.mxu1  ;;  %v680_v55 = vadd.f32 %v679_v41, %v8500_v29  ;;  %v709_v56 = vadd.f32 %v708_v42, %v8502_v30  ;;  %v5853_v42 = vld [vmem:[%s9751_s9 + $0x28] sm:$0xf0] }
 0x269   :  { %v624_v46 = vadd.f32 %v623_v43, %v8488_v11  ;;  %v653_v47 = vadd.f32 %v652_v44, %v8486_v8  ;;  %v5856_v43 = vor.u32 %v6887_v40, %v5853_v42  ;;  %v5843_v44 = vld [vmem:[%s9751_s9 + $0x10] sm:$0xf] }
 0x26a   :  { %v771_v8 = vmul.f32 0.2, %v680_v55  ;;  %v772_v63 = vmul.f32 0.2, %v709_v56  ;;  %vm739_vm2 = vcmp.gt.f32.partialorder %v680_v55, 0.0  ;;  %vm740_vm3 = vcmp.gt.f32.partialorder %v709_v56, 0.0 }
 0x26b   :  { %v773_v49 = vmul.f32 0.2, %v624_v46  ;;  %v774_v50 = vmul.f32 0.2, %v653_v47  ;;  %vm741_vm14 = vcmp.gt.f32.partialorder %v624_v46, 0.0  ;;  %vm742_vm15 = vcmp.gt.f32.partialorder %v653_v47, 0.0 }
 0x26c   :  { %v803_v4 = vsel %vm739_vm2, %v680_v55, %v771_v8  ;;  %v804_v6 = vsel %vm740_vm3, %v709_v56, %v772_v63  ;;  %v6884_v55 = vld [vmem:[%s9751_s9 + $0x4] sm:$0xf0]  ;;  %v6883_v56 = vld [vmem:[%s9751_s9 + $0x4] sm:$0xf]  ;;  %v8682_v8 = vld [vmem:[#allocation7] sm:$0x3] }
 0x26d   :  { %v805_v58 = vsel %vm741_vm14, %v624_v46, %v773_v49  ;;  %v806_v59 = vsel %vm742_vm15, %v653_v47, %v774_v50  ;;  %v6885_v46 = vld [vmem:[%s9751_s9 + $0x14] sm:$0xf]  ;;  %v5844_v47 = vor.u32 %v6886_v45, %v5843_v44  ;;  %v5835_v50 = vld [vmem:[%s9751_s9] sm:$0xf] }
 0x26e   :  { %v8618_v60 = vpack.c.bf16 %v805_v58, %v801_v57  ;;  %v8620_v61 = vpack.c.bf16 %v806_v59, %v802_v48  ;;  %v5845_v48 = vld [vmem:[%s9751_s9 + $0x18] sm:$0xf0]  ;;  %v5836_v57 = vor.u32 %v6884_v55, %v5835_v50  ;;  %v5837_v58 = vld [vmem:[%s9751_s9 + $0x8] sm:$0xf0]  ;;  %v6905_v55 = vld [vmem:[%s9751_s9 + $0xb4] sm:$0xf] }
 0x26f   :  { %v681_v11 = vpop.f32.mrf.mxu2  ;;  %v710_v62 = vpop.f32.mrf.mxu3  ;;  %v5848_v49 = vor.u32 %v6885_v46, %v5845_v48  ;;  %v5840_v59 = vor.u32 %v6883_v56, %v5837_v58  ;;  %v5925_v56 = vld [vmem:[%s9751_s9 + $0xb8] sm:$0xf0]  ;;  %v6906_v58 = vld [vmem:[%s9751_s9 + $0xb4] sm:$0xf0] }
 0x270   :  { %v682_v0 = vadd.f32 %v681_v11, %v8500_v29  ;;  %v711_v1 = vadd.f32 %v710_v62, %v8502_v30  ;;  %1238 = vmatmul.bf16.gmra.mxu0 %v8618_v60  ;;  %1267 = vmatmul.bf16.gmra.mxu1 %v8620_v61  ;;  %v6913_v11 = vld [vmem:[%s9751_s9 + $0xf4] sm:$0xf]  ;;  %v5957_v62 = vld [vmem:[%s9751_s9 + $0xf8] sm:$0xf0] }
 0x271   :  { %v5960_v63 = vor.u32 %v6913_v11, %v5957_v62 }
 0x272   :  { %v775_v2 = vmul.f32 0.2, %v682_v0  ;;  %v776_v3 = vmul.f32 0.2, %v711_v1  ;;  %vm743_vm4 = vcmp.gt.f32.partialorder %v682_v0, 0.0  ;;  %vm744_vm5 = vcmp.gt.f32.partialorder %v711_v1, 0.0 }
 0x273   :  { %1788 = vmatpush.bf16.msrb.mxu3 %v5960_v63 }
 0x274   :  { %v807_v5 = vsel %vm743_vm4, %v682_v0, %v775_v2  ;;  %v808_v10 = vsel %vm744_vm5, %v711_v1, %v776_v3  ;;  %v5955_v0 = vld [vmem:[%s9751_s9 + $0xf0] sm:$0xf]  ;;  %v6914_v1 = vld [vmem:[%s9751_s9 + $0xf4] sm:$0xf0]  ;;  %v8687_v3 = vperm.slane %v8682_v8, 0 }
 0x275   :  { %v8626_v29 = vpack.c.bf16 %v807_v5, %v803_v4  ;;  %v8628_v30 = vpack.c.bf16 %v808_v10, %v804_v6  ;;  %v5956_v2 = vor.u32 %v6914_v1, %v5955_v0  ;;  %v6911_v10 = vld [vmem:[%s9751_s9 + $0xe4] sm:$0xf] }
 0x277   :  { %1296 = vmatmul.bf16.gmra.mxu2 %v8626_v29  ;;  %1325 = vmatmul.bf16.gmra.mxu3 %v8628_v30 }
 0x278   :  { %1730 = vmatpush.bf16.msrb.mxu1 %v5956_v2 }
 0x280   :  { %1339 = vmatmul.bf16.vlgmr.msra.gmra.mxu0 %v8514_v51  ;;  %1368 = vmatmul.bf16.vlgmr.msra.gmra.mxu1 %v8516_v52  ;;  %v6898_v51 = vld [vmem:[%s9751_s9 + $0x74] sm:$0xf0]  ;;  %v6897_v52 = vld [vmem:[%s9751_s9 + $0x74] sm:$0xf] }
 0x281   :  { %v5892_v13 = vor.u32 %v6898_v51, %v5891_v12  ;;  %v5947_v12 = vld [vmem:[%s9751_s9 + $0xe0] sm:$0xf]  ;;  %v6912_v51 = vld [vmem:[%s9751_s9 + $0xe4] sm:$0xf0] }
 0x283   :  { %1701 = vmatpush.bf16.msrb.mxu0 %v5892_v13 }
 0x287   :  { %1397 = vmatmul.bf16.vlgmr.msra.gmra.mxu2 %v8529_v15  ;;  %1426 = vmatmul.bf16.vlgmr.msra.gmra.mxu3 %v8531_v16  ;;  %v5893_v15 = vld [vmem:[%s9751_s9 + $0x78] sm:$0xf0]  ;;  %v5883_v16 = vld [vmem:[%s9751_s9 + $0x60] sm:$0xf] }
 0x288   :  { %v5896_v14 = vor.u32 %v6897_v52, %v5893_v15  ;;  %v5948_v52 = vor.u32 %v6912_v51, %v5947_v12  ;;  %v5915_v12 = vld [vmem:[%s9751_s9 + $0xa0] sm:$0xf]  ;;  %v6904_v51 = vld [vmem:[%s9751_s9 + $0xa4] sm:$0xf0] }
 0x28a   :  { %1759 = vmatpush.bf16.msrb.mxu2 %v5896_v14  ;;  %1731 = vmatpush.bf16.msrb.mxu1 %v5948_v52 }
 0x290   :  { %1344 = vmatmul.bf16.gmra.mxu0 %v8550_v53  ;;  %1373 = vmatmul.bf16.gmra.mxu1 %v8552_v54  ;;  %v6896_v53 = vld [vmem:[%s9751_s9 + $0x64] sm:$0xf0] }
 0x291   :  { %v5884_v54 = vor.u32 %v6896_v53, %v5883_v16 }
 0x293   :  { %1702 = vmatpush.bf16.msrb.mxu0 %v5884_v54 }
 0x297   :  { %1402 = vmatmul.bf16.gmra.mxu2 %v8565_v20  ;;  %1431 = vmatmul.bf16.gmra.mxu3 %v8567_v21  ;;  %v5885_v20 = vld [vmem:[%s9751_s9 + $0x68] sm:$0xf0] }
 0x298   :  { %v5888_v21 = vor.u32 %v6895_v17, %v5885_v20  ;;  %1703 = vmatpush.bf16.msrb.mxu0 %v5876_v23  ;;  %v6909_v20 = vld [vmem:[%s9751_s9 + $0xd4] sm:$0xf] }
 0x29a   :  { %1760 = vmatpush.bf16.msrb.mxu2 %v5888_v21  ;;  %v5941_v21 = vld [vmem:[%s9751_s9 + $0xd8] sm:$0xf0] }
 0x29b   :  { %v5944_v24 = vor.u32 %v6909_v20, %v5941_v21 }
 0x29e   :  { %1761 = vmatpush.bf16.msrb.mxu2 %v5880_v25  ;;  %v5940_v25 = vor.u32 %v6910_v19, %v5939_v18 }
 0x2a0   :  { %1349 = vmatmul.bf16.gmra.mxu0 %v8596_v7  ;;  %1378 = vmatmul.bf16.gmra.mxu1 %v8598_v9  ;;  %v6892_v7 = vld [vmem:[%s9751_s9 + $0x44] sm:$0xf0] }
 0x2a1   :  { %v5868_v9 = vor.u32 %v6892_v7, %v5867_v26  ;;  %1732 = vmatpush.bf16.msrb.mxu1 %v5940_v25  ;;  %v5909_v25 = vld [vmem:[%s9751_s9 + $0x98] sm:$0xf0] }
 0x2a2   :  { %1762 = vmatpush.bf16.msrb.mxu2 %v5872_v31 }
 0x2a3   :  { %1704 = vmatpush.bf16.msrb.mxu0 %v5868_v9 }
 0x2a6   :  { %1763 = vmatpush.bf16.msrb.mxu2 %v5864_v37  ;;  %v5931_v37 = vld [vmem:[%s9751_s9 + $0xc0] sm:$0xf] }
 0x2a7   :  { %1407 = vmatmul.bf16.gmra.mxu2 %v8608_v38  ;;  %1436 = vmatmul.bf16.gmra.mxu3 %v8610_v39  ;;  %v5851_v38 = vld [vmem:[%s9751_s9 + $0x20] sm:$0xf]  ;;  %v6888_v39 = vld [vmem:[%s9751_s9 + $0x24] sm:$0xf0] }
 0x2a8   :  { %1705 = vmatpush.bf16.msrb.mxu0 %v5860_v35  ;;  %v5852_v41 = vor.u32 %v6888_v39, %v5851_v38  ;;  %v6907_v35 = vld [vmem:[%s9751_s9 + $0xc4] sm:$0xf]  ;;  %v6908_v38 = vld [vmem:[%s9751_s9 + $0xc4] sm:$0xf0] }
 0x2a9   :  { %v5932_v42 = vor.u32 %v6908_v38, %v5931_v37  ;;  %v6899_v37 = vld [vmem:[%s9751_s9 + $0x84] sm:$0xf]  ;;  %v5901_v38 = vld [vmem:[%s9751_s9 + $0x88] sm:$0xf0] }
 0x2aa   :  { %1764 = vmatpush.bf16.msrb.mxu2 %v5856_v43 }
 0x2ab   :  { %1733 = vmatpush.bf16.msrb.mxu1 %v5932_v42  ;;  %v5904_v42 = vor.u32 %v6899_v37, %v5901_v38 }
 0x2ac   :  { %1706 = vmatpush.bf16.msrb.mxu0 %v5852_v41  ;;  %v5936_v41 = vor.u32 %v6907_v35, %v5933_v36 }
 0x2ae   :  { %1765 = vmatpush.bf16.msrb.mxu2 %v5848_v49 }
 0x2b0   :  { %1354 = vmatmul.bf16.gmra.mxu0 %v8618_v60  ;;  %1383 = vmatmul.bf16.gmra.mxu1 %v8620_v61 }
 0x2b1   :  { %1707 = vmatpush.bf16.msrb.mxu0 %v5844_v47 }
 0x2b2   :  { %1766 = vmatpush.bf16.msrb.mxu2 %v5840_v59 }
 0x2b5   :  { %1708 = vmatpush.bf16.msrb.mxu0 %v5836_v57  ;;  %v5923_v57 = vld [vmem:[%s9751_s9 + $0xb0] sm:$0xf] }
 0x2b6   :  { %v5924_v11 = vor.u32 %v6906_v58, %v5923_v57 }
 0x2b7   :  { %1412 = vmatmul.bf16.gmra.mxu2 %v8626_v29  ;;  %1441 = vmatmul.bf16.gmra.mxu3 %v8628_v30  ;;  %v5949_v29 = vld [vmem:[%s9751_s9 + $0xe8] sm:$0xf0] }
 0x2b8   :  { %v5952_v30 = vor.u32 %v6911_v10, %v5949_v29  ;;  %1734 = vmatpush.bf16.msrb.mxu1 %v5924_v11  ;;  %v6903_v29 = vld [vmem:[%s9751_s9 + $0xa4] sm:$0xf] }
 0x2ba   :  { %1789 = vmatpush.bf16.msrb.mxu3 %v5952_v30  ;;  %v5917_v30 = vld [vmem:[%s9751_s9 + $0xa8] sm:$0xf0] }
 0x2bd   :  { %v1224_v60 = vpop.f32.mrf.mxu0  ;;  %v1253_v61 = vpop.f32.mrf.mxu1 }
 0x2be   :  { %v1225_v6 = vadd.f32 %v1224_v60, %v8687_v3  ;;  %1790 = vmatpush.bf16.msrb.mxu3 %v5944_v24  ;;  %v6901_v24 = vld [vmem:[%s9751_s9 + $0x94] sm:$0xf] }
 0x2c0   :  { %v1254_v14 = vadd.f32 %v1253_v61, %v1225_v6  ;;  %v5928_v61 = vor.u32 %v6905_v55, %v5925_v56 }
 0x2c2   :  { %1791 = vmatpush.bf16.msrb.mxu3 %v5936_v41 }
 0x2c5   :  { %v1226_v4 = vpop.f32.mrf.mxu0  ;;  %v1255_v5 = vpop.f32.mrf.mxu1 }
 0x2c6   :  { %v1227_v16 = vadd.f32 %v1226_v4, %v8687_v3  ;;  %1792 = vmatpush.bf16.msrb.mxu3 %v5928_v61 }
 0x2c8   :  { %v1256_v22 = vadd.f32 %v1255_v5, %v1227_v16 }
 0x2ca   :  { %v1282_v13 = vpop.f32.mrf.mxu2  ;;  %v1311_v15 = vpop.f32.mrf.mxu3 }
 0x2cb   :  { %v1283_v53 = vadd.f32 %v1282_v13, %v1254_v14  ;;  %v5916_v14 = vor.u32 %v6904_v51, %v5915_v12 }
 0x2cd   :  { %v1229_v17 = vpop.f32.mrf.mxu0  ;;  %v1258_v54 = vpop.f32.mrf.mxu1  ;;  %v1312_v23 = vadd.f32 %v1311_v15, %v1283_v53  ;;  %v5920_v15 = vor.u32 %v6903_v29, %v5917_v30  ;;  %1735 = vmatpush.bf16.msrb.mxu1 %v5916_v14 }
 0x2ce   :  { %v1230_v33 = vadd.f32 %v1229_v17, %v8687_v3 }
 0x2cf   :  { %v1463_v9 = vmul.f32 0.2, %v1312_v23  ;;  %vm1447_vm6 = vcmp.gt.f32.partialorder %v1312_v23, 0.0  ;;  %1793 = vmatpush.bf16.msrb.mxu3 %v5920_v15 }
 0x2d0   :  { %v1259_v46 = vadd.f32 %v1258_v54, %v1230_v33 }
 0x2d1   :  { %v1479_v39 = vsel %vm1447_vm6, %v1312_v23, %v1463_v9  ;;  %v5912_v9 = vor.u32 %v6901_v24, %v5909_v25 }
 0x2d2   :  { %v1284_v26 = vpop.f32.mrf.mxu2  ;;  %v1313_v7 = vpop.f32.mrf.mxu3 }
 0x2d3   :  { %v1285_v27 = vadd.f32 %v1284_v26, %v1256_v22  ;;  %v5907_v26 = vld [vmem:[%s9751_s9 + $0x90] sm:$0xf]  ;;  %1794 = vmatpush.bf16.msrb.mxu3 %v5912_v9 }
 0x2d5   :  { %v1314_v28 = vadd.f32 %v1313_v7, %v1285_v27  ;;  %v1231_v31 = vpop.f32.mrf.mxu0  ;;  %v1260_v32 = vpop.f32.mrf.mxu1 }
 0x2d6   :  { %v1232_v47 = vadd.f32 %v1231_v31, %v8687_v3 }
 0x2d7   :  { %vm1449_vm7 = vcmp.gt.f32.partialorder %v1314_v28, 0.0  ;;  %v1465_v34 = vmul.f32 0.2, %v1314_v28  ;;  %1795 = vmatpush.bf16.msrb.mxu3 %v5904_v42 }
 0x2d8   :  { %v1261_v59 = vadd.f32 %v1260_v32, %v1232_v47 }
 0x2d9   :  { %v1481_v40 = vsel %vm1449_vm7, %v1314_v28, %v1465_v34  ;;  %v6902_v28 = vld [vmem:[%s9751_s9 + $0x94] sm:$0xf0] }
 0x2da   :  { %v1495_v43 = vpack.c.bf16 %v1481_v40, %v1479_v39  ;;  %v1287_v44 = vpop.f32.mrf.mxu2  ;;  %v1316_v45 = vpop.f32.mrf.mxu3  ;;  %v5908_v32 = vor.u32 %v6902_v28, %v5907_v26  ;;  %v5899_v39 = vld [vmem:[%s9751_s9 + $0x80] sm:$0xf] }
 0x2db   :  { %v1288_v48 = vadd.f32 %v1287_v44, %v1259_v46 }
 0x2dc   :  { %1709 = vmatmul.bf16.vlgmr.msrb.gmra.mxu0 %v1495_v43  ;;  %1767 = vmatmul.bf16.vlgmr.msrb.gmra.mxu2 %v1495_v43  ;;  %v6900_v43 = vld [vmem:[%s9751_s9 + $0x84] sm:$0xf0]  ;;  %s8062_s9 = smov 60  }
 0x2dd   :  { %v1234_v49 = vpop.f32.mrf.mxu0  ;;  %v1263_v50 = vpop.f32.mrf.mxu1  ;;  %v1317_v60 = vadd.f32 %v1316_v45, %v1288_v48  ;;  %1736 = vmatpush.bf16.msrb.mxu1 %v5908_v32  ;;  %v5900_v44 = vor.u32 %v6900_v43, %v5899_v39 }
 0x2de   :  { %v1235_v6 = vadd.f32 %v1234_v49, %v8687_v3 }
 0x2df   :  { %v1467_v1 = vmul.f32 0.2, %v1317_v60  ;;  %vm1451_vm8 = vcmp.gt.f32.partialorder %v1317_v60, 0.0 }
 0x2e0   :  { %v1264_v54 = vadd.f32 %v1263_v50, %v1235_v6 }
 0x2e1   :  { %v1483_v52 = vsel %vm1451_vm8, %v1317_v60, %v1467_v1  ;;  %1737 = vmatpush.bf16.msrb.mxu1 %v5900_v44 }
 0x2e2   :  { %v1289_v62 = vpop.f32.mrf.mxu2  ;;  %v1318_v63 = vpop.f32.mrf.mxu3 }
 0x2e3   :  { %v1290_v0 = vadd.f32 %v1289_v62, %v1261_v59  ;;  %v8726_v62 = vperm.slane %v8682_v8, 1 }
 0x2e5   :  { %v1319_v2 = vadd.f32 %v1318_v63, %v1290_v0  ;;  %v1236_v4 = vpop.f32.mrf.mxu0  ;;  %v1265_v5 = vpop.f32.mrf.mxu1 }
 0x2e6   :  { %v1237_v20 = vadd.f32 %v1236_v4, %v8687_v3 }
 0x2e7   :  { %vm1453_vm9 = vcmp.gt.f32.partialorder %v1319_v2, 0.0  ;;  %v1469_v10 = vmul.f32 0.2, %v1319_v2 }
 0x2e8   :  { %v1266_v22 = vadd.f32 %v1265_v5, %v1237_v20 }
 0x2e9   :  { %v1485_v13 = vsel %vm1453_vm9, %v1319_v2, %v1469_v10 }
 0x2ea   :  { %v1292_v16 = vpop.f32.mrf.mxu2  ;;  %v1321_v53 = vpop.f32.mrf.mxu3  ;;  %v1497_v17 = vpack.c.bf16 %v1485_v13, %v1483_v52 }
 0x2eb   :  { %v1293_v21 = vadd.f32 %v1292_v16, %v1264_v54 }
 0x2ec   :  { %1714 = vmatmul.bf16.gmra.mxu0 %v1497_v17  ;;  %1772 = vmatmul.bf16.gmra.mxu2 %v1497_v17 }
 0x2ed   :  { %v1239_v18 = vpop.f32.mrf.mxu0  ;;  %v1268_v19 = vpop.f32.mrf.mxu1  ;;  %v1322_v23 = vadd.f32 %v1321_v53, %v1293_v21 }
 0x2ee   :  { %v1240_v40 = vadd.f32 %v1239_v18, %v8687_v3 }
 0x2ef   :  { %vm1455_vm10 = vcmp.gt.f32.partialorder %v1322_v23, 0.0  ;;  %v1471_v33 = vmul.f32 0.2, %v1322_v23 }
 0x2f0   :  { %v1269_v50 = vadd.f32 %v1268_v19, %v1240_v40 }
 0x2f1   :  { %v1487_v45 = vsel %vm1455_vm10, %v1322_v23, %v1471_v33 }
 0x2f2   :  { %v1294_v7 = vpop.f32.mrf.mxu2  ;;  %v1323_v27 = vpop.f32.mrf.mxu3 }
 0x2f3   :  { %v1295_v31 = vadd.f32 %v1294_v7, %v1266_v22 }
 0x2f5   :  { %v1324_v34 = vadd.f32 %v1323_v27, %v1295_v31  ;;  %v1241_v35 = vpop.f32.mrf.mxu0  ;;  %v1270_v36 = vpop.f32.mrf.mxu1 }
 0x2f6   :  { %v1242_v55 = vadd.f32 %v1241_v35, %v8687_v3 }
 0x2f7   :  { %vm1457_vm11 = vcmp.gt.f32.partialorder %v1324_v34, 0.0  ;;  %v1473_v41 = vmul.f32 0.2, %v1324_v34 }
 0x2f8   :  { %v1271_v59 = vadd.f32 %v1270_v36, %v1242_v55 }
 0x2f9   :  { %v1489_v46 = vsel %vm1457_vm11, %v1324_v34, %v1473_v41 }
 0x2fa   :  { %v1297_v47 = vpop.f32.mrf.mxu2  ;;  %v1326_v48 = vpop.f32.mrf.mxu3  ;;  %v1499_v49 = vpack.c.bf16 %v1489_v46, %v1487_v45 }
 0x2fb   :  { %v1298_v56 = vadd.f32 %v1297_v47, %v1269_v50 }
 0x2fc   :  { %1719 = vmatmul.bf16.gmra.mxu0 %v1499_v49  ;;  %1777 = vmatmul.bf16.gmra.mxu2 %v1499_v49 }
 0x2fd   :  { %v1340_v57 = vpop.f32.mrf.mxu0  ;;  %v1369_v58 = vpop.f32.mrf.mxu1  ;;  %v1327_v60 = vadd.f32 %v1326_v48, %v1298_v56 }
 0x2fe   :  { %v1341_v5 = vadd.f32 %v1340_v57, %v8726_v62 }
 0x2ff   :  { %v1475_v0 = vmul.f32 0.2, %v1327_v60  ;;  %vm1459_vm12 = vcmp.gt.f32.partialorder %v1327_v60, 0.0 }
 0x300   :  { %v1370_v51 = vadd.f32 %v1369_v58, %v1341_v5 }
 0x301   :  { %v1491_v6 = vsel %vm1459_vm12, %v1327_v60, %v1475_v0 }
 0x302   :  { %v1299_v61 = vpop.f32.mrf.mxu2  ;;  %v1328_v11 = vpop.f32.mrf.mxu3 }
 0x303   :  { %v1300_v63 = vadd.f32 %v1299_v61, %v1271_v59 }
 0x305   :  { %v1329_v1 = vadd.f32 %v1328_v11, %v1300_v63  ;;  %v1342_v2 = vpop.f32.mrf.mxu0  ;;  %v1371_v4 = vpop.f32.mrf.mxu1 }
 0x306   :  { %v1343_v8 = vadd.f32 %v1342_v2, %v8726_v62 }
 0x307   :  { %vm1461_vm13 = vcmp.gt.f32.partialorder %v1329_v1, 0.0  ;;  %v1477_v3 = vmul.f32 0.2, %v1329_v1 }
 0x308   :  { %v1372_v14 = vadd.f32 %v1371_v4, %v1343_v8 }
 0x309   :  { %v1493_v10 = vsel %vm1461_vm13, %v1329_v1, %v1477_v3 }
 0x30a   :  { %v1398_v29 = vpop.f32.mrf.mxu2  ;;  %v1427_v30 = vpop.f32.mrf.mxu3  ;;  %v1501_v12 = vpack.c.bf16 %v1493_v10, %v1491_v6 }
 0x30b   :  { %v1399_v52 = vadd.f32 %v1398_v29, %v1370_v51 }
 0x30c   :  { %1724 = vmatmul.bf16.gmra.mxu0 %v1501_v12  ;;  %1782 = vmatmul.bf16.gmra.mxu2 %v1501_v12 }
 0x30d   :  { %v1345_v13 = vpop.f32.mrf.mxu0  ;;  %v1374_v15 = vpop.f32.mrf.mxu1  ;;  %v1428_v16 = vadd.f32 %v1427_v30, %v1399_v52 }
 0x30e   :  { %v1346_v19 = vadd.f32 %v1345_v13, %v8726_v62 }
 0x30f   :  { %v1464_v20 = vmul.f32 0.2, %v1428_v16  ;;  %vm1448_vm14 = vcmp.gt.f32.partialorder %v1428_v16, 0.0 }
 0x310   :  { %v1375_v9 = vadd.f32 %v1374_v15, %v1346_v19 }
 0x311   :  { %v1480_v24 = vsel %vm1448_vm14, %v1428_v16, %v1464_v20  ;;  %v2202_v16 = vld [vmem:[#allocation11] sm:$0xff] }
 0x312   :  { %v1400_v53 = vpop.f32.mrf.mxu2  ;;  %v1429_v17 = vpop.f32.mrf.mxu3  ;;  %v2217_v19 = vunpack.c.h.b16 %v2202_v16 }
 0x313   :  { %v1401_v54 = vadd.f32 %v1400_v53, %v1372_v14 }
 0x315   :  { %v1430_v21 = vadd.f32 %v1429_v17, %v1401_v54  ;;  %v1347_v18 = vpop.f32.mrf.mxu0  ;;  %v1376_v23 = vpop.f32.mrf.mxu1  ;;  %v2216_v17 = vunpack.c.l.b16 %v2202_v16 }
 0x316   :  { %v1348_v28 = vadd.f32 %v1347_v18, %v8726_v62 }
 0x317   :  { %vm1450_vm15 = vcmp.gt.f32.partialorder %v1430_v21, 0.0  ;;  %v1466_v22 = vmul.f32 0.2, %v1430_v21  ;;  %v2220_v18 = vpack.c.b16 %v2216_v17, %v2216_v17 }
 0x318   :  { %v1377_v33 = vadd.f32 %v1376_v23, %v1348_v28  ;;  %v2221_v23 = vpack.c.b16 %v2217_v19, %v2217_v19 }
 0x319   :  { %v1482_v25 = vsel %vm1450_vm15, %v1430_v21, %v1466_v22 }
 0x31a   :  { %v1496_v26 = vpack.c.bf16 %v1482_v25, %v1480_v24  ;;  %v1403_v7 = vpop.f32.mrf.mxu2  ;;  %v1432_v27 = vpop.f32.mrf.mxu3  ;;  %v2184_v24 = vld [vmem:[%s9752_s7] sm:$0xff]  ;;  %v2185_v25 = vld [vmem:[%s9752_s7 + $0x8] sm:$0xff] }
 0x31b   :  { %v1404_v31 = vadd.f32 %v1403_v7, %v1375_v9  ;;  %v8740_v9 = vpack.c.bf16 %v2185_v25, %v2184_v24 }
 0x31c   :  { %1738 = vmatmul.bf16.vlgmr.msrb.gmra.mxu1 %v1496_v26  ;;  %1796 = vmatmul.bf16.vlgmr.msrb.gmra.mxu3 %v1496_v26 }
 0x31d   :  { %v1350_v32 = vpop.f32.mrf.mxu0  ;;  %v1433_v34 = vadd.f32 %v1432_v27, %v1404_v31  ;;  %v1379_v35 = vpop.f32.mrf.mxu1  ;;  %v2246_v27 = vsel %vm584_vm0, %v2221_v23, 0  ;;  %v6922_v31 = vld [vmem:[%s9753_s21 + $0x38] sm:$0xff] }
 0x31e   :  { %v1351_v42 = vadd.f32 %v1350_v32, %v8726_v62  ;;  %2300 = vmatpush.bf16.msra.mxu3 %v2246_v27  ;;  %2005 = vmatpush.bf16.msra.mxu0 %v6922_v31  ;;  %v6930_v32 = vld [vmem:[%s9753_s21 + $0x78] sm:$0xff] }
 0x31f   :  { %v1468_v39 = vmul.f32 0.2, %v1433_v34  ;;  %vm1452_vm2 = vcmp.gt.f32.partialorder %v1433_v34, 0.0  ;;  %2034 = vmatpush.bf16.msra.mxu1 %v6930_v32 }
 0x320   :  { %v1380_v49 = vadd.f32 %v1379_v35, %v1351_v42  ;;  %v2186_v35 = vld [vmem:[%s9752_s7 + $0x10] sm:$0xff]  ;;  %v2188_v42 = vld [vmem:[%s9752_s7 + $0x20] sm:$0xff] }
 0x321   :  { %v1484_v44 = vsel %vm1452_vm2, %v1433_v34, %v1468_v39  ;;  %v6929_v34 = vld [vmem:[%s9753_s21 + $0x70] sm:$0xff]  ;;  %v6928_v39 = vld [vmem:[%s9753_s21 + $0x68] sm:$0xff] }
 0x322   :  { %v1405_v36 = vpop.f32.mrf.mxu2  ;;  %v1434_v37 = vpop.f32.mrf.mxu3 }
 0x323   :  { %v1406_v38 = vadd.f32 %v1405_v36, %v1377_v33  ;;  %v6921_v33 = vld [vmem:[%s9753_s21 + $0x30] sm:$0xff]  ;;  %v2187_v36 = vld [vmem:[%s9752_s7 + $0x18] sm:$0xff]  ;;  %2035 = vmatpush.bf16.msra.mxu1 %v6929_v34 }
 0x324   :  { %2006 = vmatpush.bf16.msra.mxu0 %v6921_v33 }
 0x325   :  { %v1435_v40 = vadd.f32 %v1434_v37, %v1406_v38  ;;  %v1352_v41 = vpop.f32.mrf.mxu0  ;;  %v1381_v50 = vpop.f32.mrf.mxu1  ;;  %v8750_v37 = vpack.c.bf16 %v2187_v36, %v2186_v35  ;;  %v6920_v38 = vld [vmem:[%s9753_s21 + $0x28] sm:$0xff] }
 0x326   :  { %v1353_v55 = vadd.f32 %v1352_v41, %v8726_v62  ;;  %v6927_v41 = vld [vmem:[%s9753_s21 + $0x60] sm:$0xff] }
 0x327   :  { %vm1454_vm3 = vcmp.gt.f32.partialorder %v1435_v40, 0.0  ;;  %v1470_v43 = vmul.f32 0.2, %v1435_v40  ;;  %2036 = vmatpush.bf16.msra.mxu1 %v6928_v39 }
 0x328   :  { %v1382_v58 = vadd.f32 %v1381_v50, %v1353_v55  ;;  %2007 = vmatpush.bf16.msra.mxu0 %v6920_v38  ;;  %v2191_v50 = vld [vmem:[%s9752_s7 + $0x38] sm:$0xff] }
 0x329   :  { %v1486_v45 = vsel %vm1454_vm3, %v1435_v40, %v1470_v43  ;;  %v6919_v40 = vld [vmem:[%s9753_s21 + $0x20] sm:$0xff]  ;;  %v2189_v43 = vld [vmem:[%s9752_s7 + $0x28] sm:$0xff] }
 0x32a   :  { %v1408_v46 = vpop.f32.mrf.mxu2  ;;  %v1437_v47 = vpop.f32.mrf.mxu3  ;;  %v1498_v48 = vpack.c.bf16 %v1486_v45, %v1484_v44  ;;  %v8762_v44 = vpack.c.bf16 %v2189_v43, %v2188_v42  ;;  %v6918_v45 = vld [vmem:[%s9753_s21 + $0x18] sm:$0xff] }
 0x32b   :  { %v1409_v56 = vadd.f32 %v1408_v46, %v1380_v49  ;;  %2037 = vmatpush.bf16.msra.mxu1 %v6927_v41  ;;  %v6926_v46 = vld [vmem:[%s9753_s21 + $0x58] sm:$0xff]  ;;  %v2190_v49 = vld [vmem:[%s9752_s7 + $0x30] sm:$0xff] }
 0x32c   :  { %1743 = vmatmul.bf16.gmra.mxu1 %v1498_v48  ;;  %1801 = vmatmul.bf16.gmra.mxu3 %v1498_v48  ;;  %v6925_v48 = vld [vmem:[%s9753_s21 + $0x50] sm:$0xff]  ;;  %v8774_v55 = vpack.c.bf16 %v2191_v50, %v2190_v49 }
 0x32d   :  { %v1355_v57 = vpop.f32.mrf.mxu0  ;;  %v1438_v59 = vadd.f32 %v1437_v47, %v1409_v56  ;;  %v1384_v1 = vpop.f32.mrf.mxu1  ;;  %2008 = vmatpush.bf16.msra.mxu0 %v6919_v40  ;;  %v6917_v47 = vld [vmem:[%s9753_s21 + $0x10] sm:$0xff]  ;;  %v6916_v56 = vld [vmem:[%s9753_s21 + $0x8] sm:$0xff] }
 0x32e   :  { %v1356_v2 = vadd.f32 %v1355_v57, %v8726_v62 }
 0x32f   :  { %v1472_v63 = vmul.f32 0.2, %v1438_v59  ;;  %vm1456_vm4 = vcmp.gt.f32.partialorder %v1438_v59, 0.0  ;;  %2038 = vmatpush.bf16.msra.mxu1 %v6926_v46 }
 0x330   :  { %v1385_v12 = vadd.f32 %v1384_v1, %v1356_v2  ;;  %v6923_v1 = vld [vmem:[%s9753_s21 + $0x40] sm:$0xff] }
 0x331   :  { %v1488_v3 = vsel %vm1456_vm4, %v1438_v59, %v1472_v63  ;;  %2009 = vmatpush.bf16.msra.mxu0 %v6918_v45  ;;  %v6915_v59 = vld [vmem:[%s9753_s21] sm:$0xff] }
 0x332   :  { %v1410_v60 = vpop.f32.mrf.mxu2  ;;  %v1439_v61 = vpop.f32.mrf.mxu3  ;;  %v2203_v2 = vld [vmem:[#allocation11 + $0x8] sm:$0xff] }
 0x333   :  { %v1411_v11 = vadd.f32 %v1410_v60, %v1382_v58  ;;  %2039 = vmatpush.bf16.msra.mxu1 %v6925_v48  ;;  %v6924_v58 = vld [vmem:[%s9753_s21 + $0x48] sm:$0xff] }
 0x335   :  { %v1440_v0 = vadd.f32 %v1439_v61, %v1411_v11  ;;  %v1357_v5 = vpop.f32.mrf.mxu0  ;;  %v1386_v52 = vpop.f32.mrf.mxu1  ;;  %2010 = vmatpush.bf16.msra.mxu0 %v6917_v47  ;;  %v2192_v61 = vld [vmem:[%s9752_s7 + $0x40] sm:$0xff]  ;;  %v2193_v11 = vld [vmem:[%s9752_s7 + $0x48] sm:$0xff] }
 0x336   :  { %v1358_v51 = vadd.f32 %v1357_v5, %v8726_v62  ;;  %v2243_v62 = vsel %vm584_vm0, %v2220_v18, 0  ;;  %v8785_v63 = vpack.c.bf16 %v2193_v11, %v2192_v61 }
 0x337   :  { %vm1458_vm5 = vcmp.gt.f32.partialorder %v1440_v0, 0.0  ;;  %v1474_v4 = vmul.f32 0.2, %v1440_v0  ;;  %2261 = vmatpush.bf16.msra.mxu2 %v2243_v62  ;;  %2040 = vmatpush.bf16.msra.mxu1 %v6924_v58 }
 0x338   :  { %v1387_v13 = vadd.f32 %v1386_v52, %v1358_v51  ;;  %v2194_v52 = vld [vmem:[%s9752_s7 + $0x50] sm:$0xff] }
 0x339   :  { %v1490_v6 = vsel %vm1458_vm5, %v1440_v0, %v1474_v4  ;;  %2011 = vmatpush.bf16.msra.mxu0 %v6916_v56  ;;  %v2218_v4 = vunpack.c.l.b16 %v2203_v2 }
 0x33a   :  { %v1413_v10 = vpop.f32.mrf.mxu2  ;;  %v1442_v29 = vpop.f32.mrf.mxu3  ;;  %v1500_v30 = vpack.c.bf16 %v1490_v6, %v1488_v3  ;;  %6025 = vmatmul.msk.bf16.vlgmr.msra.gmra.mxu2 %vm571_vm1, %v8740_v9 }
 0x33b   :  { %v1414_v8 = vadd.f32 %v1413_v10, %v1385_v12  ;;  %2041 = vmatpush.bf16.msra.mxu1 %v6923_v1  ;;  %v2222_v5 = vpack.c.b16 %v2218_v4, %v2218_v4  ;;  %v2219_v10 = vunpack.c.h.b16 %v2203_v2  ;;  %v1535_v12 = vld [vmem:[#allocation8] sm:$0x3] }
 0x33c   :  { %1748 = vmatmul.bf16.gmra.mxu1 %v1500_v30  ;;  %1806 = vmatmul.bf16.gmra.mxu3 %v1500_v30  ;;  %v8805_v17 = vperm.slane %v1535_v12, 1 }
 0x33d   :  { %v1443_v15 = vadd.f32 %v1442_v29, %v1414_v8  ;;  %2012 = vmatpush.bf16.msra.mxu0 %v6915_v59  ;;  %v2249_v6 = vsel %vm584_vm0, %v2222_v5, 0  ;;  %v2223_v30 = vpack.c.b16 %v2219_v10, %v2219_v10  ;;  %v8794_v8 = vperm.slane %v1535_v12, 0 }
 0x33f   :  { %v1476_v20 = vmul.f32 0.2, %v1443_v15  ;;  %vm1460_vm6 = vcmp.gt.f32.partialorder %v1443_v15, 0.0  ;;  %v2252_v51 = vsel %vm584_vm0, %v2223_v30, 0 }
 0x340   :  { %2378 = vmatpush.bf16.msrb.mxu1 %v2252_v51  ;;  %v6107_v51 = vld [vmem:[#allocation14 + $0x70] sm:$0xf] }
 0x341   :  { %v1492_v26 = vsel %vm1460_vm6, %v1443_v15, %v1476_v20  ;;  %2339 = vmatpush.bf16.msrb.mxu0 %v2249_v6 }
 0x342   :  { %v1415_v14 = vpop.f32.mrf.mxu2  ;;  %v1444_v54 = vpop.f32.mrf.mxu3 }
 0x343   :  { %v1416_v53 = vadd.f32 %v1415_v14, %v1387_v13  ;;  %v2195_v13 = vld [vmem:[%s9752_s7 + $0x58] sm:$0xff]  ;;  %s8063_s7 = smov 48  }
 0x344   :  { %v8798_v14 = vpack.c.bf16 %v2195_v13, %v2194_v52  ;;  %v6946_v13 = vld [vmem:[#allocation14 + $0x74] sm:$0xf0] }
 0x345   :  { %v1445_v21 = vadd.f32 %v1444_v54, %v1416_v53 }
 0x347   :  { %vm1462_vm7 = vcmp.gt.f32.partialorder %v1445_v21, 0.0  ;;  %v1478_v22 = vmul.f32 0.2, %v1445_v21 }
 0x349   :  { %v1494_v7 = vsel %vm1462_vm7, %v1445_v21, %v1478_v22 }
 0x34a   :  { %v1502_v28 = vpack.c.bf16 %v1494_v7, %v1492_v26  ;;  %6026 = vmatmul.msk.bf16.gmra.mxu2 %vm571_vm1, %v8750_v37 }
 0x34c   :  { %1753 = vmatmul.bf16.gmra.mxu1 %v1502_v28  ;;  %1811 = vmatmul.bf16.gmra.mxu3 %v1502_v28 }
 0x359   :  { %v1710_v60 = vpop.f32.mrf.mxu0 }
 0x35a   :  { %6027 = vmatmul.msk.bf16.gmra.mxu2 %vm571_vm1, %v8762_v44  ;;  %v1711_v53 = vadd.f32 %v1710_v60, %v8794_v8 }
 0x35c   :  { %6031 = vmatmul.msk.bf16.vlgmr.msra.gmra.mxu3 %vm571_vm1, %v8740_v9 }
 0x35f   :  { %v1768_v57 = vpop.f32.mrf.mxu2 }
 0x360   :  { %v1769_v22 = vadd.f32 %v1768_v57, %v8805_v17 }
 0x361   :  { %v1712_v3 = vpop.f32.mrf.mxu0 }
 0x362   :  { %v1713_v18 = vadd.f32 %v1712_v3, %v8794_v8 }
 0x367   :  { %v1770_v0 = vpop.f32.mrf.mxu2 }
 0x368   :  { %v1771_v7 = vadd.f32 %v1770_v0, %v8805_v17 }
 0x369   :  { %v1715_v16 = vpop.f32.mrf.mxu0 }
 0x36a   :  { %6028 = vmatmul.msk.bf16.gmra.mxu2 %vm571_vm1, %v8774_v55  ;;  %v1716_v39 = vadd.f32 %v1715_v16, %v8794_v8  ;;  %v6108_v16 = vor.u32 %v6946_v13, %v6107_v51  ;;  %v6139_v13 = vld [vmem:[#allocation14 + $0xb0] sm:$0xf] }
 0x36c   :  { %6032 = vmatmul.msk.bf16.gmra.mxu3 %vm571_vm1, %v8750_v37  ;;  %2968 = vmatpush.bf16.msrb.mxu2 %v6108_v16 }
 0x36f   :  { %v1773_v29 = vpop.f32.mrf.mxu2 }
 0x370   :  { %v1774_v49 = vadd.f32 %v1773_v29, %v8805_v17 }
 0x371   :  { %v1717_v26 = vpop.f32.mrf.mxu0 }
 0x372   :  { %v1718_v47 = vadd.f32 %v1717_v26, %v8794_v8 }
 0x377   :  { %v1775_v54 = vpop.f32.mrf.mxu2 }
 0x378   :  { %v1776_v60 = vadd.f32 %v1775_v54, %v8805_v17  ;;  %v6962_v54 = vld [vmem:[#allocation14 + $0xf4] sm:$0xf0] }
 0x379   :  { %v1720_v45 = vpop.f32.mrf.mxu0 }
 0x37a   :  { %6029 = vmatmul.msk.bf16.gmra.mxu2 %vm571_vm1, %v8785_v63  ;;  %v1721_v10 = vadd.f32 %v1720_v45, %v8794_v8  ;;  %v6958_v45 = vld [vmem:[#allocation14 + $0xd4] sm:$0xf0] }
 0x37c   :  { %6033 = vmatmul.msk.bf16.gmra.mxu3 %vm571_vm1, %v8762_v44 }
 0x37f   :  { %v8810_v33 = vpop.f32.mrf.mxu2 }
 0x381   :  { %v1722_v5 = vpop.f32.mrf.mxu0 }
 0x387   :  { %v1780_v50 = vpop.f32.mrf.mxu2 }
 0x38a   :  { %6030 = vmatmul.msk.bf16.gmra.mxu2 %vm571_vm1, %v8798_v14 }
 0x38c   :  { %6034 = vmatmul.msk.bf16.gmra.mxu3 %vm571_vm1, %v8774_v55 }
 0x38f   :  { %v8819_v29 = vpop.f32.mrf.mxu2 }
 0x399   :  { %v1739_v15 = vpop.f32.mrf.mxu1 }
 0x39a   :  { %v1740_v20 = vadd.f32 %v1739_v15, %v1711_v53  ;;  %v6171_v53 = vld [vmem:[#allocation14 + $0xf0] sm:$0xf] }
 0x39c   :  { %6035 = vmatmul.msk.bf16.gmra.mxu3 %vm571_vm1, %v8785_v63  ;;  %v1833_v62 = vmul.f32 0.2, %v1740_v20  ;;  %vm1817_vm8 = vcmp.gt.f32.partialorder %v1740_v20, 0.0 }
 0x39e   :  { %v1849_v27 = vsel %vm1817_vm8, %v1740_v20, %v1833_v62  ;;  %v1723_v62 = vadd.f32 %v1722_v5, %v8794_v8  ;;  %v6075_v5 = vld [vmem:[#allocation14 + $0x30] sm:$0xf] }
 0x39f   :  { %v1797_v21 = vpop.f32.mrf.mxu3 }
 0x3a0   :  { %v1798_v24 = vadd.f32 %v1797_v21, %v1769_v22  ;;  %v6172_v21 = vor.u32 %v6962_v54, %v6171_v53  ;;  %v6163_v22 = vld [vmem:[#allocation14 + $0xe0] sm:$0xf] }
 0x3a1   :  { %v1741_v19 = vpop.f32.mrf.mxu1  ;;  %v6067_v54 = vld [vmem:[#allocation14 + $0x20] sm:$0xf] }
 0x3a2   :  { %v1742_v23 = vadd.f32 %v1741_v19, %v1713_v18  ;;  %v1834_v34 = vmul.f32 0.2, %v1798_v24  ;;  %vm1818_vm10 = vcmp.gt.f32.partialorder %v1798_v24, 0.0  ;;  %v6099_v18 = vld [vmem:[#allocation14 + $0x60] sm:$0xf]  ;;  %3007 = vmatpush.bf16.msrb.mxu3 %v6172_v21 }
 0x3a3   :  { %v6944_v19 = vld [vmem:[#allocation14 + $0x64] sm:$0xf0] }
 0x3a4   :  { %vm1819_vm9 = vcmp.gt.f32.partialorder %v1742_v23, 0.0  ;;  %v1835_v25 = vmul.f32 0.2, %v1742_v23  ;;  %v1850_v40 = vsel %vm1818_vm10, %v1798_v24, %v1834_v34  ;;  %v6960_v24 = vld [vmem:[#allocation14 + $0xe4] sm:$0xf0]  ;;  %v1725_v34 = vpop.f32.mrf.mxu0 }
 0x3a5   :  { %v6164_v26 = vor.u32 %v6960_v24, %v6163_v22  ;;  %v6952_v22 = vld [vmem:[#allocation14 + $0xa4] sm:$0xf0] }
 0x3a6   :  { %v1851_v28 = vsel %vm1819_vm9, %v1742_v23, %v1835_v25  ;;  %v6100_v23 = vor.u32 %v6944_v19, %v6099_v18  ;;  %v6131_v19 = vld [vmem:[#allocation14 + $0xa0] sm:$0xf] }
 0x3a7   :  { %v1865_v31 = vpack.c.bf16 %v1851_v28, %v1849_v27  ;;  %v1799_v32 = vpop.f32.mrf.mxu3  ;;  %v6942_v27 = vld [vmem:[#allocation14 + $0x54] sm:$0xf0]  ;;  %v1779_v28 = vadd.f32 %v8810_v33, %v8805_v17  ;;  %3008 = vmatpush.bf16.msrb.mxu3 %v6164_v26  ;;  %v6059_v26 = vld [vmem:[#allocation14 + $0x10] sm:$0xf] }
 0x3a8   :  { %v1800_v35 = vadd.f32 %v1799_v32, %v1771_v7  ;;  %v6091_v7 = vld [vmem:[#allocation14 + $0x50] sm:$0xf]  ;;  %2969 = vmatpush.bf16.msrb.mxu2 %v6100_v23 }
 0x3a9   :  { %v1744_v36 = vpop.f32.mrf.mxu1  ;;  %2013 = vmatmul.bf16.vlgmr.msra.gmra.mxu0 %v1865_v31 }
 0x3aa   :  { %vm1820_vm11 = vcmp.gt.f32.partialorder %v1800_v35, 0.0  ;;  %v1836_v38 = vmul.f32 0.2, %v1800_v35  ;;  %v1745_v43 = vadd.f32 %v1744_v36, %v1716_v39  ;;  %v1781_v39 = vadd.f32 %v1780_v50, %v8805_v17  ;;  %v6147_v50 = vld [vmem:[#allocation14 + $0xc0] sm:$0xf] }
 0x3ac   :  { %v1852_v41 = vsel %vm1820_vm11, %v1800_v35, %v1836_v38  ;;  %6036 = vmatmul.msk.bf16.gmra.mxu3 %vm571_vm1, %v8798_v14  ;;  %v1837_v56 = vmul.f32 0.2, %v1745_v43  ;;  %vm1821_vm12 = vcmp.gt.f32.partialorder %v1745_v43, 0.0  ;;  %v6092_v38 = vor.u32 %v6942_v27, %v6091_v7  ;;  %v6934_v7 = vld [vmem:[#allocation14 + $0x14] sm:$0xf0] }
 0x3ad   :  { %v1866_v42 = vpack.c.bf16 %v1852_v41, %v1850_v40  ;;  %v8825_v40 = vpop.f32.mrf.mxu2 }
 0x3ae   :  { %v1853_v61 = vsel %vm1821_vm12, %v1745_v43, %v1837_v56  ;;  %v6155_v43 = vld [vmem:[#allocation14 + $0xd0] sm:$0xf]  ;;  %2970 = vmatpush.bf16.msrb.mxu2 %v6092_v38  ;;  %v6083_v56 = vld [vmem:[#allocation14 + $0x40] sm:$0xf] }
 0x3af   :  { %v1802_v46 = vpop.f32.mrf.mxu3  ;;  %2042 = vmatmul.bf16.vlgmr.msra.gmra.mxu1 %v1866_v42 }
 0x3b0   :  { %v1803_v58 = vadd.f32 %v1802_v46, %v1774_v49 }
 0x3b1   :  { %v1746_v48 = vpop.f32.mrf.mxu1 }
 0x3b2   :  { %v1747_v57 = vadd.f32 %v1746_v48, %v1718_v47  ;;  %v1838_v2 = vmul.f32 0.2, %v1803_v58  ;;  %vm1822_vm14 = vcmp.gt.f32.partialorder %v1803_v58, 0.0  ;;  %v6156_v47 = vor.u32 %v6958_v45, %v6155_v43 }
 0x3b4   :  { %vm1823_vm13 = vcmp.gt.f32.partialorder %v1747_v57, 0.0  ;;  %v1839_v59 = vmul.f32 0.2, %v1747_v57  ;;  %v1854_v30 = vsel %vm1822_vm14, %v1803_v58, %v1838_v2  ;;  %3009 = vmatpush.bf16.msrb.mxu3 %v6156_v47 }
 0x3b6   :  { %v1855_v11 = vsel %vm1823_vm13, %v1747_v57, %v1839_v59  ;;  %v6940_v57 = vld [vmem:[#allocation14 + $0x44] sm:$0xf0] }
 0x3b7   :  { %v1804_v0 = vpop.f32.mrf.mxu3  ;;  %v1867_v1 = vpack.c.bf16 %v1855_v11, %v1853_v61  ;;  %v6084_v59 = vor.u32 %v6940_v57, %v6083_v56  ;;  %v6115_v57 = vld [vmem:[#allocation14 + $0x80] sm:$0xf] }
 0x3b8   :  { %v1805_v4 = vadd.f32 %v1804_v0, %v1776_v60  ;;  %v6956_v60 = vld [vmem:[#allocation14 + $0xc4] sm:$0xf0]  ;;  %v8827_v0 = vld [vmem:[#allocation13] sm:$0xf] }
 0x3b9   :  { %v1749_v3 = vpop.f32.mrf.mxu1  ;;  %2018 = vmatmul.bf16.gmra.mxu0 %v1867_v1  ;;  %v6148_v11 = vor.u32 %v6956_v60, %v6147_v50  ;;  %v1726_v1 = vadd.f32 %v1725_v34, %v8794_v8  ;;  %2971 = vmatpush.bf16.msrb.mxu2 %v6084_v59  ;;  %v6948_v59 = vld [vmem:[#allocation14 + $0x84] sm:$0xf0] }
 0x3ba   :  { %vm1824_vm15 = vcmp.gt.f32.partialorder %v1805_v4, 0.0  ;;  %v1840_v6 = vmul.f32 0.2, %v1805_v4  ;;  %v1750_v15 = vadd.f32 %v1749_v3, %v1721_v10  ;;  %v1727_v3 = vpop.f32.mrf.mxu0  ;;  %v8831_v10 = vperm.slane %v8827_v0, 0 }
 0x3bb   :  { %3010 = vmatpush.bf16.msrb.mxu3 %v6148_v11  ;;  %v1728_v21 = vadd.f32 %v1727_v3, %v8794_v8  ;;  %v6116_v60 = vor.u32 %v6948_v59, %v6115_v57 }
 0x3bc   :  { %v1856_v12 = vsel %vm1824_vm15, %v1805_v4, %v1840_v6  ;;  %v1841_v31 = vmul.f32 0.2, %v1750_v15  ;;  %vm1825_vm2 = vcmp.gt.f32.partialorder %v1750_v15, 0.0 }
 0x3bd   :  { %v1868_v52 = vpack.c.bf16 %v1856_v12, %v1854_v30  ;;  %v6938_v30 = vld [vmem:[#allocation14 + $0x34] sm:$0xf0]  ;;  %v2263_v51 = vpop.f32.mrf.mxu2 }
 0x3be   :  { %v1857_v41 = vsel %vm1825_vm2, %v1750_v15, %v1841_v31  ;;  %v6954_v15 = vld [vmem:[#allocation14 + $0xb4] sm:$0xf0]  ;;  %v2264_v24 = vadd.f32 %v2263_v51, %v8831_v10 }
 0x3bf   :  { %v1807_v20 = vpop.f32.mrf.mxu3  ;;  %2047 = vmatmul.bf16.gmra.mxu1 %v1868_v52  ;;  %v6076_v52 = vor.u32 %v6938_v30, %v6075_v5  ;;  %v6140_v53 = vor.u32 %v6954_v15, %v6139_v13 }
 0x3c0   :  { %v1808_v35 = vadd.f32 %v1807_v20, %v1779_v28  ;;  %v6936_v20 = vld [vmem:[#allocation14 + $0x24] sm:$0xf0]  ;;  %v2458_v34 = vmul.f32 0.2, %v2264_v24  ;;  %vm2410_vm8 = vcmp.gt.f32.partialorder %v2264_v24, 0.0 }
 0x3c1   :  { %v1751_v25 = vpop.f32.mrf.mxu1  ;;  %2972 = vmatpush.bf16.msrb.mxu2 %v6076_v52  ;;  %v6068_v18 = vor.u32 %v6936_v20, %v6067_v54  ;;  %3011 = vmatpush.bf16.msrb.mxu3 %v6140_v53 }
 0x3c2   :  { %v1752_v32 = vadd.f32 %v1751_v25, %v1723_v62  ;;  %v1842_v48 = vmul.f32 0.2, %v1808_v35  ;;  %vm1826_vm4 = vcmp.gt.f32.partialorder %v1808_v35, 0.0  ;;  %v1784_v62 = vadd.f32 %v8819_v29, %v8805_v17 }
 0x3c3   :  { %v6132_v25 = vor.u32 %v6952_v22, %v6131_v19  ;;  %v1786_v29 = vadd.f32 %v8825_v40, %v8805_v17  ;;  %v2506_v56 = vsel %vm2410_vm8, %v2264_v24, %v2458_v34  ;;  %v6235_v34 = vld [vmem:[#allocation14 + $0x170] sm:$0xf] }
 0x3c4   :  { %vm1827_vm3 = vcmp.gt.f32.partialorder %v1752_v32, 0.0  ;;  %v1843_v36 = vmul.f32 0.2, %v1752_v32  ;;  %v1858_v2 = vsel %vm1826_vm4, %v1808_v35, %v1842_v48  ;;  %v6051_v48 = vld [vmem:[#allocation14] sm:$0xf] }
 0x3c5   :  { %2973 = vmatpush.bf16.msrb.mxu2 %v6068_v18  ;;  %3012 = vmatpush.bf16.msrb.mxu3 %v6132_v25  ;;  %v2265_v38 = vpop.f32.mrf.mxu2 }
 0x3c6   :  { %v1859_v42 = vsel %vm1827_vm3, %v1752_v32, %v1843_v36  ;;  %v6060_v32 = vor.u32 %v6934_v7, %v6059_v26  ;;  %v2266_v45 = vadd.f32 %v2265_v38, %v8831_v10  ;;  %v6978_v38 = vld [vmem:[#allocation14 + $0x174] sm:$0xf0] }
 0x3c7   :  { %v1809_v46 = vpop.f32.mrf.mxu3  ;;  %v1869_v33 = vpack.c.bf16 %v1859_v42, %v1857_v41  ;;  %v6950_v41 = vld [vmem:[#allocation14 + $0x94] sm:$0xf0] }
 0x3c8   :  { %v1810_v49 = vadd.f32 %v1809_v46, %v1781_v39  ;;  %v6123_v39 = vld [vmem:[#allocation14 + $0x90] sm:$0xf]  ;;  %vm2414_vm10 = vcmp.gt.f32.partialorder %v2266_v45, 0.0  ;;  %v2462_v17 = vmul.f32 0.2, %v2266_v45 }
 0x3c9   :  { %v1754_v58 = vpop.f32.mrf.mxu1  ;;  %2023 = vmatmul.bf16.gmra.mxu0 %v1869_v33  ;;  %v6124_v46 = vor.u32 %v6950_v41, %v6123_v39  ;;  %2974 = vmatpush.bf16.msrb.mxu2 %v6060_v32  ;;  %v6236_v39 = vor.u32 %v6978_v38, %v6235_v34  ;;  %v6299_v41 = vld [vmem:[#allocation14 + $0x1f0] sm:$0xf] }
 0x3ca   :  { %vm1828_vm5 = vcmp.gt.f32.partialorder %v1810_v49, 0.0  ;;  %v1844_v61 = vmul.f32 0.2, %v1810_v49  ;;  %v1755_v12 = vadd.f32 %v1754_v58, %v1726_v1  ;;  %v2510_v50 = vsel %vm2414_vm10, %v2266_v45, %v2462_v17 }
 0x3cb   :  { %3013 = vmatpush.bf16.msrb.mxu3 %v6124_v46  ;;  %v8841_v1 = vpack.c.bf16 %v2510_v50, %v2506_v56  ;;  %3046 = vmatpush.bf16.msra.mxu0 %v6236_v39  ;;  %v6945_v39 = vld [vmem:[#allocation14 + $0x74] sm:$0xf] }
 0x3cc   :  { %v1860_v4 = vsel %vm1828_vm5, %v1810_v49, %v1844_v61  ;;  %v1845_v27 = vmul.f32 0.2, %v1755_v12  ;;  %vm1829_vm6 = vcmp.gt.f32.partialorder %v1755_v12, 0.0  ;;  %v6932_v49 = vld [vmem:[#allocation14 + $0x4] sm:$0xf0] }
 0x3cd   :  { %v1870_v6 = vpack.c.bf16 %v1860_v4, %v1858_v2  ;;  %v6052_v40 = vor.u32 %v6932_v49, %v6051_v48  ;;  %v8844_v4 = vperm.slane %v8827_v0, 1  ;;  %v2268_v5 = vpop.f32.mrf.mxu2 }
 0x3ce   :  { %v1861_v35 = vsel %vm1829_vm6, %v1755_v12, %v1845_v27 }
 0x3cf   :  { %v1812_v16 = vpop.f32.mrf.mxu3  ;;  %2052 = vmatmul.bf16.gmra.mxu1 %v1870_v6  ;;  %2975 = vmatpush.bf16.msrb.mxu2 %v6052_v40  ;;  %v2269_v6 = vadd.f32 %v2268_v5, %v8831_v10  ;;  %v6992_v5 = vld [vmem:[#allocation14 + $0x1e4] sm:$0xf0] }
 0x3d0   :  { %v1813_v31 = vadd.f32 %v1812_v16, %v1784_v62  ;;  %3014 = vmatpush.bf16.msrb.mxu3 %v6116_v60  ;;  %v6227_v60 = vld [vmem:[#allocation14 + $0x160] sm:$0xf] }
 0x3d1   :  { %v1756_v23 = vpop.f32.mrf.mxu1  ;;  %v2466_v12 = vmul.f32 0.2, %v2269_v6  ;;  %vm2418_vm12 = vcmp.gt.f32.partialorder %v2269_v6, 0.0 }
 0x3d2   :  { %v1757_v28 = vadd.f32 %v1756_v23, %v1728_v21  ;;  %vm1830_vm9 = vcmp.gt.f32.partialorder %v1813_v31, 0.0  ;;  %v1846_v33 = vmul.f32 0.2, %v1813_v31  ;;  %2976 = vmatmul.bf16.vlgmr.msrb.gmra.mxu2 %v8841_v1 }
 0x3d3   :  { %v2514_v54 = vsel %vm2418_vm12, %v2269_v6, %v2466_v12 }
 0x3d4   :  { %vm1831_vm7 = vcmp.gt.f32.partialorder %v1757_v28, 0.0  ;;  %v1847_v8 = vmul.f32 0.2, %v1757_v28  ;;  %v1862_v61 = vsel %vm1830_vm9, %v1813_v31, %v1846_v33 }
 0x3d5   :  { %v2270_v52 = vpop.f32.mrf.mxu2 }
 0x3d6   :  { %v1863_v36 = vsel %vm1831_vm7, %v1757_v28, %v1847_v8  ;;  %v2271_v15 = vadd.f32 %v2270_v52, %v8831_v10 }
 0x3d7   :  { %v1814_v42 = vpop.f32.mrf.mxu3  ;;  %v1871_v43 = vpack.c.bf16 %v1863_v36, %v1861_v35 }
 0x3d8   :  { %v1815_v47 = vadd.f32 %v1814_v42, %v1786_v29  ;;  %vm2422_vm14 = vcmp.gt.f32.partialorder %v2271_v15, 0.0  ;;  %v2470_v53 = vmul.f32 0.2, %v2271_v15  ;;  %v6994_v42 = vld [vmem:[#allocation14 + $0x1f4] sm:$0xf0] }
 0x3d9   :  { %2028 = vmatmul.bf16.gmra.mxu0 %v1871_v43  ;;  %v6300_v46 = vor.u32 %v6994_v42, %v6299_v41  ;;  %v6109_v41 = vld [vmem:[#allocation14 + $0x78] sm:$0xf0] }
 0x3da   :  { %vm1832_vm11 = vcmp.gt.f32.partialorder %v1815_v47, 0.0  ;;  %v1848_v58 = vmul.f32 0.2, %v1815_v47  ;;  %v2518_v18 = vsel %vm2422_vm14, %v2271_v15, %v2470_v53 }
 0x3db   :  { %v8853_v22 = vpack.c.bf16 %v2518_v18, %v2514_v54  ;;  %3085 = vmatpush.bf16.msra.mxu1 %v6300_v46  ;;  %v6961_v46 = vld [vmem:[#allocation14 + $0xf4] sm:$0xf] }
 0x3dc   :  { %v1864_v11 = vsel %vm1832_vm11, %v1815_v47, %v1848_v58 }
 0x3dd   :  { %v1872_v2 = vpack.c.bf16 %v1864_v11, %v1862_v61  ;;  %v2273_v23 = vpop.f32.mrf.mxu2  ;;  %v6976_v61 = vld [vmem:[#allocation14 + $0x164] sm:$0xf0]  ;;  %v6291_v11 = vld [vmem:[#allocation14 + $0x1e0] sm:$0xf] }
 0x3de   :  { %v2274_v25 = vadd.f32 %v2273_v23, %v8831_v10  ;;  %v6292_v6 = vor.u32 %v6992_v5, %v6291_v11  ;;  %v8906_v5 = vld [vmem:[#allocation10] ss:$0 sm:$0xff] }
 0x3df   :  { %2057 = vmatmul.bf16.gmra.mxu1 %v1872_v2  ;;  %v2302_v3 = vpop.f32.mrf.mxu3  ;;  %v6228_v2 = vor.u32 %v6976_v61, %v6227_v60  ;;  %v6943_v60 = vld [vmem:[#allocation14 + $0x64] sm:$0xf]  ;;  %v6101_v61 = vld [vmem:[#allocation14 + $0x68] sm:$0xf0] }
 0x3e0   :  { %v2303_v30 = vadd.f32 %v2302_v3, %v8844_v4  ;;  %v2474_v7 = vmul.f32 0.2, %v2274_v25  ;;  %vm2426_vm2 = vcmp.gt.f32.partialorder %v2274_v25, 0.0  ;;  %3086 = vmatpush.bf16.msra.mxu1 %v6292_v6 }
 0x3e1   :  { %3047 = vmatpush.bf16.msra.mxu0 %v6228_v2  ;;  %v6959_v2 = vld [vmem:[#allocation14 + $0xe4] sm:$0xf] }
 0x3e2   :  { %v2459_v51 = vmul.f32 0.2, %v2303_v30  ;;  %vm2411_vm13 = vcmp.gt.f32.partialorder %v2303_v30, 0.0  ;;  %2981 = vmatmul.bf16.gmra.mxu2 %v8853_v22  ;;  %v2522_v29 = vsel %vm2426_vm2, %v2274_v25, %v2474_v7  ;;  %v6990_v25 = vld [vmem:[#allocation14 + $0x1d4] sm:$0xf0] }
 0x3e4   :  { %v2507_v20 = vsel %vm2411_vm13, %v2303_v30, %v2459_v51 }
 0x3e5   :  { %v2275_v28 = vpop.f32.mrf.mxu2 }
 0x3e6   :  { %v2276_v8 = vadd.f32 %v2275_v28, %v8831_v10 }
 0x3e7   :  { %v2304_v13 = vpop.f32.mrf.mxu3 }
 0x3e8   :  { %v2305_v16 = vadd.f32 %v2304_v13, %v8844_v4  ;;  %vm2430_vm4 = vcmp.gt.f32.partialorder %v2276_v8, 0.0 }
 0x3e9   :  { %6037 = vmatmul.msk.bf16.vlgmr.msrb.gmra.mxu0 %vm571_vm1, %v8740_v9 }
 0x3ea   :  { %vm2415_vm15 = vcmp.gt.f32.partialorder %v2305_v16, 0.0  ;;  %v2463_v21 = vmul.f32 0.2, %v2305_v16 }
 0x3ec   :  { %v2511_v19 = vsel %vm2415_vm15, %v2305_v16, %v2463_v21  ;;  %v6974_v21 = vld [vmem:[#allocation14 + $0x154] sm:$0xf0] }
 0x3ed   :  { %v8855_v62 = vpack.c.bf16 %v2511_v19, %v2507_v20  ;;  %v2278_v48 = vpop.f32.mrf.mxu2  ;;  %v6219_v20 = vld [vmem:[#allocation14 + $0x150] sm:$0xf] }
 0x3ee   :  { %v2279_v17 = vadd.f32 %v2278_v48, %v8831_v10  ;;  %v6220_v18 = vor.u32 %v6974_v21, %v6219_v20  ;;  %v6173_v48 = vld [vmem:[#allocation14 + $0xf8] sm:$0xf0]  ;;  %v6957_v20 = vld [vmem:[#allocation14 + $0xd4] sm:$0xf] }
 0x3ef   :  { %6043 = vmatmul.msk.bf16.vlgmr.msrb.gmra.mxu1 %vm571_vm1, %v8740_v9  ;;  %v2307_v24 = vpop.f32.mrf.mxu3  ;;  %3015 = vmatmul.bf16.vlgmr.msrb.gmra.mxu3 %v8855_v62  ;;  %v2478_v9 = vmul.f32 0.2, %v2276_v8  ;;  %v6157_v21 = vld [vmem:[#allocation14 + $0xd8] sm:$0xf0] }
 0x3f0   :  { %v2308_v26 = vadd.f32 %v2307_v24, %v8844_v4  ;;  %v2482_v57 = vmul.f32 0.2, %v2279_v17  ;;  %vm2434_vm7 = vcmp.gt.f32.partialorder %v2279_v17, 0.0  ;;  %3048 = vmatpush.bf16.msra.mxu0 %v6220_v18  ;;  %v6283_v24 = vld [vmem:[#allocation14 + $0x1d0] sm:$0xf] }
 0x3f1   :  { %v2526_v43 = vsel %vm2430_vm4, %v2276_v8, %v2478_v9  ;;  %v6284_v7 = vor.u32 %v6990_v25, %v6283_v24  ;;  %v6160_v24 = vor.u32 %v6957_v20, %v6157_v21  ;;  %v6203_v25 = vld [vmem:[#allocation14 + $0x130] sm:$0xf]  ;;  %v6949_v21 = vld [vmem:[#allocation14 + $0x94] sm:$0xf] }
 0x3f2   :  { %v2467_v27 = vmul.f32 0.2, %v2308_v26  ;;  %vm2419_vm3 = vcmp.gt.f32.partialorder %v2308_v26, 0.0  ;;  %v8867_v33 = vpack.c.bf16 %v2526_v43, %v2522_v29  ;;  %v2530_v51 = vsel %vm2434_vm7, %v2279_v17, %v2482_v57  ;;  %v6972_v17 = vld [vmem:[#allocation14 + $0x144] sm:$0xf0] }
 0x3f3   :  { %3087 = vmatpush.bf16.msra.mxu1 %v6284_v7  ;;  %v6112_v43 = vor.u32 %v6945_v39, %v6109_v41  ;;  %v6176_v57 = vor.u32 %v6961_v46, %v6173_v48  ;;  %v6939_v7 = vld [vmem:[#allocation14 + $0x44] sm:$0xf]  ;;  %v6077_v46 = vld [vmem:[#allocation14 + $0x38] sm:$0xf0] }
 0x3f4   :  { %v2515_v36 = vsel %vm2419_vm3, %v2308_v26, %v2467_v27  ;;  %2986 = vmatmul.bf16.gmra.mxu2 %v8867_v33 }
 0x3f5   :  { %v2280_v58 = vpop.f32.mrf.mxu2  ;;  %3124 = vmatpush.bf16.msra.mxu2 %v6112_v43  ;;  %3163 = vmatpush.bf16.msra.mxu3 %v6176_v57 }
 0x3f6   :  { %v2281_v50 = vadd.f32 %v2280_v58, %v8831_v10 }
 0x3f7   :  { %v2309_v31 = vpop.f32.mrf.mxu3 }
 0x3f8   :  { %v2310_v32 = vadd.f32 %v2309_v31, %v8844_v4  ;;  %vm2438_vm8 = vcmp.gt.f32.partialorder %v2281_v50, 0.0  ;;  %v2486_v3 = vmul.f32 0.2, %v2281_v50 }
 0x3f9   :  { %6038 = vmatmul.msk.bf16.gmra.mxu0 %vm571_vm1, %v8750_v37 }
 0x3fa   :  { %vm2423_vm5 = vcmp.gt.f32.partialorder %v2310_v32, 0.0  ;;  %v2471_v35 = vmul.f32 0.2, %v2310_v32  ;;  %v2534_v52 = vsel %vm2438_vm8, %v2281_v50, %v2486_v3  ;;  %v6988_v50 = vld [vmem:[#allocation14 + $0x1c4] sm:$0xf0] }
 0x3fb   :  { %v8882_v15 = vpack.c.bf16 %v2534_v52, %v2530_v51  ;;  %v6165_v3 = vld [vmem:[#allocation14 + $0xe8] sm:$0xf0] }
 0x3fc   :  { %v2519_v45 = vsel %vm2423_vm5, %v2310_v32, %v2471_v35  ;;  %v6168_v6 = vor.u32 %v6959_v2, %v6165_v3  ;;  %v6951_v3 = vld [vmem:[#allocation14 + $0xa4] sm:$0xf] }
 0x3fd   :  { %v8869_v47 = vpack.c.bf16 %v2519_v45, %v2515_v36  ;;  %v2283_v53 = vpop.f32.mrf.mxu2 }
 0x3fe   :  { %v2284_v23 = vadd.f32 %v2283_v53, %v8831_v10  ;;  %3164 = vmatpush.bf16.msra.mxu3 %v6168_v6 }
 0x3ff   :  { %6044 = vmatmul.msk.bf16.gmra.mxu1 %vm571_vm1, %v8750_v37  ;;  %v2312_v49 = vpop.f32.mrf.mxu3  ;;  %3020 = vmatmul.bf16.gmra.mxu3 %v8869_v47 }
 0x400   :  { %v2313_v56 = vadd.f32 %v2312_v49, %v8844_v4  ;;  %v2490_v28 = vmul.f32 0.2, %v2284_v23  ;;  %vm2442_vm11 = vcmp.gt.f32.partialorder %v2284_v23, 0.0 }
 0x402   :  { %vm2427_vm6 = vcmp.gt.f32.partialorder %v2313_v56, 0.0  ;;  %v2475_v40 = vmul.f32 0.2, %v2313_v56  ;;  %v2538_v29 = vsel %vm2442_vm11, %v2284_v23, %v2490_v28  ;;  %v6085_v28 = vld [vmem:[#allocation14 + $0x48] sm:$0xf0]  ;;  %3165 = vmatpush.bf16.msra.mxu3 %v6160_v24 }
 0x403   :  { %v6968_v24 = vld [vmem:[#allocation14 + $0x124] sm:$0xf0] }
 0x404   :  { %v2523_v12 = vsel %vm2427_vm6, %v2313_v56, %v2475_v40  ;;  %2991 = vmatmul.bf16.gmra.mxu2 %v8882_v15  ;;  %v6211_v56 = vld [vmem:[#allocation14 + $0x140] sm:$0xf] }
 0x405   :  { %v2285_v27 = vpop.f32.mrf.mxu2  ;;  %v6275_v40 = vld [vmem:[#allocation14 + $0x1c0] sm:$0xf] }
 0x406   :  { %v2286_v31 = vadd.f32 %v2285_v27, %v8831_v10 }
 0x407   :  { %v2314_v59 = vpop.f32.mrf.mxu3 }
 0x408   :  { %v2315_v37 = vadd.f32 %v2314_v59, %v8844_v4  ;;  %vm2446_vm12 = vcmp.gt.f32.partialorder %v2286_v31, 0.0  ;;  %v2494_v32 = vmul.f32 0.2, %v2286_v31  ;;  %v6212_v59 = vor.u32 %v6972_v17, %v6211_v56  ;;  %v6267_v56 = vld [vmem:[#allocation14 + $0x1b0] sm:$0xf] }
 0x409   :  { %6039 = vmatmul.msk.bf16.gmra.mxu0 %vm571_vm1, %v8762_v44  ;;  %v6986_v17 = vld [vmem:[#allocation14 + $0x1b4] sm:$0xf0] }
 0x40a   :  { %vm2431_vm9 = vcmp.gt.f32.partialorder %v2315_v37, 0.0  ;;  %v2479_v30 = vmul.f32 0.2, %v2315_v37  ;;  %v2542_v35 = vsel %vm2446_vm12, %v2286_v31, %v2494_v32  ;;  %3049 = vmatpush.bf16.msra.mxu0 %v6212_v59  ;;  %v6268_v59 = vor.u32 %v6986_v17, %v6267_v56  ;;  %v6187_v56 = vld [vmem:[#allocation14 + $0x110] sm:$0xf] }
 0x40b   :  { %v8896_v38 = vpack.c.bf16 %v2542_v35, %v2538_v29  ;;  %v6966_v17 = vld [vmem:[#allocation14 + $0x114] sm:$0xf0] }
 0x40c   :  { %v2527_v13 = vsel %vm2431_vm9, %v2315_v37, %v2479_v30  ;;  %v6276_v37 = vor.u32 %v6988_v50, %v6275_v40  ;;  %v6941_v30 = vld [vmem:[#allocation14 + $0x54] sm:$0xf]  ;;  %v6141_v50 = vld [vmem:[#allocation14 + $0xb8] sm:$0xf0] }
 0x40d   :  { %v8884_v16 = vpack.c.bf16 %v2527_v13, %v2523_v12  ;;  %v2288_v45 = vpop.f32.mrf.mxu2  ;;  %v6093_v12 = vld [vmem:[#allocation14 + $0x58] sm:$0xf0] }
 0x40e   :  { %v2289_v58 = vadd.f32 %v2288_v45, %v8831_v10  ;;  %3088 = vmatpush.bf16.msra.mxu1 %v6276_v37  ;;  %v6096_v52 = vor.u32 %v6941_v30, %v6093_v12  ;;  %v6937_v45 = vld [vmem:[#allocation14 + $0x34] sm:$0xf]  ;;  %v6069_v37 = vld [vmem:[#allocation14 + $0x28] sm:$0xf0] }
 0x40f   :  { %6045 = vmatmul.msk.bf16.gmra.mxu1 %vm571_vm1, %v8762_v44  ;;  %v2317_v54 = vpop.f32.mrf.mxu3  ;;  %3025 = vmatmul.bf16.gmra.mxu3 %v8884_v16  ;;  %v6080_v40 = vor.u32 %v6937_v45, %v6077_v46  ;;  %v6133_v30 = vld [vmem:[#allocation14 + $0xa8] sm:$0xf0] }
 0x410   :  { %v2318_v19 = vadd.f32 %v2317_v54, %v8844_v4  ;;  %v2498_v51 = vmul.f32 0.2, %v2289_v58  ;;  %vm2450_vm15 = vcmp.gt.f32.partialorder %v2289_v58, 0.0 }
 0x412   :  { %v2483_v26 = vmul.f32 0.2, %v2318_v19  ;;  %vm2435_vm10 = vcmp.gt.f32.partialorder %v2318_v19, 0.0  ;;  %v2546_v29 = vsel %vm2450_vm15, %v2289_v58, %v2498_v51  ;;  %v6953_v58 = vld [vmem:[#allocation14 + $0xb4] sm:$0xf]  ;;  %3089 = vmatpush.bf16.msra.mxu1 %v6268_v59 }
 0x413   :  { %v6933_v51 = vld [vmem:[#allocation14 + $0x14] sm:$0xf] }
 0x414   :  { %v2531_v34 = vsel %vm2435_vm10, %v2318_v19, %v2483_v26  ;;  %2996 = vmatmul.bf16.gmra.mxu2 %v8896_v38  ;;  %v6970_v26 = vld [vmem:[#allocation14 + $0x134] sm:$0xf0] }
 0x415   :  { %v2290_v54 = vpop.f32.mrf.mxu2 }
 0x416   :  { %v2291_v23 = vadd.f32 %v2290_v54, %v8831_v10 }
 0x417   :  { %v2319_v44 = vpop.f32.mrf.mxu3 }
 0x418   :  { %v2320_v8 = vadd.f32 %v2319_v44, %v8844_v4  ;;  %v6204_v44 = vor.u32 %v6970_v26, %v6203_v25  ;;  %vm2454_vm2 = vcmp.gt.f32.partialorder %v2291_v23, 0.0  ;;  %v2502_v31 = vmul.f32 0.2, %v2291_v23  ;;  %v6259_v25 = vld [vmem:[#allocation14 + $0x1a0] sm:$0xf] }
 0x419   :  { %6040 = vmatmul.msk.bf16.gmra.mxu0 %vm571_vm1, %v8774_v55 }
 0x41a   :  { %vm2439_vm13 = vcmp.gt.f32.partialorder %v2320_v8, 0.0  ;;  %v2487_v9 = vmul.f32 0.2, %v2320_v8  ;;  %3050 = vmatpush.bf16.msra.mxu0 %v6204_v44  ;;  %v2550_v35 = vsel %vm2454_vm2, %v2291_v23, %v2502_v31  ;;  %v6195_v23 = vld [vmem:[#allocation14 + $0x120] sm:$0xf] }
 0x41b   :  { %v8914_v43 = vpack.c.bf16 %v2550_v35, %v2546_v29  ;;  %v6984_v44 = vld [vmem:[#allocation14 + $0x1a4] sm:$0xf0]  ;;  %v6053_v31 = vld [vmem:[#allocation14 + $0x8] sm:$0xf0] }
 0x41c   :  { %v2535_v36 = vsel %vm2439_vm13, %v2320_v8, %v2487_v9  ;;  %v6088_v8 = vor.u32 %v6939_v7, %v6085_v28  ;;  %v6955_v9 = vld [vmem:[#allocation14 + $0xc4] sm:$0xf] }
 0x41d   :  { %v8898_v42 = vpack.c.bf16 %v2535_v36, %v2531_v34  ;;  %v6149_v34 = vld [vmem:[#allocation14 + $0xc8] sm:$0xf0]  ;;  %v6931_v28 = vld [vmem:[#allocation14 + $0x4] sm:$0xf] }
 0x41e   :  { %v6152_v41 = vor.u32 %v6955_v9, %v6149_v34  ;;  %v6947_v34 = vld [vmem:[#allocation14 + $0x84] sm:$0xf] }
 0x41f   :  { %6046 = vmatmul.msk.bf16.gmra.mxu1 %vm571_vm1, %v8774_v55  ;;  %v2322_v49 = vpop.f32.mrf.mxu3  ;;  %3030 = vmatmul.bf16.gmra.mxu3 %v8898_v42  ;;  %v6104_v55 = vor.u32 %v6943_v60, %v6101_v61  ;;  %v6144_v61 = vor.u32 %v6953_v58, %v6141_v50  ;;  %v6251_v50 = vld [vmem:[#allocation14 + $0x190] sm:$0xf] }
 0x420   :  { %v2323_v11 = vadd.f32 %v2322_v49, %v8844_v4  ;;  %3166 = vmatpush.bf16.msra.mxu3 %v6152_v41 }
 0x421   :  { %3125 = vmatpush.bf16.msra.mxu2 %v6104_v55 }
 0x422   :  { %vm2443_vm14 = vcmp.gt.f32.partialorder %v2323_v11, 0.0  ;;  %v2491_v53 = vmul.f32 0.2, %v2323_v11 }
 0x424   :  { %v2539_v10 = vsel %vm2443_vm14, %v2323_v11, %v2491_v53  ;;  %v6935_v11 = vld [vmem:[#allocation14 + $0x24] sm:$0xf]  ;;  %3001 = vmatmul.bf16.gmra.mxu2 %v8914_v43  ;;  %3167 = vmatpush.bf16.msra.mxu3 %v6144_v61 }
 0x425   :  { %3126 = vmatpush.bf16.msra.mxu2 %v6096_v52  ;;  %v6072_v2 = vor.u32 %v6935_v11, %v6069_v37  ;;  %v6061_v52 = vld [vmem:[#allocation14 + $0x18] sm:$0xf0] }
 0x426   :  { %v2014_v13 = vpop.f32.mrf.mxu0  ;;  %v6064_v53 = vor.u32 %v6933_v51, %v6061_v52  ;;  %v6980_v51 = vld [vmem:[#allocation14 + $0x184] sm:$0xf0] }
 0x427   :  { %v2015_v18 = vadd.f32 %v8906_v5, %v2014_v13  ;;  %v2324_v19 = vpop.f32.mrf.mxu3 }
 0x428   :  { %v2325_v27 = vadd.f32 %v2324_v19, %v8844_v4 }
 0x429   :  { %6041 = vmatmul.msk.bf16.gmra.mxu0 %vm571_vm1, %v8785_v63  ;;  %3127 = vmatpush.bf16.msra.mxu2 %v6088_v8  ;;  %v6260_v8 = vor.u32 %v6984_v44, %v6259_v25  ;;  %v6301_v25 = vld [vmem:[#allocation14 + $0x1f8] sm:$0xf0] }
 0x42a   :  { %vm2447_vm3 = vcmp.gt.f32.partialorder %v2325_v27, 0.0  ;;  %v2495_v32 = vmul.f32 0.2, %v2325_v27 }
 0x42b   :  { %3090 = vmatpush.bf16.msra.mxu1 %v6260_v8  ;;  %v6975_v8 = vld [vmem:[#allocation14 + $0x164] sm:$0xf] }
 0x42c   :  { %v2043_v36 = vpop.f32.mrf.mxu1  ;;  %v2543_v39 = vsel %vm2447_vm3, %v2325_v27, %v2495_v32  ;;  %v6196_v27 = vor.u32 %v6968_v24, %v6195_v23  ;;  %v6056_v32 = vor.u32 %v6931_v28, %v6053_v31  ;;  %v6993_v24 = vld [vmem:[#allocation14 + $0x1f4] sm:$0xf]  ;;  %v8973_v31 = vperm.slane %v8827_v0, 2 }
 0x42d   :  { %v8916_v48 = vadd.f32 %v2043_v36, %v2015_v18  ;;  %v8918_v49 = vpack.c.bf16 %v2543_v39, %v2539_v10  ;;  %3128 = vmatpush.bf16.msra.mxu2 %v6080_v40  ;;  %v6125_v18 = vld [vmem:[#allocation14 + $0x98] sm:$0xf0]  ;;  %v6188_v40 = vor.u32 %v6966_v17, %v6187_v56  ;;  %v6973_v56 = vld [vmem:[#allocation14 + $0x154] sm:$0xf] }
 0x42e   :  { %v2016_v57 = vpop.f32.mrf.mxu0  ;;  %v6128_v26 = vor.u32 %v6949_v21, %v6125_v18  ;;  %3051 = vmatpush.bf16.msra.mxu0 %v6196_v27  ;;  %v6221_v17 = vld [vmem:[#allocation14 + $0x158] sm:$0xf0] }
 0x42f   :  { %6047 = vmatmul.msk.bf16.gmra.mxu1 %vm571_vm1, %v8785_v63  ;;  %v2327_v60 = vpop.f32.mrf.mxu3  ;;  %3035 = vmatmul.bf16.gmra.mxu3 %v8918_v49  ;;  %v2017_v6 = vadd.f32 %v8906_v5, %v2016_v57  ;;  %v6136_v63 = vor.u32 %v6951_v3, %v6133_v30  ;;  %v6964_v3 = vld [vmem:[#allocation14 + $0x104] sm:$0xf0] }
 0x430   :  { %v2328_v55 = vadd.f32 %v2327_v60, %v8844_v4  ;;  %v6982_v60 = vld [vmem:[#allocation14 + $0x194] sm:$0xf0] }
 0x431   :  { %3129 = vmatpush.bf16.msra.mxu2 %v6072_v2  ;;  %3168 = vmatpush.bf16.msra.mxu3 %v6136_v63  ;;  %v6179_v2 = vld [vmem:[#allocation14 + $0x100] sm:$0xf] }
 0x432   :  { %vm2451_vm4 = vcmp.gt.f32.partialorder %v2328_v55, 0.0  ;;  %v2499_v20 = vmul.f32 0.2, %v2328_v55  ;;  %3052 = vmatpush.bf16.msra.mxu0 %v6188_v40  ;;  %v6243_v63 = vld [vmem:[#allocation14 + $0x180] sm:$0xf] }
 0x434   :  { %v2045_v12 = vpop.f32.mrf.mxu1  ;;  %v2547_v9 = vsel %vm2451_vm4, %v2328_v55, %v2499_v20  ;;  %v6237_v20 = vld [vmem:[#allocation14 + $0x178] sm:$0xf0] }
 0x435   :  { %v8926_v13 = vadd.f32 %v2045_v12, %v2017_v6  ;;  %3130 = vmatpush.bf16.msra.mxu2 %v6064_v53  ;;  %3169 = vmatpush.bf16.msra.mxu3 %v6128_v26  ;;  %v6180_v6 = vor.u32 %v6964_v3, %v6179_v2  ;;  %v6244_v53 = vor.u32 %v6980_v51, %v6243_v63 }
 0x436   :  { %v2019_v54 = vpop.f32.mrf.mxu0  ;;  %v6304_v26 = vor.u32 %v6993_v24, %v6301_v25 }
 0x437   :  { %4287 = vrot.lane.b32.xlu0 %v8926_v13, %s8043_s0  ;;  %v2329_v19 = vpop.f32.mrf.mxu3  ;;  %v2020_v29 = vadd.f32 %v8906_v5, %v2019_v54  ;;  %3053 = vmatpush.bf16.msra.mxu0 %v6180_v6 }
 0x438   :  { %v2330_v7 = vadd.f32 %v2329_v19, %v8844_v4  ;;  %v6117_v4 = vld [vmem:[#allocation14 + $0x88] sm:$0xf0] }
 0x439   :  { %6042 = vmatmul.msk.bf16.gmra.mxu0 %vm571_vm1, %v8798_v14  ;;  %v6120_v39 = vor.u32 %v6947_v34, %v6117_v4  ;;  %3131 = vmatpush.bf16.msra.mxu2 %v6056_v32  ;;  %v6229_v32 = vld [vmem:[#allocation14 + $0x168] sm:$0xf0] }
 0x43a   :  { %vm2455_vm5 = vcmp.gt.f32.partialorder %v2330_v7, 0.0  ;;  %v2503_v10 = vmul.f32 0.2, %v2330_v7 }
 0x43b   :  { %3170 = vmatpush.bf16.msra.mxu3 %v6120_v39 }
 0x43c   :  { %v2048_v35 = vpop.f32.mrf.mxu1  ;;  %v2551_v36 = vsel %vm2455_vm5, %v2330_v7, %v2503_v10  ;;  %3132 = vmatmul.bf16.vlgmr.msra.gmra.mxu2 %v8841_v1  ;;  %v6293_v10 = vld [vmem:[#allocation14 + $0x1e8] sm:$0xf0] }
 0x43d   :  { %v8935_v41 = vadd.f32 %v2048_v35, %v2020_v29  ;;  %v8937_v45 = vpack.c.bf16 %v2551_v36, %v2547_v9  ;;  %v6232_v9 = vor.u32 %v6975_v8, %v6229_v32  ;;  %v8979_v29 = vperm.slane %v8827_v0, 3 }
 0x43e   :  { %v2021_v46 = vpop.f32.mrf.mxu0 }
 0x43f   :  { %6048 = vmatmul.msk.bf16.gmra.mxu1 %vm571_vm1, %v8798_v14  ;;  %4290 = vrot.lane.b32.xlu0 %v8935_v41, %s8025_s1  ;;  %v2022_v57 = vadd.f32 %v8906_v5, %v2021_v46  ;;  %v6252_v14 = vor.u32 %v6982_v60, %v6251_v50 }
 0x440   :  { %3040 = vmatmul.bf16.gmra.mxu3 %v8937_v45 }
 0x441   :  { %3091 = vmatpush.bf16.msra.mxu1 %v6252_v14  ;;  %v6989_v14 = vld [vmem:[#allocation14 + $0x1d4] sm:$0xf] }
 0x444   :  { %v2050_v59 = vpop.f32.mrf.mxu1 }
 0x445   :  { %v8946_v58 = vadd.f32 %v2050_v59, %v2022_v57  ;;  %3092 = vmatpush.bf16.msra.mxu1 %v6244_v53  ;;  %v6224_v57 = vor.u32 %v6973_v56, %v6221_v17 }
 0x446   :  { %v2024_v61 = vpop.f32.mrf.mxu0 }
 0x447   :  { %4293 = vrot.lane.b32.xlu1 %v8946_v58, %s8044_s12  ;;  %v2025_v11 = vadd.f32 %v8906_v5, %v2024_v61 }
 0x449   :  { %3241 = vmatpush.bf16.msrb.mxu1 %v6304_v26 }
 0x44c   :  { %v2053_v37 = vpop.f32.mrf.mxu1  ;;  %3137 = vmatmul.bf16.gmra.mxu2 %v8853_v22 }
 0x44d   :  { %v8951_v1 = vadd.f32 %v2053_v37, %v2025_v11  ;;  %v6285_v11 = vld [vmem:[#allocation14 + $0x1d8] sm:$0xf0] }
 0x44e   :  { %v2026_v55 = vpop.f32.mrf.mxu0  ;;  %v6288_v2 = vor.u32 %v6989_v14, %v6285_v11  ;;  %v6967_v11 = vld [vmem:[#allocation14 + $0x124] sm:$0xf] }
 0x44f   :  { %4296 = vrot.lane.b32.xlu1 %v8951_v1, %s8016_s22  ;;  %v2027_v30 = vadd.f32 %v8906_v5, %v2026_v55 }
 0x450   :  { %3171 = vmatmul.bf16.vlgmr.msra.gmra.mxu3 %v8855_v62  ;;  %v6977_v62 = vld [vmem:[#allocation14 + $0x174] sm:$0xf] }
 0x451   :  { %v6240_v21 = vor.u32 %v6977_v62, %v6237_v20  ;;  %v6971_v62 = vld [vmem:[#allocation14 + $0x144] sm:$0xf]  ;;  %v6213_v20 = vld [vmem:[#allocation14 + $0x148] sm:$0xf0] }
 0x452   :  { %v6216_v24 = vor.u32 %v6971_v62, %v6213_v20 }
 0x453   :  { %3202 = vmatpush.bf16.msrb.mxu0 %v6240_v21  ;;  %v6277_v21 = vld [vmem:[#allocation14 + $0x1c8] sm:$0xf0] }
 0x454   :  { %v2055_v12 = vpop.f32.mrf.mxu1 }
 0x455   :  { %v8958_v52 = vadd.f32 %v2055_v12, %v2027_v30 }
 0x456   :  { %v2029_v54 = vpop.f32.mrf.mxu0 }
 0x457   :  { %4299 = vrot.lane.b32.xlu2 %v8958_v52, %s8045_s11  ;;  %v2030_v22 = vadd.f32 %v8906_v5, %v2029_v54  ;;  %3203 = vmatpush.bf16.msrb.mxu0 %v6232_v9 }
 0x45b   :  { %3204 = vmatpush.bf16.msrb.mxu0 %v6224_v57 }
 0x45c   :  { %v2058_v18 = vpop.f32.mrf.mxu1  ;;  %3142 = vmatmul.bf16.gmra.mxu2 %v8867_v33 }
 0x45d   :  { %v8963_v19 = vadd.f32 %v2058_v18, %v2030_v22  ;;  %v6987_v22 = vld [vmem:[#allocation14 + $0x1c4] sm:$0xf] }
 0x45e   :  { %v2031_v23 = vpop.f32.mrf.mxu0  ;;  %v6280_v25 = vor.u32 %v6987_v22, %v6277_v21 }
 0x45f   :  { %4302 = vrot.lane.b32.xlu2 %v8963_v19, %s8037_s24  ;;  %v2032_v7 = vadd.f32 %v8906_v5, %v2031_v23  ;;  %3205 = vmatpush.bf16.msrb.mxu0 %v6216_v24  ;;  %v6189_v24 = vld [vmem:[#allocation14 + $0x118] sm:$0xf0] }
 0x460   :  { %3176 = vmatmul.bf16.gmra.mxu3 %v8869_v47  ;;  %v6991_v47 = vld [vmem:[#allocation14 + $0x1e4] sm:$0xf] }
 0x461   :  { %v6296_v34 = vor.u32 %v6991_v47, %v6293_v10  ;;  %v6969_v10 = vld [vmem:[#allocation14 + $0x134] sm:$0xf] }
 0x463   :  { %3242 = vmatpush.bf16.msrb.mxu1 %v6296_v34 }
 0x464   :  { %v2060_v27 = vpop.f32.mrf.mxu1 }
 0x465   :  { %v8970_v44 = vadd.f32 %v2060_v27, %v2032_v7 }
 0x466   :  { %v2341_v28 = vpop.f32.mrf.mxu0 }
 0x467   :  { %4305 = vrot.lane.b32.xlu0 %v8970_v44, %s8046_s3  ;;  %v2342_v33 = vadd.f32 %v2341_v28, %v8973_v31  ;;  %3243 = vmatpush.bf16.msrb.mxu1 %v6288_v2  ;;  %v6983_v2 = vld [vmem:[#allocation14 + $0x1a4] sm:$0xf] }
 0x469   :  { %v2460_v35 = vmul.f32 0.2, %v2342_v33  ;;  %vm2412_vm6 = vcmp.gt.f32.partialorder %v2342_v33, 0.0 }
 0x46b   :  { %v2508_v40 = vsel %vm2412_vm6, %v2342_v33, %v2460_v35  ;;  %3244 = vmatpush.bf16.msrb.mxu1 %v6280_v25  ;;  %v6205_v33 = vld [vmem:[#allocation14 + $0x138] sm:$0xf0] }
 0x46c   :  { %v2380_v5 = vpop.f32.mrf.mxu1  ;;  %3147 = vmatmul.bf16.gmra.mxu2 %v8882_v15  ;;  %v6208_v34 = vor.u32 %v6969_v10, %v6205_v33 }
 0x46d   :  { %v2381_v39 = vadd.f32 %v2380_v5, %v8979_v29 }
 0x46e   :  { %v2343_v4 = vpop.f32.mrf.mxu0  ;;  %3206 = vmatpush.bf16.msrb.mxu0 %v6208_v34 }
 0x46f   :  { %v2344_v36 = vadd.f32 %v2343_v4, %v8973_v31  ;;  %v2461_v60 = vmul.f32 0.2, %v2381_v39  ;;  %vm2413_vm8 = vcmp.gt.f32.partialorder %v2381_v39, 0.0 }
 0x470   :  { %3181 = vmatmul.bf16.gmra.mxu3 %v8884_v16 }
 0x471   :  { %vm2416_vm7 = vcmp.gt.f32.partialorder %v2344_v36, 0.0  ;;  %v2464_v46 = vmul.f32 0.2, %v2344_v36  ;;  %v2509_v37 = vsel %vm2413_vm8, %v2381_v39, %v2461_v60  ;;  %v6985_v39 = vld [vmem:[#allocation14 + $0x1b4] sm:$0xf] }
 0x473   :  { %v2512_v0 = vsel %vm2416_vm7, %v2344_v36, %v2464_v46  ;;  %v6269_v46 = vld [vmem:[#allocation14 + $0x1b8] sm:$0xf0] }
 0x474   :  { %v8985_v59 = vpack.c.bf16 %v2512_v0, %v2508_v40  ;;  %v2382_v50 = vpop.f32.mrf.mxu1  ;;  %v6272_v40 = vor.u32 %v6985_v39, %v6269_v46  ;;  %v6979_v39 = vld [vmem:[#allocation14 + $0x184] sm:$0xf] }
 0x475   :  { %v2383_v61 = vadd.f32 %v2382_v50, %v8979_v29 }
 0x476   :  { %v2346_v16 = vpop.f32.mrf.mxu0  ;;  %3054 = vmatmul.bf16.vlgmr.msra.gmra.mxu0 %v8985_v59  ;;  %3245 = vmatpush.bf16.msrb.mxu1 %v6272_v40 }
 0x477   :  { %vm2417_vm9 = vcmp.gt.f32.partialorder %v2383_v61, 0.0  ;;  %v2465_v15 = vmul.f32 0.2, %v2383_v61  ;;  %v2347_v6 = vadd.f32 %v2346_v16, %v8973_v31 }
 0x479   :  { %v2513_v55 = vsel %vm2417_vm9, %v2383_v61, %v2465_v15  ;;  %v2468_v63 = vmul.f32 0.2, %v2347_v6  ;;  %vm2420_vm10 = vcmp.gt.f32.partialorder %v2347_v6, 0.0 }
 0x47a   :  { %v8989_v3 = vpack.c.bf16 %v2513_v55, %v2509_v37  ;;  %v6197_v55 = vld [vmem:[#allocation14 + $0x128] sm:$0xf0] }
 0x47b   :  { %v2516_v18 = vsel %vm2420_vm10, %v2347_v6, %v2468_v63  ;;  %v6261_v6 = vld [vmem:[#allocation14 + $0x1a8] sm:$0xf0] }
 0x47c   :  { %v2385_v30 = vpop.f32.mrf.mxu1  ;;  %3093 = vmatmul.bf16.vlgmr.msra.gmra.mxu1 %v8989_v3  ;;  %3152 = vmatmul.bf16.gmra.mxu2 %v8896_v38  ;;  %v6264_v63 = vor.u32 %v6983_v2, %v6261_v6 }
 0x47d   :  { %v2386_v53 = vadd.f32 %v2385_v30, %v8979_v29 }
 0x47e   :  { %v2348_v12 = vpop.f32.mrf.mxu0  ;;  %3246 = vmatpush.bf16.msrb.mxu1 %v6264_v63 }
 0x47f   :  { %v2349_v51 = vadd.f32 %v2348_v12, %v8973_v31  ;;  %v2469_v27 = vmul.f32 0.2, %v2386_v53  ;;  %vm2421_vm12 = vcmp.gt.f32.partialorder %v2386_v53, 0.0  ;;  %v6200_v12 = vor.u32 %v6967_v11, %v6197_v55 }
 0x480   :  { %3186 = vmatmul.bf16.gmra.mxu3 %v8898_v42 }
 0x481   :  { %vm2424_vm11 = vcmp.gt.f32.partialorder %v2349_v51, 0.0  ;;  %v2472_v54 = vmul.f32 0.2, %v2349_v51  ;;  %v2517_v8 = vsel %vm2421_vm12, %v2386_v53, %v2469_v27  ;;  %3207 = vmatpush.bf16.msrb.mxu0 %v6200_v12 }
 0x483   :  { %v2520_v23 = vsel %vm2424_vm11, %v2349_v51, %v2472_v54 }
 0x484   :  { %v2387_v26 = vpop.f32.mrf.mxu1  ;;  %v8997_v7 = vpack.c.bf16 %v2520_v23, %v2516_v18  ;;  %v6965_v23 = vld [vmem:[#allocation14 + $0x114] sm:$0xf] }
 0x485   :  { %v2388_v42 = vadd.f32 %v2387_v26, %v8979_v29  ;;  %v6192_v27 = vor.u32 %v6965_v23, %v6189_v24 }
 0x486   :  { %v2351_v38 = vpop.f32.mrf.mxu0  ;;  %3059 = vmatmul.bf16.gmra.mxu0 %v8997_v7 }
 0x487   :  { %vm2425_vm13 = vcmp.gt.f32.partialorder %v2388_v42, 0.0  ;;  %v2473_v28 = vmul.f32 0.2, %v2388_v42  ;;  %v2352_v9 = vadd.f32 %v2351_v38, %v8973_v31  ;;  %3208 = vmatpush.bf16.msrb.mxu0 %v6192_v27  ;;  %v9044_v27 = vpop.f32.mrf.mxu3 }
 0x489   :  { %v2521_v32 = vsel %vm2425_vm13, %v2388_v42, %v2473_v28  ;;  %v2476_v35 = vmul.f32 0.2, %v2352_v9  ;;  %vm2428_vm14 = vcmp.gt.f32.partialorder %v2352_v9, 0.0 }
 0x48a   :  { %v9001_v47 = vpack.c.bf16 %v2521_v32, %v2517_v8  ;;  %v6981_v8 = vld [vmem:[#allocation14 + $0x194] sm:$0xf]  ;;  %v6253_v32 = vld [vmem:[#allocation14 + $0x198] sm:$0xf0] }
 0x48b   :  { %v2524_v0 = vsel %vm2428_vm14, %v2352_v9, %v2476_v35  ;;  %v6256_v9 = vor.u32 %v6981_v8, %v6253_v32  ;;  %v6963_v35 = vld [vmem:[#allocation14 + $0x104] sm:$0xf] }
 0x48c   :  { %v2390_v5 = vpop.f32.mrf.mxu1  ;;  %3098 = vmatmul.bf16.gmra.mxu1 %v9001_v47  ;;  %3157 = vmatmul.bf16.gmra.mxu2 %v8914_v43 }
 0x48d   :  { %v2391_v56 = vadd.f32 %v2390_v5, %v8979_v29  ;;  %3247 = vmatpush.bf16.msrb.mxu1 %v6256_v9 }
 0x48e   :  { %v2353_v4 = vpop.f32.mrf.mxu0 }
 0x48f   :  { %v2354_v36 = vadd.f32 %v2353_v4, %v8973_v31  ;;  %v2477_v61 = vmul.f32 0.2, %v2391_v56  ;;  %vm2429_vm2 = vcmp.gt.f32.partialorder %v2391_v56, 0.0 }
 0x490   :  { %3191 = vmatmul.bf16.gmra.mxu3 %v8918_v49 }
 0x491   :  { %vm2432_vm15 = vcmp.gt.f32.partialorder %v2354_v36, 0.0  ;;  %v2480_v17 = vmul.f32 0.2, %v2354_v36  ;;  %v2525_v49 = vsel %vm2429_vm2, %v2391_v56, %v2477_v61  ;;  %v6245_v56 = vld [vmem:[#allocation14 + $0x188] sm:$0xf0] }
 0x492   :  { %v6248_v40 = vor.u32 %v6979_v39, %v6245_v56  ;;  %v6339_v56 = vld [vmem:[#allocation17 + $0x40] sm:$0xf] }
 0x493   :  { %v2528_v57 = vsel %vm2432_vm15, %v2354_v36, %v2480_v17  ;;  %v6181_v36 = vld [vmem:[#allocation14 + $0x108] sm:$0xf0] }
 0x494   :  { %v2392_v50 = vpop.f32.mrf.mxu1  ;;  %v9009_v60 = vpack.c.bf16 %v2528_v57, %v2524_v0  ;;  %v6184_v46 = vor.u32 %v6963_v35, %v6181_v36  ;;  %3248 = vmatpush.bf16.msrb.mxu1 %v6248_v40  ;;  %v6347_v35 = vld [vmem:[#allocation17 + $0x50] sm:$0xf]  ;;  %v7006_v36 = vld [vmem:[#allocation17 + $0x54] sm:$0xf0] }
 0x495   :  { %v2393_v16 = vadd.f32 %v2392_v50, %v8979_v29  ;;  %v6348_v39 = vor.u32 %v7006_v36, %v6347_v35 }
 0x496   :  { %v2356_v15 = vpop.f32.mrf.mxu0  ;;  %3064 = vmatmul.bf16.gmra.mxu0 %v9009_v60 }
 0x497   :  { %vm2433_vm3 = vcmp.gt.f32.partialorder %v2393_v16, 0.0  ;;  %v2481_v43 = vmul.f32 0.2, %v2393_v16  ;;  %v2357_v30 = vadd.f32 %v2356_v15, %v8973_v31  ;;  %3209 = vmatpush.bf16.msrb.mxu0 %v6184_v46  ;;  %v9053_v46 = vpop.f32.mrf.mxu3 }
 0x499   :  { %v2529_v14 = vsel %vm2433_vm3, %v2393_v16, %v2481_v43  ;;  %v2484_v54 = vmul.f32 0.2, %v2357_v30  ;;  %vm2436_vm4 = vcmp.gt.f32.partialorder %v2357_v30, 0.0 }
 0x49a   :  { %v9013_v37 = vpack.c.bf16 %v2529_v14, %v2525_v49 }
 0x49b   :  { %v2532_v21 = vsel %vm2436_vm4, %v2357_v30, %v2484_v54 }
 0x49c   :  { %v2395_v51 = vpop.f32.mrf.mxu1  ;;  %3103 = vmatmul.bf16.gmra.mxu1 %v9013_v37 }
 0x49d   :  { %v2396_v20 = vadd.f32 %v2395_v51, %v8979_v29 }
 0x49e   :  { %v2358_v53 = vpop.f32.mrf.mxu0 }
 0x49f   :  { %v2359_v62 = vadd.f32 %v2358_v53, %v8973_v31  ;;  %v2485_v42 = vmul.f32 0.2, %v2396_v20  ;;  %vm2437_vm6 = vcmp.gt.f32.partialorder %v2396_v20, 0.0 }
 0x4a0   :  { %3196 = vmatmul.bf16.gmra.mxu3 %v8937_v45 }
 0x4a1   :  { %vm2440_vm5 = vcmp.gt.f32.partialorder %v2359_v62, 0.0  ;;  %v2488_v22 = vmul.f32 0.2, %v2359_v62  ;;  %v2533_v10 = vsel %vm2437_vm6, %v2396_v20, %v2485_v42  ;;  %v9039_v20 = vpop.f32.mrf.mxu2 }
 0x4a3   :  { %v2536_v18 = vsel %vm2440_vm5, %v2359_v62, %v2488_v22 }
 0x4a4   :  { %v2397_v25 = vpop.f32.mrf.mxu1  ;;  %v9020_v26 = vpack.c.bf16 %v2536_v18, %v2532_v21 }
 0x4a5   :  { %v2398_v38 = vadd.f32 %v2397_v25, %v8979_v29 }
 0x4a6   :  { %v2361_v28 = vpop.f32.mrf.mxu0  ;;  %3069 = vmatmul.bf16.gmra.mxu0 %v9020_v26 }
 0x4a7   :  { %vm2441_vm7 = vcmp.gt.f32.partialorder %v2398_v38, 0.0  ;;  %v2489_v45 = vmul.f32 0.2, %v2398_v38  ;;  %v2362_v5 = vadd.f32 %v2361_v28, %v8973_v31  ;;  %v7010_v28 = vld [vmem:[#allocation17 + $0x74] sm:$0xf0] }
 0x4a9   :  { %v2537_v33 = vsel %vm2441_vm7, %v2398_v38, %v2489_v45  ;;  %v2492_v0 = vmul.f32 0.2, %v2362_v5  ;;  %vm2444_vm8 = vcmp.gt.f32.partialorder %v2362_v5, 0.0  ;;  %v9050_v9 = vpop.f32.mrf.mxu2 }
 0x4aa   :  { %v9024_v34 = vpack.c.bf16 %v2537_v33, %v2533_v10 }
 0x4ab   :  { %v2540_v16 = vsel %vm2444_vm8, %v2362_v5, %v2492_v0  ;;  %v6355_v5 = vld [vmem:[#allocation17 + $0x60] sm:$0xf] }
 0x4ac   :  { %v2400_v4 = vpop.f32.mrf.mxu1  ;;  %3108 = vmatmul.bf16.gmra.mxu1 %v9024_v34 }
 0x4ad   :  { %v2401_v50 = vadd.f32 %v2400_v4, %v8979_v29  ;;  %v7008_v4 = vld [vmem:[#allocation17 + $0x64] sm:$0xf0] }
 0x4ae   :  { %v2363_v17 = vpop.f32.mrf.mxu0 }
 0x4af   :  { %v2364_v57 = vadd.f32 %v2363_v17, %v8973_v31  ;;  %v2493_v14 = vmul.f32 0.2, %v2401_v50  ;;  %vm2445_vm10 = vcmp.gt.f32.partialorder %v2401_v50, 0.0  ;;  %v7004_v17 = vld [vmem:[#allocation17 + $0x44] sm:$0xf0] }
 0x4b0   :  { %v6340_v40 = vor.u32 %v7004_v17, %v6339_v56 }
 0x4b1   :  { %vm2448_vm9 = vcmp.gt.f32.partialorder %v2364_v57, 0.0  ;;  %v2496_v61 = vmul.f32 0.2, %v2364_v57  ;;  %v2541_v6 = vsel %vm2445_vm10, %v2401_v50, %v2493_v14  ;;  %v9055_v0 = vpop.f32.mrf.mxu2  ;;  %v7002_v50 = vld [vmem:[#allocation17 + $0x34] sm:$0xf0] }
 0x4b3   :  { %v2544_v15 = vsel %vm2448_vm9, %v2364_v57, %v2496_v61  ;;  %v6331_v57 = vld [vmem:[#allocation17 + $0x30] sm:$0xf] }
 0x4b4   :  { %v2402_v43 = vpop.f32.mrf.mxu1  ;;  %v9030_v49 = vpack.c.bf16 %v2544_v15, %v2540_v16  ;;  %v6332_v61 = vor.u32 %v7002_v50, %v6331_v57  ;;  %v9058_v16 = vpop.f32.mrf.mxu3  ;;  %v6323_v15 = vld [vmem:[#allocation17 + $0x20] sm:$0xf]  ;;  %v6421_v57 = vld [vmem:[#allocation17 + $0xe8] sm:$0xf0]  ;;  %v7005_v50 = vld [vmem:[#allocation17 + $0x54] sm:$0xf] }
 0x4b5   :  { %v2403_v11 = vadd.f32 %v2402_v43, %v8979_v29  ;;  %v7000_v43 = vld [vmem:[#allocation17 + $0x24] sm:$0xf0] }
 0x4b6   :  { %v2366_v55 = vpop.f32.mrf.mxu0  ;;  %3074 = vmatmul.bf16.gmra.mxu0 %v9030_v49  ;;  %v6324_v14 = vor.u32 %v7000_v43, %v6323_v15 }
 0x4b7   :  { %vm2449_vm11 = vcmp.gt.f32.partialorder %v2403_v11, 0.0  ;;  %v2497_v2 = vmul.f32 0.2, %v2403_v11  ;;  %v2367_v63 = vadd.f32 %v2366_v55, %v8973_v31  ;;  %v6315_v55 = vld [vmem:[#allocation17 + $0x10] sm:$0xf] }
 0x4b9   :  { %v2545_v30 = vsel %vm2449_vm11, %v2403_v11, %v2497_v2  ;;  %v2500_v54 = vmul.f32 0.2, %v2367_v63  ;;  %vm2452_vm12 = vcmp.gt.f32.partialorder %v2367_v63, 0.0  ;;  %v9061_v11 = vpop.f32.mrf.mxu2  ;;  %v6998_v2 = vld [vmem:[#allocation17 + $0x14] sm:$0xf0] }
 0x4ba   :  { %v9034_v12 = vpack.c.bf16 %v2545_v30, %v2541_v6  ;;  %v6316_v6 = vor.u32 %v6998_v2, %v6315_v55  ;;  %v6307_v30 = vld [vmem:[#allocation17] sm:$0xf]  ;;  %v6341_v2 = vld [vmem:[#allocation17 + $0x48] sm:$0xf0] }
 0x4bb   :  { %v2548_v18 = vsel %vm2452_vm12, %v2367_v63, %v2500_v54  ;;  %v6996_v63 = vld [vmem:[#allocation17 + $0x4] sm:$0xf0]  ;;  %v7026_v54 = vld [vmem:[#allocation17 + $0xf4] sm:$0xf0] }
 0x4bc   :  { %v2405_v51 = vpop.f32.mrf.mxu1  ;;  %3113 = vmatmul.bf16.gmra.mxu1 %v9034_v12 }
 0x4bd   :  { %v2406_v22 = vadd.f32 %v2405_v51, %v8979_v29  ;;  %v6308_v51 = vor.u32 %v6996_v63, %v6307_v30 }
 0x4be   :  { %v2368_v53 = vpop.f32.mrf.mxu0 }
 0x4bf   :  { %v2369_v62 = vadd.f32 %v2368_v53, %v8973_v31  ;;  %v2501_v42 = vmul.f32 0.2, %v2406_v22  ;;  %vm2453_vm14 = vcmp.gt.f32.partialorder %v2406_v22, 0.0  ;;  %v6363_v31 = vld [vmem:[#allocation17 + $0x70] sm:$0xf] }
 0x4c0   :  { %v6364_v8 = vor.u32 %v7010_v28, %v6363_v31  ;;  %v7025_v31 = vld [vmem:[#allocation17 + $0xf4] sm:$0xf]  ;;  %v6419_v28 = vld [vmem:[#allocation17 + $0xe0] sm:$0xf] }
 0x4c1   :  { %vm2456_vm13 = vcmp.gt.f32.partialorder %v2369_v62, 0.0  ;;  %v2504_v21 = vmul.f32 0.2, %v2369_v62  ;;  %v2549_v32 = vsel %vm2453_vm14, %v2406_v22, %v2501_v42  ;;  %v9066_v53 = vpop.f32.mrf.mxu2 }
 0x4c2   :  { %3562 = vmatpush.bf16.msrb.mxu2 %v6364_v8  ;;  %v7024_v8 = vld [vmem:[#allocation17 + $0xe4] sm:$0xf0] }
 0x4c3   :  { %v2552_v23 = vsel %vm2456_vm13, %v2369_v62, %v2504_v21  ;;  %v7009_v62 = vld [vmem:[#allocation17 + $0x74] sm:$0xf] }
 0x4c4   :  { %v2407_v24 = vpop.f32.mrf.mxu1  ;;  %v9042_v25 = vpack.c.bf16 %v2552_v23, %v2548_v18  ;;  %v6365_v18 = vld [vmem:[#allocation17 + $0x78] sm:$0xf0] }
 0x4c5   :  { %v2408_v38 = vadd.f32 %v2407_v24, %v8979_v29  ;;  %v6356_v29 = vor.u32 %v7008_v4, %v6355_v5  ;;  %v6368_v23 = vor.u32 %v7009_v62, %v6365_v18  ;;  %v9071_v24 = vld [vmem:[#allocation16] sm:$0x3]  ;;  %v7007_v4 = vld [vmem:[#allocation17 + $0x64] sm:$0xf]  ;;  %v6411_v62 = vld [vmem:[#allocation17 + $0xd0] sm:$0xf] }
 0x4c6   :  { %3079 = vmatmul.bf16.gmra.mxu0 %v9042_v25  ;;  %v9074_v42 = vperm.slane %v9071_v24, 0  ;;  %v7001_v18 = vld [vmem:[#allocation17 + $0x34] sm:$0xf] }
 0x4c7   :  { %vm2457_vm15 = vcmp.gt.f32.partialorder %v2408_v38, 0.0  ;;  %v2505_v45 = vmul.f32 0.2, %v2408_v38  ;;  %3563 = vmatpush.bf16.msrb.mxu2 %v6356_v29  ;;  %3640 = vmatpush.bf16.msra.mxu0 %v6368_v23  ;;  %v6357_v29 = vld [vmem:[#allocation17 + $0x68] sm:$0xf0] }
 0x4c8   :  { %v6360_v36 = vor.u32 %v7007_v4, %v6357_v29  ;;  %v2980_v56 = vadd.f32 %v9050_v9, %v9074_v42  ;;  %v7003_v9 = vld [vmem:[#allocation17 + $0x44] sm:$0xf]  ;;  %v6333_v23 = vld [vmem:[#allocation17 + $0x38] sm:$0xf0] }
 0x4c9   :  { %v2553_v10 = vsel %vm2457_vm15, %v2408_v38, %v2505_v45 }
 0x4ca   :  { %v9048_v33 = vpack.c.bf16 %v2553_v10, %v2549_v32  ;;  %v2978_v32 = vadd.f32 %v9039_v20, %v9074_v42  ;;  %v6420_v10 = vor.u32 %v7024_v8, %v6419_v28  ;;  %v3019_v15 = vadd.f32 %v9053_v46, %v2980_v56  ;;  %v7021_v56 = vld [vmem:[#allocation17 + $0xd4] sm:$0xf] }
 0x4cb   :  { %3564 = vmatpush.bf16.msrb.mxu2 %v6348_v39  ;;  %3641 = vmatpush.bf16.msra.mxu0 %v6360_v36  ;;  %v2983_v46 = vadd.f32 %v9055_v0, %v9074_v42  ;;  %v6336_v28 = vor.u32 %v7001_v18, %v6333_v23 }
 0x4cc   :  { %3118 = vmatmul.bf16.gmra.mxu1 %v9048_v33  ;;  %v3017_v39 = vadd.f32 %v9044_v27, %v2978_v32  ;;  %v6999_v32 = vld [vmem:[#allocation17 + $0x24] sm:$0xf] }
 0x4cd   :  { %v3022_v29 = vadd.f32 %v9058_v16, %v2983_v46  ;;  %v6997_v16 = vld [vmem:[#allocation17 + $0x14] sm:$0xf] }
 0x4cf   :  { %3565 = vmatpush.bf16.msrb.mxu2 %v6340_v40 }
 0x4d3   :  { %3566 = vmatpush.bf16.msrb.mxu2 %v6332_v61  ;;  %v6349_v61 = vld [vmem:[#allocation17 + $0x58] sm:$0xf0] }
 0x4d4   :  { %v6352_v55 = vor.u32 %v7005_v50, %v6349_v61 }
 0x4d6   :  { %3210 = vmatmul.bf16.vlgmr.msrb.gmra.mxu0 %v8985_v59  ;;  %v9063_v59 = vpop.f32.mrf.mxu3 }
 0x4d7   :  { %3567 = vmatpush.bf16.msrb.mxu2 %v6324_v14  ;;  %3642 = vmatpush.bf16.msra.mxu0 %v6352_v55  ;;  %v6995_v55 = vld [vmem:[#allocation17 + $0x4] sm:$0xf] }
 0x4db   :  { %3568 = vmatpush.bf16.msrb.mxu2 %v6316_v6 }
 0x4dc   :  { %3249 = vmatmul.bf16.vlgmr.msrb.gmra.mxu1 %v8989_v3  ;;  %v6427_v3 = vld [vmem:[#allocation17 + $0xf0] sm:$0xf] }
 0x4dd   :  { %v6428_v21 = vor.u32 %v7026_v54, %v6427_v3 }
 0x4de   :  { %v9069_v22 = vpop.f32.mrf.mxu3 }
 0x4df   :  { %3569 = vmatpush.bf16.msrb.mxu2 %v6308_v51  ;;  %3601 = vmatpush.bf16.msrb.mxu3 %v6428_v21  ;;  %v7022_v21 = vld [vmem:[#allocation17 + $0xd4] sm:$0xf0] }
 0x4e3   :  { %3602 = vmatpush.bf16.msrb.mxu3 %v6420_v10  ;;  %v6325_v10 = vld [vmem:[#allocation17 + $0x28] sm:$0xf0] }
 0x4e4   :  { %v6328_v0 = vor.u32 %v6999_v32, %v6325_v10  ;;  %v7018_v10 = vld [vmem:[#allocation17 + $0xb4] sm:$0xf0] }
 0x4e6   :  { %3215 = vmatmul.bf16.gmra.mxu0 %v8997_v7  ;;  %v9076_v7 = vpop.f32.mrf.mxu2  ;;  %v9081_v5 = vpop.f32.mrf.mxu3 }
 0x4ec   :  { %3254 = vmatmul.bf16.gmra.mxu1 %v9001_v47  ;;  %v6429_v47 = vld [vmem:[#allocation17 + $0xf8] sm:$0xf0] }
 0x4ed   :  { %v6432_v45 = vor.u32 %v7025_v31, %v6429_v47  ;;  %v6412_v47 = vor.u32 %v7022_v21, %v6411_v62  ;;  %v2988_v62 = vadd.f32 %v9066_v53, %v9074_v42 }
 0x4ee   :  { %v9087_v20 = vpop.f32.mrf.mxu2  ;;  %v9090_v6 = vpop.f32.mrf.mxu3 }
 0x4ef   :  { %3679 = vmatpush.bf16.msra.mxu1 %v6432_v45  ;;  %3603 = vmatpush.bf16.msrb.mxu3 %v6412_v47  ;;  %v2990_v47 = vadd.f32 %v9076_v7, %v9074_v42 }
 0x4f3   :  { %v3055_v38 = vpop.f32.mrf.mxu0 }
 0x4f4   :  { %v3056_v40 = vadd.f32 %v3055_v38, %v3017_v39 }
 0x4f6   :  { %3220 = vmatmul.bf16.gmra.mxu0 %v9009_v60  ;;  %v7023_v60 = vld [vmem:[#allocation17 + $0xe4] sm:$0xf]  ;;  %v9095_v45 = vpop.f32.mrf.mxu2 }
 0x4f7   :  { %v6424_v14 = vor.u32 %v7023_v60, %v6421_v57  ;;  %v7020_v60 = vld [vmem:[#allocation17 + $0xc4] sm:$0xf0] }
 0x4f9   :  { %v3094_v35 = vpop.f32.mrf.mxu1  ;;  %3680 = vmatpush.bf16.msra.mxu1 %v6424_v14 }
 0x4fa   :  { %v3095_v43 = vadd.f32 %v3094_v35, %v3056_v40  ;;  %v2985_v35 = vadd.f32 %v9061_v11, %v9074_v42  ;;  %v6403_v40 = vld [vmem:[#allocation17 + $0xc0] sm:$0xf] }
 0x4fb   :  { %v3057_v17 = vpop.f32.mrf.mxu0 }
 0x4fc   :  { %3259 = vmatmul.bf16.gmra.mxu1 %v9013_v37  ;;  %v3058_v27 = vadd.f32 %v3057_v17, %v3019_v15  ;;  %v6344_v37 = vor.u32 %v7003_v9, %v6341_v2  ;;  %v3304_v63 = vmul.f32 0.2, %v3095_v43  ;;  %vm3280_vm2 = vcmp.gt.f32.partialorder %v3095_v43, 0.0  ;;  %v6413_v17 = vld [vmem:[#allocation17 + $0xd8] sm:$0xf0] }
 0x4fd   :  { %v3024_v57 = vadd.f32 %v9063_v59, %v2985_v35  ;;  %v6416_v61 = vor.u32 %v7021_v56, %v6413_v17  ;;  %v6404_v15 = vor.u32 %v7020_v60, %v6403_v40  ;;  %v7017_v40 = vld [vmem:[#allocation17 + $0xb4] sm:$0xf] }
 0x4fe   :  { %3643 = vmatpush.bf16.msra.mxu0 %v6344_v37  ;;  %v3328_v38 = vsel %vm3280_vm2, %v3095_v43, %v3304_v63  ;;  %v6317_v43 = vld [vmem:[#allocation17 + $0x18] sm:$0xf0]  ;;  %v9107_v9 = vpop.f32.mrf.mxu2 }
 0x4ff   :  { %v6320_v14 = vor.u32 %v6997_v16, %v6317_v43  ;;  %3681 = vmatpush.bf16.msra.mxu1 %v6416_v61  ;;  %3604 = vmatpush.bf16.msrb.mxu3 %v6404_v15 }
 0x501   :  { %v3096_v30 = vpop.f32.mrf.mxu1 }
 0x502   :  { %v3097_v51 = vadd.f32 %v3096_v30, %v3058_v27  ;;  %3644 = vmatpush.bf16.msra.mxu0 %v6336_v28  ;;  %v6309_v27 = vld [vmem:[#allocation17 + $0x8] sm:$0xf0] }
 0x503   :  { %v3060_v3 = vpop.f32.mrf.mxu0  ;;  %v6312_v2 = vor.u32 %v6995_v55, %v6309_v27  ;;  %v2995_v27 = vadd.f32 %v9095_v45, %v9074_v42 }
 0x504   :  { %vm3282_vm3 = vcmp.gt.f32.partialorder %v3097_v51, 0.0  ;;  %v3306_v54 = vmul.f32 0.2, %v3097_v51  ;;  %v3061_v39 = vadd.f32 %v3060_v3, %v3022_v29 }
 0x506   :  { %v3330_v31 = vsel %vm3282_vm3, %v3097_v51, %v3306_v54  ;;  %3225 = vmatmul.bf16.gmra.mxu0 %v9020_v26  ;;  %v9103_v26 = vpop.f32.mrf.mxu3  ;;  %v7019_v51 = vld [vmem:[#allocation17 + $0xc4] sm:$0xf]  ;;  %v6405_v54 = vld [vmem:[#allocation17 + $0xc8] sm:$0xf0]  ;;  %v9120_v28 = vpop.f32.mrf.mxu2 }
 0x507   :  { %v9097_v8 = vpack.c.bf16 %v3330_v31, %v3328_v38  ;;  %3645 = vmatpush.bf16.msra.mxu0 %v6328_v0  ;;  %v6408_v18 = vor.u32 %v7019_v51, %v6405_v54  ;;  %v3027_v31 = vadd.f32 %v9069_v22, %v2988_v62 }
 0x509   :  { %v3099_v4 = vpop.f32.mrf.mxu1  ;;  %3570 = vmatmul.bf16.vlgmr.msrb.gmra.mxu2 %v9097_v8  ;;  %3682 = vmatpush.bf16.msra.mxu1 %v6408_v18 }
 0x50a   :  { %v3100_v50 = vadd.f32 %v3099_v4, %v3061_v39  ;;  %v3029_v4 = vadd.f32 %v9081_v5, %v2990_v47  ;;  %v6397_v5 = vld [vmem:[#allocation17 + $0xb8] sm:$0xf0] }
 0x50b   :  { %v3062_v36 = vpop.f32.mrf.mxu0  ;;  %3646 = vmatpush.bf16.msra.mxu0 %v6320_v14  ;;  %v6400_v16 = vor.u32 %v7017_v40, %v6397_v5  ;;  %v7012_v40 = vld [vmem:[#allocation17 + $0x84] sm:$0xf0] }
 0x50c   :  { %3264 = vmatmul.bf16.gmra.mxu1 %v9024_v34  ;;  %v3063_v11 = vadd.f32 %v3062_v36, %v3024_v57  ;;  %v3308_v30 = vmul.f32 0.2, %v3100_v50  ;;  %vm3284_vm4 = vcmp.gt.f32.partialorder %v3100_v50, 0.0  ;;  %v6387_v57 = vld [vmem:[#allocation17 + $0xa0] sm:$0xf] }
 0x50d   :  { %3683 = vmatpush.bf16.msra.mxu1 %v6400_v16  ;;  %v6373_v16 = vld [vmem:[#allocation17 + $0x88] sm:$0xf0] }
 0x50e   :  { %v9109_v3 = vpop.f32.mrf.mxu3  ;;  %v3332_v46 = vsel %vm3284_vm4, %v3100_v50, %v3308_v30  ;;  %v9128_v60 = vpop.f32.mrf.mxu2  ;;  %v7016_v50 = vld [vmem:[#allocation17 + $0xa4] sm:$0xf0]  ;;  %v6389_v30 = vld [vmem:[#allocation17 + $0xa8] sm:$0xf0] }
 0x50f   :  { %3647 = vmatpush.bf16.msra.mxu0 %v6312_v2  ;;  %v6388_v43 = vor.u32 %v7016_v50, %v6387_v57  ;;  %v7015_v2 = vld [vmem:[#allocation17 + $0xa4] sm:$0xf] }
 0x511   :  { %v3101_v34 = vpop.f32.mrf.mxu1 }
 0x512   :  { %v3102_v37 = vadd.f32 %v3101_v34, %v3063_v11 }
 0x513   :  { %v3065_v59 = vpop.f32.mrf.mxu0 }
 0x514   :  { %vm3286_vm5 = vcmp.gt.f32.partialorder %v3102_v37, 0.0  ;;  %v3310_v63 = vmul.f32 0.2, %v3102_v37  ;;  %v3066_v53 = vadd.f32 %v3065_v59, %v3027_v31  ;;  %v7014_v31 = vld [vmem:[#allocation17 + $0x94] sm:$0xf0] }
 0x516   :  { %3230 = vmatmul.bf16.gmra.mxu0 %v9030_v49  ;;  %v3334_v21 = vsel %vm3286_vm5, %v3102_v37, %v3310_v63  ;;  %v6395_v49 = vld [vmem:[#allocation17 + $0xb0] sm:$0xf]  ;;  %v9124_v35 = vpop.f32.mrf.mxu3  ;;  %v3034_v37 = vadd.f32 %v9103_v26, %v2995_v27  ;;  %v6392_v63 = vor.u32 %v7015_v2, %v6389_v30  ;;  %v3004_v51 = vpop.f32.mrf.mxu2 }
 0x517   :  { %v9114_v23 = vpack.c.bf16 %v3334_v21, %v3332_v46  ;;  %v6396_v29 = vor.u32 %v7018_v10, %v6395_v49 }
 0x518   :  { %3684 = vmatpush.bf16.msra.mxu1 %v6392_v63 }
 0x519   :  { %v3104_v38 = vpop.f32.mrf.mxu1  ;;  %3575 = vmatmul.bf16.gmra.mxu2 %v9114_v23  ;;  %3605 = vmatpush.bf16.msrb.mxu3 %v6396_v29 }
 0x51a   :  { %v3105_v0 = vadd.f32 %v3104_v38, %v3066_v53  ;;  %v6379_v38 = vld [vmem:[#allocation17 + $0x90] sm:$0xf] }
 0x51b   :  { %v3067_v32 = vpop.f32.mrf.mxu0 }
 0x51c   :  { %3269 = vmatmul.bf16.gmra.mxu1 %v9034_v12  ;;  %v3068_v36 = vadd.f32 %v3067_v32, %v3029_v4  ;;  %v3312_v39 = vmul.f32 0.2, %v3105_v0  ;;  %vm3288_vm6 = vcmp.gt.f32.partialorder %v3105_v0, 0.0  ;;  %v2993_v12 = vadd.f32 %v9087_v20, %v9074_v42 }
 0x51d   :  { %3606 = vmatpush.bf16.msrb.mxu3 %v6388_v43  ;;  %v6380_v32 = vor.u32 %v7014_v31, %v6379_v38 }
 0x51e   :  { %v3336_v61 = vsel %vm3288_vm6, %v3105_v0, %v3312_v39  ;;  %v9133_v11 = vpop.f32.mrf.mxu3  ;;  %v3032_v20 = vadd.f32 %v9090_v6, %v2993_v12  ;;  %v3133_v49 = vpop.f32.mrf.mxu2  ;;  %v3000_v0 = vadd.f32 %v9120_v28, %v9074_v42  ;;  %v7013_v39 = vld [vmem:[#allocation17 + $0x94] sm:$0xf] }
 0x521   :  { %v3106_v22 = vpop.f32.mrf.mxu1  ;;  %3607 = vmatpush.bf16.msrb.mxu3 %v6380_v32 }
 0x522   :  { %v3107_v56 = vadd.f32 %v3106_v22, %v3068_v36 }
 0x523   :  { %v3070_v7 = vpop.f32.mrf.mxu0 }
 0x524   :  { %vm3290_vm7 = vcmp.gt.f32.partialorder %v3107_v56, 0.0  ;;  %v3314_v17 = vmul.f32 0.2, %v3107_v56 }
 0x526   :  { %3235 = vmatmul.bf16.gmra.mxu0 %v9042_v25  ;;  %v3338_v15 = vsel %vm3290_vm7, %v3107_v56, %v3314_v17  ;;  %v3071_v25 = vadd.f32 %v3070_v7, %v3032_v20  ;;  %v3043_v6 = vpop.f32.mrf.mxu3  ;;  %v6381_v56 = vld [vmem:[#allocation17 + $0x98] sm:$0xf0]  ;;  %v6371_v7 = vld [vmem:[#allocation17 + $0x80] sm:$0xf] }
 0x527   :  { %v9131_v14 = vpack.c.bf16 %v3338_v15, %v3336_v61  ;;  %v6384_v17 = vor.u32 %v7013_v39, %v6381_v56  ;;  %v6372_v5 = vor.u32 %v7012_v40, %v6371_v7  ;;  %v3135_v61 = vpop.f32.mrf.mxu2  ;;  %v7011_v15 = vld [vmem:[#allocation17 + $0x84] sm:$0xf] }
 0x528   :  { %v6376_v43 = vor.u32 %v7011_v15, %v6373_v16 }
 0x529   :  { %v3109_v55 = vpop.f32.mrf.mxu1  ;;  %3580 = vmatmul.bf16.gmra.mxu2 %v9131_v14  ;;  %3685 = vmatpush.bf16.msra.mxu1 %v6384_v17 }
 0x52a   :  { %v3110_v59 = vadd.f32 %v3109_v55, %v3071_v25  ;;  %3608 = vmatpush.bf16.msrb.mxu3 %v6372_v5  ;;  %v3003_v55 = vadd.f32 %v9128_v60, %v9074_v42 }
 0x52b   :  { %v3072_v34 = vpop.f32.mrf.mxu0 }
 0x52c   :  { %3274 = vmatmul.bf16.gmra.mxu1 %v9048_v33  ;;  %v3073_v54 = vadd.f32 %v3072_v34, %v3034_v37  ;;  %v3316_v46 = vmul.f32 0.2, %v3110_v59  ;;  %vm3292_vm8 = vcmp.gt.f32.partialorder %v3110_v59, 0.0  ;;  %v2998_v33 = vadd.f32 %v9107_v9, %v9074_v42 }
 0x52d   :  { %3686 = vmatpush.bf16.msra.mxu1 %v6376_v43  ;;  %v3042_v30 = vadd.f32 %v9133_v11, %v3003_v55  ;;  %v3005_v37 = vadd.f32 %v3004_v51, %v9074_v42 }
 0x52e   :  { %v3340_v26 = vsel %vm3292_vm8, %v3110_v59, %v3316_v46  ;;  %v3037_v4 = vadd.f32 %v9109_v3, %v2998_v33  ;;  %v3172_v9 = vpop.f32.mrf.mxu3 }
 0x531   :  { %v3111_v62 = vpop.f32.mrf.mxu1 }
 0x532   :  { %v3112_v21 = vadd.f32 %v3111_v62, %v3073_v54  ;;  %v3138_v54 = vpop.f32.mrf.mxu2  ;;  %v3044_v62 = vadd.f32 %v3043_v6, %v3005_v37 }
 0x533   :  { %v3075_v18 = vpop.f32.mrf.mxu0 }
 0x534   :  { %vm3294_vm9 = vcmp.gt.f32.partialorder %v3112_v21, 0.0  ;;  %v3318_v45 = vmul.f32 0.2, %v3112_v21  ;;  %v3076_v36 = vadd.f32 %v3075_v18, %v3037_v4  ;;  %v9160_v18 = vperm.slane %v9071_v24, 1 }
 0x536   :  { %3648 = vmatmul.bf16.vlgmr.msra.gmra.mxu0 %v9097_v8  ;;  %v3342_v47 = vsel %vm3294_vm9, %v3112_v21, %v3318_v45  ;;  %v3039_v8 = vadd.f32 %v9124_v35, %v3000_v0  ;;  %v3174_v34 = vpop.f32.mrf.mxu3  ;;  %v3134_v11 = vadd.f32 %v3133_v49, %v9160_v18  ;;  %v3136_v32 = vadd.f32 %v3135_v61, %v9160_v18 }
 0x537   :  { %v9144_v53 = vpack.c.bf16 %v3342_v47, %v3340_v26  ;;  %v3139_v40 = vadd.f32 %v3138_v54, %v9160_v18 }
 0x538   :  { %v3173_v24 = vadd.f32 %v3172_v9, %v3134_v11  ;;  %v7042_v11 = vld [vmem:[%s9754_s8 + $0x78] sm:$0xff] }
 0x539   :  { %v3114_v10 = vpop.f32.mrf.mxu1  ;;  %3585 = vmatmul.bf16.gmra.mxu2 %v9144_v53  ;;  %3973 = vmatpush.bf16.msra.mxu3 %v7042_v11 }
 0x53a   :  { %v3115_v22 = vadd.f32 %v3114_v10, %v3076_v36  ;;  %v3140_v6 = vpop.f32.mrf.mxu2 }
 0x53b   :  { %v3077_v29 = vpop.f32.mrf.mxu0 }
 0x53c   :  { %v3078_v12 = vadd.f32 %v3077_v29, %v3039_v8  ;;  %v3320_v50 = vmul.f32 0.2, %v3115_v22  ;;  %vm3296_vm10 = vcmp.gt.f32.partialorder %v3115_v22, 0.0  ;;  %v3175_v29 = vadd.f32 %v3174_v34, %v3136_v32 }
 0x53e   :  { %v3344_v20 = vsel %vm3296_vm10, %v3115_v22, %v3320_v50 }
 0x541   :  { %v3116_v57 = vpop.f32.mrf.mxu1 }
 0x542   :  { %v3117_v3 = vadd.f32 %v3116_v57, %v3078_v12  ;;  %v3143_v49 = vpop.f32.mrf.mxu2 }
 0x543   :  { %v3080_v28 = vpop.f32.mrf.mxu0 }
 0x544   :  { %vm3298_vm11 = vcmp.gt.f32.partialorder %v3117_v3, 0.0  ;;  %v3322_v35 = vmul.f32 0.2, %v3117_v3  ;;  %v3081_v63 = vadd.f32 %v3080_v28, %v3042_v30 }
 0x546   :  { %3653 = vmatmul.bf16.gmra.mxu0 %v9114_v23  ;;  %v3346_v27 = vsel %vm3298_vm11, %v3117_v3, %v3322_v35  ;;  %v3177_v23 = vpop.f32.mrf.mxu3  ;;  %v3141_v3 = vadd.f32 %v3140_v6, %v9160_v18 }
 0x547   :  { %v9154_v25 = vpack.c.bf16 %v3346_v27, %v3344_v20  ;;  %v3178_v50 = vadd.f32 %v3177_v23, %v3139_v40  ;;  %v4195_v27 = vld [vmem:[#allocation22] sm:$0xf] }
 0x549   :  { %v3119_v2 = vpop.f32.mrf.mxu1  ;;  %3590 = vmatmul.bf16.gmra.mxu2 %v9154_v25 }
 0x54a   :  { %v3120_v60 = vadd.f32 %v3119_v2, %v3081_v63  ;;  %v3145_v61 = vpop.f32.mrf.mxu2  ;;  %v3144_v63 = vadd.f32 %v3143_v49, %v9160_v18 }
 0x54b   :  { %v3082_v59 = vpop.f32.mrf.mxu0 }
 0x54c   :  { %v3083_v46 = vadd.f32 %v3082_v59, %v3044_v62  ;;  %v3324_v45 = vmul.f32 0.2, %v3120_v60  ;;  %vm3300_vm12 = vcmp.gt.f32.partialorder %v3120_v60, 0.0 }
 0x54e   :  { %v3348_v42 = vsel %vm3300_vm12, %v3120_v60, %v3324_v45  ;;  %v3179_v10 = vpop.f32.mrf.mxu3  ;;  %v3146_v45 = vadd.f32 %v3145_v61, %v9160_v18  ;;  %vm4308_vm12 = vcmask 15360  }
 0x54f   :  { %v3180_v16 = vadd.f32 %v3179_v10, %v3141_v3 }
 0x551   :  { %v3121_v21 = vpop.f32.mrf.mxu1 }
 0x552   :  { %v3122_v38 = vadd.f32 %v3121_v21, %v3083_v46  ;;  %v3148_v59 = vpop.f32.mrf.mxu2 }
 0x553   :  { %v3211_v31 = vpop.f32.mrf.mxu0 }
 0x554   :  { %vm3302_vm13 = vcmp.gt.f32.partialorder %v3122_v38, 0.0  ;;  %v3326_v33 = vmul.f32 0.2, %v3122_v38  ;;  %v3212_v0 = vadd.f32 %v3211_v31, %v3173_v24 }
 0x556   :  { %3658 = vmatmul.bf16.gmra.mxu0 %v9131_v14  ;;  %v3350_v51 = vsel %vm3302_vm13, %v3122_v38, %v3326_v33  ;;  %v3182_v17 = vpop.f32.mrf.mxu3  ;;  %v7034_v33 = vld [vmem:[%s9754_s8 + $0x38] sm:$0xff]  ;;  %vm4310_vm13 = vcmask 31744  }
 0x557   :  { %v9164_v26 = vpack.c.bf16 %v3350_v51, %v3348_v42  ;;  %v3183_v21 = vadd.f32 %v3182_v17, %v3144_v63  ;;  %3934 = vmatpush.bf16.msra.mxu2 %v7034_v33 }
 0x559   :  { %v3250_v47 = vpop.f32.mrf.mxu1  ;;  %3595 = vmatmul.bf16.gmra.mxu2 %v9164_v26 }
 0x55a   :  { %v3251_v36 = vadd.f32 %v3250_v47, %v3212_v0  ;;  %v3150_v6 = vpop.f32.mrf.mxu2 }
 0x55b   :  { %v3213_v4 = vpop.f32.mrf.mxu0 }
 0x55c   :  { %v3214_v8 = vadd.f32 %v3213_v4, %v3175_v29  ;;  %v3305_v14 = vmul.f32 0.2, %v3251_v36  ;;  %vm3281_vm14 = vcmp.gt.f32.partialorder %v3251_v36, 0.0  ;;  %v7033_v29 = vld [vmem:[%s9754_s8 + $0x30] sm:$0xff] }
 0x55d   :  { %3935 = vmatpush.bf16.msra.mxu2 %v7033_v29 }
 0x55e   :  { %v3329_v9 = vsel %vm3281_vm14, %v3251_v36, %v3305_v14  ;;  %v3184_v43 = vpop.f32.mrf.mxu3  ;;  %v3149_v36 = vadd.f32 %v3148_v59, %v9160_v18  ;;  %vm4312_vm14 = vcmask 48128  }
 0x55f   :  { %v3185_v42 = vadd.f32 %v3184_v43, %v3146_v45 }
 0x561   :  { %v3252_v22 = vpop.f32.mrf.mxu1 }
 0x562   :  { %v3253_v39 = vadd.f32 %v3252_v22, %v3214_v8  ;;  %v3153_v14 = vpop.f32.mrf.mxu2 }
 0x563   :  { %v3216_v56 = vpop.f32.mrf.mxu0 }
 0x564   :  { %vm3283_vm15 = vcmp.gt.f32.partialorder %v3253_v39, 0.0  ;;  %v3307_v7 = vmul.f32 0.2, %v3253_v39  ;;  %v3217_v15 = vadd.f32 %v3216_v56, %v3178_v50  ;;  %v4193_v50 = vld [vmem:[%s9755_s14 + $0x8] sm:$0xff] }
 0x566   :  { %v3331_v12 = vsel %vm3283_vm15, %v3253_v39, %v3307_v7  ;;  %3663 = vmatmul.bf16.gmra.mxu0 %v9144_v53  ;;  %v4204_v53 = vsel %vm584_vm0, %v4195_v27, 0  ;;  %v3187_v46 = vpop.f32.mrf.mxu3  ;;  %v3151_v7 = vadd.f32 %v3150_v6, %v9160_v18  ;;  %v7040_v27 = vld [vmem:[%s9754_s8 + $0x68] sm:$0xff]  ;;  %vm4315_vm15 = vcmask 80896  }
 0x567   :  { %v3353_v5 = vpack.c.bf16 %v3331_v12, %v3329_v9  ;;  %4213 = vmatpush.bf16.msrb.mxu0 %v4204_v53  ;;  %v3188_v56 = vadd.f32 %v3187_v46, %v3149_v36  ;;  %v7041_v9 = vld [vmem:[%s9754_s8 + $0x70] sm:$0xff] }
 0x568   :  { %3974 = vmatpush.bf16.msra.mxu3 %v7041_v9 }
 0x569   :  { %v3255_v57 = vpop.f32.mrf.mxu1  ;;  %3609 = vmatmul.bf16.vlgmr.msrb.gmra.mxu3 %v3353_v5  ;;  %3687 = vmatmul.bf16.vlgmr.msra.gmra.mxu1 %v3353_v5 }
 0x56a   :  { %v3256_v35 = vadd.f32 %v3255_v57, %v3217_v15  ;;  %v4192_v57 = vld [vmem:[%s9755_s14] sm:$0xff] }
 0x56b   :  { %v3218_v28 = vpop.f32.mrf.mxu0 }
 0x56c   :  { %v3219_v55 = vadd.f32 %v3218_v28, %v3180_v16  ;;  %v3309_v34 = vmul.f32 0.2, %v3256_v35  ;;  %vm3285_vm2 = vcmp.gt.f32.partialorder %v3256_v35, 0.0  ;;  %v4194_v16 = vpack.c.bf16 %v4193_v50, %v4192_v57  ;;  %3975 = vmatpush.bf16.msra.mxu3 %v7040_v27 }
 0x56e   :  { %v3333_v54 = vsel %vm3285_vm2, %v3256_v35, %v3309_v34  ;;  %v3189_v10 = vpop.f32.mrf.mxu3  ;;  %v3155_v35 = vpop.f32.mrf.mxu2  ;;  %v3154_v34 = vadd.f32 %v3153_v14, %v9160_v18  ;;  %vm4317_vm2 = vcmask 97280  }
 0x56f   :  { %v3190_v5 = vadd.f32 %v3189_v10, %v3151_v7  ;;  %v7030_v7 = vld [vmem:[%s9754_s8 + $0x18] sm:$0xff] }
 0x571   :  { %v3257_v20 = vpop.f32.mrf.mxu1 }
 0x572   :  { %v3258_v2 = vadd.f32 %v3257_v20, %v3219_v55  ;;  %v7032_v20 = vld [vmem:[%s9754_s8 + $0x28] sm:$0xff] }
 0x573   :  { %v3221_v30 = vpop.f32.mrf.mxu0  ;;  %3936 = vmatpush.bf16.msra.mxu2 %v7032_v20 }
 0x574   :  { %vm3287_vm3 = vcmp.gt.f32.partialorder %v3258_v2, 0.0  ;;  %v3311_v37 = vmul.f32 0.2, %v3258_v2  ;;  %v3222_v31 = vadd.f32 %v3221_v30, %v3183_v21  ;;  %v7039_v21 = vld [vmem:[%s9754_s8 + $0x60] sm:$0xff] }
 0x575   :  { %3976 = vmatpush.bf16.msra.mxu3 %v7039_v21 }
 0x576   :  { %3668 = vmatmul.bf16.gmra.mxu0 %v9154_v25  ;;  %v3335_v62 = vsel %vm3287_vm3, %v3258_v2, %v3311_v37  ;;  %v3192_v12 = vpop.f32.mrf.mxu3  ;;  %v3158_v46 = vpop.f32.mrf.mxu2  ;;  %vm4319_vm3 = vcmask 113664  }
 0x577   :  { %v3355_v60 = vpack.c.bf16 %v3335_v62, %v3333_v54  ;;  %v3193_v63 = vadd.f32 %v3192_v12, %v3154_v34  ;;  %v3156_v54 = vadd.f32 %v3155_v35, %v9160_v18  ;;  %v3159_v10 = vadd.f32 %v3158_v46, %v9160_v18 }
 0x579   :  { %v3260_v23 = vpop.f32.mrf.mxu1  ;;  %3614 = vmatmul.bf16.gmra.mxu3 %v3355_v60  ;;  %3692 = vmatmul.bf16.gmra.mxu1 %v3355_v60 }
 0x57a   :  { %v3261_v51 = vadd.f32 %v3260_v23, %v3222_v31  ;;  %v7031_v23 = vld [vmem:[%s9754_s8 + $0x20] sm:$0xff] }
 0x57b   :  { %v3223_v38 = vpop.f32.mrf.mxu0  ;;  %3937 = vmatpush.bf16.msra.mxu2 %v7031_v23  ;;  %v7028_v23 = vld [vmem:[%s9754_s8 + $0x8] sm:$0xff] }
 0x57c   :  { %v3224_v25 = vadd.f32 %v3223_v38, %v3185_v42  ;;  %v3313_v24 = vmul.f32 0.2, %v3261_v51  ;;  %vm3289_vm4 = vcmp.gt.f32.partialorder %v3261_v51, 0.0 }
 0x57e   :  { %v3337_v8 = vsel %vm3289_vm4, %v3261_v51, %v3313_v24  ;;  %v3194_v30 = vpop.f32.mrf.mxu3  ;;  %v3160_v29 = vpop.f32.mrf.mxu2  ;;  %vm4361_vm4 = vcmask 130048  }
 0x57f   :  { %v3195_v45 = vadd.f32 %v3194_v30, %v3156_v54  ;;  %3938 = vmatpush.bf16.msra.mxu2 %v7030_v7 }
 0x581   :  { %v3262_v47 = vpop.f32.mrf.mxu1 }
 0x582   :  { %v3263_v32 = vadd.f32 %v3262_v47, %v3224_v25  ;;  %v7047_v25 = vld [vmem:[#allocation28 + $0x4] sm:$0xf]  ;;  %v6519_v47 = vld [vmem:[#allocation28 + $0xc] sm:$0xf0] }
 0x583   :  { %v3226_v4 = vpop.f32.mrf.mxu0 }
 0x584   :  { %vm3291_vm5 = vcmp.gt.f32.partialorder %v3263_v32, 0.0  ;;  %v3315_v0 = vmul.f32 0.2, %v3263_v32  ;;  %v3227_v40 = vadd.f32 %v3226_v4, %v3188_v56 }
 0x586   :  { %3673 = vmatmul.bf16.gmra.mxu0 %v9164_v26  ;;  %v3339_v49 = vsel %vm3291_vm5, %v3263_v32, %v3315_v0  ;;  %v3197_v33 = vpop.f32.mrf.mxu3  ;;  %v6522_v32 = vor.u32 %v7047_v25, %v6519_v47  ;;  %v3396_v47 = vld [vmem:[#allocation19] sm:$0x3] }
 0x587   :  { %v3357_v22 = vpack.c.bf16 %v3339_v49, %v3337_v8  ;;  %v3198_v49 = vadd.f32 %v3197_v33, %v3159_v10 }
 0x588   :  { %4426 = vmatpush.bf16.msrb.mxu1 %v6522_v32 }
 0x589   :  { %v3265_v39 = vpop.f32.mrf.mxu1  ;;  %3619 = vmatmul.bf16.gmra.mxu3 %v3357_v22  ;;  %3697 = vmatmul.bf16.gmra.mxu1 %v3357_v22  ;;  %v3161_v22 = vadd.f32 %v3160_v29, %v9160_v18 }
 0x58a   :  { %v3266_v26 = vadd.f32 %v3265_v39, %v3227_v40  ;;  %v4288_v40 = vpop.permute.xlu0 %4287 }
 0x58b   :  { %v3228_v17 = vpop.f32.mrf.mxu0  ;;  %v4309_v27 = vsel %vm4308_vm12, %v8916_v48, %v4288_v40 }
 0x58c   :  { %v3229_v3 = vadd.f32 %v3228_v17, %v3190_v5  ;;  %v3317_v28 = vmul.f32 0.2, %v3266_v26  ;;  %vm3293_vm6 = vcmp.gt.f32.partialorder %v3266_v26, 0.0  ;;  %v7038_v17 = vld [vmem:[%s9754_s8 + $0x58] sm:$0xff]  ;;  %v4294_v5 = vpop.permute.xlu1 %4293  ;;  %v3571_v33 = vpop.f32.mrf.mxu2 }
 0x58d   :  { %3977 = vmatpush.bf16.msra.mxu3 %v7038_v17 }
 0x58e   :  { %v3341_v2 = vsel %vm3293_vm6, %v3266_v26, %v3317_v28  ;;  %v3199_v14 = vpop.f32.mrf.mxu3  ;;  %v7029_v28 = vld [vmem:[%s9754_s8 + $0x10] sm:$0xff] }
 0x58f   :  { %v3200_v9 = vadd.f32 %v3199_v14, %v3161_v22  ;;  %3939 = vmatpush.bf16.msra.mxu2 %v7029_v28 }
 0x591   :  { %v3267_v61 = vpop.f32.mrf.mxu1 }
 0x592   :  { %v3268_v15 = vadd.f32 %v3267_v61, %v3229_v3  ;;  %v4291_v20 = vpop.permute.xlu0 %4290 }
 0x593   :  { %v3231_v43 = vpop.f32.mrf.mxu0  ;;  %3940 = vmatpush.bf16.msra.mxu2 %v7028_v23 }
 0x594   :  { %vm3295_vm7 = vcmp.gt.f32.partialorder %v3268_v15, 0.0  ;;  %v3319_v55 = vmul.f32 0.2, %v3268_v15  ;;  %v3232_v60 = vadd.f32 %v3231_v43, %v3193_v63  ;;  %v4297_v34 = vpop.permute.xlu1 %4296 }
 0x596   :  { %6497 = vmatmul.msk.bf16.vlgmr.msrb.gmra.mxu0 %vm571_vm1, %v4194_v16  ;;  %v3343_v53 = vsel %vm3295_vm7, %v3268_v15, %v3319_v55  ;;  %v7037_v15 = vld [vmem:[%s9754_s8 + $0x50] sm:$0xff]  ;;  %v4300_v55 = vpop.permute.xlu2 %4299 }
 0x597   :  { %v3359_v37 = vpack.c.bf16 %v3343_v53, %v3341_v2  ;;  %3978 = vmatpush.bf16.msra.mxu3 %v7037_v15  ;;  %v4311_v2 = vsel %vm4310_vm13, %v4309_v27, %v4291_v20  ;;  %v7045_v15 = vld [vmem:[#allocation25 + $0x10] sm:$0xff] }
 0x598   :  { %v4313_v30 = vsel %vm4312_vm14, %v4311_v2, %v4294_v5 }
 0x599   :  { %v3270_v59 = vpop.f32.mrf.mxu1  ;;  %3624 = vmatmul.bf16.gmra.mxu3 %v3359_v37  ;;  %3702 = vmatmul.bf16.gmra.mxu1 %v3359_v37  ;;  %v4314_v37 = vsel %vm571_vm1, %v4313_v30, %v4297_v34  ;;  %v7044_v34 = vld [vmem:[#allocation25 + $0x8] sm:$0xff] }
 0x59a   :  { %v3271_v38 = vadd.f32 %v3270_v59, %v3232_v60  ;;  %v4316_v59 = vsel %vm4315_vm15, %v4314_v37, %v4300_v55  ;;  %v4306_v63 = vpop.permute.xlu0 %4305 }
 0x59b   :  { %v3233_v62 = vpop.f32.mrf.mxu0 }
 0x59c   :  { %v3234_v31 = vadd.f32 %v3233_v62, %v3195_v45  ;;  %v3321_v42 = vmul.f32 0.2, %v3271_v38  ;;  %vm3297_vm8 = vcmp.gt.f32.partialorder %v3271_v38, 0.0 }
 0x59e   :  { %v3345_v4 = vsel %vm3297_vm8, %v3271_v38, %v3321_v42  ;;  %v4303_v54 = vpop.permute.xlu2 %4302  ;;  %v7036_v38 = vld [vmem:[%s9754_s8 + $0x48] sm:$0xff]  ;;  %v7027_v42 = vld [vmem:[%s9754_s8] sm:$0xff] }
 0x59f   :  { %v4318_v62 = vsel %vm4317_vm2, %v4316_v59, %v4303_v54  ;;  %3979 = vmatpush.bf16.msra.mxu3 %v7036_v38  ;;  %3941 = vmatpush.bf16.msra.mxu2 %v7027_v42 }
 0x5a0   :  { %v4320_v46 = vsel %vm4319_vm3, %v4318_v62, %v4306_v63  ;;  %v7043_v63 = vld [vmem:[#allocation25] sm:$0xff] }
 0x5a1   :  { %v3272_v11 = vpop.f32.mrf.mxu1  ;;  %v9206_v21 = vpack.c.bf16 %v4320_v46, %v4320_v46 }
 0x5a2   :  { %v3273_v51 = vadd.f32 %v3272_v11, %v3234_v31  ;;  %v7035_v31 = vld [vmem:[%s9754_s8 + $0x40] sm:$0xff] }
 0x5a3   :  { %v3236_v6 = vpop.f32.mrf.mxu0  ;;  %3980 = vmatpush.bf16.msra.mxu3 %v7035_v31 }
 0x5a4   :  { %vm3299_vm9 = vcmp.gt.f32.partialorder %v3273_v51, 0.0  ;;  %v3323_v24 = vmul.f32 0.2, %v3273_v51  ;;  %v3237_v56 = vadd.f32 %v3236_v6, %v3198_v49  ;;  %v3573_v6 = vpop.f32.mrf.mxu2 }
 0x5a6   :  { %v3347_v0 = vsel %vm3299_vm9, %v3273_v51, %v3323_v24  ;;  %v9219_v24 = vperm.slane %v3396_v47, 1 }
 0x5a7   :  { %v3361_v36 = vpack.c.bf16 %v3347_v0, %v3345_v4  ;;  %v9222_v0 = vperm.slane %v3396_v47, 0 }
 0x5a9   :  { %v3275_v8 = vpop.f32.mrf.mxu1  ;;  %3629 = vmatmul.bf16.gmra.mxu3 %v3361_v36  ;;  %3707 = vmatmul.bf16.gmra.mxu1 %v3361_v36  ;;  %v3572_v14 = vadd.f32 %v3571_v33, %v9222_v0 }
 0x5aa   :  { %v3276_v12 = vadd.f32 %v3275_v8, %v3237_v56 }
 0x5ab   :  { %v3238_v39 = vpop.f32.mrf.mxu0 }
 0x5ac   :  { %v3239_v26 = vadd.f32 %v3238_v39, %v3200_v9  ;;  %v3325_v50 = vmul.f32 0.2, %v3276_v12  ;;  %vm3301_vm10 = vcmp.gt.f32.partialorder %v3276_v12, 0.0  ;;  %v3576_v32 = vpop.f32.mrf.mxu2  ;;  %v7046_v9 = vld [vmem:[#allocation25 + $0x18] sm:$0xff] }
 0x5ad   :  { %4271 = vmatpush.bf16.msra.mxu0 %v7046_v9  ;;  %v3577_v54 = vadd.f32 %v3576_v32, %v9222_v0  ;;  %v7048_v9 = vld [vmem:[#allocation28 + $0x8] sm:$0xf0] }
 0x5ae   :  { %v3349_v16 = vsel %vm3301_vm10, %v3276_v12, %v3325_v50  ;;  %v3574_v12 = vadd.f32 %v3573_v6, %v9222_v0 }
 0x5b1   :  { %v3277_v57 = vpop.f32.mrf.mxu1  ;;  %4272 = vmatpush.bf16.msra.mxu0 %v7045_v15 }
 0x5b2   :  { %v3278_v3 = vadd.f32 %v3277_v57, %v3239_v26 }
 0x5b3   :  { %v3649_v61 = vpop.f32.mrf.mxu0 }
 0x5b4   :  { %vm3303_vm11 = vcmp.gt.f32.partialorder %v3278_v3, 0.0  ;;  %v3327_v18 = vmul.f32 0.2, %v3278_v3  ;;  %v3650_v4 = vadd.f32 %v3649_v61, %v9219_v24  ;;  %v3578_v7 = vpop.f32.mrf.mxu2 }
 0x5b5   :  { %4273 = vmatpush.bf16.msra.mxu0 %v7044_v34  ;;  %v3579_v38 = vadd.f32 %v3578_v7, %v9222_v0 }
 0x5b6   :  { %v3351_v35 = vsel %vm3303_vm11, %v3278_v3, %v3327_v18 }
 0x5b7   :  { %v3363_v43 = vpack.c.bf16 %v3351_v35, %v3349_v16 }
 0x5b9   :  { %3634 = vmatmul.bf16.gmra.mxu3 %v3363_v43  ;;  %3712 = vmatmul.bf16.gmra.mxu1 %v3363_v43 }
 0x5ba   :  { %4274 = vmatpush.bf16.msra.mxu0 %v7043_v63 }
 0x5bb   :  { %v3651_v53 = vpop.f32.mrf.mxu0 }
 0x5bc   :  { %v3652_v49 = vadd.f32 %v3651_v53, %v9219_v24  ;;  %v3581_v20 = vpop.f32.mrf.mxu2 }
 0x5c3   :  { %v3654_v60 = vpop.f32.mrf.mxu0 }
 0x5c4   :  { %v3655_v35 = vadd.f32 %v3654_v60, %v9219_v24  ;;  %v3583_v6 = vpop.f32.mrf.mxu2 }
 0x5c5   :  { %v3584_v15 = vadd.f32 %v3583_v6, %v9222_v0 }
 0x5c9   :  { %6528 = vmatmul.msk.bf16.vlgmr.msrb.gmra.mxu1 %vm4361_vm4, %v9206_v21 }
 0x5cb   :  { %v3656_v45 = vpop.f32.mrf.mxu0 }
 0x5cc   :  { %v3657_v37 = vadd.f32 %v3656_v45, %v9219_v24 }
 0x5d3   :  { %v9212_v11 = vpop.f32.mrf.mxu0 }
 0x5db   :  { %v9215_v51 = vpop.f32.mrf.mxu0 }
 0x5e3   :  { %v9217_v25 = vpop.f32.mrf.mxu0 }
 0x5e4   :  { %v3665_v63 = vadd.f32 %v9217_v25, %v9219_v24 }
 0x5e6   :  { %v3688_v10 = vpop.f32.mrf.mxu1 }
 0x5e7   :  { %v3689_v29 = vadd.f32 %v3688_v10, %v3650_v4 }
 0x5e9   :  { %v3743_v39 = vmul.f32 0.2, %v3689_v29  ;;  %vm3719_vm5 = vcmp.gt.f32.partialorder %v3689_v29, 0.0 }
 0x5eb   :  { %v9224_v36 = vpop.f32.mrf.mxu0  ;;  %v3767_v5 = vsel %vm3719_vm5, %v3689_v29, %v3743_v39 }
 0x5ec   :  { %v3610_v8 = vpop.f32.mrf.mxu3 }
 0x5ed   :  { %v3611_v17 = vadd.f32 %v3610_v8, %v3572_v14  ;;  %v3660_v8 = vadd.f32 %v9212_v11, %v9219_v24 }
 0x5ee   :  { %v3690_v22 = vpop.f32.mrf.mxu1 }
 0x5ef   :  { %v3691_v56 = vadd.f32 %v3690_v22, %v3652_v49  ;;  %v3742_v61 = vmul.f32 0.2, %v3611_v17  ;;  %vm3718_vm7 = vcmp.gt.f32.partialorder %v3611_v17, 0.0 }
 0x5f1   :  { %vm3721_vm6 = vcmp.gt.f32.partialorder %v3691_v56, 0.0  ;;  %v3745_v40 = vmul.f32 0.2, %v3691_v56  ;;  %v3766_v43 = vsel %vm3718_vm7, %v3611_v17, %v3742_v61  ;;  %v3662_v17 = vadd.f32 %v9215_v51, %v9219_v24 }
 0x5f3   :  { %v3769_v26 = vsel %vm3721_vm6, %v3691_v56, %v3745_v40  ;;  %v9229_v57 = vpop.f32.mrf.mxu0  ;;  %v6517_v40 = vld [vmem:[#allocation28] sm:$0xf] }
 0x5f4   :  { %v3791_v50 = vpack.c.bf16 %v3769_v26, %v3767_v5  ;;  %v3612_v3 = vpop.f32.mrf.mxu3  ;;  %v6518_v26 = vor.u32 %v7048_v9, %v6517_v40  ;;  %v7062_v40 = vld [vmem:[%s9756_s20 + $0x60] sm:$0xff] }
 0x5f5   :  { %v3613_v18 = vadd.f32 %v3612_v3, %v3574_v12  ;;  %v3586_v12 = vpop.f32.mrf.mxu2 }
 0x5f6   :  { %v3693_v28 = vpop.f32.mrf.mxu1  ;;  %3981 = vmatmul.bf16.vlgmr.msra.gmra.mxu3 %v3791_v50  ;;  %v3582_v50 = vadd.f32 %v3581_v20, %v9222_v0  ;;  %4413 = vmatpush.bf16.msrb.mxu0 %v6518_v26  ;;  %v7065_v20 = vld [vmem:[%s9756_s20 + $0x78] sm:$0xff] }
 0x5f7   :  { %vm3720_vm8 = vcmp.gt.f32.partialorder %v3613_v18, 0.0  ;;  %v3744_v16 = vmul.f32 0.2, %v3613_v18  ;;  %v3694_v2 = vadd.f32 %v3693_v28, %v3655_v35  ;;  %v7216_v28 = vld [vmem:[#allocation23] ss:$0 sm:$0xff]  ;;  %4633 = vmatpush.bf16.msrb.mxu3 %v7065_v20 }
 0x5f9   :  { %v3768_v55 = vsel %vm3720_vm8, %v3613_v18, %v3744_v16  ;;  %v3747_v62 = vmul.f32 0.2, %v3694_v2  ;;  %vm3723_vm9 = vcmp.gt.f32.partialorder %v3694_v2, 0.0 }
 0x5fa   :  { %v3790_v27 = vpack.c.bf16 %v3768_v55, %v3766_v43 }
 0x5fb   :  { %v9232_v53 = vpop.f32.mrf.mxu0  ;;  %v3771_v33 = vsel %vm3723_vm9, %v3694_v2, %v3747_v62 }
 0x5fc   :  { %v3615_v30 = vpop.f32.mrf.mxu3  ;;  %3942 = vmatmul.bf16.vlgmr.msra.gmra.mxu2 %v3790_v27 }
 0x5fd   :  { %v3616_v60 = vadd.f32 %v3615_v30, %v3577_v54 }
 0x5fe   :  { %v3695_v59 = vpop.f32.mrf.mxu1 }
 0x5ff   :  { %v3696_v46 = vadd.f32 %v3695_v59, %v3657_v37  ;;  %v3746_v10 = vmul.f32 0.2, %v3616_v60  ;;  %vm3722_vm11 = vcmp.gt.f32.partialorder %v3616_v60, 0.0  ;;  %v3588_v59 = vpop.f32.mrf.mxu2 }
 0x601   :  { %vm3725_vm10 = vcmp.gt.f32.partialorder %v3696_v46, 0.0  ;;  %v3749_v23 = vmul.f32 0.2, %v3696_v46  ;;  %v3770_v49 = vsel %vm3722_vm11, %v3616_v60, %v3746_v10  ;;  %v6525_v10 = vld [vmem:[#allocation28 + $0x8] sm:$0xf] }
 0x603   :  { %v9237_v31 = vpop.f32.mrf.mxu0  ;;  %v3773_v42 = vsel %vm3725_vm10, %v3696_v46, %v3749_v23  ;;  %v7064_v46 = vld [vmem:[%s9756_s20 + $0x70] sm:$0xff] }
 0x604   :  { %v3617_v47 = vpop.f32.mrf.mxu3  ;;  %v3793_v45 = vpack.c.bf16 %v3773_v42, %v3771_v33  ;;  %4634 = vmatpush.bf16.msrb.mxu3 %v7064_v46 }
 0x605   :  { %v3618_v4 = vadd.f32 %v3617_v47, %v3579_v38  ;;  %v3667_v47 = vadd.f32 %v9224_v36, %v9219_v24 }
 0x606   :  { %v3698_v32 = vpop.f32.mrf.mxu1  ;;  %3986 = vmatmul.bf16.gmra.mxu3 %v3793_v45  ;;  %v7063_v45 = vld [vmem:[%s9756_s20 + $0x68] sm:$0xff] }
 0x607   :  { %vm3724_vm5 = vcmp.gt.f32.partialorder %v3618_v4, 0.0  ;;  %v3748_v29 = vmul.f32 0.2, %v3618_v4  ;;  %v3699_v39 = vadd.f32 %v3698_v32, %v3660_v8  ;;  %v3587_v8 = vadd.f32 %v3586_v12, %v9222_v0  ;;  %v3591_v9 = vpop.f32.mrf.mxu2 }
 0x608   :  { %4635 = vmatpush.bf16.msrb.mxu3 %v7063_v45 }
 0x609   :  { %v3772_v22 = vsel %vm3724_vm5, %v3618_v4, %v3748_v29  ;;  %v3751_v3 = vmul.f32 0.2, %v3699_v39  ;;  %vm3727_vm6 = vcmp.gt.f32.partialorder %v3699_v39, 0.0  ;;  %v7049_v4 = vld [vmem:[#allocation28 + $0x10] sm:$0xf0] }
 0x60a   :  { %v3792_v14 = vpack.c.bf16 %v3772_v22, %v3770_v49 }
 0x60b   :  { %v9241_v56 = vpop.f32.mrf.mxu0  ;;  %v3775_v51 = vsel %vm3727_vm6, %v3699_v39, %v3751_v3  ;;  %vm4263_vm6 = vcmask 523264   ;;  %v6526_v39 = vor.u32 %v7049_v4, %v6525_v10  ;;  %v3675_v4 = vadd.f32 %v9237_v31, %v9219_v24  ;;  %v9275_v31 = vld [vmem:[#allocation29] sm:$0x7] }
 0x60c   :  { %v3620_v7 = vpop.f32.mrf.mxu3  ;;  %3947 = vmatmul.bf16.gmra.mxu2 %v3792_v14  ;;  %4636 = vmatpush.bf16.msrb.mxu3 %v7062_v40 }
 0x60d   :  { %v3621_v61 = vadd.f32 %v3620_v7, %v3582_v50 }
 0x60e   :  { %v3700_v5 = vpop.f32.mrf.mxu1 }
 0x60f   :  { %v3701_v11 = vadd.f32 %v3700_v5, %v3662_v17  ;;  %v3750_v27 = vmul.f32 0.2, %v3621_v61  ;;  %vm3726_vm8 = vcmp.gt.f32.partialorder %v3621_v61, 0.0  ;;  %v3589_v5 = vadd.f32 %v3588_v59, %v9222_v0 }
 0x610   :  { %v3592_v59 = vadd.f32 %v3591_v9, %v9222_v0 }
 0x611   :  { %vm3729_vm7 = vcmp.gt.f32.partialorder %v3701_v11, 0.0  ;;  %v3753_v18 = vmul.f32 0.2, %v3701_v11  ;;  %v3774_v54 = vsel %vm3726_vm8, %v3621_v61, %v3750_v27 }
 0x613   :  { %v4215_v16 = vpop.f32.mrf.mxu0  ;;  %v3777_v35 = vsel %vm3729_vm7, %v3701_v11, %v3753_v18  ;;  %v7061_v18 = vld [vmem:[%s9756_s20 + $0x58] sm:$0xff] }
 0x614   :  { %v3622_v43 = vpop.f32.mrf.mxu3  ;;  %v3795_v55 = vpack.c.bf16 %v3777_v35, %v3775_v51  ;;  %v4216_v2 = vadd.f32 %v7216_v28, %v4215_v16  ;;  %4637 = vmatpush.bf16.msrb.mxu3 %v7061_v18  ;;  %v3670_v16 = vadd.f32 %v9229_v57, %v9219_v24  ;;  %v7058_v57 = vld [vmem:[%s9756_s20 + $0x40] sm:$0xff] }
 0x615   :  { %v3623_v34 = vadd.f32 %v3622_v43, %v3584_v15  ;;  %v7060_v43 = vld [vmem:[%s9756_s20 + $0x50] sm:$0xff] }
 0x616   :  { %v3703_v30 = vpop.f32.mrf.mxu1  ;;  %3991 = vmatmul.bf16.gmra.mxu3 %v3795_v55  ;;  %v4222_v60 = vmul.f32 0.2, %v4216_v2  ;;  %vm4220_vm10 = vcmp.gt.f32.partialorder %v4216_v2, 0.0 }
 0x617   :  { %vm3728_vm9 = vcmp.gt.f32.partialorder %v3623_v34, 0.0  ;;  %v3752_v37 = vmul.f32 0.2, %v3623_v34  ;;  %v3704_v38 = vadd.f32 %v3703_v30, %v3665_v63  ;;  %v7059_v30 = vld [vmem:[%s9756_s20 + $0x48] sm:$0xff] }
 0x618   :  { %v4224_v32 = vsel %vm4220_vm10, %v4216_v2, %v4222_v60  ;;  %4638 = vmatpush.bf16.msrb.mxu3 %v7060_v43  ;;  %v3672_v2 = vadd.f32 %v9232_v53, %v9219_v24 }
 0x619   :  { %v3776_v62 = vsel %vm3728_vm9, %v3623_v34, %v3752_v37  ;;  %v3755_v49 = vmul.f32 0.2, %v3704_v38  ;;  %vm3731_vm5 = vcmp.gt.f32.partialorder %v3704_v38, 0.0  ;;  %v3593_v34 = vpop.f32.mrf.mxu2 }
 0x61a   :  { %v3794_v23 = vpack.c.bf16 %v3776_v62, %v3774_v54  ;;  %v3594_v60 = vadd.f32 %v3593_v34, %v9222_v0  ;;  %v7056_v34 = vld [vmem:[%s9756_s20 + $0x30] sm:$0xff] }
 0x61b   :  { %v4217_v33 = vpop.f32.mrf.mxu0  ;;  %v3779_v26 = vsel %vm3731_vm5, %v3704_v38, %v3755_v49 }
 0x61c   :  { %v4218_v42 = vadd.f32 %v7216_v28, %v4217_v33  ;;  %v3625_v6 = vpop.f32.mrf.mxu3  ;;  %3952 = vmatmul.bf16.gmra.mxu2 %v3794_v23  ;;  %4639 = vmatpush.bf16.msrb.mxu3 %v7059_v30  ;;  %v7055_v30 = vld [vmem:[%s9756_s20 + $0x28] sm:$0xff] }
 0x61d   :  { %v3626_v36 = vadd.f32 %v3625_v6, %v3587_v8 }
 0x61e   :  { %vm4221_vm11 = vcmp.gt.f32.partialorder %v4218_v42, 0.0  ;;  %v4223_v25 = vmul.f32 0.2, %v4218_v42  ;;  %v3705_v29 = vpop.f32.mrf.mxu1 }
 0x61f   :  { %v3706_v22 = vadd.f32 %v3705_v29, %v3667_v47  ;;  %v3754_v11 = vmul.f32 0.2, %v3626_v36  ;;  %vm3730_vm8 = vcmp.gt.f32.partialorder %v3626_v36, 0.0 }
 0x620   :  { %v4225_v14 = vsel %vm4221_vm11, %v4218_v42, %v4223_v25  ;;  %4640 = vmatpush.bf16.msrb.mxu3 %v7058_v57 }
 0x621   :  { %v4226_v7 = vpack.c.bf16 %v4225_v14, %v4224_v32  ;;  %vm3733_vm7 = vcmp.gt.f32.partialorder %v3706_v22, 0.0  ;;  %v3757_v17 = vmul.f32 0.2, %v3706_v22  ;;  %v3778_v51 = vsel %vm3730_vm8, %v3626_v36, %v3754_v11  ;;  %v3596_v47 = vpop.f32.mrf.mxu2 }
 0x622   :  { %v4382_v11 = vperm.slane %v9275_v31, 1 }
 0x623   :  { %6514 = vmatmul.msk.bf16.vlgmr.msra.gmra.mxu0 %vm4263_vm6, %v4226_v7  ;;  %v3781_v12 = vsel %vm3733_vm7, %v3706_v22, %v3757_v17  ;;  %v3677_v22 = vadd.f32 %v9241_v56, %v9219_v24 }
 0x624   :  { %v3627_v50 = vpop.f32.mrf.mxu3  ;;  %v3797_v3 = vpack.c.bf16 %v3781_v12, %v3779_v26  ;;  %4439 = vmatpush.bf16.msra.mxu0 %v6526_v39  ;;  %v3597_v39 = vadd.f32 %v3596_v47, %v9222_v0 }
 0x625   :  { %v3628_v61 = vadd.f32 %v3627_v50, %v3589_v5 }
 0x626   :  { %v3708_v28 = vpop.f32.mrf.mxu1  ;;  %3996 = vmatmul.bf16.gmra.mxu3 %v3797_v3 }
 0x627   :  { %vm3732_vm9 = vcmp.gt.f32.partialorder %v3628_v61, 0.0  ;;  %v3756_v15 = vmul.f32 0.2, %v3628_v61  ;;  %v3709_v27 = vadd.f32 %v3708_v28, %v3670_v16 }
 0x629   :  { %v3780_v35 = vsel %vm3732_vm9, %v3628_v61, %v3756_v15  ;;  %v3759_v63 = vmul.f32 0.2, %v3709_v27  ;;  %vm3735_vm10 = vcmp.gt.f32.partialorder %v3709_v27, 0.0  ;;  %v3598_v17 = vpop.f32.mrf.mxu2 }
 0x62a   :  { %v3796_v55 = vpack.c.bf16 %v3780_v35, %v3778_v51  ;;  %v3599_v5 = vadd.f32 %v3598_v17, %v9222_v0 }
 0x62b   :  { %v3783_v23 = vsel %vm3735_vm10, %v3709_v27, %v3759_v63 }
 0x62c   :  { %v3630_v20 = vpop.f32.mrf.mxu3  ;;  %3957 = vmatmul.bf16.gmra.mxu2 %v3796_v55  ;;  %v7057_v55 = vld [vmem:[%s9756_s20 + $0x38] sm:$0xff] }
 0x62d   :  { %v3631_v62 = vadd.f32 %v3630_v20, %v3592_v59  ;;  %4620 = vmatpush.bf16.msrb.mxu2 %v7057_v55  ;;  %v9283_v20 = vld [vmem:[#allocation20] ss:$0 sm:$0xff] }
 0x62e   :  { %v3710_v37 = vpop.f32.mrf.mxu1 }
 0x62f   :  { %v3711_v54 = vadd.f32 %v3710_v37, %v3672_v2  ;;  %v3758_v42 = vmul.f32 0.2, %v3631_v62  ;;  %vm3734_vm5 = vcmp.gt.f32.partialorder %v3631_v62, 0.0 }
 0x631   :  { %vm3737_vm11 = vcmp.gt.f32.partialorder %v3711_v54, 0.0  ;;  %v3761_v46 = vmul.f32 0.2, %v3711_v54  ;;  %v3782_v32 = vsel %vm3734_vm5, %v3631_v62, %v3758_v42  ;;  %4621 = vmatpush.bf16.msrb.mxu2 %v7056_v34  ;;  %v7053_v62 = vld [vmem:[%s9756_s20 + $0x18] sm:$0xff] }
 0x633   :  { %6527 = vmatmul.msk.bf16.vlgmr.msrb.gmra.mxu0 %vm4361_vm4, %v9206_v21  ;;  %v3785_v38 = vsel %vm3737_vm11, %v3711_v54, %v3761_v46  ;;  %v7054_v54 = vld [vmem:[%s9756_s20 + $0x20] sm:$0xff] }
 0x634   :  { %v3632_v53 = vpop.f32.mrf.mxu3  ;;  %v3799_v33 = vpack.c.bf16 %v3785_v38, %v3783_v23  ;;  %v7052_v38 = vld [vmem:[%s9756_s20 + $0x10] sm:$0xff] }
 0x635   :  { %v3633_v6 = vadd.f32 %v3632_v53, %v3594_v60  ;;  %4622 = vmatpush.bf16.msrb.mxu2 %v7055_v30  ;;  %v4383_v30 = vperm.slane %v9275_v31, 2 }
 0x636   :  { %v3713_v45 = vpop.f32.mrf.mxu1  ;;  %4001 = vmatmul.bf16.gmra.mxu3 %v3799_v33  ;;  %v7051_v33 = vld [vmem:[%s9756_s20 + $0x8] sm:$0xff] }
 0x637   :  { %vm3736_vm7 = vcmp.gt.f32.partialorder %v3633_v6, 0.0  ;;  %v3760_v10 = vmul.f32 0.2, %v3633_v6  ;;  %v3714_v8 = vadd.f32 %v3713_v45, %v3675_v4  ;;  %v7050_v45 = vld [vmem:[%s9756_s20] sm:$0xff] }
 0x639   :  { %v3784_v25 = vsel %vm3736_vm7, %v3633_v6, %v3760_v10  ;;  %v3763_v7 = vmul.f32 0.2, %v3714_v8  ;;  %vm3739_vm8 = vcmp.gt.f32.partialorder %v3714_v8, 0.0  ;;  %4623 = vmatpush.bf16.msrb.mxu2 %v7054_v54  ;;  %vm4616_vm7 = vcmask 1045504  }
 0x63a   :  { %v3798_v29 = vpack.c.bf16 %v3784_v25, %v3782_v32  ;;  %v6604_v25 = vld [vmem:[%s9756_s20 + $0x90] sm:$0xf] }
 0x63b   :  { %v3787_v26 = vsel %vm3739_vm8, %v3714_v8, %v3763_v7  ;;  %v7067_v7 = vld [vmem:[%s9756_s20 + $0x88] sm:$0xff] }
 0x63c   :  { %v3635_v49 = vpop.f32.mrf.mxu3  ;;  %3962 = vmatmul.bf16.gmra.mxu2 %v3798_v29  ;;  %v7068_v29 = vld [vmem:[%s9756_s20 + $0x90] sm:$0x30] }
 0x63d   :  { %v3636_v40 = vadd.f32 %v3635_v49, %v3597_v39  ;;  %4624 = vmatpush.bf16.msrb.mxu2 %v7053_v62  ;;  %v6605_v49 = vor.u32 %v7068_v29, %v6604_v25  ;;  %v7218_v39 = vld [vmem:[#allocation26] ss:$0 sm:$0xff] }
 0x63e   :  { %v3715_v14 = vpop.f32.mrf.mxu1 }
 0x63f   :  { %v3716_v36 = vadd.f32 %v3715_v14, %v3677_v22  ;;  %v3762_v50 = vmul.f32 0.2, %v3636_v40  ;;  %vm3738_vm10 = vcmp.gt.f32.partialorder %v3636_v40, 0.0  ;;  %v4618_v22 = vsel %vm4616_vm7, %v6605_v49, 0 }
 0x640   :  { %4651 = vmatpush.bf16.msra.mxu1 %v4618_v22 }
 0x641   :  { %vm3741_vm9 = vcmp.gt.f32.partialorder %v3716_v36, 0.0  ;;  %v3765_v9 = vmul.f32 0.2, %v3716_v36  ;;  %v3786_v0 = vsel %vm3738_vm10, %v3636_v40, %v3762_v50  ;;  %4625 = vmatpush.bf16.msrb.mxu2 %v7052_v38  ;;  %vm4612_vm10 = vcmask 359424  }
 0x643   :  { %6529 = vmatmul.msk.bf16.vlgmr.msra.gmra.mxu0 %vm4361_vm4, %v9206_v21  ;;  %v3789_v12 = vsel %vm3741_vm9, %v3716_v36, %v3765_v9 }
 0x644   :  { %v3637_v24 = vpop.f32.mrf.mxu3  ;;  %v3801_v56 = vpack.c.bf16 %v3789_v12, %v3787_v26  ;;  %4652 = vmatpush.bf16.msra.mxu1 %v7067_v7  ;;  %v7066_v26 = vld [vmem:[%s9756_s20 + $0x80] sm:$0xff] }
 0x645   :  { %v3638_v3 = vadd.f32 %v3637_v24, %v3599_v5  ;;  %4626 = vmatpush.bf16.msrb.mxu2 %v7051_v33 }
 0x646   :  { %4006 = vmatmul.bf16.gmra.mxu3 %v3801_v56  ;;  %v4428_v61 = vpop.f32.mrf.mxu1 }
 0x647   :  { %vm3740_vm11 = vcmp.gt.f32.partialorder %v3638_v3, 0.0  ;;  %v3764_v18 = vmul.f32 0.2, %v3638_v3  ;;  %v4429_v28 = vadd.f32 %v4428_v61, %v4382_v11  ;;  %v4381_v11 = vperm.slane %v9275_v31, 0 }
 0x648   :  { %4653 = vmatpush.bf16.msra.mxu1 %v7066_v26 }
 0x649   :  { %v3788_v15 = vsel %vm3740_vm11, %v3638_v3, %v3764_v18  ;;  %v4449_v16 = vmul.f32 0.2, %v4429_v28  ;;  %vm4446_vm5 = vcmp.gt.f32.partialorder %v4429_v28, 0.0  ;;  %4627 = vmatpush.bf16.msrb.mxu2 %v7050_v45 }
 0x64a   :  { %v3800_v21 = vpack.c.bf16 %v3788_v15, %v3786_v0 }
 0x64b   :  { %v4452_v35 = vsel %vm4446_vm5, %v4429_v28, %v4449_v16  ;;  %vm4723_vm5 = vcmask 1041408  }
 0x64c   :  { %3967 = vmatmul.bf16.gmra.mxu2 %v3800_v21  ;;  %v4455_v43 = vpack.c.bf16 %v4452_v35, %v4452_v35 }
 0x64e   :  { %v4430_v51 = vpop.f32.mrf.mxu1 }
 0x656   :  { %4641 = vmatmul.bf16.vlgmr.msrb.gmra.mxu3 %v4455_v43 }
 0x679   :  { %v3982_v27 = vpop.f32.mrf.mxu3 }
 0x67f   :  { %v3943_v2 = vpop.f32.mrf.mxu2 }
 0x680   :  { %v3944_v37 = vadd.f32 %v9283_v20, %v3943_v2 }
 0x681   :  { %v3984_v59 = vpop.f32.mrf.mxu3 }
 0x682   :  { %v9287_v63 = vadd.f32 %v3982_v27, %v3944_v37 }
 0x687   :  { %v3945_v57 = vpop.f32.mrf.mxu2 }
 0x688   :  { %v3946_v46 = vadd.f32 %v9283_v20, %v3945_v57 }
 0x689   :  { %v3987_v60 = vpop.f32.mrf.mxu3 }
 0x68a   :  { %v9292_v23 = vadd.f32 %v3984_v59, %v3946_v46 }
 0x68c   :  { %4321 = vrot.lane.b32.xlu1 %v9292_v23, %s8043_s0 }
 0x68f   :  { %v3948_v53 = vpop.f32.mrf.mxu2 }
 0x690   :  { %v3949_v42 = vadd.f32 %v9283_v20, %v3948_v53 }
 0x691   :  { %v3989_v6 = vpop.f32.mrf.mxu3 }
 0x692   :  { %v9299_v47 = vadd.f32 %v3987_v60, %v3949_v42 }
 0x694   :  { %4324 = vrot.lane.b32.xlu2 %v9299_v47, %s8025_s1 }
 0x697   :  { %v3950_v10 = vpop.f32.mrf.mxu2 }
 0x698   :  { %v3951_v4 = vadd.f32 %v9283_v20, %v3950_v10 }
 0x699   :  { %v3992_v32 = vpop.f32.mrf.mxu3 }
 0x69a   :  { %v9307_v8 = vadd.f32 %v3989_v6, %v3951_v4 }
 0x69c   :  { %4327 = vrot.lane.b32.xlu0 %v9307_v8, %s8044_s12 }
 0x69f   :  { %v3953_v14 = vpop.f32.mrf.mxu2 }
 0x6a0   :  { %v3954_v36 = vadd.f32 %v9283_v20, %v3953_v14  ;;  %v4276_v17 = vpop.f32.mrf.mxu0 }
 0x6a1   :  { %v9314_v40 = vadd.f32 %v7218_v39, %v4276_v17  ;;  %v3994_v9 = vpop.f32.mrf.mxu3 }
 0x6a2   :  { %v9316_v5 = vadd.f32 %v3992_v32, %v3954_v36 }
 0x6a4   :  { %4330 = vrot.lane.b32.xlu1 %v9316_v5, %s8016_s22 }
 0x6a7   :  { %v3955_v12 = vpop.f32.mrf.mxu2 }
 0x6a8   :  { %v3956_v24 = vadd.f32 %v9283_v20, %v3955_v12  ;;  %v4278_v56 = vpop.f32.mrf.mxu0 }
 0x6a9   :  { %v3997_v50 = vpop.f32.mrf.mxu3  ;;  %v4279_v6 = vadd.f32 %v7218_v39, %v4278_v56  ;;  %v7073_v56 = vld [vmem:[%s9757_s16 + $0x20] sm:$0xff] }
 0x6aa   :  { %v9322_v3 = vadd.f32 %v3994_v9, %v3956_v24  ;;  %v7074_v24 = vld [vmem:[%s9757_s16 + $0x28] sm:$0xff] }
 0x6ab   :  { %v4284_v4 = vmul.f32 0.2, %v4279_v6  ;;  %vm4282_vm11 = vcmp.gt.f32.partialorder %v4279_v6, 0.0 }
 0x6ac   :  { %4333 = vrot.lane.b32.xlu2 %v9322_v3, %s8045_s11 }
 0x6ad   :  { %v4286_v49 = vsel %vm4282_vm11, %v4279_v6, %v4284_v4 }
 0x6af   :  { %v3958_v61 = vpop.f32.mrf.mxu2 }
 0x6b0   :  { %v3959_v18 = vadd.f32 %v9283_v20, %v3958_v61  ;;  %v4415_v28 = vpop.f32.mrf.mxu0 }
 0x6b1   :  { %v4416_v0 = vadd.f32 %v4415_v28, %v4381_v11  ;;  %v3999_v15 = vpop.f32.mrf.mxu3  ;;  %v4757_v11 = vld [vmem:[#allocation34 + $0x20] sm:$0xf] }
 0x6b2   :  { %v9328_v21 = vadd.f32 %v3997_v50, %v3959_v18  ;;  %v4756_v50 = vld [vmem:[#allocation34 + $0x18] sm:$0xff]  ;;  %v4780_v18 = vunpack.c.l.b16 %v4757_v11 }
 0x6b3   :  { %vm4445_vm8 = vcmp.gt.f32.partialorder %v4416_v0, 0.0  ;;  %v4448_v16 = vmul.f32 0.2, %v4416_v0  ;;  %v4779_v61 = vunpack.c.h.b16 %v4756_v50  ;;  %v7072_v28 = vld [vmem:[%s9757_s16 + $0x18] sm:$0xff] }
 0x6b4   :  { %4336 = vrot.lane.b32.xlu0 %v9328_v21, %s8037_s24 }
 0x6b5   :  { %v4451_v51 = vsel %vm4445_vm8, %v4416_v0, %v4448_v16  ;;  %v4786_v16 = vpack.c.b16 %v4780_v18, %v4780_v18 }
 0x6b6   :  { %v4454_v35 = vpack.c.bf16 %v4451_v51, %v4451_v51  ;;  %v4778_v51 = vunpack.c.l.b16 %v4756_v50 }
 0x6b7   :  { %v3960_v43 = vpop.f32.mrf.mxu2 }
 0x6b8   :  { %v3961_v55 = vadd.f32 %v9283_v20, %v3960_v43  ;;  %v4417_v27 = vpop.f32.mrf.mxu0  ;;  %4628 = vmatmul.bf16.vlgmr.msrb.gmra.mxu2 %v4454_v35  ;;  %v4801_v43 = vsel %vm584_vm0, %v4786_v16, 0 }
 0x6b9   :  { %v4002_v34 = vpop.f32.mrf.mxu3  ;;  %4835 = vmatpush.bf16.msra.mxu3 %v4801_v43  ;;  %v4784_v27 = vpack.c.b16 %v4778_v51, %v4778_v51 }
 0x6ba   :  { %v9333_v2 = vadd.f32 %v3999_v15, %v3961_v55  ;;  %v4785_v15 = vpack.c.b16 %v4779_v61, %v4779_v61  ;;  %v7071_v55 = vld [vmem:[%s9757_s16 + $0x10] sm:$0xff] }
 0x6bc   :  { %4339 = vrot.lane.b32.xlu1 %v9333_v2, %s8046_s3  ;;  %v4798_v35 = vsel %vm584_vm0, %v4785_v15, 0 }
 0x6bd   :  { %4822 = vmatpush.bf16.msra.mxu2 %v4798_v35 }
 0x6bf   :  { %v3963_v37 = vpop.f32.mrf.mxu2 }
 0x6c0   :  { %v3964_v59 = vadd.f32 %v9283_v20, %v3963_v37  ;;  %v4441_v54 = vpop.f32.mrf.mxu0 }
 0x6c1   :  { %v4442_v57 = vadd.f32 %v4441_v54, %v4383_v30  ;;  %v4004_v62 = vpop.f32.mrf.mxu3  ;;  %v7070_v30 = vld [vmem:[%s9757_s16 + $0x8] sm:$0xff] }
 0x6c2   :  { %v9339_v46 = vadd.f32 %v4002_v34, %v3964_v59  ;;  %v4795_v34 = vsel %vm584_vm0, %v4784_v27, 0  ;;  %v7075_v59 = vld [vmem:[#allocation34 + $0x4] sm:$0xf]  ;;  %v6636_v54 = vld [vmem:[#allocation34 + $0xc] sm:$0xf0]  ;;  %vm4363_vm0 = vcmask 146432  }
 0x6c3   :  { %vm4447_vm9 = vcmp.gt.f32.partialorder %v4442_v57, 0.0  ;;  %v4450_v60 = vmul.f32 0.2, %v4442_v57  ;;  %4809 = vmatpush.bf16.msrb.mxu1 %v4795_v34 }
 0x6c4   :  { %4342 = vrot.lane.b32.xlu2 %v9339_v46, %s8047_s10 }
 0x6c5   :  { %v4453_v38 = vsel %vm4447_vm9, %v4442_v57, %v4450_v60  ;;  %v6642_v57 = vld [vmem:[#allocation34 + $0x8] sm:$0xf]  ;;  %v7077_v60 = vld [vmem:[#allocation34 + $0x10] sm:$0xf0] }
 0x6c6   :  { %v4456_v53 = vpack.c.bf16 %v4453_v38, %v4453_v38  ;;  %v6634_v38 = vld [vmem:[#allocation34] sm:$0xf] }
 0x6c7   :  { %v3965_v33 = vpop.f32.mrf.mxu2 }
 0x6c8   :  { %v3966_v31 = vadd.f32 %v9283_v20, %v3965_v33  ;;  %v4443_v42 = vpop.f32.mrf.mxu0  ;;  %6606 = vmatmul.msk.bf16.vlgmr.msra.gmra.mxu1 %vm4612_vm10, %v4456_v53  ;;  %v6643_v53 = vor.u32 %v7077_v60, %v6642_v57  ;;  %v7076_v33 = vld [vmem:[#allocation34 + $0x8] sm:$0xf0] }
 0x6c9   :  { %v4007_v45 = vpop.f32.mrf.mxu3  ;;  %v7069_v42 = vld [vmem:[%s9757_s16] sm:$0xff] }
 0x6ca   :  { %v9345_v10 = vadd.f32 %v4004_v62, %v3966_v31  ;;  %v6639_v62 = vor.u32 %v7075_v59, %v6636_v54  ;;  %v6635_v31 = vor.u32 %v7076_v33, %v6634_v38  ;;  %4836 = vmatpush.bf16.msra.mxu3 %v6643_v53 }
 0x6cc   :  { %4345 = vrot.lane.b32.xlu0 %v9345_v10, %s8048_s15  ;;  %4823 = vmatpush.bf16.msra.mxu2 %v6639_v62 }
 0x6cd   :  { %4810 = vmatpush.bf16.msrb.mxu1 %v6635_v31 }
 0x6cf   :  { %v3968_v32 = vpop.f32.mrf.mxu2 }
 0x6d0   :  { %v3969_v25 = vadd.f32 %v9283_v20, %v3968_v32 }
 0x6d1   :  { %v4009_v29 = vpop.f32.mrf.mxu3 }
 0x6d2   :  { %v9350_v22 = vadd.f32 %v4007_v45, %v3969_v25 }
 0x6d4   :  { %4348 = vrot.lane.b32.xlu1 %v9350_v22, %s8049_s5  ;;  %4370 = vrot.lane.b32.xlu0 %v4286_v49, %s8024_s26  ;;  %s8052_s26 = smov 127  }
 0x6d7   :  { %v3970_v14 = vpop.f32.mrf.mxu2 }
 0x6d8   :  { %v3971_v39 = vadd.f32 %v9283_v20, %v3970_v14  ;;  %v4675_v20 = vld [vmem:[%s9757_s16 + $0x30] sm:$0x3] }
 0x6d9   :  { %v9356_v7 = vpop.f32.mrf.mxu3  ;;  %v4705_v9 = vunpack.c.l.b16 %v4675_v20  ;;  %v7219_v20 = vld [vmem:[#allocation31] ss:$0 sm:$0xff] }
 0x6da   :  { %v9358_v36 = vadd.f32 %v4009_v29, %v3971_v39 }
 0x6db   :  { %v4712_v26 = vpack.c.b16 %v4705_v9, %v4705_v9 }
 0x6dc   :  { %4351 = vrot.lane.b32.xlu2 %v9358_v36, %s8050_s18  ;;  %2075 = vrot.lane.b32.xlu0 %v8935_v41, %s8051_s17 }
 0x6dd   :  { %2071 = vrot.lane.b32.xlu1 %v8916_v48, %s8051_s17  ;;  %v4725_v12 = vsel %vm4723_vm5, %v4712_v26, 0 }
 0x6de   :  { %4728 = vmatpush.bf16.msrb.mxu0 %v4725_v12 }
 0x6e1   :  { %v4644_v17 = vpop.f32.mrf.mxu3 }
 0x6e2   :  { %4729 = vmatpush.bf16.msrb.mxu0 %v7074_v24 }
 0x6e4   :  { %2073 = vrot.lane.b32.xlu2 %v8926_v13, %s8051_s17  ;;  %2081 = vrot.lane.b32.xlu0 %v8958_v52, %s8051_s17 }
 0x6e5   :  { %2077 = vrot.lane.b32.xlu1 %v8946_v58, %s8051_s17 }
 0x6e6   :  { %4730 = vmatpush.bf16.msrb.mxu0 %v7073_v56 }
 0x6ea   :  { %4731 = vmatpush.bf16.msrb.mxu0 %v7072_v28 }
 0x6ec   :  { %2079 = vrot.lane.b32.xlu2 %v8951_v1, %s8051_s17 }
 0x6ed   :  { %2083 = vrot.lane.b32.xlu1 %v8963_v19, %s8051_s17 }
 0x6ee   :  { %v4325_v0 = vpop.permute.xlu2 %4324  ;;  %4732 = vmatpush.bf16.msrb.mxu0 %v7071_v55 }
 0x6f2   :  { %4733 = vmatpush.bf16.msrb.mxu0 %v7070_v30 }
 0x6f4   :  { %2085 = vrot.lane.b32.xlu2 %v8970_v44, %s8051_s17 }
 0x6f6   :  { %4734 = vmatpush.bf16.msrb.mxu0 %v7069_v42 }
 0x6fe   :  { %v4322_v6 = vpop.permute.xlu1 %4321 }
 0x6ff   :  { %v4354_v49 = vsel %vm4308_vm12, %v9287_v63, %v4322_v6 }
 0x700   :  { %v4355_v14 = vsel %vm4310_vm13, %v4354_v49, %v4325_v0  ;;  %v4283_v0 = vmul.f32 0.2, %v9314_v40  ;;  %vm4281_vm13 = vcmp.gt.f32.partialorder %v9314_v40, 0.0 }
 0x706   :  { %v4334_v37 = vpop.permute.xlu2 %4333 }
 0x70e   :  { %v4328_v45 = vpop.permute.xlu0 %4327 }
 0x70f   :  { %v4356_v17 = vsel %vm4312_vm14, %v4355_v14, %v4328_v45  ;;  %vm4365_vm14 = vcmask 162816  }
 0x716   :  { %v4331_v32 = vpop.permute.xlu1 %4330 }
 0x717   :  { %v4357_v9 = vsel %vm571_vm1, %v4356_v17, %v4331_v32 }
 0x718   :  { %v4358_v50 = vsel %vm4315_vm15, %v4357_v9, %v4334_v37  ;;  %vm4367_vm15 = vcmask 179200   ;;  %v4285_v37 = vsel %vm4281_vm13, %v9314_v40, %v4283_v0  ;;  %vm5384_vm13 = vcmask 64560  }
 0x71e   :  { %v4343_v4 = vpop.permute.xlu2 %4342 }
 0x726   :  { %v4337_v25 = vpop.permute.xlu0 %4336 }
 0x727   :  { %v4359_v61 = vsel %vm4317_vm2, %v4358_v50, %v4337_v25 }
 0x72e   :  { %v4340_v26 = vpop.permute.xlu1 %4339 }
 0x72f   :  { %v4360_v28 = vsel %vm4319_vm3, %v4359_v61, %v4340_v26  ;;  %vm4790_vm3 = vcmask 195584  }
 0x736   :  { %v4352_v29 = vpop.permute.xlu2 %4351 }
 0x73b   :  { %v4629_v39 = vpop.f32.mrf.mxu2 }
 0x73c   :  { %v4630_v11 = vadd.f32 %v7219_v20, %v4629_v39 }
 0x73e   :  { %v2074_v12 = vpop.permute.xlu2 %2073  ;;  %v4346_v24 = vpop.permute.xlu0 %4345  ;;  %v4643_v16 = vadd.f32 %v9356_v7, %v4630_v11 }
 0x73f   :  { %v2096_v56 = vsub.f32 %v8926_v13, %v2074_v12  ;;  %v4362_v13 = vsel %vm4361_vm4, %v4360_v28, %v4343_v4  ;;  %vm4719_vm4 = vcmask 818176  }
 0x740   :  { %v4364_v35 = vsel %vm4363_vm0, %v4362_v13, %v4346_v24  ;;  %vm5378_vm0 = vcmask 48160  }
 0x741   :  { %v2105_v18 = vmul.f32 1.442695, %v2096_v56 }
 0x743   :  { %7226 = vpow2.f32 %v2105_v18  ;;  %v4631_v15 = vpop.f32.mrf.mxu2 }
 0x745   :  { %v4655_v51 = vpop.f32.mrf.mxu1 }
 0x746   :  { %v4656_v43 = vadd.f32 %v4655_v51, %v4643_v16  ;;  %v4349_v55 = vpop.permute.xlu1 %4348  ;;  %v2080_v27 = vpop.permute.xlu2 %2079 }
 0x747   :  { %v4366_v34 = vsel %vm4365_vm14, %v4364_v35, %v4349_v55  ;;  %v2099_v30 = vsub.f32 %v8951_v1, %v2080_v27  ;;  %v4371_v59 = vpop.permute.xlu0 %4370  ;;  %vm5390_vm14 = vcmask 80960  }
 0x748   :  { %vm4659_vm8 = vcmp.gt.f32.partialorder %v4656_v43, 0.0  ;;  %v4660_v54 = vmul.f32 0.2, %v4656_v43  ;;  %v4368_v57 = vsel %vm4367_vm15, %v4366_v34, %v4352_v29  ;;  %v9405_v7 = vsel %vm4263_vm6, %v4285_v37, %v4371_v59  ;;  %v7085_v37 = vld [vmem:[#allocation35 + $0x38] sm:$0xff] }
 0x749   :  { %v7227_v62 = vpop.eup %7226  ;;  %v4751_v60 = vpack.c.bf16 %v4368_v57, %v4368_v57  ;;  %v2111_v38 = vmul.f32 1.442695, %v2099_v30  ;;  %v7093_v59 = vld [vmem:[#allocation35 + $0x78] sm:$0xff]  ;;  %5015 = vmatpush.bf16.msra.mxu1 %v7085_v37  ;;  %v7092_v57 = vld [vmem:[#allocation35 + $0x70] sm:$0xff]  ;;  %vm2175_vm6 = vcmask 7168   ;;  %vm5396_vm15 = vcmask 97360  }
 0x74a   :  { %v2120_v53 = vadd.f32 1.0, %v7227_v62  ;;  %v4661_v33 = vsel %vm4659_vm8, %v4656_v43, %v4660_v54  ;;  %v7084_v54 = vld [vmem:[#allocation35 + $0x30] sm:$0xff]  ;;  %5028 = vmatpush.bf16.msrb.mxu2 %v7093_v59  ;;  %v7083_v62 = vld [vmem:[#allocation35 + $0x28] sm:$0xff]  ;;  %vm5408_vm8 = vcmask 130160  }
 0x74b   :  { %v4662_v31 = vpack.c.bf16 %v4661_v33, %v4661_v33  ;;  %7228 = vpow2.f32 %v2111_v38  ;;  %6644 = vmatmul.msk.bf16.vlgmr.msrb.gmra.mxu1 %vm4790_vm3, %v4751_v60  ;;  %6645 = vmatmul.msk.bf16.vlgmr.msra.gmra.mxu2 %vm4790_vm3, %v4751_v60  ;;  %v6721_v38 = vld [vmem:[#allocation35 + $0x90] sm:$0xf] }
 0x74c   :  { %7230 = vrcp.f32 %v2120_v53  ;;  %6646 = vmatmul.msk.bf16.vlgmr.msra.gmra.mxu3 %vm4790_vm3, %v4751_v60  ;;  %v7082_v60 = vld [vmem:[#allocation35 + $0x20] sm:$0xff]  ;;  %v7096_v53 = vld [vmem:[#allocation35 + $0x90] sm:$0x30]  ;;  %vm5402_vm3 = vcmask 113760  }
 0x74d   :  { %v4657_v1 = vpop.f32.mrf.mxu1  ;;  %6631 = vmatmul.msk.bf16.vlgmr.msrb.gmra.mxu0 %vm4719_vm4, %v4662_v31  ;;  %5016 = vmatpush.bf16.msra.mxu1 %v7084_v54  ;;  %v6722_v33 = vor.u32 %v7096_v53, %v6721_v38  ;;  %v7091_v31 = vld [vmem:[#allocation35 + $0x68] sm:$0xff] }
 0x74e   :  { %v2086_v40 = vpop.permute.xlu2 %2085  ;;  %5029 = vmatpush.bf16.msrb.mxu2 %v7092_v57  ;;  %v7081_v1 = vld [vmem:[#allocation35 + $0x18] sm:$0xff] }
 0x74f   :  { %v2102_v42 = vsub.f32 %v8970_v44, %v2086_v40  ;;  %v2076_v6 = vpop.permute.xlu0 %2075  ;;  %v2072_v45 = vpop.permute.xlu1 %2071  ;;  %v5013_v40 = vsel %vm4616_vm7, %v6722_v33, 0 }
 0x750   :  { %v2097_v4 = vsub.f32 %v8935_v41, %v2076_v6  ;;  %v2095_v32 = vsub.f32 %v8916_v48, %v2072_v45  ;;  %5046 = vmatpush.bf16.msrb.mxu3 %v5013_v40  ;;  %v7095_v6 = vld [vmem:[#allocation35 + $0x88] sm:$0xff]  ;;  %v7080_v45 = vld [vmem:[#allocation35 + $0x10] sm:$0xff] }
 0x751   :  { %v7229_v25 = vpop.eup %7228  ;;  %v2117_v29 = vmul.f32 1.442695, %v2102_v42  ;;  %5017 = vmatpush.bf16.msra.mxu1 %v7083_v62  ;;  %v7090_v42 = vld [vmem:[#allocation35 + $0x60] sm:$0xff] }
 0x752   :  { %v9414_v49 = vpop.eup %7230  ;;  %v2123_v14 = vadd.f32 1.0, %v7229_v25  ;;  %v2107_v39 = vmul.f32 1.442695, %v2097_v4  ;;  %v2103_v17 = vmul.f32 1.442695, %v2095_v32  ;;  %5030 = vmatpush.bf16.msrb.mxu2 %v7091_v31  ;;  %v7094_v4 = vld [vmem:[#allocation35 + $0x80] sm:$0xff] }
 0x753   :  { %7232 = vpow2.f32 %v2117_v29  ;;  %2153 = vrot.lane.b32.xlu1 %v9414_v49, %s8052_s26  ;;  %v7089_v32 = vld [vmem:[#allocation35 + $0x58] sm:$0xff]  ;;  %v7079_v29 = vld [vmem:[#allocation35 + $0x8] sm:$0xff] }
 0x754   :  { %7234 = vrcp.f32 %v2123_v14  ;;  %5047 = vmatpush.bf16.msrb.mxu3 %v7095_v6  ;;  %v7110_v25 = vld [vmem:[%s9758_s23 + $0x38] sm:$0xff] }
 0x755   :  { %7236 = vpow2.f32 %v2107_v39  ;;  %5018 = vmatpush.bf16.msra.mxu1 %v7082_v60  ;;  %v7088_v14 = vld [vmem:[#allocation35 + $0x50] sm:$0xff] }
 0x756   :  { %7238 = vpow2.f32 %v2103_v17  ;;  %5031 = vmatpush.bf16.msrb.mxu2 %v7090_v42  ;;  %v7109_v39 = vld [vmem:[%s9758_s23 + $0x30] sm:$0xff]  ;;  %v7078_v17 = vld [vmem:[#allocation35] sm:$0xff] }
 0x757   :  { %v2082_v44 = vpop.permute.xlu0 %2081  ;;  %v2078_v20 = vpop.permute.xlu1 %2077 }
 0x758   :  { %v2100_v41 = vsub.f32 %v8958_v52, %v2082_v44  ;;  %v2098_v48 = vsub.f32 %v8946_v58, %v2078_v20  ;;  %5048 = vmatpush.bf16.msrb.mxu3 %v7094_v4  ;;  %v7087_v44 = vld [vmem:[#allocation35 + $0x48] sm:$0xff] }
 0x759   :  { %v7233_v9 = vpop.eup %7232  ;;  %5019 = vmatpush.bf16.msra.mxu1 %v7081_v1  ;;  %v7108_v20 = vld [vmem:[%s9758_s23 + $0x28] sm:$0xff] }
 0x75a   :  { %v9420_v26 = vpop.eup %7234  ;;  %v2126_v12 = vadd.f32 1.0, %v7233_v9  ;;  %v2113_v24 = vmul.f32 1.442695, %v2100_v41  ;;  %v2109_v61 = vmul.f32 1.442695, %v2098_v48  ;;  %5032 = vmatpush.bf16.msrb.mxu2 %v7089_v32  ;;  %v7086_v41 = vld [vmem:[#allocation35 + $0x40] sm:$0xff] }
 0x75b   :  { %v7237_v56 = vpop.eup %7236  ;;  %2159 = vrot.lane.b32.xlu1 %v9420_v26, %s8052_s26  ;;  %v7107_v48 = vld [vmem:[%s9758_s23 + $0x20] sm:$0xff]  ;;  %v7106_v9 = vld [vmem:[%s9758_s23 + $0x18] sm:$0xff]  ;;  %v2139_v54 = vsub.f32 1.0, %v9420_v26 }
 0x75c   :  { %v7239_v50 = vpop.eup %7238  ;;  %7240 = vrcp.f32 %v2126_v12  ;;  %v2121_v11 = vadd.f32 1.0, %v7237_v56  ;;  %5213 = vmatpush.bf16.msra.mxu3 %v7110_v25  ;;  %v7105_v12 = vld [vmem:[%s9758_s23 + $0x10] sm:$0xff] }
 0x75d   :  { %v2119_v18 = vadd.f32 1.0, %v7239_v50  ;;  %7242 = vpow2.f32 %v2113_v24  ;;  %5020 = vmatpush.bf16.msra.mxu1 %v7080_v45 }
 0x75e   :  { %7244 = vrcp.f32 %v2121_v11  ;;  %5033 = vmatpush.bf16.msrb.mxu2 %v7088_v14  ;;  %v4758_v11 = vld [vmem:[%s9759_s13] sm:$0x7] }
 0x75f   :  { %7246 = vrcp.f32 %v2119_v18  ;;  %v2084_v52 = vpop.permute.xlu1 %2083  ;;  %v2136_v18 = vsub.f32 1.0, %v9414_v49  ;;  %v4761_v49 = vperm.slane %v4758_v11, 1  ;;  %v4762_v59 = vperm.slane %v4758_v11, 2 }
 0x760   :  { %7248 = vpow2.f32 %v2109_v61  ;;  %v2101_v58 = vsub.f32 %v8963_v19, %v2084_v52  ;;  %5214 = vmatpush.bf16.msra.mxu3 %v7109_v39  ;;  %v7104_v61 = vld [vmem:[%s9758_s23 + $0x8] sm:$0xff] }
 0x761   :  { %5021 = vmatpush.bf16.msra.mxu1 %v7079_v29 }
 0x762   :  { %v9425_v28 = vpop.eup %7240  ;;  %v2115_v0 = vmul.f32 1.442695, %v2101_v58  ;;  %5034 = vmatpush.bf16.msrb.mxu2 %v7087_v44  ;;  %v4760_v58 = vperm.slane %v4758_v11, 0 }
 0x763   :  { %v7243_v15 = vpop.eup %7242  ;;  %2165 = vrot.lane.b32.xlu1 %v9425_v28, %s8052_s26  ;;  %v2142_v14 = vsub.f32 1.0, %v9425_v28 }
 0x764   :  { %v9429_v16 = vpop.eup %7244  ;;  %v2124_v13 = vadd.f32 1.0, %v7243_v15  ;;  %7250 = vpow2.f32 %v2115_v0  ;;  %5215 = vmatpush.bf16.msra.mxu3 %v7108_v20  ;;  %v7103_v0 = vld [vmem:[%s9758_s23] sm:$0xff] }
 0x765   :  { %v9431_v51 = vpop.eup %7246  ;;  %2155 = vrot.lane.b32.xlu2 %v9429_v16, %s8052_s26  ;;  %5022 = vmatpush.bf16.msra.mxu1 %v7078_v17  ;;  %v2137_v24 = vsub.f32 1.0, %v9429_v16 }
 0x766   :  { %v7249_v35 = vpop.eup %7248  ;;  %7252 = vrcp.f32 %v2124_v13  ;;  %2151 = vrot.lane.b32.xlu0 %v9431_v51, %s8052_s26  ;;  %5035 = vmatpush.bf16.msrb.mxu2 %v7086_v41  ;;  %v2135_v41 = vsub.f32 1.0, %v9431_v51 }
 0x767   :  { %v2122_v19 = vadd.f32 1.0, %v7249_v35 }
 0x768   :  { %5216 = vmatpush.bf16.msra.mxu3 %v7107_v48 }
 0x769   :  { %7254 = vrcp.f32 %v2122_v19 }
 0x76a   :  { %v7251_v43 = vpop.eup %7250 }
 0x76b   :  { %v2125_v55 = vadd.f32 1.0, %v7251_v43  ;;  %4028 = vrot.lane.b32.xlu1 %v9299_v47, %s8051_s17 }
 0x76c   :  { %v9439_v27 = vpop.eup %7252  ;;  %5217 = vmatpush.bf16.msra.mxu3 %v7106_v9 }
 0x76d   :  { %2161 = vrot.lane.b32.xlu2 %v9439_v27, %s8052_s26  ;;  %7256 = vrcp.f32 %v2125_v55  ;;  %v2140_v15 = vsub.f32 1.0, %v9439_v27 }
 0x76f   :  { %v9443_v34 = vpop.eup %7254 }
 0x770   :  { %2157 = vrot.lane.b32.xlu0 %v9443_v34, %s8052_s26  ;;  %5218 = vmatpush.bf16.msra.mxu3 %v7105_v12 }
 0x773   :  { %4034 = vrot.lane.b32.xlu1 %v9322_v3, %s8051_s17  ;;  %v9449_v30 = vpop.eup %7256 }
 0x774   :  { %5219 = vmatpush.bf16.msra.mxu3 %v7104_v61  ;;  %v2138_v61 = vsub.f32 1.0, %v9443_v34  ;;  %v2141_v34 = vsub.f32 1.0, %v9449_v30 }
 0x775   :  { %4024 = vrot.lane.b32.xlu2 %v9287_v63, %s8051_s17 }
 0x778   :  { %2163 = vrot.lane.b32.xlu0 %v9449_v30, %s8052_s26  ;;  %5220 = vmatpush.bf16.msra.mxu3 %v7103_v0 }
 0x77b   :  { %4040 = vrot.lane.b32.xlu1 %v9339_v46, %s8051_s17 }
 0x77d   :  { %4030 = vrot.lane.b32.xlu2 %v9307_v8, %s8051_s17 }
 0x780   :  { %4026 = vrot.lane.b32.xlu0 %v9292_v23, %s8051_s17 }
 0x785   :  { %4036 = vrot.lane.b32.xlu2 %v9328_v21, %s8051_s17 }
 0x788   :  { %4032 = vrot.lane.b32.xlu0 %v9316_v5, %s8051_s17 }
 0x78d   :  { %4042 = vrot.lane.b32.xlu2 %v9345_v10, %s8051_s17 }
 0x790   :  { %4038 = vrot.lane.b32.xlu0 %v9333_v2, %s8051_s17 }
 0x795   :  { %4046 = vrot.lane.b32.xlu2 %v9358_v36, %s8051_s17 }
 0x798   :  { %4044 = vrot.lane.b32.xlu0 %v9350_v22, %s8051_s17 }
 0x7bf   :  { %v2156_v56 = vpop.permute.xlu2 %2155 }
 0x7c0   :  { %v9482_v50 = vsel %vm2175_vm6, %v2156_v56, %v2137_v24 }
 0x7c5   :  { %v2154_v52 = vpop.permute.xlu1 %2153 }
 0x7c6   :  { %v9490_v13 = vsel %vm2175_vm6, %v2154_v52, %v2136_v18 }
 0x7c7   :  { %v2162_v35 = vpop.permute.xlu2 %2161 }
 0x7c8   :  { %v4812_v16 = vpop.f32.mrf.mxu1  ;;  %v9493_v19 = vsel %vm2175_vm6, %v2162_v35, %v2140_v15 }
 0x7c9   :  { %v4813_v43 = vadd.f32 %v4812_v16, %v4760_v58  ;;  %v5144_v58 = vpack.c.bf16 %v9405_v7, %v9405_v7 }
 0x7ca   :  { %v9495_v55 = vpop.f32.mrf.mxu0 }
 0x7cb   :  { %vm4842_vm7 = vcmp.gt.f32.partialorder %v4813_v43, 0.0  ;;  %v4845_v37 = vmul.f32 0.2, %v4813_v43 }
 0x7cd   :  { %v4848_v57 = vsel %vm4842_vm7, %v4813_v43, %v4845_v37  ;;  %v2160_v27 = vpop.permute.xlu1 %2159 }
 0x7ce   :  { %v4851_v62 = vpack.c.bf16 %v4848_v57, %v4848_v57  ;;  %v4825_v60 = vpop.f32.mrf.mxu2  ;;  %v9499_v38 = vsel %vm2175_vm6, %v2160_v27, %v2139_v54 }
 0x7cf   :  { %v4025_v53 = vpop.permute.xlu2 %4024  ;;  %v4826_v33 = vadd.f32 %v4825_v60, %v4761_v49  ;;  %v4838_v31 = vpop.f32.mrf.mxu3 }
 0x7d0   :  { %v4060_v1 = vsub.f32 %v9287_v63, %v4025_v53  ;;  %v4839_v40 = vadd.f32 %v4838_v31, %v4762_v59  ;;  %v4814_v42 = vpop.f32.mrf.mxu1  ;;  %5023 = vmatmul.bf16.vlgmr.msra.gmra.mxu1 %v4851_v62 }
 0x7d1   :  { %vm4843_vm9 = vcmp.gt.f32.partialorder %v4826_v33, 0.0  ;;  %v4846_v6 = vmul.f32 0.2, %v4826_v33 }
 0x7d2   :  { %v4072_v45 = vmul.f32 1.442695, %v4060_v1  ;;  %vm4844_vm11 = vcmp.gt.f32.partialorder %v4839_v40, 0.0  ;;  %v4847_v26 = vmul.f32 0.2, %v4839_v40  ;;  %v4738_v4 = vpop.f32.mrf.mxu0 }
 0x7d3   :  { %v4849_v32 = vsel %vm4843_vm9, %v4826_v33, %v4846_v6  ;;  %vm5420_vm9 = vcmask 162960  }
 0x7d4   :  { %7258 = vpow2.f32 %v4072_v45  ;;  %v4852_v25 = vpack.c.bf16 %v4849_v32, %v4849_v32  ;;  %v4850_v29 = vsel %vm4844_vm11, %v4839_v40, %v4847_v26  ;;  %vm5426_vm11 = vcmask 179360  }
 0x7d5   :  { %v4853_v39 = vpack.c.bf16 %v4850_v29, %v4850_v29  ;;  %v2166_v17 = vpop.permute.xlu1 %2165 }
 0x7d6   :  { %v4827_v44 = vpop.f32.mrf.mxu2  ;;  %5036 = vmatmul.bf16.vlgmr.msrb.gmra.mxu2 %v4852_v25  ;;  %v9504_v63 = vsel %vm2175_vm6, %v2166_v17, %v2142_v14 }
 0x7d7   :  { %v4031_v20 = vpop.permute.xlu2 %4030  ;;  %v4840_v48 = vpop.f32.mrf.mxu3  ;;  %6723 = vmatmul.msk.bf16.vlgmr.msrb.gmra.mxu3 %vm4612_vm10, %v4853_v39 }
 0x7d8   :  { %v2152_v9 = vpop.permute.xlu0 %2151  ;;  %v4063_v40 = vsub.f32 %v9307_v8, %v4031_v20 }
 0x7d9   :  { %v2176_v12 = vsel %vm2175_vm6, %v2152_v9, %v2135_v41 }
 0x7da   :  { %v7259_v24 = vpop.eup %7258  ;;  %5367 = vst.msk [vmem:[%s8276_s4] sm:$0xff] %vm4308_vm12, %v2176_v12  ;;  %v4078_v26 = vmul.f32 1.442695, %v4063_v40  ;;  %v7097_v40 = vld [vmem:[%s9760_s27] sm:$0xff] }
 0x7db   :  { %v4096_v28 = vadd.f32 1.0, %v7259_v24 }
 0x7dd   :  { %7260 = vrcp.f32 %v4096_v28  ;;  %v4029_v56 = vpop.permute.xlu1 %4028 }
 0x7df   :  { %v4037_v11 = vpop.permute.xlu2 %4036 }
 0x7e0   :  { %v4066_v42 = vsub.f32 %v9328_v21, %v4037_v11 }
 0x7e2   :  { %v2158_v18 = vpop.permute.xlu0 %2157  ;;  %v4084_v32 = vmul.f32 1.442695, %v4066_v42 }
 0x7e3   :  { %v9512_v52 = vpop.eup %7260  ;;  %v9515_v51 = vsel %vm2175_vm6, %v2158_v18, %v2138_v61 }
 0x7e4   :  { %4144 = vrot.lane.b32.xlu2 %v9512_v52, %s8052_s26 }
 0x7e5   :  { %v4035_v0 = vpop.permute.xlu1 %4034 }
 0x7e6   :  { %v4065_v15 = vsub.f32 %v9322_v3, %v4035_v0  ;;  %v4062_v3 = vsub.f32 %v9299_v47, %v4029_v56 }
 0x7e7   :  { %v4043_v35 = vpop.permute.xlu2 %4042  ;;  %5221 = vmatmul.bf16.vlgmr.msra.gmra.mxu3 %v5144_v58 }
 0x7e8   :  { %v4082_v16 = vmul.f32 1.442695, %v4065_v15  ;;  %v4076_v31 = vmul.f32 1.442695, %v4062_v3  ;;  %v4069_v21 = vsub.f32 %v9345_v10, %v4043_v35  ;;  %v4120_v3 = vsub.f32 1.0, %v9512_v52 }
 0x7ea   :  { %v2164_v43 = vpop.permute.xlu0 %2163  ;;  %7262 = vpow2.f32 %v4082_v16  ;;  %v4090_v41 = vmul.f32 1.442695, %v4069_v21 }
 0x7eb   :  { %v9524_v37 = vsel %vm2175_vm6, %v2164_v43, %v2141_v34 }
 0x7ed   :  { %v4041_v49 = vpop.permute.xlu1 %4040 }
 0x7ee   :  { %v4068_v59 = vsub.f32 %v9339_v46, %v4041_v49 }
 0x7ef   :  { %v4047_v54 = vpop.permute.xlu2 %4046 }
 0x7f0   :  { %v7263_v57 = vpop.eup %7262  ;;  %v4071_v7 = vsub.f32 %v9358_v36, %v4047_v54  ;;  %v4088_v27 = vmul.f32 1.442695, %v4068_v59  ;;  %v7102_v59 = vld [vmem:[%s9760_s27 + $0x28] sm:$0xff]  ;;  %v7101_v54 = vld [vmem:[%s9760_s27 + $0x20] sm:$0xff] }
 0x7f1   :  { %v4101_v62 = vadd.f32 1.0, %v7263_v57  ;;  %v7100_v57 = vld [vmem:[%s9760_s27 + $0x18] sm:$0xff] }
 0x7f2   :  { %v4094_v60 = vmul.f32 1.442695, %v4071_v7  ;;  %v4027_v53 = vpop.permute.xlu0 %4026  ;;  %7264 = vpow2.f32 %v4088_v27 }
 0x7f3   :  { %7266 = vrcp.f32 %v4101_v62  ;;  %v4061_v30 = vsub.f32 %v9292_v23, %v4027_v53 }
 0x7f4   :  { %7268 = vpow2.f32 %v4094_v60 }
 0x7f5   :  { %v4074_v33 = vmul.f32 1.442695, %v4061_v30 }
 0x7f7   :  { %7270 = vpow2.f32 %v4074_v33  ;;  %v7098_v33 = vld [vmem:[%s9760_s27 + $0x8] sm:$0xff] }
 0x7f8   :  { %v7265_v1 = vpop.eup %7264  ;;  %7272 = vpow2.f32 %v4076_v31  ;;  %v7220_v31 = vld [vmem:[#allocation32] ss:$0 sm:$0xff] }
 0x7f9   :  { %v9530_v46 = vpop.eup %7266  ;;  %v4104_v36 = vadd.f32 1.0, %v7265_v1  ;;  %v9600_v52 = vadd.f32 %v7220_v31, %v9495_v55  ;;  %v7221_v55 = vld [vmem:[#allocation37] ss:$0 sm:$0xff] }
 0x7fa   :  { %v4033_v47 = vpop.permute.xlu0 %4032  ;;  %4154 = vrot.lane.b32.xlu0 %v9530_v46, %s8052_s26  ;;  %v7269_v6 = vpop.eup %7268 }
 0x7fb   :  { %7274 = vrcp.f32 %v4104_v36  ;;  %v4064_v23 = vsub.f32 %v9316_v5, %v4033_v47  ;;  %v4107_v29 = vadd.f32 1.0, %v7269_v6 }
 0x7fd   :  { %v7271_v45 = vpop.eup %7270  ;;  %v4080_v4 = vmul.f32 1.442695, %v4064_v23  ;;  %v4740_v23 = vsel %vm571_vm1, %v9600_v52, -inf }
 0x7fe   :  { %v4097_v25 = vadd.f32 1.0, %v7271_v45  ;;  %v7273_v8 = vpop.eup %7272 }
 0x7ff   :  { %7276 = vpow2.f32 %v4080_v4  ;;  %v4098_v5 = vadd.f32 1.0, %v7273_v8 }
 0x800   :  { %7278 = vrcp.f32 %v4097_v25 }
 0x801   :  { %v9537_v14 = vpop.eup %7274  ;;  %7280 = vpow2.f32 %v4078_v26 }
 0x802   :  { %7282 = vpow2.f32 %v4084_v32  ;;  %v4039_v39 = vpop.permute.xlu0 %4038  ;;  %4160 = vrot.lane.b32.xlu0 %v9537_v14, %s8052_s26 }
 0x803   :  { %7284 = vrcp.f32 %v4107_v29  ;;  %v4067_v17 = vsub.f32 %v9333_v2, %v4039_v39 }
 0x804   :  { %7286 = vrcp.f32 %v4098_v5 }
 0x805   :  { %v7277_v44 = vpop.eup %7276  ;;  %v4086_v12 = vmul.f32 1.442695, %v4067_v17 }
 0x806   :  { %v9543_v20 = vpop.eup %7278  ;;  %v4100_v48 = vadd.f32 1.0, %v7277_v44 }
 0x807   :  { %v7281_v9 = vpop.eup %7280  ;;  %4146 = vrot.lane.b32.xlu2 %v9543_v20, %s8052_s26 }
 0x808   :  { %v7283_v10 = vpop.eup %7282  ;;  %7288 = vrcp.f32 %v4100_v48  ;;  %v4099_v2 = vadd.f32 1.0, %v7281_v9 }
 0x809   :  { %v9547_v24 = vpop.eup %7284  ;;  %7290 = vpow2.f32 %v4090_v41  ;;  %v4102_v28 = vadd.f32 1.0, %v7283_v10 }
 0x80a   :  { %4166 = vrot.lane.b32.xlu0 %v9547_v24, %s8052_s26  ;;  %7292 = vpow2.f32 %v4086_v12  ;;  %v9551_v56 = vpop.eup %7286  ;;  %v4045_v36 = vpop.permute.xlu0 %4044 }
 0x80b   :  { %7294 = vrcp.f32 %v4099_v2  ;;  %v4070_v47 = vsub.f32 %v9350_v22, %v4045_v36 }
 0x80c   :  { %7296 = vrcp.f32 %v4102_v28  ;;  %v7222_v28 = vld [vmem:[#allocation40] ss:$0 sm:$0xff] }
 0x80d   :  { %v4092_v45 = vmul.f32 1.442695, %v4070_v47 }
 0x80e   :  { %v9553_v11 = vpop.eup %7288 }
 0x80f   :  { %4152 = vrot.lane.b32.xlu1 %v9553_v11, %s8052_s26  ;;  %4148 = vrot.lane.b32.xlu2 %v9551_v56, %s8052_s26  ;;  %v7291_v61 = vpop.eup %7290 }
 0x810   :  { %v7293_v18 = vpop.eup %7292  ;;  %v4105_v58 = vadd.f32 1.0, %v7291_v61  ;;  %v4122_v61 = vsub.f32 1.0, %v9551_v56 }
 0x811   :  { %v4103_v0 = vadd.f32 1.0, %v7293_v18  ;;  %v9561_v15 = vpop.eup %7294 }
 0x812   :  { %5375 = vrot.lane.b32.xlu0 %v9482_v50, %s8025_s1  ;;  %v9563_v35 = vpop.eup %7296  ;;  %7298 = vrcp.f32 %v4105_v58  ;;  %s9761_s1 = sld [smem:[#allocation80_spill]] }
 0x813   :  { %7300 = vrcp.f32 %v4103_v0 }
 0x814   :  { %7302 = vpow2.f32 %v4092_v45  ;;  %v7118_v45 = vld [vmem:[%s8268_s30 + $0x8] sm:$0xff] }
 0x817   :  { %4156 = vrot.lane.b32.xlu1 %v9563_v35, %s8052_s26  ;;  %4150 = vrot.lane.b32.xlu2 %v9561_v15, %s8052_s26 }
 0x818   :  { %v9571_v50 = vpop.eup %7298  ;;  %v5242_v7 = vld [vmem:[%s9761_s1 + $0x30] sm:$0x3]  ;;  %v7116_v60 = vld [vmem:[%s9761_s1 + $0x28] sm:$0xff]  ;;  %v7115_v1 = vld [vmem:[%s9761_s1 + $0x20] sm:$0xff] }
 0x819   :  { %v9573_v16 = vpop.eup %7300  ;;  %v5272_v27 = vunpack.c.l.b16 %v5242_v7  ;;  %v7114_v42 = vld [vmem:[%s9761_s1 + $0x18] sm:$0xff]  ;;  %v7113_v6 = vld [vmem:[%s9761_s1 + $0x10] sm:$0xff]  ;;  %v7112_v4 = vld [vmem:[%s9761_s1 + $0x8] sm:$0xff] }
 0x81a   :  { %5387 = vrot.lane.b32.xlu0 %v9499_v38, %s8016_s22  ;;  %v5070_v38 = vld [vmem:[%s9760_s27 + $0x30] sm:$0x3]  ;;  %v7111_v32 = vld [vmem:[%s9761_s1] sm:$0xff]  ;;  %v7303_v25 = vpop.eup %7302  ;;  %s8053_s22 = smov 26  }
 0x81b   :  { %v5100_v34 = vunpack.c.l.b16 %v5070_v38  ;;  %v4106_v8 = vadd.f32 1.0, %v7303_v25 }
 0x81d   :  { %v5107_v43 = vpack.c.b16 %v5100_v34, %v5100_v34  ;;  %7304 = vrcp.f32 %v4106_v8  ;;  %v7223_v8 = vld [vmem:[#allocation38] ss:$0 sm:$0xff] }
 0x81f   :  { %4158 = vrot.lane.b32.xlu1 %v9573_v16, %s8052_s26  ;;  %4162 = vrot.lane.b32.xlu2 %v9571_v50, %s8052_s26  ;;  %v5118_v49 = vsel %vm4723_vm5, %v5107_v43, 0 }
 0x820   :  { %5121 = vmatpush.bf16.msra.mxu0 %v5118_v49  ;;  %v4125_v49 = vsub.f32 1.0, %v9530_v46 }
 0x822   :  { %5405 = vrot.lane.b32.xlu0 %v9504_v63, %s8046_s3  ;;  %v5279_v63 = vpack.c.b16 %v5272_v27, %v5272_v27 }
 0x823   :  { %v9608_v48 = vpop.eup %7304 }
 0x824   :  { %5122 = vmatpush.bf16.msra.mxu0 %v7102_v59  ;;  %v5290_v62 = vsel %vm4723_vm5, %v5279_v63, 0  ;;  %vm5345_vm5 = vcmask 1040384  }
 0x825   :  { %5293 = vmatpush.bf16.msrb.mxu1 %v5290_v62 }
 0x827   :  { %5393 = vrot.lane.b32.xlu2 %v9493_v19, %s8045_s11  ;;  %v7099_v19 = vld [vmem:[%s9760_s27 + $0x10] sm:$0xff] }
 0x828   :  { %5123 = vmatpush.bf16.msra.mxu0 %v7101_v54 }
 0x829   :  { %5294 = vmatpush.bf16.msrb.mxu1 %v7116_v60  ;;  %v4124_v60 = vsub.f32 1.0, %v9553_v11 }
 0x82c   :  { %5124 = vmatpush.bf16.msra.mxu0 %v7100_v57  ;;  %v4123_v57 = vsub.f32 1.0, %v9561_v15  ;;  %v4131_v15 = vsub.f32 1.0, %v9547_v24 }
 0x82d   :  { %5295 = vmatpush.bf16.msrb.mxu1 %v7115_v1 }
 0x830   :  { %5125 = vmatpush.bf16.msra.mxu0 %v7099_v19 }
 0x831   :  { %5296 = vmatpush.bf16.msrb.mxu1 %v7114_v42 }
 0x834   :  { %5126 = vmatpush.bf16.msra.mxu0 %v7098_v33 }
 0x835   :  { %5297 = vmatpush.bf16.msrb.mxu1 %v7113_v6  ;;  %v7119_v6 = vld [vmem:[%s8268_s30 + $0x10] sm:$0xff] }
 0x838   :  { %5127 = vmatpush.bf16.msra.mxu0 %v7097_v40  ;;  %v5315_v40 = vld [vmem:[%s8268_s30 + $0x18] sm:$0x1] }
 0x839   :  { %5298 = vmatpush.bf16.msrb.mxu1 %v7112_v4  ;;  %v5333_v42 = vunpack.c.l.b16 %v5315_v40 }
 0x83b   :  { %v5337_v47 = vpack.c.b16 %v5333_v42, %v5333_v42 }
 0x83d   :  { %5299 = vmatpush.bf16.msrb.mxu1 %v7111_v32  ;;  %v7117_v32 = vld [vmem:[%s8268_s30] sm:$0xff]  ;;  %s8059_s30 = smov 32  }
 0x83e   :  { %v4145_v53 = vpop.permute.xlu2 %4144 }
 0x83f   :  { %v4180_v30 = vsel %vm2175_vm6, %v4145_v53, %v4120_v3  ;;  %v4126_v53 = vsub.f32 1.0, %v9563_v35 }
 0x840   :  { %5411 = vrot.lane.b32.xlu2 %v4180_v30, %s8047_s10 }
 0x849   :  { %4741 = vmax.xlane.f32.xlu1 %v4740_v23  ;;  %v5347_v23 = vsel %vm5345_vm5, %v5337_v47, 0  ;;  %vm5438_vm5 = vcmask 212160  }
 0x84a   :  { %5353 = vmatpush.bf16.msra.mxu2 %v5347_v23 }
 0x84d   :  { %v5024_v26 = vpop.f32.mrf.mxu1 }
 0x84e   :  { %v5025_v21 = vadd.f32 %v7221_v55, %v5024_v26  ;;  %5354 = vmatpush.bf16.msra.mxu2 %v7119_v6 }
 0x852   :  { %5355 = vmatpush.bf16.msra.mxu2 %v7118_v45  ;;  %v8064_v45 = vmov 0.0  }
 0x855   :  { %v5026_v29 = vpop.f32.mrf.mxu1 }
 0x856   :  { %5356 = vmatpush.bf16.msra.mxu2 %v7117_v32 }
 0x859   :  { %v5037_v22 = vpop.f32.mrf.mxu2 }
 0x85a   :  { %v5038_v39 = vadd.f32 %v5037_v22, %v5025_v21  ;;  %v5050_v5 = vpop.f32.mrf.mxu3  ;;  %v4129_v21 = vsub.f32 1.0, %v9571_v50 }
 0x85c   :  { %v5051_v17 = vadd.f32 %v5050_v5, %v5038_v39 }
 0x85e   :  { %vm5054_vm12 = vcmp.gt.f32.partialorder %v5051_v17, 0.0  ;;  %v5055_v44 = vmul.f32 0.2, %v5051_v17 }
 0x860   :  { %v5056_v41 = vsel %vm5054_vm12, %v5051_v17, %v5055_v44  ;;  %vm5341_vm12 = vcmask 408576  }
 0x861   :  { %v5057_v9 = vpack.c.bf16 %v5056_v41, %v5056_v41  ;;  %v4147_v12 = vpop.permute.xlu2 %4146  ;;  %v5039_v10 = vpop.f32.mrf.mxu2 }
 0x862   :  { %4164 = vrot.lane.b32.xlu1 %v9608_v48, %s8052_s26  ;;  %v5052_v2 = vpop.f32.mrf.mxu3  ;;  %v7224_v10 = vld [vmem:[#allocation41] ss:$0 sm:$0xff] }
 0x863   :  { %6748 = vmatmul.msk.bf16.vlgmr.msra.gmra.mxu0 %vm4719_vm4, %v5057_v9 }
 0x869   :  { %v4149_v18 = vpop.permute.xlu2 %4148 }
 0x86a   :  { %5369 = vrot.lane.b32.xlu1 %v9490_v13, %s8043_s0  ;;  %v4182_v58 = vsel %vm2175_vm6, %v4149_v18, %v4122_v61  ;;  %v5222_v0 = vpop.f32.mrf.mxu3 }
 0x86b   :  { %5423 = vrot.lane.b32.xlu0 %v4182_v58, %s8049_s5  ;;  %v5223_v38 = vadd.f32 %v7222_v28, %v5222_v0 }
 0x86c   :  { %v4155_v34 = vpop.permute.xlu0 %4154 }
 0x86d   :  { %vm5226_vm10 = vcmp.gt.f32.partialorder %v5223_v38, 0.0  ;;  %v5227_v43 = vmul.f32 0.2, %v5223_v38  ;;  %v4185_v56 = vsel %vm2175_vm6, %v4155_v34, %v4125_v49 }
 0x86f   :  { %v5228_v59 = vsel %vm5226_vm10, %v5223_v38, %v5227_v43  ;;  %vm5432_vm10 = vcmask 195760   ;;  %v4128_v43 = vsub.f32 1.0, %v9537_v14 }
 0x870   :  { %v5229_v54 = vpack.c.bf16 %v5228_v59, %v5228_v59 }
 0x871   :  { %v4151_v7 = vpop.permute.xlu2 %4150 }
 0x872   :  { %5381 = vrot.lane.b32.xlu1 %v9515_v51, %s8044_s12  ;;  %v4183_v13 = vsel %vm2175_vm6, %v4151_v7, %v4123_v57  ;;  %v5224_v27 = vpop.f32.mrf.mxu3  ;;  %6805 = vmatmul.msk.bf16.vlgmr.msrb.gmra.mxu1 %vm4719_vm4, %v5229_v54  ;;  %v4121_v51 = vsub.f32 1.0, %v9543_v20  ;;  %v4127_v20 = vsub.f32 1.0, %v9573_v16  ;;  %vm5414_vm4 = vcmask 146560  }
 0x873   :  { %5429 = vrot.lane.b32.xlu2 %v4183_v13, %s8050_s18  ;;  %5441 = vrot.lane.b32.xlu0 %v4185_v56, %s8053_s22 }
 0x874   :  { %v9626_v46 = vpop.permute.xlu0 %4160  ;;  %v4181_v3 = vsel %vm2175_vm6, %v4147_v12, %v4121_v51 }
 0x875   :  { %v4188_v54 = vsel %vm2175_vm6, %v9626_v46, %v4128_v43 }
 0x879   :  { %v4163_v55 = vpop.permute.xlu2 %4162 }
 0x87a   :  { %5399 = vrot.lane.b32.xlu1 %v9524_v37, %s8037_s24  ;;  %s8054_s24 = smov 24   ;;  %v4189_v22 = vsel %vm2175_vm6, %v4163_v55, %v4129_v21 }
 0x87c   :  { %v4167_v63 = vpop.permute.xlu0 %4166 }
 0x87d   :  { %v9632_v19 = vsel %vm2175_vm6, %v4167_v63, %v4131_v15 }
 0x881   :  { %v4153_v62 = vpop.permute.xlu1 %4152  ;;  %v5394_v50 = vpop.permute.xlu2 %5393 }
 0x882   :  { %5417 = vrot.lane.b32.xlu1 %v4181_v3, %s8048_s15  ;;  %v4184_v37 = vsel %vm2175_vm6, %v4153_v62, %v4124_v60 }
 0x884   :  { %v5376_v25 = vpop.permute.xlu0 %5375 }
 0x889   :  { %v4157_v30 = vpop.permute.xlu1 %4156 }
 0x88a   :  { %5435 = vrot.lane.b32.xlu1 %v4184_v37, %s8054_s24  ;;  %v4186_v24 = vsel %vm2175_vm6, %v4157_v30, %v4126_v53  ;;  %v7225_v37 = vld [vmem:[#allocation2] ss:$0 sm:$0xff] }
 0x88b   :  { %5447 = vrot.lane.b32.xlu2 %v4186_v24, %s8055_s28 }
 0x88c   :  { %v5388_v5 = vpop.permute.xlu0 %5387 }
 0x891   :  { %v4159_v33 = vpop.permute.xlu1 %4158 }
 0x892   :  { %v4187_v31 = vsel %vm2175_vm6, %v4159_v33, %v4127_v20 }
 0x893   :  { %5453 = vrot.lane.b32.xlu1 %v4187_v31, %s8056_s6 }
 0x894   :  { %v5406_v9 = vpop.permute.xlu0 %5405 }
 0x89a   :  { %v5412_v2 = vpop.permute.xlu2 %5411 }
 0x8bc   :  { %v4742_v11 = vpop.xlane.xlu1 %4741 }
 0x8bd   :  { %v4743_v35 = vsub.f32 %v9600_v52, %v4742_v11  ;;  %v4130_v52 = vsub.f32 1.0, %v9608_v48 }
 0x8bf   :  { %v4744_v1 = vmul.f32 1.442695, %v4743_v35 }
 0x8c1   :  { %7306 = vpow2.f32 %v4744_v1 }
 0x8c7   :  { %v9645_v36 = vpop.eup %7306 }
 0x8c8   :  { %v4746_v16 = vsel %vm571_vm1, %v9645_v36, 0.0  ;;  %vm5372_vm1 = vcmask 31760  }
 0x8c9   :  { %4747 = vadd.xlane.f32.xlu2 %v4746_v16 }
 0x8cd   :  { %v5430_v49 = vpop.permute.xlu2 %5429 }
 0x8d4   :  { %v4165_v26 = vpop.permute.xlu1 %4164 }
 0x8d5   :  { %v4190_v4 = vsel %vm2175_vm6, %v4165_v26, %v4130_v52  ;;  %vm5462_vm6 = vcmask 277760  }
 0x8d6   :  { %5471 = vrot.lane.b32.xlu1 %v4190_v4, %s8057_s29 }
 0x8dc   :  { %v5370_v29 = vpop.permute.xlu1 %5369 }
 0x8dd   :  { %5373 = vst.msk [vmem:[%s8276_s4] sm:$0xff] %vm5372_vm1, %v5370_v29  ;;  %v5424_v58 = vpop.permute.xlu0 %5423  ;;  %vm5444_vm1 = vcmask 228560  }
 0x8de   :  { %5379 = vst.msk [vmem:[%s8276_s4] sm:$0xff] %vm5378_vm0, %v5376_v25  ;;  %vm5450_vm0 = vcmask 244960  }
 0x8e0   :  { %v5129_v39 = vpop.f32.mrf.mxu0 }
 0x8e1   :  { %5465 = vrot.lane.b32.xlu2 %v4189_v22, %s8058_s2  ;;  %v9658_v17 = vadd.f32 %v7223_v8, %v5129_v39 }
 0x8e3   :  { %v5133_v44 = vsel %vm4317_vm2, %v9658_v17, -inf }
 0x8e4   :  { %v5382_v41 = vpop.permute.xlu1 %5381  ;;  %5134 = vmax.xlane.f32.xlu0 %v5133_v44 }
 0x8e5   :  { %5385 = vst.msk [vmem:[%s8276_s4] sm:$0xff] %vm5384_vm13, %v5382_v41  ;;  %v5442_v56 = vpop.permute.xlu0 %5441  ;;  %v5448_v14 = vpop.permute.xlu2 %5447  ;;  %vm5456_vm13 = vcmask 261360  }
 0x8e6   :  { %5391 = vst.msk [vmem:[%s8276_s4] sm:$0xff] %vm5390_vm14, %v5388_v5  ;;  %vm5468_vm14 = vcmask 294160  }
 0x8e7   :  { %5397 = vst.msk [vmem:[%s8276_s4] sm:$0xff] %vm5396_vm15, %v5394_v50  ;;  %vm5474_vm15 = vcmask 310560  }
 0x8e8   :  { %v5131_v48 = vpop.f32.mrf.mxu0 }
 0x8ec   :  { %v5400_v12 = vpop.permute.xlu1 %5399 }
 0x8ed   :  { %5403 = vst.msk [vmem:[%s8276_s4] sm:$0xff] %vm5402_vm3, %v5400_v12  ;;  %vm5486_vm3 = vcmask 392512  }
 0x8ee   :  { %5409 = vst.msk [vmem:[%s8276_s4] sm:$0xff] %vm5408_vm8, %v5406_v9  ;;  %vm5492_vm8 = vcmask 490880  }
 0x8ef   :  { %v5301_v28 = vpop.f32.mrf.mxu1  ;;  %5415 = vst.msk [vmem:[%s8276_s4] sm:$0xff] %vm5414_vm4, %v5412_v2  ;;  %vm5498_vm4 = vcmask 499168  }
 0x8f0   :  { %v5302_v61 = vadd.f32 %v7224_v10, %v5301_v28 }
 0x8f2   :  { %vm5305_vm7 = vcmp.gt.f32.partialorder %v5302_v61, 0.0  ;;  %v5306_v18 = vmul.f32 0.01, %v5302_v61 }
 0x8f4   :  { %v5307_v0 = vsel %vm5305_vm7, %v5302_v61, %v5306_v18  ;;  %v5418_v38 = vpop.permute.xlu1 %5417  ;;  %vm5500_vm7 = vcmask 1048040  }
 0x8f5   :  { %v5308_v34 = vpack.c.bf16 %v5307_v0, %v5307_v0  ;;  %5421 = vst.msk [vmem:[%s8276_s4] sm:$0xff] %vm5420_vm9, %v5418_v38 }
 0x8f6   :  { %5427 = vst.msk [vmem:[%s8276_s4] sm:$0xff] %vm5426_vm11, %v5424_v58 }
 0x8f7   :  { %v5303_v59 = vpop.f32.mrf.mxu1  ;;  %6818 = vmatmul.msk.bf16.vlgmr.msra.gmra.mxu2 %vm5341_vm12, %v5308_v34  ;;  %5433 = vst.msk [vmem:[%s8276_s4] sm:$0xff] %vm5432_vm10, %v5430_v49 }
 0x8f8   :  { %5459 = vrot.lane.b32.xlu0 %v4188_v54, %s8059_s30 }
 0x8fc   :  { %v5436_v57 = vpop.permute.xlu1 %5435 }
 0x8fd   :  { %5439 = vst.msk [vmem:[%s8276_s4] sm:$0xff] %vm5438_vm5, %v5436_v57 }
 0x8fe   :  { %5445 = vst.msk [vmem:[%s8276_s4] sm:$0xff] %vm5444_vm1, %v5442_v56 }
 0x8ff   :  { %5451 = vst.msk [vmem:[%s8276_s4] sm:$0xff] %vm5450_vm0, %v5448_v14 }
 0x905   :  { %v5454_v7 = vpop.permute.xlu1 %5453 }
 0x906   :  { %5457 = vst.msk [vmem:[%s8276_s4] sm:$0xff] %vm5456_vm13, %v5454_v7 }
 0x93c   :  { %v4748_v13 = vpop.xlane.xlu2 %4747 }
 0x93d   :  { %7308 = vrcp.f32 %v4748_v13 }
 0x943   :  { %v7309_v27 = vpop.eup %7308 }
 0x944   :  { %v4750_v46 = vmul.f32 %v7309_v27, %v9645_v36  ;;  %v5466_v53 = vpop.permute.xlu2 %5465 }
 0x946   :  { %5483 = vrot.lane.b32.xlu2 %v4750_v46, %s8060_s19 }
 0x948   :  { %v5472_v30 = vpop.permute.xlu1 %5471 }
 0x957   :  { %v5135_v15 = vpop.xlane.xlu0 %5134 }
 0x958   :  { %v5136_v63 = vsub.f32 %v9658_v17, %v5135_v15 }
 0x95a   :  { %v5137_v51 = vmul.f32 1.442695, %v5136_v63 }
 0x95c   :  { %7310 = vpow2.f32 %v5137_v51 }
 0x962   :  { %v7311_v62 = vpop.eup %7310 }
 0x963   :  { %v5139_v3 = vsel %vm4317_vm2, %v7311_v62, 0.0  ;;  %vm5480_vm2 = vcmask 326960  }
 0x964   :  { %5140 = vadd.xlane.f32.xlu0 %v5139_v3 }
 0x96a   :  { %v5460_v60 = vpop.permute.xlu0 %5459 }
 0x96b   :  { %5463 = vst.msk [vmem:[%s8276_s4] sm:$0xff] %vm5462_vm6, %v5460_v60 }
 0x96c   :  { %5469 = vst.msk [vmem:[%s8276_s4] sm:$0xff] %vm5468_vm14, %v5466_v53 }
 0x96d   :  { %5475 = vst.msk [vmem:[%s8276_s4] sm:$0xff] %vm5474_vm15, %v5472_v30 }
 0x978   :  { %5477 = vrot.lane.b32.xlu0 %v9632_v19, %s8061_s25 }
 0x97a   :  { %v5358_v24 = vpop.f32.mrf.mxu2 }
 0x97b   :  { %v5359_v20 = vadd.f32 %v7225_v37, %v5358_v24 }
 0x97d   :  { %v5362_v33 = vsub.f32 0.0, %v5359_v20 }
 0x97f   :  { %v5363_v31 = vmul.f32 1.442695, %v5362_v33 }
 0x981   :  { %7312 = vpow2.f32 %v5363_v31 }
 0x982   :  { %v5360_v11 = vpop.f32.mrf.mxu2 }
 0x987   :  { %v7313_v35 = vpop.eup %7312 }
 0x988   :  { %v5365_v1 = vadd.f32 1.0, %v7313_v35 }
 0x98a   :  { %7314 = vrcp.f32 %v5365_v1 }
 0x990   :  { %v7315_v40 = vpop.eup %7314 }
 0x991   :  { %5495 = vrot.lane.b32.xlu0 %v7315_v40, %s8062_s9 }
 0x9a0   :  { %v5484_v47 = vpop.permute.xlu2 %5483 }
 0x9d7   :  { %v5141_v36 = vpop.xlane.xlu0 %5140 }
 0x9d8   :  { %7316 = vrcp.f32 %v5141_v36 }
 0x9de   :  { %v7317_v42 = vpop.eup %7316 }
 0x9df   :  { %v5143_v19 = vmul.f32 %v7317_v42, %v7311_v62 }
 0x9e1   :  { %5489 = vrot.lane.b32.xlu1 %v5143_v19, %s8063_s7 }
 0x9ea   :  { %v5478_v16 = vpop.permute.xlu0 %5477 }
 0x9eb   :  { %5481 = vst.msk [vmem:[%s8276_s4] sm:$0xff] %vm5480_vm2, %v5478_v16 }
 0x9ec   :  { %5487 = vst.msk [vmem:[%s8276_s4] sm:$0xff] %vm5486_vm3, %v5484_v47 }
 0xa03   :  { %v5496_v6 = vpop.permute.xlu0 %5495 }
 0xa53   :  { %v5490_v23 = vpop.permute.xlu1 %5489 }
 0xa54   :  { %5493 = vst.msk [vmem:[%s8276_s4] sm:$0xff] %vm5492_vm8, %v5490_v23 }
 0xa55   :  { %5499 = vst.msk [vmem:[%s8276_s4] sm:$0xff] %vm5498_vm4, %v5496_v6 }
 0xa56   :  { %5501 = vst.msk [vmem:[%s8276_s4] sm:$0xff] %vm5500_vm7, %v8064_v45 }
 0xa57   :  { %5506 = vsyncpa [#allocation4], 1 }
 0xa58   :  { %5507 = vsyncpa [#allocation6], 1 }
 0xa59   :  { %5508 = vsyncpa [#allocation9], 1 }
 0xa5a   :  { %5509 = vsyncpa [#allocation12], 1 }
 0xa5b   :  { %5510 = vsyncpa [#allocation15], 1 }
 0xa5c   :  { %5511 = vsyncpa [#allocation18], 1 }
 0xa5d   :  { %5512 = vsyncpa [#allocation21], 1 }
 0xa5e   :  { %5513 = vsyncpa [#allocation24], 1 }
 0xa5f   :  { %5514 = vsyncpa [#allocation27], 1 }
 0xa60   :  { %5515 = vsyncpa [#allocation30], 1 }
 0xa61   :  { %5516 = vsyncpa [#allocation33], 1 }
 0xa62   :  { %5517 = vsyncpa [#allocation36], 1 }
 0xa63   :  { %5518 = vsyncpa [#allocation39], 1 }
 0xa64   :  { %5519 = vsyncpa [#allocation42], 1 }

</bundles_post_ra>
